<compile_context>
chip_gen: v7x
topology: tpu7x:2x2x1
jax: 0.10.0
libtpu: 0.0.40
codegen_flags: <defaults>
</compile_context>

<pallas_src>
import functools

import jax
import jax.numpy as jnp
from jax.experimental import pallas as pl
from jax.experimental.pallas import tpu as pltpu


def _fused_kernel(x_ref, m_ref, w_ref, o_ref, *, W, layers):
    """Whole network in one kernel.  Activations are (C, H*W) f32.

    x_ref: (8, HW)    input image, channels 3..7 zero-padded.
    m_ref: (9, HW)    per-tap source-validity masks (row 4 / centre unused).
    w_ref: (720, 32)  packed tap weights + biases (see forward()).
    o_ref: (16, HW)   final sigmoid output.
    """
    HW = x_ref.shape[-1]
    masks = m_ref[...]                                          # (9, HW) f32
    # Hoist the per-tap boundary masks once; reused by all 4 layers.
    m = [jax.lax.slice_in_dim(masks, t, t + 1, axis=0) for t in range(9)]

    a = x_ref[...]                                              # (8, HW) f32
    for wbase, bbase, cin, cout, act in layers:
        acc = jnp.zeros((cout, HW), jnp.float32)
        for ky in range(3):
            for kx in range(3):
                t = ky * 3 + kx
                d = (ky - 1) * W + (kx - 1)                     # flat source offset
                w_t = w_ref[wbase + t * cout:wbase + (t + 1) * cout, 0:cin]
                if d == 0:
                    # Centre tap: no shift, mask is all-ones.
                    contrib = jnp.dot(w_t, a, preferred_element_type=jnp.float32)
                elif cin <= cout:
                    # Mask the (smaller) input side: tap[c,p] = a[c, p+d] for
                    # in-bounds source pixels, 0 elsewhere (row & column wrap
                    # of the circular roll killed by the mask).
                    tap = pltpu.roll(a, (-d) % HW, 1) * m[t]
                    contrib = jnp.dot(w_t, tap, preferred_element_type=jnp.float32)
                else:
                    # Mask the (smaller) output side — mathematically identical.
                    tap = pltpu.roll(a, (-d) % HW, 1)
                    contrib = jnp.dot(w_t, tap,
                                      preferred_element_type=jnp.float32) * m[t]
                acc = acc + contrib
        acc = acc + w_ref[bbase:bbase + cout, 0:1]              # bias (cout, 1)
        a = jnp.maximum(acc, 0.0) if act == "relu" else jax.nn.sigmoid(acc)
    o_ref[...] = a


def _tap_weight_rows(wt, cin_pad, cout_pad=None):
    """ConvTranspose2d weight (Cin, Cout, 3, 3) -> (9*Cout_pad, Cin_pad) matrix
    of the equivalent 'same' 3x3 conv (spatial flip + channel swap), tap-major
    rows: rows [t*Cout_pad:(t+1)*Cout_pad] hold W_tap for tap t = ky*3+kx."""
    cin, cout = wt.shape[0], wt.shape[1]
    if cout_pad is None:
        cout_pad = cout
    w_conv = jnp.transpose(wt[:, :, ::-1, ::-1], (1, 0, 2, 3))  # (Cout, Cin, 3, 3)
    w_conv = jnp.pad(w_conv, ((0, cout_pad - cout), (0, cin_pad - cin),
                              (0, 0), (0, 0)))
    return jnp.transpose(w_conv, (2, 3, 0, 1)).reshape(9 * cout_pad, cin_pad)


def init_params(key):
    """Deterministic params matching the PyTorch module's shapes."""
    def tconv(key, cin, cout, k=3):
        kw, kb = jax.random.split(key)
        bound = 1.0 / (cin * k * k) ** 0.5
        w = jax.random.uniform(kw, (cin, cout, k, k), jnp.float32, -bound, bound)
        b = jax.random.uniform(kb, (cout,), jnp.float32, -bound, bound)
        return w, b

    k1, k2, k3 = jax.random.split(key, 3)
    w1, b1 = tconv(k1, 3, 32)
    w2, b2 = tconv(k2, 32, 16)
    w3, b3 = tconv(k3, 16, 3)
    # conv_4 exists in the reference module but is never used in forward().
    return {"w1": w1, "b1": b1, "w2": w2, "b2": b2, "w3": w3, "b3": b3}


def forward(x_nchw, params):
    N, C, H, W = x_nchw.shape
    assert N == 1 and C == 3
    HW = H * W
    assert HW % 128 == 0  # lane-dense flattened-spatial layout

    # --- input: (3, HW), channel-padded to a whole sublane tile ------------
    x = x_nchw[0].reshape(C, HW).astype(jnp.float32)
    x_pad = jnp.pad(x, ((0, 8 - C), (0, 0)))                    # (8, HW)

    # --- per-tap source-validity masks (shared by all layers) --------------
    row = jnp.arange(HW, dtype=jnp.int32) // W
    col = jnp.arange(HW, dtype=jnp.int32) % W
    mask_rows = []
    for ky in range(3):
        for kx in range(3):
            dy, dx = ky - 1, kx - 1
            valid = ((row + dy >= 0) & (row + dy < H) &
                     (col + dx >= 0) & (col + dx < W))
            mask_rows.append(valid.astype(jnp.float32))
    masks = jnp.stack(mask_rows, axis=0)                         # (9, HW)

    # --- pack every weight / bias into ONE sublane-aligned slab ------------
    w1t = _tap_weight_rows(params["w1"], cin_pad=8)               # (288, 8)  3->8 in, 32 out
    w2t = _tap_weight_rows(params["w2"], cin_pad=32)              # (144, 32) 32 in, 16 out
    w3t = _tap_weight_rows(params["w3"], cin_pad=16, cout_pad=8)  # (72, 16)  16 in, 3->8 out
    # TODO(synk): v7 = conv_2(v6) is shape-invalid in the reference PyTorch
    # (3 channels fed to a 32-in-channel conv); emulate with conv_2 restricted
    # to its first 3 input channels (== zero-padding v6's channels 3 -> 32).
    w4t = _tap_weight_rows(params["w2"][:3], cin_pad=8)           # (144, 8)
    b1 = params["b1"][:, None]                                    # (32, 1)
    b2 = params["b2"][:, None]                                    # (16, 1)
    b3 = jnp.pad(params["b3"], (0, 8 - params["b3"].shape[0]))[:, None]  # (8, 1)
    b4 = params["b2"][:, None]                                    # (16, 1)

    row_blocks = [w1t, w2t, w3t, w4t, b1, b2, b3, b4]
    width = max(blk.shape[1] for blk in row_blocks)               # 32
    offs, off = [], 0
    for blk in row_blocks:
        offs.append(off)
        off += blk.shape[0]
    wpack = jnp.concatenate(
        [jnp.pad(blk, ((0, 0), (0, width - blk.shape[1]))) for blk in row_blocks],
        axis=0)                                                   # (720, 32)

    # (weight row base, bias row base, Cin_pad, Cout_pad, activation)
    layers = (
        (offs[0], offs[4], 8, 32, "relu"),      # conv_1 + relu
        (offs[1], offs[5], 32, 16, "relu"),     # conv_2 + relu
        (offs[2], offs[6], 16, 8, "sigmoid"),   # conv_3 + sigmoid (out 3 -> 8)
        (offs[3], offs[7], 8, 16, "sigmoid"),   # conv_2 on v6 + sigmoid
    )

    kernel = functools.partial(_fused_kernel, W=W, layers=layers)
    out = pl.pallas_call(
        kernel,
        out_shape=jax.ShapeDtypeStruct((16, HW), jnp.float32),
        in_specs=[pl.BlockSpec(memory_space=pltpu.MemorySpace.VMEM)] * 3,
        out_specs=pl.BlockSpec(memory_space=pltpu.MemorySpace.VMEM),
    )(x_pad, masks, wpack)
    return out.reshape(16, H, W)[None]                            # (1, 16, H, W)


def reference_forward(x_nchw, params):
    """Pure-JAX reference for checking the Pallas kernel."""
    def tconv(x, wt, b):
        w_conv = jnp.transpose(wt[:, :, ::-1, ::-1], (1, 0, 2, 3))   # (Cout,Cin,3,3)
        y = jax.lax.conv_general_dilated(
            x, w_conv, window_strides=(1, 1), padding=((1, 1), (1, 1)),
            dimension_numbers=("NCHW", "OIHW", "NCHW"),
            precision=jax.lax.Precision.HIGHEST)
        return y + b[None, :, None, None]

    v2 = jax.nn.relu(tconv(x_nchw, params["w1"], params["b1"]))
    v4 = jax.nn.relu(tconv(v2, params["w2"], params["b2"]))
    v6 = jax.nn.sigmoid(tconv(v4, params["w3"], params["b3"]))
    v6p = jnp.pad(v6, ((0, 0), (0, params["w2"].shape[0] - v6.shape[1]),
                       (0, 0), (0, 0)))
    v8 = jax.nn.sigmoid(tconv(v6p, params["w2"], params["b2"]))
    return v8


if __name__ == "__main__":
    key = jax.random.PRNGKey(0)
    kx, kp = jax.random.split(key)

    # Module's input shape: x1 = torch.randn(1, 3, 32, 32)
    x1 = jax.random.normal(kx, (1, 3, 32, 32), jnp.float32)
    params = init_params(kp)

    out = jax.jit(forward)(x1, params)
    out = jax.block_until_ready(out)

    assert out.shape == (1, 16, 32, 32), out.shape
    assert bool(jnp.all(jnp.isfinite(out)))

    ref = reference_forward(x1, params)
    assert bool(jnp.allclose(out, ref, rtol=2e-3, atol=2e-3)), \
        float(jnp.max(jnp.abs(out - ref)))

    print("KERNEL_OK")
</pallas_src>

<mosaic_0001>
module attributes {stable_mosaic.version = 11 : i64} {
  func.func @_fused_kernel(%arg0: memref<8x1024xf32, #tpu.memory_space<vmem>>, %arg1: memref<9x1024xf32, #tpu.memory_space<vmem>>, %arg2: memref<720x32xf32, #tpu.memory_space<vmem>>, %arg3: memref<16x1024xf32, #tpu.memory_space<vmem>>) attributes {dimension_semantics = [], scalar_prefetch = 0 : i64, scratch_operands = 0 : i64, tpu.core_type = #tpu.core_type<tc>} {
    %c0 = arith.constant 0 : index
    %c0_0 = arith.constant 0 : index
    %0 = vector.load %arg1[%c0, %c0_0] : memref<9x1024xf32, #tpu.memory_space<vmem>>, vector<9x1024xf32>
    %1 = vector.extract_strided_slice %0 {offsets = [0, 0], sizes = [1, 1024], strides = [1, 1]} : vector<9x1024xf32> to vector<1x1024xf32>
    %2 = vector.extract_strided_slice %0 {offsets = [1, 0], sizes = [1, 1024], strides = [1, 1]} : vector<9x1024xf32> to vector<1x1024xf32>
    %3 = vector.extract_strided_slice %0 {offsets = [2, 0], sizes = [1, 1024], strides = [1, 1]} : vector<9x1024xf32> to vector<1x1024xf32>
    %4 = vector.extract_strided_slice %0 {offsets = [3, 0], sizes = [1, 1024], strides = [1, 1]} : vector<9x1024xf32> to vector<1x1024xf32>
    %5 = vector.extract_strided_slice %0 {offsets = [5, 0], sizes = [1, 1024], strides = [1, 1]} : vector<9x1024xf32> to vector<1x1024xf32>
    %6 = vector.extract_strided_slice %0 {offsets = [6, 0], sizes = [1, 1024], strides = [1, 1]} : vector<9x1024xf32> to vector<1x1024xf32>
    %7 = vector.extract_strided_slice %0 {offsets = [7, 0], sizes = [1, 1024], strides = [1, 1]} : vector<9x1024xf32> to vector<1x1024xf32>
    %8 = vector.extract_strided_slice %0 {offsets = [8, 0], sizes = [1, 1024], strides = [1, 1]} : vector<9x1024xf32> to vector<1x1024xf32>
    %c0_1 = arith.constant 0 : index
    %c0_2 = arith.constant 0 : index
    %9 = vector.load %arg0[%c0_1, %c0_2] : memref<8x1024xf32, #tpu.memory_space<vmem>>, vector<8x1024xf32>
    %cst = arith.constant 0.000000e+00 : f32
    %10 = vector.broadcast %cst : f32 to vector<32x1024xf32>
    %c0_3 = arith.constant 0 : index
    %c0_4 = arith.constant 0 : index
    %11 = vector.load %arg2[%c0_3, %c0_4] : memref<720x32xf32, #tpu.memory_space<vmem>>, vector<32x8xf32>
    %c33_i32 = arith.constant 33 : i32
    %12 = tpu.dynamic_rotate %9 by %c33_i32 dim 1 : vector<8x1024xf32>, i32 -> vector<8x1024xf32>
    %13 = vector.broadcast %1 : vector<1x1024xf32> to vector<8x1024xf32>
    %14 = arith.mulf %12, %13 : vector<8x1024xf32>
    %cst_5 = arith.constant dense<0.000000e+00> : vector<32x1024xf32>
    %15 = tpu.matmul %11, %14, %cst_5 {dimension_numbers = #tpu.dot_dimension_numbers<[1], [0], [0], [1], [0, 0, 1, 1], [], []>} : vector<32x8xf32>, vector<8x1024xf32>, vector<32x1024xf32> -> vector<32x1024xf32>
    %16 = arith.addf %10, %15 : vector<32x1024xf32>
    %c32 = arith.constant 32 : index
    %c0_6 = arith.constant 0 : index
    %17 = vector.load %arg2[%c32, %c0_6] : memref<720x32xf32, #tpu.memory_space<vmem>>, vector<32x8xf32>
    %c32_i32 = arith.constant 32 : i32
    %18 = tpu.dynamic_rotate %9 by %c32_i32 dim 1 : vector<8x1024xf32>, i32 -> vector<8x1024xf32>
    %19 = vector.broadcast %2 : vector<1x1024xf32> to vector<8x1024xf32>
    %20 = arith.mulf %18, %19 : vector<8x1024xf32>
    %cst_7 = arith.constant dense<0.000000e+00> : vector<32x1024xf32>
    %21 = tpu.matmul %17, %20, %cst_7 {dimension_numbers = #tpu.dot_dimension_numbers<[1], [0], [0], [1], [0, 0, 1, 1], [], []>} : vector<32x8xf32>, vector<8x1024xf32>, vector<32x1024xf32> -> vector<32x1024xf32>
    %22 = arith.addf %16, %21 : vector<32x1024xf32>
    %c64 = arith.constant 64 : index
    %c0_8 = arith.constant 0 : index
    %23 = vector.load %arg2[%c64, %c0_8] : memref<720x32xf32, #tpu.memory_space<vmem>>, vector<32x8xf32>
    %c31_i32 = arith.constant 31 : i32
    %24 = tpu.dynamic_rotate %9 by %c31_i32 dim 1 : vector<8x1024xf32>, i32 -> vector<8x1024xf32>
    %25 = vector.broadcast %3 : vector<1x1024xf32> to vector<8x1024xf32>
    %26 = arith.mulf %24, %25 : vector<8x1024xf32>
    %cst_9 = arith.constant dense<0.000000e+00> : vector<32x1024xf32>
    %27 = tpu.matmul %23, %26, %cst_9 {dimension_numbers = #tpu.dot_dimension_numbers<[1], [0], [0], [1], [0, 0, 1, 1], [], []>} : vector<32x8xf32>, vector<8x1024xf32>, vector<32x1024xf32> -> vector<32x1024xf32>
    %28 = arith.addf %22, %27 : vector<32x1024xf32>
    %c96 = arith.constant 96 : index
    %c0_10 = arith.constant 0 : index
    %29 = vector.load %arg2[%c96, %c0_10] : memref<720x32xf32, #tpu.memory_space<vmem>>, vector<32x8xf32>
    %c1_i32 = arith.constant 1 : i32
    %30 = tpu.dynamic_rotate %9 by %c1_i32 dim 1 : vector<8x1024xf32>, i32 -> vector<8x1024xf32>
    %31 = vector.broadcast %4 : vector<1x1024xf32> to vector<8x1024xf32>
    %32 = arith.mulf %30, %31 : vector<8x1024xf32>
    %cst_11 = arith.constant dense<0.000000e+00> : vector<32x1024xf32>
    %33 = tpu.matmul %29, %32, %cst_11 {dimension_numbers = #tpu.dot_dimension_numbers<[1], [0], [0], [1], [0, 0, 1, 1], [], []>} : vector<32x8xf32>, vector<8x1024xf32>, vector<32x1024xf32> -> vector<32x1024xf32>
    %34 = arith.addf %28, %33 : vector<32x1024xf32>
    %c128 = arith.constant 128 : index
    %c0_12 = arith.constant 0 : index
    %35 = vector.load %arg2[%c128, %c0_12] : memref<720x32xf32, #tpu.memory_space<vmem>>, vector<32x8xf32>
    %cst_13 = arith.constant dense<0.000000e+00> : vector<32x1024xf32>
    %36 = tpu.matmul %35, %9, %cst_13 {dimension_numbers = #tpu.dot_dimension_numbers<[1], [0], [0], [1], [0, 0, 1, 1], [], []>} : vector<32x8xf32>, vector<8x1024xf32>, vector<32x1024xf32> -> vector<32x1024xf32>
    %37 = arith.addf %34, %36 : vector<32x1024xf32>
    %c160 = arith.constant 160 : index
    %c0_14 = arith.constant 0 : index
    %38 = vector.load %arg2[%c160, %c0_14] : memref<720x32xf32, #tpu.memory_space<vmem>>, vector<32x8xf32>
    %c1023_i32 = arith.constant 1023 : i32
    %39 = tpu.dynamic_rotate %9 by %c1023_i32 dim 1 : vector<8x1024xf32>, i32 -> vector<8x1024xf32>
    %40 = vector.broadcast %5 : vector<1x1024xf32> to vector<8x1024xf32>
    %41 = arith.mulf %39, %40 : vector<8x1024xf32>
    %cst_15 = arith.constant dense<0.000000e+00> : vector<32x1024xf32>
    %42 = tpu.matmul %38, %41, %cst_15 {dimension_numbers = #tpu.dot_dimension_numbers<[1], [0], [0], [1], [0, 0, 1, 1], [], []>} : vector<32x8xf32>, vector<8x1024xf32>, vector<32x1024xf32> -> vector<32x1024xf32>
    %43 = arith.addf %37, %42 : vector<32x1024xf32>
    %c192 = arith.constant 192 : index
    %c0_16 = arith.constant 0 : index
    %44 = vector.load %arg2[%c192, %c0_16] : memref<720x32xf32, #tpu.memory_space<vmem>>, vector<32x8xf32>
    %c993_i32 = arith.constant 993 : i32
    %45 = tpu.dynamic_rotate %9 by %c993_i32 dim 1 : vector<8x1024xf32>, i32 -> vector<8x1024xf32>
    %46 = vector.broadcast %6 : vector<1x1024xf32> to vector<8x1024xf32>
    %47 = arith.mulf %45, %46 : vector<8x1024xf32>
    %cst_17 = arith.constant dense<0.000000e+00> : vector<32x1024xf32>
    %48 = tpu.matmul %44, %47, %cst_17 {dimension_numbers = #tpu.dot_dimension_numbers<[1], [0], [0], [1], [0, 0, 1, 1], [], []>} : vector<32x8xf32>, vector<8x1024xf32>, vector<32x1024xf32> -> vector<32x1024xf32>
    %49 = arith.addf %43, %48 : vector<32x1024xf32>
    %c224 = arith.constant 224 : index
    %c0_18 = arith.constant 0 : index
    %50 = vector.load %arg2[%c224, %c0_18] : memref<720x32xf32, #tpu.memory_space<vmem>>, vector<32x8xf32>
    %c992_i32 = arith.constant 992 : i32
    %51 = tpu.dynamic_rotate %9 by %c992_i32 dim 1 : vector<8x1024xf32>, i32 -> vector<8x1024xf32>
    %52 = vector.broadcast %7 : vector<1x1024xf32> to vector<8x1024xf32>
    %53 = arith.mulf %51, %52 : vector<8x1024xf32>
    %cst_19 = arith.constant dense<0.000000e+00> : vector<32x1024xf32>
    %54 = tpu.matmul %50, %53, %cst_19 {dimension_numbers = #tpu.dot_dimension_numbers<[1], [0], [0], [1], [0, 0, 1, 1], [], []>} : vector<32x8xf32>, vector<8x1024xf32>, vector<32x1024xf32> -> vector<32x1024xf32>
    %55 = arith.addf %49, %54 : vector<32x1024xf32>
    %c256 = arith.constant 256 : index
    %c0_20 = arith.constant 0 : index
    %56 = vector.load %arg2[%c256, %c0_20] : memref<720x32xf32, #tpu.memory_space<vmem>>, vector<32x8xf32>
    %c991_i32 = arith.constant 991 : i32
    %57 = tpu.dynamic_rotate %9 by %c991_i32 dim 1 : vector<8x1024xf32>, i32 -> vector<8x1024xf32>
    %58 = vector.broadcast %8 : vector<1x1024xf32> to vector<8x1024xf32>
    %59 = arith.mulf %57, %58 : vector<8x1024xf32>
    %cst_21 = arith.constant dense<0.000000e+00> : vector<32x1024xf32>
    %60 = tpu.matmul %56, %59, %cst_21 {dimension_numbers = #tpu.dot_dimension_numbers<[1], [0], [0], [1], [0, 0, 1, 1], [], []>} : vector<32x8xf32>, vector<8x1024xf32>, vector<32x1024xf32> -> vector<32x1024xf32>
    %61 = arith.addf %55, %60 : vector<32x1024xf32>
    %c648 = arith.constant 648 : index
    %c0_22 = arith.constant 0 : index
    %62 = vector.load %arg2[%c648, %c0_22] : memref<720x32xf32, #tpu.memory_space<vmem>>, vector<32x1xf32>
    %63 = vector.broadcast %62 : vector<32x1xf32> to vector<32x1024xf32>
    %64 = arith.addf %61, %63 : vector<32x1024xf32>
    %cst_23 = arith.constant 0.000000e+00 : f32
    %65 = vector.broadcast %cst_23 : f32 to vector<32x1024xf32>
    %66 = arith.maximumf %64, %65 : vector<32x1024xf32>
    %cst_24 = arith.constant 0.000000e+00 : f32
    %67 = vector.broadcast %cst_24 : f32 to vector<16x1024xf32>
    %c288 = arith.constant 288 : index
    %c0_25 = arith.constant 0 : index
    %68 = vector.load %arg2[%c288, %c0_25] : memref<720x32xf32, #tpu.memory_space<vmem>>, vector<16x32xf32>
    %c33_i32_26 = arith.constant 33 : i32
    %69 = tpu.dynamic_rotate %66 by %c33_i32_26 dim 1 : vector<32x1024xf32>, i32 -> vector<32x1024xf32>
    %cst_27 = arith.constant dense<0.000000e+00> : vector<16x1024xf32>
    %70 = tpu.matmul %68, %69, %cst_27 {dimension_numbers = #tpu.dot_dimension_numbers<[1], [0], [0], [1], [0, 0, 1, 1], [], []>} : vector<16x32xf32>, vector<32x1024xf32>, vector<16x1024xf32> -> vector<16x1024xf32>
    %71 = vector.broadcast %1 : vector<1x1024xf32> to vector<16x1024xf32>
    %72 = arith.mulf %70, %71 : vector<16x1024xf32>
    %73 = arith.addf %67, %72 : vector<16x1024xf32>
    %c304 = arith.constant 304 : index
    %c0_28 = arith.constant 0 : index
    %74 = vector.load %arg2[%c304, %c0_28] : memref<720x32xf32, #tpu.memory_space<vmem>>, vector<16x32xf32>
    %c32_i32_29 = arith.constant 32 : i32
    %75 = tpu.dynamic_rotate %66 by %c32_i32_29 dim 1 : vector<32x1024xf32>, i32 -> vector<32x1024xf32>
    %cst_30 = arith.constant dense<0.000000e+00> : vector<16x1024xf32>
    %76 = tpu.matmul %74, %75, %cst_30 {dimension_numbers = #tpu.dot_dimension_numbers<[1], [0], [0], [1], [0, 0, 1, 1], [], []>} : vector<16x32xf32>, vector<32x1024xf32>, vector<16x1024xf32> -> vector<16x1024xf32>
    %77 = vector.broadcast %2 : vector<1x1024xf32> to vector<16x1024xf32>
    %78 = arith.mulf %76, %77 : vector<16x1024xf32>
    %79 = arith.addf %73, %78 : vector<16x1024xf32>
    %c320 = arith.constant 320 : index
    %c0_31 = arith.constant 0 : index
    %80 = vector.load %arg2[%c320, %c0_31] : memref<720x32xf32, #tpu.memory_space<vmem>>, vector<16x32xf32>
    %c31_i32_32 = arith.constant 31 : i32
    %81 = tpu.dynamic_rotate %66 by %c31_i32_32 dim 1 : vector<32x1024xf32>, i32 -> vector<32x1024xf32>
    %cst_33 = arith.constant dense<0.000000e+00> : vector<16x1024xf32>
    %82 = tpu.matmul %80, %81, %cst_33 {dimension_numbers = #tpu.dot_dimension_numbers<[1], [0], [0], [1], [0, 0, 1, 1], [], []>} : vector<16x32xf32>, vector<32x1024xf32>, vector<16x1024xf32> -> vector<16x1024xf32>
    %83 = vector.broadcast %3 : vector<1x1024xf32> to vector<16x1024xf32>
    %84 = arith.mulf %82, %83 : vector<16x1024xf32>
    %85 = arith.addf %79, %84 : vector<16x1024xf32>
    %c336 = arith.constant 336 : index
    %c0_34 = arith.constant 0 : index
    %86 = vector.load %arg2[%c336, %c0_34] : memref<720x32xf32, #tpu.memory_space<vmem>>, vector<16x32xf32>
    %c1_i32_35 = arith.constant 1 : i32
    %87 = tpu.dynamic_rotate %66 by %c1_i32_35 dim 1 : vector<32x1024xf32>, i32 -> vector<32x1024xf32>
    %cst_36 = arith.constant dense<0.000000e+00> : vector<16x1024xf32>
    %88 = tpu.matmul %86, %87, %cst_36 {dimension_numbers = #tpu.dot_dimension_numbers<[1], [0], [0], [1], [0, 0, 1, 1], [], []>} : vector<16x32xf32>, vector<32x1024xf32>, vector<16x1024xf32> -> vector<16x1024xf32>
    %89 = vector.broadcast %4 : vector<1x1024xf32> to vector<16x1024xf32>
    %90 = arith.mulf %88, %89 : vector<16x1024xf32>
    %91 = arith.addf %85, %90 : vector<16x1024xf32>
    %c352 = arith.constant 352 : index
    %c0_37 = arith.constant 0 : index
    %92 = vector.load %arg2[%c352, %c0_37] : memref<720x32xf32, #tpu.memory_space<vmem>>, vector<16x32xf32>
    %cst_38 = arith.constant dense<0.000000e+00> : vector<16x1024xf32>
    %93 = tpu.matmul %92, %66, %cst_38 {dimension_numbers = #tpu.dot_dimension_numbers<[1], [0], [0], [1], [0, 0, 1, 1], [], []>} : vector<16x32xf32>, vector<32x1024xf32>, vector<16x1024xf32> -> vector<16x1024xf32>
    %94 = arith.addf %91, %93 : vector<16x1024xf32>
    %c368 = arith.constant 368 : index
    %c0_39 = arith.constant 0 : index
    %95 = vector.load %arg2[%c368, %c0_39] : memref<720x32xf32, #tpu.memory_space<vmem>>, vector<16x32xf32>
    %c1023_i32_40 = arith.constant 1023 : i32
    %96 = tpu.dynamic_rotate %66 by %c1023_i32_40 dim 1 : vector<32x1024xf32>, i32 -> vector<32x1024xf32>
    %cst_41 = arith.constant dense<0.000000e+00> : vector<16x1024xf32>
    %97 = tpu.matmul %95, %96, %cst_41 {dimension_numbers = #tpu.dot_dimension_numbers<[1], [0], [0], [1], [0, 0, 1, 1], [], []>} : vector<16x32xf32>, vector<32x1024xf32>, vector<16x1024xf32> -> vector<16x1024xf32>
    %98 = vector.broadcast %5 : vector<1x1024xf32> to vector<16x1024xf32>
    %99 = arith.mulf %97, %98 : vector<16x1024xf32>
    %100 = arith.addf %94, %99 : vector<16x1024xf32>
    %c384 = arith.constant 384 : index
    %c0_42 = arith.constant 0 : index
    %101 = vector.load %arg2[%c384, %c0_42] : memref<720x32xf32, #tpu.memory_space<vmem>>, vector<16x32xf32>
    %c993_i32_43 = arith.constant 993 : i32
    %102 = tpu.dynamic_rotate %66 by %c993_i32_43 dim 1 : vector<32x1024xf32>, i32 -> vector<32x1024xf32>
    %cst_44 = arith.constant dense<0.000000e+00> : vector<16x1024xf32>
    %103 = tpu.matmul %101, %102, %cst_44 {dimension_numbers = #tpu.dot_dimension_numbers<[1], [0], [0], [1], [0, 0, 1, 1], [], []>} : vector<16x32xf32>, vector<32x1024xf32>, vector<16x1024xf32> -> vector<16x1024xf32>
    %104 = vector.broadcast %6 : vector<1x1024xf32> to vector<16x1024xf32>
    %105 = arith.mulf %103, %104 : vector<16x1024xf32>
    %106 = arith.addf %100, %105 : vector<16x1024xf32>
    %c400 = arith.constant 400 : index
    %c0_45 = arith.constant 0 : index
    %107 = vector.load %arg2[%c400, %c0_45] : memref<720x32xf32, #tpu.memory_space<vmem>>, vector<16x32xf32>
    %c992_i32_46 = arith.constant 992 : i32
    %108 = tpu.dynamic_rotate %66 by %c992_i32_46 dim 1 : vector<32x1024xf32>, i32 -> vector<32x1024xf32>
    %cst_47 = arith.constant dense<0.000000e+00> : vector<16x1024xf32>
    %109 = tpu.matmul %107, %108, %cst_47 {dimension_numbers = #tpu.dot_dimension_numbers<[1], [0], [0], [1], [0, 0, 1, 1], [], []>} : vector<16x32xf32>, vector<32x1024xf32>, vector<16x1024xf32> -> vector<16x1024xf32>
    %110 = vector.broadcast %7 : vector<1x1024xf32> to vector<16x1024xf32>
    %111 = arith.mulf %109, %110 : vector<16x1024xf32>
    %112 = arith.addf %106, %111 : vector<16x1024xf32>
    %c416 = arith.constant 416 : index
    %c0_48 = arith.constant 0 : index
    %113 = vector.load %arg2[%c416, %c0_48] : memref<720x32xf32, #tpu.memory_space<vmem>>, vector<16x32xf32>
    %c991_i32_49 = arith.constant 991 : i32
    %114 = tpu.dynamic_rotate %66 by %c991_i32_49 dim 1 : vector<32x1024xf32>, i32 -> vector<32x1024xf32>
    %cst_50 = arith.constant dense<0.000000e+00> : vector<16x1024xf32>
    %115 = tpu.matmul %113, %114, %cst_50 {dimension_numbers = #tpu.dot_dimension_numbers<[1], [0], [0], [1], [0, 0, 1, 1], [], []>} : vector<16x32xf32>, vector<32x1024xf32>, vector<16x1024xf32> -> vector<16x1024xf32>
    %116 = vector.broadcast %8 : vector<1x1024xf32> to vector<16x1024xf32>
    %117 = arith.mulf %115, %116 : vector<16x1024xf32>
    %118 = arith.addf %112, %117 : vector<16x1024xf32>
    %c680 = arith.constant 680 : index
    %c0_51 = arith.constant 0 : index
    %119 = vector.load %arg2[%c680, %c0_51] : memref<720x32xf32, #tpu.memory_space<vmem>>, vector<16x1xf32>
    %120 = vector.broadcast %119 : vector<16x1xf32> to vector<16x1024xf32>
    %121 = arith.addf %118, %120 : vector<16x1024xf32>
    %cst_52 = arith.constant 0.000000e+00 : f32
    %122 = vector.broadcast %cst_52 : f32 to vector<16x1024xf32>
    %123 = arith.maximumf %121, %122 : vector<16x1024xf32>
    %cst_53 = arith.constant 0.000000e+00 : f32
    %124 = vector.broadcast %cst_53 : f32 to vector<8x1024xf32>
    %c432 = arith.constant 432 : index
    %c0_54 = arith.constant 0 : index
    %125 = vector.load %arg2[%c432, %c0_54] : memref<720x32xf32, #tpu.memory_space<vmem>>, vector<8x16xf32>
    %c33_i32_55 = arith.constant 33 : i32
    %126 = tpu.dynamic_rotate %123 by %c33_i32_55 dim 1 : vector<16x1024xf32>, i32 -> vector<16x1024xf32>
    %cst_56 = arith.constant dense<0.000000e+00> : vector<8x1024xf32>
    %127 = tpu.matmul %125, %126, %cst_56 {dimension_numbers = #tpu.dot_dimension_numbers<[1], [0], [0], [1], [0, 0, 1, 1], [], []>} : vector<8x16xf32>, vector<16x1024xf32>, vector<8x1024xf32> -> vector<8x1024xf32>
    %128 = vector.broadcast %1 : vector<1x1024xf32> to vector<8x1024xf32>
    %129 = arith.mulf %127, %128 : vector<8x1024xf32>
    %130 = arith.addf %124, %129 : vector<8x1024xf32>
    %c440 = arith.constant 440 : index
    %c0_57 = arith.constant 0 : index
    %131 = vector.load %arg2[%c440, %c0_57] : memref<720x32xf32, #tpu.memory_space<vmem>>, vector<8x16xf32>
    %c32_i32_58 = arith.constant 32 : i32
    %132 = tpu.dynamic_rotate %123 by %c32_i32_58 dim 1 : vector<16x1024xf32>, i32 -> vector<16x1024xf32>
    %cst_59 = arith.constant dense<0.000000e+00> : vector<8x1024xf32>
    %133 = tpu.matmul %131, %132, %cst_59 {dimension_numbers = #tpu.dot_dimension_numbers<[1], [0], [0], [1], [0, 0, 1, 1], [], []>} : vector<8x16xf32>, vector<16x1024xf32>, vector<8x1024xf32> -> vector<8x1024xf32>
    %134 = vector.broadcast %2 : vector<1x1024xf32> to vector<8x1024xf32>
    %135 = arith.mulf %133, %134 : vector<8x1024xf32>
    %136 = arith.addf %130, %135 : vector<8x1024xf32>
    %c448 = arith.constant 448 : index
    %c0_60 = arith.constant 0 : index
    %137 = vector.load %arg2[%c448, %c0_60] : memref<720x32xf32, #tpu.memory_space<vmem>>, vector<8x16xf32>
    %c31_i32_61 = arith.constant 31 : i32
    %138 = tpu.dynamic_rotate %123 by %c31_i32_61 dim 1 : vector<16x1024xf32>, i32 -> vector<16x1024xf32>
    %cst_62 = arith.constant dense<0.000000e+00> : vector<8x1024xf32>
    %139 = tpu.matmul %137, %138, %cst_62 {dimension_numbers = #tpu.dot_dimension_numbers<[1], [0], [0], [1], [0, 0, 1, 1], [], []>} : vector<8x16xf32>, vector<16x1024xf32>, vector<8x1024xf32> -> vector<8x1024xf32>
    %140 = vector.broadcast %3 : vector<1x1024xf32> to vector<8x1024xf32>
    %141 = arith.mulf %139, %140 : vector<8x1024xf32>
    %142 = arith.addf %136, %141 : vector<8x1024xf32>
    %c456 = arith.constant 456 : index
    %c0_63 = arith.constant 0 : index
    %143 = vector.load %arg2[%c456, %c0_63] : memref<720x32xf32, #tpu.memory_space<vmem>>, vector<8x16xf32>
    %c1_i32_64 = arith.constant 1 : i32
    %144 = tpu.dynamic_rotate %123 by %c1_i32_64 dim 1 : vector<16x1024xf32>, i32 -> vector<16x1024xf32>
    %cst_65 = arith.constant dense<0.000000e+00> : vector<8x1024xf32>
    %145 = tpu.matmul %143, %144, %cst_65 {dimension_numbers = #tpu.dot_dimension_numbers<[1], [0], [0], [1], [0, 0, 1, 1], [], []>} : vector<8x16xf32>, vector<16x1024xf32>, vector<8x1024xf32> -> vector<8x1024xf32>
    %146 = vector.broadcast %4 : vector<1x1024xf32> to vector<8x1024xf32>
    %147 = arith.mulf %145, %146 : vector<8x1024xf32>
    %148 = arith.addf %142, %147 : vector<8x1024xf32>
    %c464 = arith.constant 464 : index
    %c0_66 = arith.constant 0 : index
    %149 = vector.load %arg2[%c464, %c0_66] : memref<720x32xf32, #tpu.memory_space<vmem>>, vector<8x16xf32>
    %cst_67 = arith.constant dense<0.000000e+00> : vector<8x1024xf32>
    %150 = tpu.matmul %149, %123, %cst_67 {dimension_numbers = #tpu.dot_dimension_numbers<[1], [0], [0], [1], [0, 0, 1, 1], [], []>} : vector<8x16xf32>, vector<16x1024xf32>, vector<8x1024xf32> -> vector<8x1024xf32>
    %151 = arith.addf %148, %150 : vector<8x1024xf32>
    %c472 = arith.constant 472 : index
    %c0_68 = arith.constant 0 : index
    %152 = vector.load %arg2[%c472, %c0_68] : memref<720x32xf32, #tpu.memory_space<vmem>>, vector<8x16xf32>
    %c1023_i32_69 = arith.constant 1023 : i32
    %153 = tpu.dynamic_rotate %123 by %c1023_i32_69 dim 1 : vector<16x1024xf32>, i32 -> vector<16x1024xf32>
    %cst_70 = arith.constant dense<0.000000e+00> : vector<8x1024xf32>
    %154 = tpu.matmul %152, %153, %cst_70 {dimension_numbers = #tpu.dot_dimension_numbers<[1], [0], [0], [1], [0, 0, 1, 1], [], []>} : vector<8x16xf32>, vector<16x1024xf32>, vector<8x1024xf32> -> vector<8x1024xf32>
    %155 = vector.broadcast %5 : vector<1x1024xf32> to vector<8x1024xf32>
    %156 = arith.mulf %154, %155 : vector<8x1024xf32>
    %157 = arith.addf %151, %156 : vector<8x1024xf32>
    %c480 = arith.constant 480 : index
    %c0_71 = arith.constant 0 : index
    %158 = vector.load %arg2[%c480, %c0_71] : memref<720x32xf32, #tpu.memory_space<vmem>>, vector<8x16xf32>
    %c993_i32_72 = arith.constant 993 : i32
    %159 = tpu.dynamic_rotate %123 by %c993_i32_72 dim 1 : vector<16x1024xf32>, i32 -> vector<16x1024xf32>
    %cst_73 = arith.constant dense<0.000000e+00> : vector<8x1024xf32>
    %160 = tpu.matmul %158, %159, %cst_73 {dimension_numbers = #tpu.dot_dimension_numbers<[1], [0], [0], [1], [0, 0, 1, 1], [], []>} : vector<8x16xf32>, vector<16x1024xf32>, vector<8x1024xf32> -> vector<8x1024xf32>
    %161 = vector.broadcast %6 : vector<1x1024xf32> to vector<8x1024xf32>
    %162 = arith.mulf %160, %161 : vector<8x1024xf32>
    %163 = arith.addf %157, %162 : vector<8x1024xf32>
    %c488 = arith.constant 488 : index
    %c0_74 = arith.constant 0 : index
    %164 = vector.load %arg2[%c488, %c0_74] : memref<720x32xf32, #tpu.memory_space<vmem>>, vector<8x16xf32>
    %c992_i32_75 = arith.constant 992 : i32
    %165 = tpu.dynamic_rotate %123 by %c992_i32_75 dim 1 : vector<16x1024xf32>, i32 -> vector<16x1024xf32>
    %cst_76 = arith.constant dense<0.000000e+00> : vector<8x1024xf32>
    %166 = tpu.matmul %164, %165, %cst_76 {dimension_numbers = #tpu.dot_dimension_numbers<[1], [0], [0], [1], [0, 0, 1, 1], [], []>} : vector<8x16xf32>, vector<16x1024xf32>, vector<8x1024xf32> -> vector<8x1024xf32>
    %167 = vector.broadcast %7 : vector<1x1024xf32> to vector<8x1024xf32>
    %168 = arith.mulf %166, %167 : vector<8x1024xf32>
    %169 = arith.addf %163, %168 : vector<8x1024xf32>
    %c496 = arith.constant 496 : index
    %c0_77 = arith.constant 0 : index
    %170 = vector.load %arg2[%c496, %c0_77] : memref<720x32xf32, #tpu.memory_space<vmem>>, vector<8x16xf32>
    %c991_i32_78 = arith.constant 991 : i32
    %171 = tpu.dynamic_rotate %123 by %c991_i32_78 dim 1 : vector<16x1024xf32>, i32 -> vector<16x1024xf32>
    %cst_79 = arith.constant dense<0.000000e+00> : vector<8x1024xf32>
    %172 = tpu.matmul %170, %171, %cst_79 {dimension_numbers = #tpu.dot_dimension_numbers<[1], [0], [0], [1], [0, 0, 1, 1], [], []>} : vector<8x16xf32>, vector<16x1024xf32>, vector<8x1024xf32> -> vector<8x1024xf32>
    %173 = vector.broadcast %8 : vector<1x1024xf32> to vector<8x1024xf32>
    %174 = arith.mulf %172, %173 : vector<8x1024xf32>
    %175 = arith.addf %169, %174 : vector<8x1024xf32>
    %c696 = arith.constant 696 : index
    %c0_80 = arith.constant 0 : index
    %176 = vector.load %arg2[%c696, %c0_80] : memref<720x32xf32, #tpu.memory_space<vmem>>, vector<8x1xf32>
    %177 = vector.broadcast %176 : vector<8x1xf32> to vector<8x1024xf32>
    %178 = arith.addf %175, %177 : vector<8x1024xf32>
    %179 = arith.negf %178 : vector<8x1024xf32>
    %180 = math.exp %179 : vector<8x1024xf32>
    %cst_81 = arith.constant 1.000000e+00 : f32
    %181 = vector.broadcast %cst_81 : f32 to vector<8x1024xf32>
    %182 = arith.addf %181, %180 : vector<8x1024xf32>
    %183 = arith.divf %181, %182 : vector<8x1024xf32>
    %cst_82 = arith.constant 0.000000e+00 : f32
    %184 = vector.broadcast %cst_82 : f32 to vector<16x1024xf32>
    %c504 = arith.constant 504 : index
    %c0_83 = arith.constant 0 : index
    %185 = vector.load %arg2[%c504, %c0_83] : memref<720x32xf32, #tpu.memory_space<vmem>>, vector<16x8xf32>
    %c33_i32_84 = arith.constant 33 : i32
    %186 = tpu.dynamic_rotate %183 by %c33_i32_84 dim 1 : vector<8x1024xf32>, i32 -> vector<8x1024xf32>
    %187 = vector.broadcast %1 : vector<1x1024xf32> to vector<8x1024xf32>
    %188 = arith.mulf %186, %187 : vector<8x1024xf32>
    %cst_85 = arith.constant dense<0.000000e+00> : vector<16x1024xf32>
    %189 = tpu.matmul %185, %188, %cst_85 {dimension_numbers = #tpu.dot_dimension_numbers<[1], [0], [0], [1], [0, 0, 1, 1], [], []>} : vector<16x8xf32>, vector<8x1024xf32>, vector<16x1024xf32> -> vector<16x1024xf32>
    %190 = arith.addf %184, %189 : vector<16x1024xf32>
    %c520 = arith.constant 520 : index
    %c0_86 = arith.constant 0 : index
    %191 = vector.load %arg2[%c520, %c0_86] : memref<720x32xf32, #tpu.memory_space<vmem>>, vector<16x8xf32>
    %c32_i32_87 = arith.constant 32 : i32
    %192 = tpu.dynamic_rotate %183 by %c32_i32_87 dim 1 : vector<8x1024xf32>, i32 -> vector<8x1024xf32>
    %193 = vector.broadcast %2 : vector<1x1024xf32> to vector<8x1024xf32>
    %194 = arith.mulf %192, %193 : vector<8x1024xf32>
    %cst_88 = arith.constant dense<0.000000e+00> : vector<16x1024xf32>
    %195 = tpu.matmul %191, %194, %cst_88 {dimension_numbers = #tpu.dot_dimension_numbers<[1], [0], [0], [1], [0, 0, 1, 1], [], []>} : vector<16x8xf32>, vector<8x1024xf32>, vector<16x1024xf32> -> vector<16x1024xf32>
    %196 = arith.addf %190, %195 : vector<16x1024xf32>
    %c536 = arith.constant 536 : index
    %c0_89 = arith.constant 0 : index
    %197 = vector.load %arg2[%c536, %c0_89] : memref<720x32xf32, #tpu.memory_space<vmem>>, vector<16x8xf32>
    %c31_i32_90 = arith.constant 31 : i32
    %198 = tpu.dynamic_rotate %183 by %c31_i32_90 dim 1 : vector<8x1024xf32>, i32 -> vector<8x1024xf32>
    %199 = vector.broadcast %3 : vector<1x1024xf32> to vector<8x1024xf32>
    %200 = arith.mulf %198, %199 : vector<8x1024xf32>
    %cst_91 = arith.constant dense<0.000000e+00> : vector<16x1024xf32>
    %201 = tpu.matmul %197, %200, %cst_91 {dimension_numbers = #tpu.dot_dimension_numbers<[1], [0], [0], [1], [0, 0, 1, 1], [], []>} : vector<16x8xf32>, vector<8x1024xf32>, vector<16x1024xf32> -> vector<16x1024xf32>
    %202 = arith.addf %196, %201 : vector<16x1024xf32>
    %c552 = arith.constant 552 : index
    %c0_92 = arith.constant 0 : index
    %203 = vector.load %arg2[%c552, %c0_92] : memref<720x32xf32, #tpu.memory_space<vmem>>, vector<16x8xf32>
    %c1_i32_93 = arith.constant 1 : i32
    %204 = tpu.dynamic_rotate %183 by %c1_i32_93 dim 1 : vector<8x1024xf32>, i32 -> vector<8x1024xf32>
    %205 = vector.broadcast %4 : vector<1x1024xf32> to vector<8x1024xf32>
    %206 = arith.mulf %204, %205 : vector<8x1024xf32>
    %cst_94 = arith.constant dense<0.000000e+00> : vector<16x1024xf32>
    %207 = tpu.matmul %203, %206, %cst_94 {dimension_numbers = #tpu.dot_dimension_numbers<[1], [0], [0], [1], [0, 0, 1, 1], [], []>} : vector<16x8xf32>, vector<8x1024xf32>, vector<16x1024xf32> -> vector<16x1024xf32>
    %208 = arith.addf %202, %207 : vector<16x1024xf32>
    %c568 = arith.constant 568 : index
    %c0_95 = arith.constant 0 : index
    %209 = vector.load %arg2[%c568, %c0_95] : memref<720x32xf32, #tpu.memory_space<vmem>>, vector<16x8xf32>
    %cst_96 = arith.constant dense<0.000000e+00> : vector<16x1024xf32>
    %210 = tpu.matmul %209, %183, %cst_96 {dimension_numbers = #tpu.dot_dimension_numbers<[1], [0], [0], [1], [0, 0, 1, 1], [], []>} : vector<16x8xf32>, vector<8x1024xf32>, vector<16x1024xf32> -> vector<16x1024xf32>
    %211 = arith.addf %208, %210 : vector<16x1024xf32>
    %c584 = arith.constant 584 : index
    %c0_97 = arith.constant 0 : index
    %212 = vector.load %arg2[%c584, %c0_97] : memref<720x32xf32, #tpu.memory_space<vmem>>, vector<16x8xf32>
    %c1023_i32_98 = arith.constant 1023 : i32
    %213 = tpu.dynamic_rotate %183 by %c1023_i32_98 dim 1 : vector<8x1024xf32>, i32 -> vector<8x1024xf32>
    %214 = vector.broadcast %5 : vector<1x1024xf32> to vector<8x1024xf32>
    %215 = arith.mulf %213, %214 : vector<8x1024xf32>
    %cst_99 = arith.constant dense<0.000000e+00> : vector<16x1024xf32>
    %216 = tpu.matmul %212, %215, %cst_99 {dimension_numbers = #tpu.dot_dimension_numbers<[1], [0], [0], [1], [0, 0, 1, 1], [], []>} : vector<16x8xf32>, vector<8x1024xf32>, vector<16x1024xf32> -> vector<16x1024xf32>
    %217 = arith.addf %211, %216 : vector<16x1024xf32>
    %c600 = arith.constant 600 : index
    %c0_100 = arith.constant 0 : index
    %218 = vector.load %arg2[%c600, %c0_100] : memref<720x32xf32, #tpu.memory_space<vmem>>, vector<16x8xf32>
    %c993_i32_101 = arith.constant 993 : i32
    %219 = tpu.dynamic_rotate %183 by %c993_i32_101 dim 1 : vector<8x1024xf32>, i32 -> vector<8x1024xf32>
    %220 = vector.broadcast %6 : vector<1x1024xf32> to vector<8x1024xf32>
    %221 = arith.mulf %219, %220 : vector<8x1024xf32>
    %cst_102 = arith.constant dense<0.000000e+00> : vector<16x1024xf32>
    %222 = tpu.matmul %218, %221, %cst_102 {dimension_numbers = #tpu.dot_dimension_numbers<[1], [0], [0], [1], [0, 0, 1, 1], [], []>} : vector<16x8xf32>, vector<8x1024xf32>, vector<16x1024xf32> -> vector<16x1024xf32>
    %223 = arith.addf %217, %222 : vector<16x1024xf32>
    %c616 = arith.constant 616 : index
    %c0_103 = arith.constant 0 : index
    %224 = vector.load %arg2[%c616, %c0_103] : memref<720x32xf32, #tpu.memory_space<vmem>>, vector<16x8xf32>
    %c992_i32_104 = arith.constant 992 : i32
    %225 = tpu.dynamic_rotate %183 by %c992_i32_104 dim 1 : vector<8x1024xf32>, i32 -> vector<8x1024xf32>
    %226 = vector.broadcast %7 : vector<1x1024xf32> to vector<8x1024xf32>
    %227 = arith.mulf %225, %226 : vector<8x1024xf32>
    %cst_105 = arith.constant dense<0.000000e+00> : vector<16x1024xf32>
    %228 = tpu.matmul %224, %227, %cst_105 {dimension_numbers = #tpu.dot_dimension_numbers<[1], [0], [0], [1], [0, 0, 1, 1], [], []>} : vector<16x8xf32>, vector<8x1024xf32>, vector<16x1024xf32> -> vector<16x1024xf32>
    %229 = arith.addf %223, %228 : vector<16x1024xf32>
    %c632 = arith.constant 632 : index
    %c0_106 = arith.constant 0 : index
    %230 = vector.load %arg2[%c632, %c0_106] : memref<720x32xf32, #tpu.memory_space<vmem>>, vector<16x8xf32>
    %c991_i32_107 = arith.constant 991 : i32
    %231 = tpu.dynamic_rotate %183 by %c991_i32_107 dim 1 : vector<8x1024xf32>, i32 -> vector<8x1024xf32>
    %232 = vector.broadcast %8 : vector<1x1024xf32> to vector<8x1024xf32>
    %233 = arith.mulf %231, %232 : vector<8x1024xf32>
    %cst_108 = arith.constant dense<0.000000e+00> : vector<16x1024xf32>
    %234 = tpu.matmul %230, %233, %cst_108 {dimension_numbers = #tpu.dot_dimension_numbers<[1], [0], [0], [1], [0, 0, 1, 1], [], []>} : vector<16x8xf32>, vector<8x1024xf32>, vector<16x1024xf32> -> vector<16x1024xf32>
    %235 = arith.addf %229, %234 : vector<16x1024xf32>
    %c704 = arith.constant 704 : index
    %c0_109 = arith.constant 0 : index
    %236 = vector.load %arg2[%c704, %c0_109] : memref<720x32xf32, #tpu.memory_space<vmem>>, vector<16x1xf32>
    %237 = vector.broadcast %236 : vector<16x1xf32> to vector<16x1024xf32>
    %238 = arith.addf %235, %237 : vector<16x1024xf32>
    %239 = arith.negf %238 : vector<16x1024xf32>
    %240 = math.exp %239 : vector<16x1024xf32>
    %cst_110 = arith.constant 1.000000e+00 : f32
    %241 = vector.broadcast %cst_110 : f32 to vector<16x1024xf32>
    %242 = arith.addf %241, %240 : vector<16x1024xf32>
    %243 = arith.divf %241, %242 : vector<16x1024xf32>
    %c0_111 = arith.constant 0 : index
    %c0_112 = arith.constant 0 : index
    %244 = vector.load %arg3[%c0_111, %c0_112] : memref<16x1024xf32, #tpu.memory_space<vmem>>, vector<16x1024xf32>
    tpu.vector_store %arg3[%c0_111, %c0_112], %243 {strides = array<i32>} : memref<16x1024xf32, #tpu.memory_space<vmem>>, vector<16x1024xf32>,
    return
  }
}

</mosaic_0001>

<bundles_post_ra>
// kernel: squeeze.1
= control target key start
LH: loop header
LB: loop body
LE: loop exit
PB: predicated region body
PF: predicated region fallthrough
CT: control target
= control target key end

     0   :  { %vm24_vm0 = vcmask 1041409   ;;  %s27_s10 = smov 12  ;;  %vm29_vm1 = vcmask 1043458   ;;  %vm33_vm2 = vcmask 1044484   ;;  %s36_s15 = smov 96  ;;  %vm38_vm3 = vcmask 1046533   ;;  %s734_s0 = inlined_call_operand.vmem [shape: f32[1,3,32,32], index: 0, kind: input, shape index: {}]   ;;  %s735_s1 = inlined_call_operand.vmem [shape: f32[3,1024], index: 1, kind: output, shape index: {}]  }
   0x1   :  { %v375_v0 = vld [vmem:[%s734_s0 + $0x3] sm:$0x1]   ;;  %v378_v4 = vld [vmem:[%s734_s0 + $0x23] sm:$0x10]   ;;  %v380_v6 = vld [vmem:[%s734_s0 + $0x24] sm:$0x80]  }
   0x2   :  { %v376_v1 = vld [vmem:[%s734_s0 + $0x22] sm:$0x2]   ;;  %vm42_vm4 = vcmask 1047559   ;;  %v393_v9 = vld [vmem:[%s734_s0 + $0x2] sm:$0x1]   ;;  %s127_s24 = smov 12 }
   0x3   :  { %v25_v2 = vsel %vm24_vm0, %v376_v1, %v375_v0  ;;  %v377_v3 = vld [vmem:[%s734_s0 + $0xbb] ss:$-60 sm:%s27_s10]   ;;  %v394_v10 = vld [vmem:[%s734_s0 + $0x21] sm:$0x2]   ;;  %v396_v13 = vld [vmem:[%s734_s0 + $0x22] sm:$0x10]  }
   0x4   :  { %v30_v5 = vsel %vm29_vm1, %v377_v3, %v25_v2  ;;  %v379_v8 = vld [vmem:[%s734_s0 + $0x173] ss:$-60 sm:%s36_s15]   ;;  %v125_v12 = vsel %vm24_vm0, %v394_v10, %v393_v9  ;;  %s136_s27 = smov 96  ;;  %v398_v14 = vld [vmem:[%s734_s0 + $0x23] sm:$0x80]   ;;  %s59_s5 = smov 12 }
   0x5   :  { %v34_v7 = vsel %vm33_vm2, %v378_v4, %v30_v5  ;;  %v395_v16 = vld [vmem:[%s734_s0 + $0xba] ss:$-60 sm:%s127_s24]   ;;  %s439_s6 = smov 96   ;;  %v381_v19 = vld [vmem:[%s734_s0 + $0x13] sm:$0x1]   ;;  %s68_s15 = smov 96 }
   0x6   :  { %v39_v11 = vsel %vm38_vm3, %v379_v8, %v34_v7  ;;  %v397_v17 = vld [vmem:[%s734_s0 + $0x172] ss:$-60 sm:%s136_s27]   ;;  %v130_v18 = vsel %vm29_vm1, %v395_v16, %v125_v12  ;;  %v382_v20 = vld [vmem:[%s734_s0 + $0x32] sm:$0x2]   ;;  %v384_v21 = vld [vmem:[%s734_s0 + $0x33] sm:$0x10]  }
   0x7   :  { %v43_v15 = vsel %vm42_vm4, %v380_v6, %v39_v11  ;;  %v134_v22 = vsel %vm33_vm2, %v396_v13, %v130_v18  ;;  %v57_v23 = vsel %vm24_vm0, %v382_v20, %v381_v19  ;;  %v383_v24 = vld [vmem:[%s734_s0 + $0xcb] ss:$-60 sm:%s59_s5]   ;;  %s86_s18 = smov 3  ;;  %vm90_vm5 = vcmask 1042434   ;;  %s93_s23 = smov 24 }
   0x8   :  { %44 = vrot.lane.b32.xlu0 %v43_v15, %s439_s6  ;;  %v386_v25 = vld [vmem:[%s734_s0 + $0x34] sm:$0x80]   ;;  %v139_v26 = vsel %vm38_vm3, %v397_v17, %v134_v22  ;;  %v62_v27 = vsel %vm29_vm1, %v383_v24, %v57_v23  ;;  %v388_v32 = vld [vmem:[%s734_s0 + $0x2d] sm:$0x4]   ;;  %vm95_vm6 = vcmask 1044483   ;;  %vm99_vm7 = vcmask 1045509  }
   0x9   :  { %v385_v28 = vld [vmem:[%s734_s0 + $0x183] ss:$-60 sm:%s68_s15]   ;;  %v143_v30 = vsel %vm42_vm4, %v398_v14, %v139_v26  ;;  %v66_v31 = vsel %vm33_vm2, %v384_v21, %v62_v27  ;;  %s440_s28 = smov 64   ;;  %vm103_vm8 = vcmask 1046534   ;;  %s159_s4 = smov 12  ;;  %vm3_vm9 = vcmask 261120  }
   0xa   :  { %v387_v29 = vld [vmem:[%s734_s0 + $0x4b] ss:$-60 sm:%s86_s18]   ;;  %144 = vrot.lane.b32.xlu1 %v143_v30, %s440_s28  ;;  %v71_v34 = vsel %vm38_vm3, %v385_v28, %v66_v31  ;;  %v399_v41 = vld [vmem:[%s734_s0 + $0x12] sm:$0x1]   ;;  %s168_s16 = smov 96  ;;  %s186_s17 = smov 3 }
   0xb   :  { %v389_v33 = vld [vmem:[%s734_s0 + $0x2b] ss:$12 sm:%s93_s23]   ;;  %v91_v35 = vsel %vm90_vm5, %v388_v32, %v387_v29  ;;  %v75_v38 = vsel %vm42_vm4, %v386_v25, %v71_v34  ;;  %v400_v42 = vld [vmem:[%s734_s0 + $0x31] sm:$0x2]   ;;  %v402_v46 = vld [vmem:[%s734_s0 + $0x32] sm:$0x10]  }
   0xc   :  { %v390_v36 = vld [vmem:[%s734_s0 + $0x1a] sm:$0x20]   ;;  %v96_v39 = vsel %vm95_vm6, %v389_v33, %v91_v35  ;;  %76 = vrot.lane.b32.xlu0 %v75_v38, %s439_s6  ;;  %v157_v44 = vsel %vm24_vm0, %v400_v42, %v399_v41  ;;  %v401_v45 = vld [vmem:[%s734_s0 + $0xca] ss:$-60 sm:%s159_s4]   ;;  %s193_s26 = smov 24  ;;  %s227_s30 = smov 12 }
   0xd   :  { %v391_v37 = vld [vmem:[%s734_s0 + $0x39] sm:$0x40]   ;;  %v100_v43 = vsel %vm99_vm7, %v390_v36, %v96_v39  ;;  %v162_v48 = vsel %vm29_vm1, %v401_v45, %v157_v44  ;;  %v403_v49 = vld [vmem:[%s734_s0 + $0x182] ss:$-60 sm:%s168_s16]   ;;  %s236_s5 = smov 96  ;;  %s268_s18 = smov 96 }
   0xe   :  { %v392_v40 = vld [vmem:[%s734_s0 + $0x58] sm:$0x80]   ;;  %v104_v47 = vsel %vm103_vm8, %v391_v37, %v100_v43  ;;  %v404_v50 = vld [vmem:[%s734_s0 + $0x33] sm:$0x80]   ;;  %v406_v51 = vld [vmem:[%s734_s0 + $0x2c] sm:$0x4]   ;;  %v166_v53 = vsel %vm33_vm2, %v402_v46, %v162_v48 }
   0xf   :  { %v108_v52 = vsel %vm42_vm4, %v392_v40, %v104_v47  ;;  %v405_v54 = vld [vmem:[%s734_s0 + $0x4a] ss:$-60 sm:%s186_s17]   ;;  %v171_v56 = vsel %vm38_vm3, %v403_v49, %v166_v53  ;;  %v411_v63 = vld [vmem:[%s734_s0 + $0x1] sm:$0x1]   ;;  %v414_v4 = vld [vmem:[%s734_s0 + $0x21] sm:$0x10]  }
  0x10   :  { %v408_v55 = vld [vmem:[%s734_s0 + $0x19] sm:$0x20]   ;;  %109 = vrot.lane.b32.xlu1 %v108_v52, %s439_s6  ;;  %v191_v57 = vsel %vm90_vm5, %v406_v51, %v405_v54  ;;  %v175_v60 = vsel %vm42_vm4, %v404_v50, %v171_v56  ;;  %v412_v0 = vld [vmem:[%s734_s0 + $0x20] sm:$0x2]   ;;  %s259_s17 = smov 12  ;;  %s293_s7 = smov 24 }
  0x11   :  { %v407_v58 = vld [vmem:[%s734_s0 + $0x2a] ss:$12 sm:%s193_s26]   ;;  %176 = vrot.lane.b32.xlu0 %v175_v60, %s440_s28  ;;  %v225_v2 = vsel %vm24_vm0, %v412_v0, %v411_v63  ;;  %v416_v8 = vld [vmem:[%s734_s0 + $0x22] sm:$0x80]   ;;  %s441_s14 = smov 32   ;;  %vm46_vm10 = vcmask 1048320  }
  0x12   :  { %v409_v59 = vld [vmem:[%s734_s0 + $0x38] sm:$0x40]   ;;  %v196_v61 = vsel %vm95_vm6, %v407_v58, %v191_v57  ;;  %v413_v3 = vld [vmem:[%s734_s0 + $0xb9] ss:$-60 sm:%s227_s30]   ;;  %v2_v31 = vld [vmem:[%s734_s0] ss:$4 sm:$0xff]  }
  0x13   :  { %v410_v62 = vld [vmem:[%s734_s0 + $0x57] sm:$0x80]   ;;  %v200_v1 = vsel %vm99_vm7, %v408_v55, %v196_v61  ;;  %v230_v6 = vsel %vm29_vm1, %v413_v3, %v225_v2  ;;  %v415_v7 = vld [vmem:[%s734_s0 + $0x171] ss:$-60 sm:%s236_s5]   ;;  %s286_s5 = smov 3  ;;  %vm146_vm11 = vcmask 785920  }
  0x14   :  { %v204_v5 = vsel %vm103_vm8, %v409_v59, %v200_v1  ;;  %v417_v9 = vld [vmem:[%s734_s0 + $0x11] sm:$0x1]   ;;  %v234_v11 = vsel %vm33_vm2, %v414_v4, %v230_v6  ;;  %v420_v14 = vld [vmem:[%s734_s0 + $0x31] sm:$0x10]   ;;  %v422_v18 = vld [vmem:[%s734_s0 + $0x32] sm:$0x80]  }
  0x15   :  { %v208_v10 = vsel %vm42_vm4, %v410_v62, %v204_v5  ;;  %v418_v12 = vld [vmem:[%s734_s0 + $0x30] sm:$0x2]   ;;  %v239_v15 = vsel %vm38_vm3, %v415_v7, %v234_v11  ;;  %v424_v22 = vld [vmem:[%s734_s0 + $0x2b] sm:$0x4]   ;;  %v426_v23 = vld [vmem:[%s734_s0 + $0x18] sm:$0x20]  }
  0x16   :  { %v419_v13 = vld [vmem:[%s734_s0 + $0xc9] ss:$-60 sm:%s259_s17]   ;;  %209 = vrot.lane.b32.xlu1 %v208_v10, %s440_s28  ;;  %v257_v16 = vsel %vm24_vm0, %v418_v12, %v417_v9  ;;  %v243_v19 = vsel %vm42_vm4, %v416_v8, %v239_v15  ;;  %v373_v32 = vld [vmem:[%s734_s0 + $0x20] ss:$4 sm:$0xff]   ;;  %vm246_vm12 = vcmask 523520  }
  0x17   :  { %v421_v17 = vld [vmem:[%s734_s0 + $0x181] ss:$-60 sm:%s268_s18]   ;;  %v262_v20 = vsel %vm29_vm1, %v419_v13, %v257_v16  ;;  %244 = vrot.lane.b32.xlu0 %v243_v19, %s441_s14  ;;  %4 = vst.msk [vmem:[#allocation0] ss:$8 sm:$0xf] %vm3_vm9, %v2_v31  }
  0x18   :  { %v423_v21 = vld [vmem:[%s734_s0 + $0x49] ss:$-60 sm:%s286_s5]   ;;  %v266_v24 = vsel %vm33_vm2, %v420_v14, %v262_v20  ;;  %10 = vst.msk [vmem:[#allocation0 + $0x1] ss:$8 sm:$0xf] %vm3_vm9, %v373_v32  }
  0x19   :  { %v291_v25 = vsel %vm90_vm5, %v424_v22, %v423_v21  ;;  %v425_v26 = vld [vmem:[%s734_s0 + $0x29] ss:$12 sm:%s293_s7]   ;;  %v271_v28 = vsel %vm38_vm3, %v421_v17, %v266_v24  ;;  %v374_v35 = vld [vmem:[%s734_s0 + $0x40] ss:$4 sm:$0xff]  }
  0x1a   :  { %v427_v27 = vld [vmem:[%s734_s0 + $0x37] sm:$0x40]   ;;  %v296_v29 = vsel %vm95_vm6, %v425_v26, %v291_v25  ;;  %v275_v33 = vsel %vm42_vm4, %v422_v18, %v271_v28  ;;  %5 = vst.msk [vmem:[#allocation0] ss:$8 sm:$0xf0] %vm3_vm9, %v2_v31  }
  0x1b   :  { %v428_v30 = vld [vmem:[%s734_s0 + $0x56] sm:$0x80]   ;;  %v300_v34 = vsel %vm99_vm7, %v426_v23, %v296_v29  ;;  %12 = vst.msk [vmem:[#allocation0 + $0x1] ss:$8 sm:$0xf0] %vm3_vm9, %v373_v32   ;;  %276 = vrot.lane.b32.xlu1 %v275_v33, %s441_s14 }
  0x1c   :  { %v304_v36 = vsel %vm103_vm8, %v427_v27, %v300_v34  ;;  %17 = vst.msk [vmem:[#allocation0 + $0x2] ss:$8 sm:$0xf] %vm3_vm9, %v374_v35   ;;  %19 = vst.msk [vmem:[#allocation0 + $0x2] ss:$8 sm:$0xf0] %vm3_vm9, %v374_v35  }
  0x1d   :  { %v308_v37 = vsel %vm42_vm4, %v428_v30, %v304_v36 }
  0x1e   :  { %309 = vrot.lane.b32.xlu0 %v308_v37, %s441_s14 }
  0x7a   :  { %v45_v38 = vpop.permute.xlu0 %44  }
  0x7b   :  { %47 = vst.msk [vmem:[#allocation0] sm:$0x7] %vm46_vm10, %v45_v38   ;;  %49 = vst.msk [vmem:[#allocation0 + $0x5] sm:$0x38] %vm46_vm10, %v45_v38  }
  0x7c   :  { %51 = vst.msk [vmem:[#allocation0 + $0xa] sm:$0xc0] %vm46_vm10, %v45_v38   ;;  %v145_v39 = vpop.permute.xlu1 %144  }
  0x7d   :  { %147 = vst.msk [vmem:[#allocation0] sm:$0x7] %vm146_vm11, %v145_v39   ;;  %149 = vst.msk [vmem:[#allocation0 + $0x5] sm:$0x38] %vm146_vm11, %v145_v39  }
  0x7e   :  { %151 = vst.msk [vmem:[#allocation0 + $0xa] sm:$0xc0] %vm146_vm11, %v145_v39   ;;  %v77_v40 = vpop.permute.xlu0 %76  }
  0x7f   :  { %80 = vst.msk [vmem:[#allocation0 + $0x20] sm:$0x7] %vm46_vm10, %v77_v40   ;;  %82 = vst.msk [vmem:[#allocation0 + $0x25] sm:$0x38] %vm46_vm10, %v77_v40  }
  0x80   :  { %84 = vst.msk [vmem:[#allocation0 + $0x2a] sm:$0xc0] %vm46_vm10, %v77_v40  }
  0x82   :  { %v110_v41 = vpop.permute.xlu1 %109  }
  0x83   :  { %113 = vst.msk [vmem:[#allocation0 + $0x12] ss:$6 sm:$0x3] %vm46_vm10, %v110_v41   ;;  %115 = vst.msk [vmem:[#allocation0 + $0x17] sm:$0xc] %vm46_vm10, %v110_v41   ;;  %v177_v42 = vpop.permute.xlu0 %176  }
  0x84   :  { %117 = vst.msk [vmem:[#allocation0 + $0x1a] ss:$6 sm:$0x30] %vm46_vm10, %v110_v41   ;;  %119 = vst.msk [vmem:[#allocation0 + $0x33] sm:$0xc0] %vm46_vm10, %v110_v41  }
  0x85   :  { %180 = vst.msk [vmem:[#allocation0 + $0x20] sm:$0x7] %vm146_vm11, %v177_v42   ;;  %182 = vst.msk [vmem:[#allocation0 + $0x25] sm:$0x38] %vm146_vm11, %v177_v42  }
  0x86   :  { %184 = vst.msk [vmem:[#allocation0 + $0x2a] sm:$0xc0] %vm146_vm11, %v177_v42  }
  0x88   :  { %v210_v43 = vpop.permute.xlu1 %209  }
  0x89   :  { %213 = vst.msk [vmem:[#allocation0 + $0x12] ss:$6 sm:$0x3] %vm146_vm11, %v210_v43   ;;  %215 = vst.msk [vmem:[#allocation0 + $0x17] sm:$0xc] %vm146_vm11, %v210_v43   ;;  %v245_v44 = vpop.permute.xlu0 %244  }
  0x8a   :  { %217 = vst.msk [vmem:[#allocation0 + $0x1a] ss:$6 sm:$0x30] %vm146_vm11, %v210_v43   ;;  %219 = vst.msk [vmem:[#allocation0 + $0x33] sm:$0xc0] %vm146_vm11, %v210_v43  }
  0x8b   :  { %247 = vst.msk [vmem:[#allocation0] sm:$0x7] %vm246_vm12, %v245_v44   ;;  %249 = vst.msk [vmem:[#allocation0 + $0x5] sm:$0x38] %vm246_vm12, %v245_v44  }
  0x8c   :  { %251 = vst.msk [vmem:[#allocation0 + $0xa] sm:$0xc0] %vm246_vm12, %v245_v44  }
  0x8d   :  { %v277_v45 = vpop.permute.xlu1 %276  }
  0x8e   :  { %280 = vst.msk [vmem:[#allocation0 + $0x20] sm:$0x7] %vm246_vm12, %v277_v45   ;;  %282 = vst.msk [vmem:[#allocation0 + $0x25] sm:$0x38] %vm246_vm12, %v277_v45  }
  0x8f   :  { %284 = vst.msk [vmem:[#allocation0 + $0x2a] sm:$0xc0] %vm246_vm12, %v277_v45  }
  0x90   :  { %v310_v46 = vpop.permute.xlu0 %309  }
  0x91   :  { %313 = vst.msk [vmem:[#allocation0 + $0x12] ss:$6 sm:$0x3] %vm246_vm12, %v310_v46   ;;  %315 = vst.msk [vmem:[#allocation0 + $0x17] sm:$0xc] %vm246_vm12, %v310_v46  }
  0x92   :  { %317 = vst.msk [vmem:[#allocation0 + $0x1a] ss:$6 sm:$0x30] %vm246_vm12, %v310_v46   ;;  %319 = vst.msk [vmem:[#allocation0 + $0x33] sm:$0xc0] %vm246_vm12, %v310_v46  }
  0x93   :  { %v323_v47 = vld [vmem:[#allocation0] sm:$0xf]  ;;  %v327_v48 = vld [vmem:[#allocation0 + $0x8] sm:$0xf] }
  0x94   :  { %325 = vst [vmem:[%s735_s1] sm:$0xf] %v323_v47  ;;  %429 = vst [vmem:[%s735_s1 + $0x4] sm:$0xf] %v327_v48 }
  0x95   :  { %v344_v49 = vld [vmem:[#allocation0 + $0x20] sm:$0xf]  ;;  %v350_v50 = vld [vmem:[#allocation0 + $0x28] sm:$0xf] }
  0x96   :  { %432 = vst [vmem:[%s735_s1 + $0x10] sm:$0xf] %v344_v49  ;;  %433 = vst [vmem:[%s735_s1 + $0x14] sm:$0xf] %v350_v50 }
  0x98   :  { %v338_v51 = vld [vmem:[#allocation0 + $0x18] sm:$0xf]  ;;  %v332_v53 = vld [vmem:[#allocation0 + $0x10] sm:$0xf] }
  0x99   :  { %v362_v52 = vld [vmem:[#allocation0 + $0x38] sm:$0xf]  ;;  %431 = vst [vmem:[%s735_s1 + $0xc] sm:$0xf] %v338_v51  ;;  %430 = vst [vmem:[%s735_s1 + $0x8] sm:$0xf] %v332_v53 }
  0x9a   :  { %435 = vst [vmem:[%s735_s1 + $0x1c] sm:$0xf] %v362_v52  ;;  %v356_v54 = vld [vmem:[#allocation0 + $0x30] sm:$0xf] }
  0x9b   :  { %434 = vst [vmem:[%s735_s1 + $0x18] sm:$0xf] %v356_v54 }

// kernel: forward.1
= control target key start
LH: loop header
LB: loop body
LE: loop exit
PB: predicated region body
PF: predicated region fallthrough
CT: control target
= control target key end

     0   :  { %v22517_v2 = vmov 0.0   ;;  %s16949_s16 = smov 32   ;;  %s16950_s29 = smov 33   ;;  %v58_v9 = vlaneseq  ;;  %vm178_vm1 = vcmask 64512   ;;  %vm4319_vm9 = vcmask 261120   ;;  %s22507_s0 = inlined_call_operand.vmem [shape: f32[8,1024], index: 0, kind: input, shape index: {}]   ;;  %s22508_s1 = inlined_call_operand.vmem [shape: f32[9,1024], index: 1, kind: input, shape index: {}]   ;;  %s22509_s2 = inlined_call_operand.vmem [shape: f32[720,32], index: 2, kind: input, shape index: {}]   ;;  %s22510_s3 = inlined_call_operand.vmem [shape: f32[16,1024], index: 3, kind: output, shape index: {}]  }
   0x1   :  { %v16981_v0 = vld [vmem:[%s22507_s0 + $0x10] sm:$0xff]  ;;  %v16986_v1 = vld [vmem:[%s22507_s0 + $0x8] sm:$0xff]  ;;  %344 = vmatprep.mubr.f32.mxu1 %v22517_v2  ;;  %255 = vmatprep.mubr.f32.mxu0 %v22517_v2  ;;  %v16997_v3 = vld [vmem:[%s22507_s0 + $0x18] sm:$0xff]  ;;  %s16952_s30 = smov 1   ;;  %s16953_s4 = smov 127   ;;  %vm8199_vm10 = vcmask 130048  }
   0x2   :  { %117 = vrot.lane.b32.xlu0 %v16981_v0, %s16949_s16  ;;  %115 = vrot.lane.b32.xlu1 %v16986_v1, %s16949_s16  ;;  %v17002_v4 = vld [vmem:[%s22507_s0] sm:$0xff]  ;;  %v17011_v5 = vld [vmem:[%s22507_s0 + $0x38] sm:$0xff]  ;;  %s16954_s5 = smov 97   ;;  %s16955_s6 = smov 96   ;;  %v17132_v10 = vshrl.u32 %v58_v9, 7  ;;  %v17134_v11 = vand.u32 127, %v58_v9 }
   0x3   :  { %v17016_v6 = vld [vmem:[%s22507_s0 + $0x30] sm:$0xff]  ;;  %v17025_v7 = vld [vmem:[%s22507_s0 + $0x28] sm:$0xff]  ;;  %v17030_v8 = vld [vmem:[%s22507_s0 + $0x20] sm:$0xff]  ;;  %s16951_s0 = smov 31   ;;  %s16956_s7 = smov 95  }
   0x4   :  { %v17143_v12 = vld [vmem:[%s22508_s1 + $0x18] sm:$0xff]  ;;  %v140_v13 = vsub.s32 1, %v17132_v10  ;;  %v17149_v14 = vld [vmem:[%s22508_s1 + $0x8] sm:$0xff]  ;;  %v17154_v17 = vld [vmem:[%s22508_s1 + $0x10] sm:$0xff]  ;;  %vm129_vm0 = vcmp.lt.s32.totalorder %v17134_v11, 32  ;;  %v17230_v43 = vsub.s32 0, %v17132_v10 }
   0x5   :  { %v17166_v20 = vld [vmem:[%s22508_s1] sm:$0xff]  ;;  %v17178_v22 = vld [vmem:[%s22508_s1 + $0x38] sm:$0xff]  ;;  %v17189_v28 = vld [vmem:[%s22508_s1 + $0x30] sm:$0xff]  ;;  %vm60_vm2 = vcmp.lt.s32.totalorder %v17134_v11, 33  ;;  %vm935_vm3 = vcmp.lt.s32.totalorder %v17134_v11, 31  ;;  %vm1404_vm4 = vcmp.lt.s32.totalorder %v17134_v11, 1 }
   0x6   :  { %119 = vrot.lane.b32.xlu0 %v16997_v3, %s16949_s16  ;;  %113 = vrot.lane.b32.xlu1 %v17002_v4, %s16949_s16  ;;  %v17158_v18 = vrot.slane %v17143_v12, %v140_v13  ;;  %v17161_v19 = vrot.slane %v17149_v14, %v140_v13  ;;  %v17173_v21 = vrot.slane %v17154_v17, %v140_v13  ;;  %v17199_v32 = vld [vmem:[%s22508_s1 + $0x20] sm:$0xff]  ;;  %v17217_v36 = vld [vmem:[%s22508_s1 + $0x28] sm:$0xff]  ;;  %vm2277_vm5 = vcmp.lt.s32.totalorder %v17134_v11, 127 }
   0x7   :  { %v17192_v29 = vrot.slane %v17166_v20, %v140_v13  ;;  %v17202_v33 = vrot.slane %v17178_v22, %v140_v13  ;;  %v17212_v35 = vld [vmem:[%s22509_s2 + $0x20] sm:$0xff]  ;;  %v17220_v39 = vrot.slane %v17189_v28, %v140_v13  ;;  %v17227_v42 = vrot.slane %v17199_v32, %v140_v13  ;;  %v17245_v47 = vld [vmem:[%s22509_s2 + $0x28] sm:$0xff]  ;;  %v17272_v57 = vld [vmem:[%s22509_s2 + $0x30] sm:$0xff] }
   0x8   :  { %22758 = vst [vmem:[#allocation2_spill] sm:$0xff] %v17158_v18  ;;  %22759 = vst [vmem:[#allocation3_spill] sm:$0xff] %v17161_v19  ;;  %v17237_v46 = vrot.slane %v17217_v36, %v140_v13  ;;  %v17259_v53 = vrot.slane %v17143_v12, %v17230_v43  ;;  %v17286_v62 = vrot.slane %v17149_v14, %v17230_v43  ;;  %v17293_v63 = vld [vmem:[%s22509_s2 + $0x38] sm:$0xff]  ;;  %vm2746_vm6 = vcmp.lt.s32.totalorder %v17134_v11, 97 }
   0x9   :  { %22760 = vst [vmem:[#allocation4_spill] sm:$0xff] %v17173_v21  ;;  %22761 = vst [vmem:[#allocation5_spill] sm:$0xff] %v17192_v29  ;;  %v17297_v9 = vrot.slane %v17154_v17, %v17230_v43  ;;  %vm3215_vm7 = vcmp.lt.s32.totalorder %v17134_v11, 96  ;;  %vm3684_vm8 = vcmp.lt.s32.totalorder %v17134_v11, 95  ;;  %v14174_v11 = vld [vmem:[%s22509_s2 + $0x280] sm:$0xff] }
   0xa   :  { %127 = vrot.lane.b32.xlu0 %v17011_v5, %s16949_s16  ;;  %125 = vrot.lane.b32.xlu1 %v17016_v6, %s16949_s16  ;;  %22762 = vst [vmem:[#allocation6_spill] sm:$0xff] %v17202_v33  ;;  %22763 = vst [vmem:[#allocation7_spill] sm:$0xff] %v17220_v39 }
   0xb   :  { %22764 = vst [vmem:[#allocation8_spill] sm:$0xff] %v17227_v42  ;;  %22765 = vst [vmem:[#allocation9_spill] sm:$0xff] %v17237_v46 }
   0xc   :  { %22766 = vst [vmem:[#allocation10_spill] sm:$0xff] %v17259_v53  ;;  %22767 = vst [vmem:[#allocation11_spill] sm:$0xff] %v17286_v62 }
   0xd   :  { %22768 = vst [vmem:[#allocation12_spill] sm:$0xff] %v17297_v9 }
   0xe   :  { %123 = vrot.lane.b32.xlu0 %v17025_v7, %s16949_s16  ;;  %121 = vrot.lane.b32.xlu1 %v17030_v8, %s16949_s16 }
  0x12   :  { %48 = vrot.lane.b32.xlu1 %v16997_v3, %s16950_s29  ;;  %46 = vrot.lane.b32.xlu0 %v16981_v0, %s16950_s29 }
  0x16   :  { %42 = vrot.lane.b32.xlu1 %v17002_v4, %s16950_s29  ;;  %44 = vrot.lane.b32.xlu0 %v16986_v1, %s16950_s29 }
  0x1a   :  { %54 = vrot.lane.b32.xlu1 %v17016_v6, %s16950_s29  ;;  %56 = vrot.lane.b32.xlu0 %v17011_v5, %s16950_s29 }
  0x1e   :  { %50 = vrot.lane.b32.xlu1 %v17030_v8, %s16950_s29  ;;  %52 = vrot.lane.b32.xlu0 %v17025_v7, %s16950_s29 }
  0x22   :  { %925 = vrot.lane.b32.xlu1 %v16997_v3, %s16951_s0  ;;  %923 = vrot.lane.b32.xlu0 %v16981_v0, %s16951_s0 }
  0x26   :  { %919 = vrot.lane.b32.xlu1 %v17002_v4, %s16951_s0  ;;  %921 = vrot.lane.b32.xlu0 %v16986_v1, %s16951_s0 }
  0x2a   :  { %931 = vrot.lane.b32.xlu1 %v17016_v6, %s16951_s0  ;;  %933 = vrot.lane.b32.xlu0 %v17011_v5, %s16951_s0 }
  0x2e   :  { %927 = vrot.lane.b32.xlu1 %v17030_v8, %s16951_s0  ;;  %929 = vrot.lane.b32.xlu0 %v17025_v7, %s16951_s0 }
  0x32   :  { %1394 = vrot.lane.b32.xlu1 %v16997_v3, %s16952_s30  ;;  %1392 = vrot.lane.b32.xlu0 %v16981_v0, %s16952_s30 }
  0x36   :  { %1388 = vrot.lane.b32.xlu1 %v17002_v4, %s16952_s30  ;;  %1390 = vrot.lane.b32.xlu0 %v16986_v1, %s16952_s30 }
  0x3a   :  { %1400 = vrot.lane.b32.xlu1 %v17016_v6, %s16952_s30  ;;  %1402 = vrot.lane.b32.xlu0 %v17011_v5, %s16952_s30 }
  0x3e   :  { %1396 = vrot.lane.b32.xlu1 %v17030_v8, %s16952_s30  ;;  %1398 = vrot.lane.b32.xlu0 %v17025_v7, %s16952_s30 }
  0x42   :  { %2269 = vrot.lane.b32.xlu1 %v17030_v8, %s16953_s4  ;;  %2267 = vrot.lane.b32.xlu0 %v16997_v3, %s16953_s4 }
  0x46   :  { %2263 = vrot.lane.b32.xlu1 %v16986_v1, %s16953_s4  ;;  %2265 = vrot.lane.b32.xlu0 %v16981_v0, %s16953_s4 }
  0x4a   :  { %2275 = vrot.lane.b32.xlu1 %v17011_v5, %s16953_s4  ;;  %2261 = vrot.lane.b32.xlu0 %v17002_v4, %s16953_s4 }
  0x4e   :  { %2271 = vrot.lane.b32.xlu1 %v17025_v7, %s16953_s4  ;;  %2273 = vrot.lane.b32.xlu0 %v17016_v6, %s16953_s4 }
  0x52   :  { %2738 = vrot.lane.b32.xlu1 %v17030_v8, %s16954_s5  ;;  %2736 = vrot.lane.b32.xlu0 %v16997_v3, %s16954_s5 }
  0x56   :  { %2732 = vrot.lane.b32.xlu1 %v16986_v1, %s16954_s5  ;;  %2734 = vrot.lane.b32.xlu0 %v16981_v0, %s16954_s5 }
  0x5a   :  { %2744 = vrot.lane.b32.xlu1 %v17011_v5, %s16954_s5  ;;  %2730 = vrot.lane.b32.xlu0 %v17002_v4, %s16954_s5 }
  0x5e   :  { %2740 = vrot.lane.b32.xlu1 %v17025_v7, %s16954_s5  ;;  %2742 = vrot.lane.b32.xlu0 %v17016_v6, %s16954_s5 }
  0x62   :  { %3207 = vrot.lane.b32.xlu1 %v17030_v8, %s16955_s6  ;;  %3205 = vrot.lane.b32.xlu0 %v16997_v3, %s16955_s6 }
  0x66   :  { %3201 = vrot.lane.b32.xlu1 %v16986_v1, %s16955_s6  ;;  %3203 = vrot.lane.b32.xlu0 %v16981_v0, %s16955_s6 }
  0x6a   :  { %3213 = vrot.lane.b32.xlu1 %v17011_v5, %s16955_s6  ;;  %3199 = vrot.lane.b32.xlu0 %v17002_v4, %s16955_s6 }
  0x6e   :  { %3209 = vrot.lane.b32.xlu1 %v17025_v7, %s16955_s6  ;;  %3211 = vrot.lane.b32.xlu0 %v17016_v6, %s16955_s6 }
  0x72   :  { %3676 = vrot.lane.b32.xlu1 %v17030_v8, %s16956_s7  ;;  %3674 = vrot.lane.b32.xlu0 %v16997_v3, %s16956_s7 }
  0x74   :  { %v118_v15 = vpop.permute.xlu0 %117  ;;  %v116_v16 = vpop.permute.xlu1 %115 }
  0x75   :  { %v135_v25 = vsel %vm129_vm0, %v116_v16, %v118_v15 }
  0x76   :  { %3670 = vrot.lane.b32.xlu1 %v16986_v1, %s16956_s7  ;;  %3672 = vrot.lane.b32.xlu0 %v16981_v0, %s16956_s7  ;;  %v172_v34 = vmul.f32 %v17173_v21, %v135_v25  ;;  %v17311_v25 = vrot.slane %v17178_v22, %v17230_v43 }
  0x78   :  { %v120_v23 = vpop.permute.xlu0 %119  ;;  %v114_v24 = vpop.permute.xlu1 %113  ;;  %22769 = vst [vmem:[#allocation13_spill] sm:$0xff] %v17311_v25 }
  0x79   :  { %v134_v26 = vsel %vm129_vm0, %v118_v15, %v120_v23  ;;  %v136_v27 = vsel %vm129_vm0, %v114_v24, %v116_v16 }
  0x7a   :  { %v173_v30 = vmul.f32 %v17158_v18, %v134_v26  ;;  %v171_v31 = vmul.f32 %v17161_v19, %v136_v27  ;;  %3682 = vrot.lane.b32.xlu1 %v17011_v5, %s16956_s7  ;;  %3668 = vrot.lane.b32.xlu0 %v17002_v4, %s16956_s7  ;;  %v17317_v27 = vrot.slane %v17166_v20, %v17230_v43 }
  0x7c   :  { %280 = vmatprep.subr.mxu1 %v173_v30  ;;  %v128_v37 = vpop.permute.xlu0 %127  ;;  %191 = vmatprep.subr.mxu0 %v171_v31  ;;  %v126_v38 = vpop.permute.xlu1 %125  ;;  %22770 = vst [vmem:[#allocation14_spill] sm:$0xff] %v17317_v27 }
  0x7d   :  { %v130_v40 = vsel %vm129_vm0, %v126_v38, %v128_v37  ;;  %281 = vmatpush1.msra.mxu1 %v172_v34  ;;  %v137_v41 = vsel %vm129_vm0, %v128_v37, %v114_v24 }
  0x7e   :  { %14685 = vmatmul.mubr.msk.f32.vlgmr.msra.gmra.mrb[0].mxu1 %vm178_vm1, %v17212_v35  ;;  %v170_v44 = vmul.f32 %v17192_v29, %v137_v41  ;;  %v177_v45 = vmul.f32 %v17202_v33, %v130_v40  ;;  %3678 = vrot.lane.b32.xlu1 %v17025_v7, %s16956_s7  ;;  %v17331_v40 = vrot.slane %v17217_v36, %v17230_v43 }
  0x7f   :  { %350 = vmatprep.mubr.f32.mxu1 %v22517_v2  ;;  %3680 = vrot.lane.b32.xlu0 %v17016_v6, %s16956_s7 }
  0x80   :  { %v124_v48 = vpop.permute.xlu0 %123  ;;  %192 = vmatpush1.msra.mxu0 %v170_v44  ;;  %v122_v49 = vpop.permute.xlu1 %121  ;;  %458 = vmatprep.subr.mxu1 %v177_v45  ;;  %22771 = vst [vmem:[#allocation15_spill] sm:$0xff] %v17331_v40 }
  0x81   :  { %v131_v50 = vsel %vm129_vm0, %v124_v48, %v126_v38  ;;  %v132_v51 = vsel %vm129_vm0, %v122_v49, %v124_v48  ;;  %v133_v52 = vsel %vm129_vm0, %v120_v23, %v122_v49  ;;  %14681 = vmatmul.mubr.msk.f32.vlgmr.msra.gmra.mrb[0].mxu0 %vm178_vm1, %v17212_v35 }
  0x82   :  { %v176_v54 = vmul.f32 %v17220_v39, %v131_v50  ;;  %v174_v55 = vmul.f32 %v17227_v42, %v133_v52  ;;  %14686 = vmatmul.mubr.msk.f32.gmra.mrb[2].mxu1 %vm178_vm1, %v17245_v47  ;;  %261 = vmatprep.mubr.f32.mxu0 %v22517_v2  ;;  %v175_v56 = vmul.f32 %v17237_v46, %v132_v51  ;;  %v17345_v50 = vsub.s32 2, %v17132_v10 }
  0x83   :  { %356 = vmatprep.mubr.f32.mxu1 %v22517_v2  ;;  %v17358_v52 = vrot.slane %v17189_v28, %v17230_v43 }
  0x84   :  { %369 = vmatprep.subr.mxu0 %v175_v56  ;;  %459 = vmatpush1.msra.mxu1 %v176_v54  ;;  %v17274_v58 = vpop.permute.xlu1 %48  ;;  %v47_v59 = vpop.permute.xlu0 %46 }
  0x85   :  { %14682 = vmatmul.mubr.msk.f32.gmra.mrb[2].mxu0 %vm178_vm1, %v17245_v47  ;;  %v65_v60 = vsel %vm60_vm2, %v47_v59, %v17274_v58  ;;  %22772 = vst [vmem:[#allocation16_spill] sm:$0xff] %v17358_v52 }
  0x86   :  { %370 = vmatpush1.msra.mxu0 %v174_v55  ;;  %14687 = vmatmul.mubr.msk.f32.gmra.mrb[4].mxu1 %vm178_vm1, %v17272_v57  ;;  %v104_v61 = vmul.f32 %v17259_v53, %v65_v60 }
  0x87   :  { %267 = vmatprep.mubr.f32.mxu0 %v22517_v2  ;;  %362 = vmatprep.mubr.f32.mxu1 %v22517_v2 }
  0x88   :  { %v43_v13 = vpop.permute.xlu1 %42  ;;  %v45_v15 = vpop.permute.xlu0 %44  ;;  %648 = vmatprep.subr.mxu1 %v104_v61 }
  0x89   :  { %14683 = vmatmul.mubr.msk.f32.gmra.mrb[4].mxu0 %vm178_vm1, %v17272_v57  ;;  %v66_v16 = vsel %vm60_vm2, %v45_v15, %v47_v59  ;;  %v67_v23 = vsel %vm60_vm2, %v43_v13, %v45_v15  ;;  %v38_v59 = vld [vmem:[%s22509_s2] sm:$0xff]  ;;  %v17386_v15 = vrot.slane %v17149_v14, %v17345_v50 }
  0x8a   :  { %14688 = vmatmul.mubr.msk.f32.gmra.mrb[6].mxu1 %vm178_vm1, %v17293_v63  ;;  %273 = vmatprep.mubr.f32.mxu0 %v22517_v2  ;;  %v102_v24 = vmul.f32 %v17286_v62, %v67_v23  ;;  %v103_v26 = vmul.f32 %v17297_v9, %v66_v16 }
  0x8b   :  { %522 = vmatprep.mubr.f32.mxu1 %v22517_v2  ;;  %22775 = vst [vmem:[#allocation19_spill] sm:$0xff] %v17386_v15 }
  0x8c   :  { %v55_v30 = vpop.permute.xlu1 %54  ;;  %559 = vmatprep.subr.mxu0 %v102_v24  ;;  %v57_v31 = vpop.permute.xlu0 %56 }
  0x8d   :  { %14684 = vmatmul.mubr.msk.f32.gmra.mrb[6].mxu0 %vm178_vm1, %v17293_v63  ;;  %v61_v34 = vsel %vm60_vm2, %v55_v30, %v57_v31  ;;  %v68_v37 = vsel %vm60_vm2, %v57_v31, %v43_v13  ;;  %v41_v31 = vld [vmem:[%s22509_s2 + $0x18] sm:$0xff] }
  0x8e   :  { %14693 = vmatmul.mubr.msk.f32.vlgmr.msra.gmra.mrb[8].mxu1 %vm178_vm1, %v17212_v35  ;;  %433 = vmatprep.mubr.f32.mxu0 %v22517_v2  ;;  %v108_v38 = vmul.f32 %v17311_v25, %v61_v34  ;;  %v101_v41 = vmul.f32 %v17317_v27, %v68_v37  ;;  %v17419_v34 = vrot.slane %v17154_v17, %v17345_v50 }
  0x8f   :  { %528 = vmatprep.mubr.f32.mxu1 %v22517_v2  ;;  %649 = vmatpush1.msra.mxu1 %v103_v26 }
  0x90   :  { %v51_v44 = vpop.permute.xlu1 %50  ;;  %v53_v45 = vpop.permute.xlu0 %52  ;;  %826 = vmatprep.subr.mxu1 %v108_v38  ;;  %22776 = vst [vmem:[#allocation20_spill] sm:$0xff] %v17419_v34  ;;  %v17425_v38 = vrot.slane %v17178_v22, %v17345_v50 }
  0x91   :  { %14689 = vmatmul.mubr.msk.f32.vlgmr.msra.gmra.mrb[8].mxu0 %vm178_vm1, %v17212_v35  ;;  %v63_v48 = vsel %vm60_vm2, %v51_v44, %v53_v45  ;;  %v62_v54 = vsel %vm60_vm2, %v53_v45, %v55_v30  ;;  %v64_v16 = vsel %vm60_vm2, %v17274_v58, %v51_v44 }
  0x92   :  { %14694 = vmatmul.mubr.msk.f32.gmra.mrb[10].mxu1 %vm178_vm1, %v17245_v47  ;;  %439 = vmatprep.mubr.f32.mxu0 %v22517_v2  ;;  %v106_v49 = vmul.f32 %v17331_v40, %v63_v48  ;;  %v107_v56 = vmul.f32 %v17358_v52, %v62_v54  ;;  %22777 = vst [vmem:[#allocation21_spill] sm:$0xff] %v17425_v38 }
  0x93   :  { %534 = vmatprep.mubr.f32.mxu1 %v22517_v2  ;;  %560 = vmatpush1.msra.mxu0 %v101_v41  ;;  %v17436_v48 = vrot.slane %v17166_v20, %v17345_v50 }
  0x94   :  { %737 = vmatprep.subr.mxu0 %v106_v49  ;;  %v17353_v35 = vpop.permute.xlu1 %925  ;;  %v924_v51 = vpop.permute.xlu0 %923 }
  0x95   :  { %14690 = vmatmul.mubr.msk.f32.gmra.mrb[10].mxu0 %vm178_vm1, %v17245_v47  ;;  %v17364_v47 = vrot.slane %v17143_v12, %v17345_v50  ;;  %v940_v55 = vsel %vm935_vm3, %v924_v51, %v17353_v35  ;;  %22778 = vst [vmem:[#allocation22_spill] sm:$0xff] %v17436_v48 }
  0x96   :  { %14695 = vmatmul.mubr.msk.f32.gmra.mrb[12].mxu1 %vm178_vm1, %v17272_v57  ;;  %445 = vmatprep.mubr.f32.mxu0 %v22517_v2 }
  0x97   :  { %540 = vmatprep.mubr.f32.mxu1 %v22517_v2  ;;  %22773 = vst [vmem:[#allocation17_spill] sm:$0xff] %v17364_v47  ;;  %v979_v13 = vmul.f32 %v17364_v47, %v940_v55  ;;  %v17443_v55 = vrot.slane %v17217_v36, %v17345_v50 }
  0x98   :  { %v920_v60 = vpop.permute.xlu1 %919  ;;  %v922_v61 = vpop.permute.xlu0 %921 }
  0x99   :  { %14691 = vmatmul.mubr.msk.f32.gmra.mrb[12].mxu0 %vm178_vm1, %v17272_v57  ;;  %v17381_v57 = vrot.slane %v17199_v32, %v17230_v43  ;;  %v942_v23 = vsel %vm935_vm3, %v920_v60, %v922_v61  ;;  %v39_v43 = vld [vmem:[%s22509_s2 + $0x8] sm:$0xff]  ;;  %v941_v37 = vsel %vm935_vm3, %v922_v61, %v924_v51  ;;  %22779 = vst [vmem:[#allocation23_spill] sm:$0xff] %v17443_v55 }
  0x9a   :  { %14696 = vmatmul.mubr.msk.f32.gmra.mrb[14].mxu1 %vm178_vm1, %v17293_v63  ;;  %451 = vmatprep.mubr.f32.mxu0 %v22517_v2  ;;  %v977_v58 = vmul.f32 %v17386_v15, %v942_v23  ;;  %v978_v45 = vmul.f32 %v17419_v34, %v941_v37  ;;  %v17469_v23 = vrot.slane %v17189_v28, %v17345_v50 }
  0x9b   :  { %712 = vmatprep.mubr.f32.mxu1 %v22517_v2  ;;  %22774 = vst [vmem:[#allocation18_spill] sm:$0xff] %v17381_v57  ;;  %v105_v24 = vmul.f32 %v17381_v57, %v64_v16  ;;  %v17490_v37 = vrot.slane %v17199_v32, %v17345_v50  ;;  %v916_v50 = vld [vmem:[%s22509_s2 + $0x48] sm:$0xff] }
  0x9c   :  { %v934_v26 = vpop.permute.xlu0 %933  ;;  %v932_v30 = vpop.permute.xlu1 %931  ;;  %22780 = vst [vmem:[#allocation24_spill] sm:$0xff] %v17469_v23 }
  0x9d   :  { %14692 = vmatmul.mubr.msk.f32.gmra.mrb[14].mxu0 %vm178_vm1, %v17293_v63  ;;  %v40_v63 = vld [vmem:[%s22509_s2 + $0x10] sm:$0xff]  ;;  %v936_v41 = vsel %vm935_vm3, %v932_v30, %v934_v26  ;;  %v943_v51 = vsel %vm935_vm3, %v934_v26, %v920_v60  ;;  %22782 = vst [vmem:[#allocation26_spill] sm:$0xff] %v17490_v37 }
  0x9e   :  { %14701 = vmatmul.mubr.msk.f32.vlgmr.msra.gmra.mrb[0].mxu1 %vm178_vm1, %v38_v59  ;;  %623 = vmatprep.mubr.f32.mxu0 %v22517_v2  ;;  %v983_v54 = vmul.f32 %v17425_v38, %v936_v41  ;;  %v976_v60 = vmul.f32 %v17436_v48, %v943_v51 }
  0x9f   :  { %718 = vmatprep.mubr.f32.mxu1 %v22517_v2  ;;  %827 = vmatpush1.msra.mxu1 %v107_v56 }
  0xa0   :  { %1085 = vmatprep.subr.mxu1 %v979_v13  ;;  %v930_v44 = vpop.permute.xlu0 %929  ;;  %v928_v49 = vpop.permute.xlu1 %927  ;;  %v17458_v13 = vsub.s32 3, %v17132_v10 }
  0xa1   :  { %14697 = vmatmul.mubr.msk.f32.vlgmr.msra.gmra.mrb[0].mxu0 %vm178_vm1, %v38_v59  ;;  %v938_v56 = vsel %vm935_vm3, %v928_v49, %v930_v44  ;;  %v939_v51 = vsel %vm935_vm3, %v17353_v35, %v928_v49 }
  0xa2   :  { %738 = vmatpush1.msra.mxu0 %v105_v24  ;;  %14702 = vmatmul.mubr.msk.f32.gmra.mrb[2].mxu1 %vm178_vm1, %v39_v43  ;;  %v981_v61 = vmul.f32 %v17443_v55, %v938_v56  ;;  %v937_v24 = vsel %vm935_vm3, %v930_v44, %v932_v30  ;;  %v915_v30 = vld [vmem:[%s22509_s2 + $0x40] sm:$0xff]  ;;  %v980_v56 = vmul.f32 %v17490_v37, %v939_v51 }
  0xa3   :  { %629 = vmatprep.mubr.f32.mxu0 %v22517_v2  ;;  %724 = vmatprep.mubr.f32.mxu1 %v22517_v2  ;;  %v982_v26 = vmul.f32 %v17469_v23, %v937_v24  ;;  %v17527_v24 = vrot.slane %v17154_v17, %v17458_v13 }
  0xa4   :  { %996 = vmatprep.subr.mxu0 %v977_v58  ;;  %v1393_v16 = vpop.permute.xlu0 %1392 }
  0xa5   :  { %14698 = vmatmul.mubr.msk.f32.gmra.mrb[2].mxu0 %vm178_vm1, %v39_v43  ;;  %22784 = vst [vmem:[#allocation28_spill] sm:$0xff] %v17527_v24 }
  0xa6   :  { %14703 = vmatmul.mubr.msk.f32.gmra.mrb[4].mxu1 %vm178_vm1, %v40_v63  ;;  %635 = vmatprep.mubr.f32.mxu0 %v22517_v2 }
  0xa7   :  { %730 = vmatprep.mubr.f32.mxu1 %v22517_v2 }
  0xa8   :  { %v1391_v41 = vpop.permute.xlu0 %1390 }
  0xa9   :  { %14699 = vmatmul.mubr.msk.f32.gmra.mrb[4].mxu0 %vm178_vm1, %v40_v63 }
  0xaa   :  { %14704 = vmatmul.mubr.msk.f32.gmra.mrb[6].mxu1 %vm178_vm1, %v41_v31  ;;  %641 = vmatprep.mubr.f32.mxu0 %v22517_v2 }
  0xab   :  { %890 = vmatprep.mubr.f32.mxu1 %v22517_v2 }
  0xac   :  { %v1403_v49 = vpop.permute.xlu0 %1402 }
  0xad   :  { %14700 = vmatmul.mubr.msk.f32.gmra.mrb[6].mxu0 %vm178_vm1, %v41_v31 }
  0xae   :  { %14709 = vmatmul.mubr.msk.f32.vlgmr.msra.gmra.mrb[8].mxu1 %vm178_vm1, %v38_v59  ;;  %801 = vmatprep.mubr.f32.mxu0 %v22517_v2 }
  0xaf   :  { %896 = vmatprep.mubr.f32.mxu1 %v22517_v2  ;;  %1086 = vmatpush1.msra.mxu1 %v978_v45  ;;  %v17495_v45 = vrot.slane %v17149_v14, %v17458_v13 }
  0xb0   :  { %1263 = vmatprep.subr.mxu1 %v983_v54  ;;  %v1399_v51 = vpop.permute.xlu0 %1398 }
  0xb1   :  { %14705 = vmatmul.mubr.msk.f32.vlgmr.msra.gmra.mrb[8].mxu0 %vm178_vm1, %v38_v59  ;;  %v17464_v59 = vpop.permute.xlu1 %1394  ;;  %22783 = vst [vmem:[#allocation27_spill] sm:$0xff] %v17495_v45 }
  0xb2   :  { %14710 = vmatmul.mubr.msk.f32.gmra.mrb[10].mxu1 %vm178_vm1, %v39_v43  ;;  %807 = vmatprep.mubr.f32.mxu0 %v22517_v2  ;;  %v1409_v58 = vsel %vm1404_vm4, %v1393_v16, %v17464_v59 }
  0xb3   :  { %902 = vmatprep.mubr.f32.mxu1 %v22517_v2  ;;  %997 = vmatpush1.msra.mxu0 %v976_v60 }
  0xb4   :  { %1174 = vmatprep.subr.mxu0 %v981_v61  ;;  %v918_v61 = vld [vmem:[%s22509_s2 + $0x58] sm:$0xff] }
  0xb5   :  { %14706 = vmatmul.mubr.msk.f32.gmra.mrb[10].mxu0 %vm178_vm1, %v39_v43  ;;  %v17475_v43 = vrot.slane %v17143_v12, %v17458_v13 }
  0xb6   :  { %14711 = vmatmul.mubr.msk.f32.gmra.mrb[12].mxu1 %vm178_vm1, %v40_v63  ;;  %813 = vmatprep.mubr.f32.mxu0 %v22517_v2 }
  0xb7   :  { %908 = vmatprep.mubr.f32.mxu1 %v22517_v2  ;;  %22781 = vst [vmem:[#allocation25_spill] sm:$0xff] %v17475_v43  ;;  %v1448_v44 = vmul.f32 %v17475_v43, %v1409_v58  ;;  %v1410_v58 = vsel %vm1404_vm4, %v1391_v41, %v1393_v16  ;;  %v17544_v16 = vrot.slane %v17166_v20, %v17458_v13 }
  0xb9   :  { %14707 = vmatmul.mubr.msk.f32.gmra.mrb[12].mxu0 %vm178_vm1, %v40_v63  ;;  %v1389_v63 = vpop.permute.xlu1 %1388  ;;  %22786 = vst [vmem:[#allocation30_spill] sm:$0xff] %v17544_v16 }
  0xba   :  { %14712 = vmatmul.mubr.msk.f32.gmra.mrb[14].mxu1 %vm178_vm1, %v41_v31  ;;  %819 = vmatprep.mubr.f32.mxu0 %v22517_v2  ;;  %v1411_v54 = vsel %vm1404_vm4, %v1389_v63, %v1391_v41 }
  0xbb   :  { %1149 = vmatprep.mubr.f32.mxu1 %v22517_v2  ;;  %v1446_v35 = vmul.f32 %v17495_v45, %v1411_v54  ;;  %v1447_v54 = vmul.f32 %v17527_v24, %v1410_v58  ;;  %v17551_v45 = vrot.slane %v17217_v36, %v17458_v13 }
  0xbd   :  { %14708 = vmatmul.mubr.msk.f32.gmra.mrb[14].mxu0 %vm178_vm1, %v41_v31  ;;  %v917_v31 = vld [vmem:[%s22509_s2 + $0x50] sm:$0xff]  ;;  %v1401_v60 = vpop.permute.xlu1 %1400  ;;  %22787 = vst [vmem:[#allocation31_spill] sm:$0xff] %v17551_v45 }
  0xbe   :  { %14717 = vmatmul.mubr.msk.f32.vlgmr.msra.gmra.mrb[0].mxu1 %vm178_vm1, %v915_v30  ;;  %1060 = vmatprep.mubr.f32.mxu0 %v22517_v2 }
  0xbf   :  { %1155 = vmatprep.mubr.f32.mxu1 %v22517_v2  ;;  %1264 = vmatpush1.msra.mxu1 %v982_v26  ;;  %v17533_v26 = vrot.slane %v17178_v22, %v17458_v13 }
  0xc0   :  { %1554 = vmatprep.subr.mxu1 %v1448_v44  ;;  %v1405_v44 = vsel %vm1404_vm4, %v1401_v60, %v1403_v49 }
  0xc1   :  { %14713 = vmatmul.mubr.msk.f32.vlgmr.msra.gmra.mrb[0].mxu0 %vm178_vm1, %v915_v30  ;;  %22785 = vst [vmem:[#allocation29_spill] sm:$0xff] %v17533_v26  ;;  %v1397_v41 = vpop.permute.xlu1 %1396 }
  0xc2   :  { %1175 = vmatpush1.msra.mxu0 %v980_v56  ;;  %14718 = vmatmul.mubr.msk.f32.gmra.mrb[2].mxu1 %vm178_vm1, %v916_v50  ;;  %v1412_v56 = vsel %vm1404_vm4, %v1403_v49, %v1389_v63  ;;  %v1407_v58 = vsel %vm1404_vm4, %v1397_v41, %v1399_v51 }
  0xc3   :  { %1066 = vmatprep.mubr.f32.mxu0 %v22517_v2  ;;  %1161 = vmatprep.mubr.f32.mxu1 %v22517_v2  ;;  %v1445_v63 = vmul.f32 %v17544_v16, %v1412_v56  ;;  %v1450_v49 = vmul.f32 %v17551_v45, %v1407_v58  ;;  %v17585_v56 = vrot.slane %v17199_v32, %v17458_v13 }
  0xc4   :  { %1465 = vmatprep.subr.mxu0 %v1446_v35  ;;  %v1452_v35 = vmul.f32 %v17533_v26, %v1405_v44  ;;  %v17571_v44 = vrot.slane %v17189_v28, %v17458_v13 }
  0xc5   :  { %14714 = vmatmul.mubr.msk.f32.gmra.mrb[2].mxu0 %vm178_vm1, %v916_v50  ;;  %22789 = vst [vmem:[#allocation33_spill] sm:$0xff] %v17585_v56 }
  0xc6   :  { %14719 = vmatmul.mubr.msk.f32.gmra.mrb[4].mxu1 %vm178_vm1, %v917_v31  ;;  %1072 = vmatprep.mubr.f32.mxu0 %v22517_v2  ;;  %22788 = vst [vmem:[#allocation32_spill] sm:$0xff] %v17571_v44 }
  0xc7   :  { %1167 = vmatprep.mubr.f32.mxu1 %v22517_v2 }
  0xc9   :  { %14715 = vmatmul.mubr.msk.f32.gmra.mrb[4].mxu0 %vm178_vm1, %v917_v31 }
  0xca   :  { %14720 = vmatmul.mubr.msk.f32.gmra.mrb[6].mxu1 %vm178_vm1, %v918_v61  ;;  %1078 = vmatprep.mubr.f32.mxu0 %v22517_v2 }
  0xcb   :  { %1327 = vmatprep.mubr.f32.mxu1 %v22517_v2 }
  0xcd   :  { %14716 = vmatmul.mubr.msk.f32.gmra.mrb[6].mxu0 %vm178_vm1, %v918_v61 }
  0xce   :  { %14725 = vmatmul.mubr.msk.f32.vlgmr.msra.gmra.mrb[8].mxu1 %vm178_vm1, %v915_v30  ;;  %1238 = vmatprep.mubr.f32.mxu0 %v22517_v2 }
  0xcf   :  { %1333 = vmatprep.mubr.f32.mxu1 %v22517_v2  ;;  %1555 = vmatpush1.msra.mxu1 %v1447_v54  ;;  %v1384_v54 = vld [vmem:[%s22509_s2 + $0x60] sm:$0xff] }
  0xd0   :  { %1732 = vmatprep.subr.mxu1 %v1452_v35 }
  0xd1   :  { %14721 = vmatmul.mubr.msk.f32.vlgmr.msra.gmra.mrb[8].mxu0 %vm178_vm1, %v915_v30  ;;  %v1406_v30 = vsel %vm1404_vm4, %v1399_v51, %v1401_v60  ;;  %v1385_v60 = vld [vmem:[%s22509_s2 + $0x68] sm:$0xff] }
  0xd2   :  { %14726 = vmatmul.mubr.msk.f32.gmra.mrb[10].mxu1 %vm178_vm1, %v916_v50  ;;  %1244 = vmatprep.mubr.f32.mxu0 %v22517_v2 }
  0xd3   :  { %1339 = vmatprep.mubr.f32.mxu1 %v22517_v2  ;;  %1466 = vmatpush1.msra.mxu0 %v1445_v63 }
  0xd4   :  { %1643 = vmatprep.subr.mxu0 %v1450_v49  ;;  %v1854_v49 = vld [vmem:[%s22509_s2 + $0x88] sm:$0xff] }
  0xd5   :  { %14722 = vmatmul.mubr.msk.f32.gmra.mrb[10].mxu0 %vm178_vm1, %v916_v50  ;;  %v1451_v50 = vmul.f32 %v17571_v44, %v1406_v30 }
  0xd6   :  { %14727 = vmatmul.mubr.msk.f32.gmra.mrb[12].mxu1 %vm178_vm1, %v917_v31  ;;  %1250 = vmatprep.mubr.f32.mxu0 %v22517_v2 }
  0xd7   :  { %1345 = vmatprep.mubr.f32.mxu1 %v22517_v2 }
  0xd9   :  { %14723 = vmatmul.mubr.msk.f32.gmra.mrb[12].mxu0 %vm178_vm1, %v917_v31  ;;  %v1408_v31 = vsel %vm1404_vm4, %v17464_v59, %v1397_v41  ;;  %v1386_v59 = vld [vmem:[%s22509_s2 + $0x70] sm:$0xff] }
  0xda   :  { %14728 = vmatmul.mubr.msk.f32.gmra.mrb[14].mxu1 %vm178_vm1, %v918_v61  ;;  %1256 = vmatprep.mubr.f32.mxu0 %v22517_v2  ;;  %v1449_v13 = vmul.f32 %v17585_v56, %v1408_v31  ;;  %v1856_v31 = vld [vmem:[%s22509_s2 + $0x98] sm:$0xff] }
  0xdb   :  { %1618 = vmatprep.mubr.f32.mxu1 %v22517_v2 }
  0xdd   :  { %14724 = vmatmul.mubr.msk.f32.gmra.mrb[14].mxu0 %vm178_vm1, %v918_v61  ;;  %v1853_v61 = vld [vmem:[%s22509_s2 + $0x80] sm:$0xff] }
  0xde   :  { %14733 = vmatmul.mubr.msk.f32.vlgmr.msra.gmra.mrb[0].mxu1 %vm178_vm1, %v1384_v54  ;;  %1529 = vmatprep.mubr.f32.mxu0 %v22517_v2 }
  0xdf   :  { %1624 = vmatprep.mubr.f32.mxu1 %v22517_v2  ;;  %1733 = vmatpush1.msra.mxu1 %v1451_v50  ;;  %v1855_v50 = vld [vmem:[%s22509_s2 + $0x90] sm:$0xff] }
  0xe0   :  { %1958 = vmatprep.subr.mxu1 %v16997_v3  ;;  %v1387_v3 = vld [vmem:[%s22509_s2 + $0x78] sm:$0xff] }
  0xe1   :  { %14729 = vmatmul.mubr.msk.f32.vlgmr.msra.gmra.mrb[0].mxu0 %vm178_vm1, %v1384_v54 }
  0xe2   :  { %1644 = vmatpush1.msra.mxu0 %v1449_v13  ;;  %14734 = vmatmul.mubr.msk.f32.gmra.mrb[2].mxu1 %vm178_vm1, %v1385_v60 }
  0xe3   :  { %1535 = vmatprep.mubr.f32.mxu0 %v22517_v2  ;;  %1630 = vmatprep.mubr.f32.mxu1 %v22517_v2 }
  0xe4   :  { %1869 = vmatprep.subr.mxu0 %v16986_v1  ;;  %v17631_v1 = vsub.s32 5, %v17132_v10 }
  0xe5   :  { %14730 = vmatmul.mubr.msk.f32.gmra.mrb[2].mxu0 %vm178_vm1, %v1385_v60 }
  0xe6   :  { %14735 = vmatmul.mubr.msk.f32.gmra.mrb[4].mxu1 %vm178_vm1, %v1386_v59  ;;  %1541 = vmatprep.mubr.f32.mxu0 %v22517_v2  ;;  %v17657_v58 = vrot.slane %v17149_v14, %v17631_v1  ;;  %v17693_v13 = vrot.slane %v17178_v22, %v17631_v1 }
  0xe7   :  { %1636 = vmatprep.mubr.f32.mxu1 %v22517_v2 }
  0xe8   :  { %22791 = vst [vmem:[#allocation35_spill] sm:$0xff] %v17657_v58  ;;  %22793 = vst [vmem:[#allocation37_spill] sm:$0xff] %v17693_v13 }
  0xe9   :  { %14731 = vmatmul.mubr.msk.f32.gmra.mrb[4].mxu0 %vm178_vm1, %v1386_v59 }
  0xea   :  { %14736 = vmatmul.mubr.msk.f32.gmra.mrb[6].mxu1 %vm178_vm1, %v1387_v3  ;;  %1547 = vmatprep.mubr.f32.mxu0 %v22517_v2 }
  0xeb   :  { %1796 = vmatprep.mubr.f32.mxu1 %v22517_v2 }
  0xed   :  { %14732 = vmatmul.mubr.msk.f32.gmra.mrb[6].mxu0 %vm178_vm1, %v1387_v3 }
  0xee   :  { %14741 = vmatmul.mubr.msk.f32.vlgmr.msra.gmra.mrb[8].mxu1 %vm178_vm1, %v1384_v54  ;;  %1707 = vmatprep.mubr.f32.mxu0 %v22517_v2 }
  0xef   :  { %1802 = vmatprep.mubr.f32.mxu1 %v22517_v2  ;;  %1959 = vmatpush1.msra.mxu1 %v16981_v0  ;;  %v17637_v0 = vpop.permute.xlu1 %2269 }
  0xf0   :  { %2136 = vmatprep.subr.mxu1 %v17011_v5  ;;  %v2268_v5 = vpop.permute.xlu0 %2267 }
  0xf1   :  { %14737 = vmatmul.mubr.msk.f32.vlgmr.msra.gmra.mrb[8].mxu0 %vm178_vm1, %v1384_v54 }
  0xf2   :  { %14742 = vmatmul.mubr.msk.f32.gmra.mrb[10].mxu1 %vm178_vm1, %v1385_v60  ;;  %1713 = vmatprep.mubr.f32.mxu0 %v22517_v2 }
  0xf3   :  { %1808 = vmatprep.mubr.f32.mxu1 %v22517_v2  ;;  %1870 = vmatpush1.msra.mxu0 %v17002_v4  ;;  %v17642_v4 = vrot.slane %v17143_v12, %v17631_v1  ;;  %v2264_v51 = vpop.permute.xlu1 %2263 }
  0xf4   :  { %2047 = vmatprep.subr.mxu0 %v17025_v7  ;;  %v2281_v7 = vsel %vm2277_vm5, %v2268_v5, %v17637_v0  ;;  %v2266_v41 = vpop.permute.xlu0 %2265 }
  0xf5   :  { %14738 = vmatmul.mubr.msk.f32.gmra.mrb[10].mxu0 %vm178_vm1, %v1385_v60  ;;  %22790 = vst [vmem:[#allocation34_spill] sm:$0xff] %v17642_v4  ;;  %v2321_v35 = vmul.f32 %v17642_v4, %v2281_v7  ;;  %v2283_v63 = vsel %vm2277_vm5, %v2264_v51, %v2266_v41  ;;  %v17687_v60 = vrot.slane %v17154_v17, %v17631_v1 }
  0xf6   :  { %14743 = vmatmul.mubr.msk.f32.gmra.mrb[12].mxu1 %vm178_vm1, %v1386_v59  ;;  %1719 = vmatprep.mubr.f32.mxu0 %v22517_v2  ;;  %v2319_v30 = vmul.f32 %v17657_v58, %v2283_v63 }
  0xf7   :  { %1814 = vmatprep.mubr.f32.mxu1 %v22517_v2  ;;  %22792 = vst [vmem:[#allocation36_spill] sm:$0xff] %v17687_v60 }
  0xf8   :  { %v2262_v54 = vpop.permute.xlu0 %2261 }
  0xf9   :  { %14739 = vmatmul.mubr.msk.f32.gmra.mrb[12].mxu0 %vm178_vm1, %v1386_v59 }
  0xfa   :  { %14744 = vmatmul.mubr.msk.f32.gmra.mrb[14].mxu1 %vm178_vm1, %v1387_v3  ;;  %1725 = vmatprep.mubr.f32.mxu0 %v22517_v2 }
  0xfb   :  { %2022 = vmatprep.mubr.f32.mxu1 %v22517_v2 }
  0xfd   :  { %14740 = vmatmul.mubr.msk.f32.gmra.mrb[14].mxu0 %vm178_vm1, %v1387_v3  ;;  %v2274_v3 = vpop.permute.xlu0 %2273 }
  0xfe   :  { %14749 = vmatmul.mubr.msk.f32.vlgmr.msra.gmra.mrb[0].mxu1 %vm178_vm1, %v1853_v61  ;;  %1933 = vmatprep.mubr.f32.mxu0 %v22517_v2 }
  0xff   :  { %2028 = vmatprep.mubr.f32.mxu1 %v22517_v2  ;;  %2137 = vmatpush1.msra.mxu1 %v17016_v6  ;;  %v2276_v6 = vpop.permute.xlu1 %2275 }
 0x100   :  { %2427 = vmatprep.subr.mxu1 %v2321_v35  ;;  %v2285_v59 = vsel %vm2277_vm5, %v2276_v6, %v2262_v54  ;;  %v2284_v35 = vsel %vm2277_vm5, %v2262_v54, %v2264_v51 }
 0x101   :  { %14745 = vmatmul.mubr.msk.f32.vlgmr.msra.gmra.mrb[0].mxu0 %vm178_vm1, %v1853_v61  ;;  %v2325_v63 = vmul.f32 %v17693_v13, %v2285_v59  ;;  %v17726_v59 = vsub.s32 6, %v17132_v10 }
 0x102   :  { %14750 = vmatmul.mubr.msk.f32.gmra.mrb[2].mxu1 %vm178_vm1, %v1854_v49  ;;  %1939 = vmatprep.mubr.f32.mxu0 %v22517_v2 }
 0x103   :  { %2034 = vmatprep.mubr.f32.mxu1 %v22517_v2  ;;  %2048 = vmatpush1.msra.mxu0 %v17030_v8  ;;  %v2282_v8 = vsel %vm2277_vm5, %v2266_v41, %v2268_v5  ;;  %v17704_v5 = vrot.slane %v17166_v20, %v17631_v1  ;;  %v2272_v41 = vpop.permute.xlu1 %2271  ;;  %v17765_v13 = vrot.slane %v17149_v14, %v17726_v59 }
 0x104   :  { %2338 = vmatprep.subr.mxu0 %v2319_v30  ;;  %v2320_v7 = vmul.f32 %v17687_v60, %v2282_v8  ;;  %v17711_v30 = vrot.slane %v17217_v36, %v17631_v1  ;;  %v2279_v8 = vsel %vm2277_vm5, %v2272_v41, %v2274_v3 }
 0x105   :  { %14746 = vmatmul.mubr.msk.f32.gmra.mrb[2].mxu0 %vm178_vm1, %v1854_v49  ;;  %22794 = vst [vmem:[#allocation38_spill] sm:$0xff] %v17704_v5  ;;  %v2318_v51 = vmul.f32 %v17704_v5, %v2284_v35  ;;  %v17737_v35 = vrot.slane %v17189_v28, %v17631_v1  ;;  %22799 = vst [vmem:[#allocation43_spill] sm:$0xff] %v17765_v13 }
 0x106   :  { %14751 = vmatmul.mubr.msk.f32.gmra.mrb[4].mxu1 %vm178_vm1, %v1855_v50  ;;  %1945 = vmatprep.mubr.f32.mxu0 %v22517_v2  ;;  %22795 = vst [vmem:[#allocation39_spill] sm:$0xff] %v17711_v30  ;;  %v2323_v54 = vmul.f32 %v17711_v30, %v2279_v8 }
 0x107   :  { %2040 = vmatprep.mubr.f32.mxu1 %v22517_v2  ;;  %22796 = vst [vmem:[#allocation40_spill] sm:$0xff] %v17737_v35 }
 0x109   :  { %14747 = vmatmul.mubr.msk.f32.gmra.mrb[4].mxu0 %vm178_vm1, %v1855_v50 }
 0x10a   :  { %14752 = vmatmul.mubr.msk.f32.gmra.mrb[6].mxu1 %vm178_vm1, %v1856_v31  ;;  %1951 = vmatprep.mubr.f32.mxu0 %v22517_v2 }
 0x10b   :  { %2200 = vmatprep.mubr.f32.mxu1 %v22517_v2 }
 0x10d   :  { %14748 = vmatmul.mubr.msk.f32.gmra.mrb[6].mxu0 %vm178_vm1, %v1856_v31 }
 0x10e   :  { %14757 = vmatmul.mubr.msk.f32.vlgmr.msra.gmra.mrb[8].mxu1 %vm178_vm1, %v1853_v61  ;;  %2111 = vmatprep.mubr.f32.mxu0 %v22517_v2 }
 0x10f   :  { %2206 = vmatprep.mubr.f32.mxu1 %v22517_v2  ;;  %2428 = vmatpush1.msra.mxu1 %v2320_v7  ;;  %v2737_v7 = vpop.permute.xlu0 %2736 }
 0x110   :  { %2605 = vmatprep.subr.mxu1 %v2325_v63  ;;  %v2278_v63 = vsel %vm2277_vm5, %v2274_v3, %v2276_v6  ;;  %v17756_v6 = vld [vmem:[%s22509_s2 + $0xa0] sm:$0xff] }
 0x111   :  { %14753 = vmatmul.mubr.msk.f32.vlgmr.msra.gmra.mrb[8].mxu0 %vm178_vm1, %v1853_v61  ;;  %v17732_v61 = vpop.permute.xlu1 %2738 }
 0x112   :  { %14758 = vmatmul.mubr.msk.f32.gmra.mrb[10].mxu1 %vm178_vm1, %v1854_v49  ;;  %2117 = vmatprep.mubr.f32.mxu0 %v22517_v2  ;;  %v2750_v8 = vsel %vm2746_vm6, %v2737_v7, %v17732_v61 }
 0x113   :  { %2212 = vmatprep.mubr.f32.mxu1 %v22517_v2  ;;  %2339 = vmatpush1.msra.mxu0 %v2318_v51  ;;  %v2324_v51 = vmul.f32 %v17737_v35, %v2278_v63  ;;  %v2280_v63 = vsel %vm2277_vm5, %v17637_v0, %v2272_v41  ;;  %v4133_v41 = vld [vmem:[%s22509_s2 + $0x288] sm:$0xff] }
 0x114   :  { %2516 = vmatprep.subr.mxu0 %v2323_v54  ;;  %v2735_v54 = vpop.permute.xlu0 %2734 }
 0x115   :  { %14754 = vmatmul.mubr.msk.f32.gmra.mrb[10].mxu0 %vm178_vm1, %v1854_v49  ;;  %v17743_v49 = vrot.slane %v17143_v12, %v17726_v59  ;;  %v2733_v3 = vpop.permute.xlu1 %2732 }
 0x116   :  { %14759 = vmatmul.mubr.msk.f32.gmra.mrb[12].mxu1 %vm178_vm1, %v1855_v50  ;;  %2123 = vmatprep.mubr.f32.mxu0 %v22517_v2 }
 0x117   :  { %2218 = vmatprep.mubr.f32.mxu1 %v22517_v2  ;;  %22797 = vst [vmem:[#allocation41_spill] sm:$0xff] %v17743_v49  ;;  %v2790_v30 = vmul.f32 %v17743_v49, %v2750_v8  ;;  %v2258_v8 = vld [vmem:[%s22509_s2 + $0xa8] sm:$0xff] }
 0x119   :  { %14755 = vmatmul.mubr.msk.f32.gmra.mrb[12].mxu0 %vm178_vm1, %v1855_v50  ;;  %v17760_v50 = vrot.slane %v17199_v32, %v17631_v1  ;;  %v22800_v1 = vmov 0.0  }
 0x11a   :  { %14760 = vmatmul.mubr.msk.f32.gmra.mrb[14].mxu1 %vm178_vm1, %v1856_v31  ;;  %2129 = vmatprep.mubr.f32.mxu0 %v22517_v2 }
 0x11b   :  { %2491 = vmatprep.mubr.f32.mxu1 %v22517_v2  ;;  %22798 = vst [vmem:[#allocation42_spill] sm:$0xff] %v17760_v50  ;;  %v2752_v2 = vsel %vm2746_vm6, %v2733_v3, %v2735_v54  ;;  %v2322_v49 = vmul.f32 %v17760_v50, %v2280_v63  ;;  %v2745_v63 = vpop.permute.xlu1 %2744 }
 0x11c   :  { %v2788_v0 = vmul.f32 %v17765_v13, %v2752_v2  ;;  %v2259_v2 = vld [vmem:[%s22509_s2 + $0xb0] sm:$0xff]  ;;  %v17817_v13 = vrot.slane %v17178_v22, %v17726_v59  ;;  %v17828_v22 = vrot.slane %v17166_v20, %v17726_v59 }
 0x11d   :  { %14756 = vmatmul.mubr.msk.f32.gmra.mrb[14].mxu0 %vm178_vm1, %v1856_v31  ;;  %v16957_v31 = vmov 0  }
 0x11e   :  { %14765 = vmatmul.mubr.msk.f32.vlgmr.msra.gmra.mrb[0].mxu1 %vm178_vm1, %v17756_v6  ;;  %2402 = vmatprep.mubr.f32.mxu0 %v22800_v1  ;;  %22802 = vst [vmem:[#allocation45_spill] sm:$0xff] %v17817_v13  ;;  %22803 = vst [vmem:[#allocation46_spill] sm:$0xff] %v17828_v22 }
 0x11f   :  { %2497 = vmatprep.mubr.f32.mxu1 %v22800_v1  ;;  %2606 = vmatpush1.msra.mxu1 %v2324_v51  ;;  %v4134_v51 = vld [vmem:[%s22509_s2 + $0x290] sm:$0xff] }
 0x120   :  { %2896 = vmatprep.subr.mxu1 %v2790_v30  ;;  %15864 = vset.pattern.permute.xlu1 %v16957_v31  ;;  %v2731_v30 = vpop.permute.xlu0 %2730 }
 0x121   :  { %14761 = vmatmul.mubr.msk.f32.vlgmr.msra.gmra.mrb[0].mxu0 %vm178_vm1, %v17756_v6  ;;  %15863 = vset.pattern.permute.xlu0 %v16957_v31  ;;  %v4135_v31 = vld [vmem:[%s22509_s2 + $0x298] sm:$0xff]  ;;  %v2754_v50 = vsel %vm2746_vm6, %v2745_v63, %v2731_v30 }
 0x122   :  { %2517 = vmatpush1.msra.mxu0 %v2322_v49  ;;  %14766 = vmatmul.mubr.msk.f32.gmra.mrb[2].mxu1 %vm178_vm1, %v2258_v8  ;;  %v4136_v49 = vld [vmem:[%s22509_s2 + $0x2a0] sm:$0xff] }
 0x123   :  { %2408 = vmatprep.mubr.f32.mxu0 %v22800_v1  ;;  %2503 = vmatprep.mubr.f32.mxu1 %v22800_v1 }
 0x124   :  { %2807 = vmatprep.subr.mxu0 %v2788_v0  ;;  %4139 = vperm.xlu0 %15863, %v4133_v41   ;;  %v2260_v0 = vld [vmem:[%s22509_s2 + $0xb8] sm:$0xff]  ;;  %v17811_v41 = vrot.slane %v17154_v17, %v17726_v59  ;;  %v2743_v17 = vpop.permute.xlu0 %2742 }
 0x125   :  { %14762 = vmatmul.mubr.msk.f32.gmra.mrb[2].mxu0 %vm178_vm1, %v2258_v8  ;;  %4144 = vperm.xlu1 %15864, %v4134_v51   ;;  %v2751_v51 = vsel %vm2746_vm6, %v2735_v54, %v2737_v7  ;;  %v2741_v7 = vpop.permute.xlu1 %2740  ;;  %v2753_v54 = vsel %vm2746_vm6, %v2731_v30, %v2733_v3  ;;  %v17863_v3 = vrot.slane %v17189_v28, %v17726_v59 }
 0x126   :  { %14767 = vmatmul.mubr.msk.f32.gmra.mrb[4].mxu1 %vm178_vm1, %v2259_v2  ;;  %2414 = vmatprep.mubr.f32.mxu0 %v22800_v1  ;;  %22801 = vst [vmem:[#allocation44_spill] sm:$0xff] %v17811_v41  ;;  %v2789_v35 = vmul.f32 %v17811_v41, %v2751_v51  ;;  %v2748_v51 = vsel %vm2746_vm6, %v2741_v7, %v2743_v17 }
 0x127   :  { %2509 = vmatprep.mubr.f32.mxu1 %v22800_v1  ;;  %v2787_v20 = vmul.f32 %v17828_v22, %v2753_v54  ;;  %22805 = vst [vmem:[#allocation48_spill] sm:$0xff] %v17863_v3 }
 0x128   :  { %4154 = vperm.xlu0 %15863, %v4136_v49   ;;  %v2794_v49 = vmul.f32 %v17817_v13, %v2754_v50 }
 0x129   :  { %14763 = vmatmul.mubr.msk.f32.gmra.mrb[4].mxu0 %vm178_vm1, %v2259_v2  ;;  %4149 = vperm.xlu1 %15864, %v4135_v31   ;;  %v17835_v31 = vrot.slane %v17217_v36, %v17726_v59  ;;  %v17852_v36 = vsub.s32 7, %v17132_v10  ;;  %v2747_v10 = vsel %vm2746_vm6, %v2743_v17, %v2745_v63  ;;  %v2726_v63 = vld [vmem:[%s22509_s2 + $0xc0] sm:$0xff] }
 0x12a   :  { %14768 = vmatmul.mubr.msk.f32.gmra.mrb[6].mxu1 %vm178_vm1, %v2260_v0  ;;  %2420 = vmatprep.mubr.f32.mxu0 %v22800_v1  ;;  %v2793_v28 = vmul.f32 %v17863_v3, %v2747_v10  ;;  %v16921_v10 = vld [vmem:[%s22508_s1 + $0x10] sm:$0xff] }
 0x12b   :  { %2669 = vmatprep.mubr.f32.mxu1 %v22800_v1  ;;  %22804 = vst [vmem:[#allocation47_spill] sm:$0xff] %v17835_v31  ;;  %v2792_v50 = vmul.f32 %v17835_v31, %v2748_v51  ;;  %v2749_v51 = vsel %vm2746_vm6, %v17732_v61, %v2741_v7  ;;  %v2728_v61 = vld [vmem:[%s22509_s2 + $0xd0] sm:$0xff] }
 0x12d   :  { %14764 = vmatmul.mubr.msk.f32.gmra.mrb[6].mxu0 %vm178_vm1, %v2260_v0 }
 0x12e   :  { %14773 = vmatmul.mubr.msk.f32.vlgmr.msra.gmra.mrb[8].mxu1 %vm178_vm1, %v17756_v6  ;;  %2580 = vmatprep.mubr.f32.mxu0 %v22800_v1 }
 0x12f   :  { %2675 = vmatprep.mubr.f32.mxu1 %v22800_v1  ;;  %2897 = vmatpush1.msra.mxu1 %v2789_v35  ;;  %v17858_v35 = vpop.permute.xlu1 %3207 }
 0x130   :  { %3074 = vmatprep.subr.mxu1 %v2794_v49  ;;  %v17889_v49 = vrot.slane %v17149_v14, %v17852_v36  ;;  %v2727_v14 = vld [vmem:[%s22509_s2 + $0xc8] sm:$0xff] }
 0x131   :  { %14769 = vmatmul.mubr.msk.f32.vlgmr.msra.gmra.mrb[8].mxu0 %vm178_vm1, %v17756_v6  ;;  %v3206_v6 = vpop.permute.xlu0 %3205 }
 0x132   :  { %14774 = vmatmul.mubr.msk.f32.gmra.mrb[10].mxu1 %vm178_vm1, %v2258_v8  ;;  %2586 = vmatprep.mubr.f32.mxu0 %v22800_v1  ;;  %v3219_v30 = vsel %vm3215_vm7, %v3206_v6, %v17858_v35  ;;  %22808 = vst [vmem:[#allocation51_spill] sm:$0xff] %v17889_v49 }
 0x133   :  { %2681 = vmatprep.mubr.f32.mxu1 %v22800_v1  ;;  %2808 = vmatpush1.msra.mxu0 %v2787_v20 }
 0x134   :  { %2985 = vmatprep.subr.mxu0 %v2792_v50  ;;  %v2729_v50 = vld [vmem:[%s22509_s2 + $0xd8] sm:$0xff] }
 0x135   :  { %14770 = vmatmul.mubr.msk.f32.gmra.mrb[10].mxu0 %vm178_vm1, %v2258_v8  ;;  %v17869_v8 = vrot.slane %v17143_v12, %v17852_v36  ;;  %v17884_v12 = vrot.slane %v17199_v32, %v17726_v59  ;;  %v3204_v17 = vpop.permute.xlu0 %3203 }
 0x136   :  { %14775 = vmatmul.mubr.msk.f32.gmra.mrb[12].mxu1 %vm178_vm1, %v2259_v2  ;;  %2592 = vmatprep.mubr.f32.mxu0 %v22800_v1 }
 0x137   :  { %2687 = vmatprep.mubr.f32.mxu1 %v22800_v1  ;;  %22806 = vst [vmem:[#allocation49_spill] sm:$0xff] %v17869_v8  ;;  %22807 = vst [vmem:[#allocation50_spill] sm:$0xff] %v17884_v12  ;;  %v3259_v54 = vmul.f32 %v17869_v8, %v3219_v30  ;;  %v2791_v32 = vmul.f32 %v17884_v12, %v2749_v51  ;;  %v17923_v30 = vrot.slane %v16921_v10, %v17852_v36  ;;  %v16924_v8 = vld [vmem:[%s22508_s1 + $0x28] sm:$0xff] }
 0x139   :  { %14771 = vmatmul.mubr.msk.f32.gmra.mrb[12].mxu0 %vm178_vm1, %v2259_v2  ;;  %v3202_v2 = vpop.permute.xlu1 %3201  ;;  %22809 = vst [vmem:[#allocation52_spill] sm:$0xff] %v17923_v30 }
 0x13a   :  { %14776 = vmatmul.mubr.msk.f32.gmra.mrb[14].mxu1 %vm178_vm1, %v2260_v0  ;;  %2598 = vmatprep.mubr.f32.mxu0 %v22800_v1  ;;  %v3221_v20 = vsel %vm3215_vm7, %v3202_v2, %v3204_v17 }
 0x13b   :  { %2960 = vmatprep.mubr.f32.mxu1 %v22800_v1  ;;  %v3257_v59 = vmul.f32 %v17889_v49, %v3221_v20 }
 0x13d   :  { %14772 = vmatmul.mubr.msk.f32.gmra.mrb[14].mxu0 %vm178_vm1, %v2260_v0  ;;  %v3200_v0 = vpop.permute.xlu0 %3199  ;;  %v3214_v7 = vpop.permute.xlu1 %3213 }
 0x13e   :  { %14781 = vmatmul.mubr.msk.f32.vlgmr.msra.gmra.mrb[0].mxu1 %vm178_vm1, %v2726_v63  ;;  %2871 = vmatprep.mubr.f32.mxu0 %v22800_v1  ;;  %v3223_v20 = vsel %vm3215_vm7, %v3214_v7, %v3200_v0 }
 0x13f   :  { %2966 = vmatprep.mubr.f32.mxu1 %v22800_v1  ;;  %3075 = vmatpush1.msra.mxu1 %v2793_v28  ;;  %v3220_v28 = vsel %vm3215_vm7, %v3204_v17, %v3206_v6  ;;  %v16923_v6 = vld [vmem:[%s22508_s1] sm:$0xff] }
 0x140   :  { %3365 = vmatprep.subr.mxu1 %v3259_v54  ;;  %v16922_v54 = vld [vmem:[%s22508_s1 + $0x38] sm:$0xff]  ;;  %v17944_v17 = vrot.slane %v16923_v6, %v17852_v36 }
 0x141   :  { %14777 = vmatmul.mubr.msk.f32.vlgmr.msra.gmra.mrb[0].mxu0 %vm178_vm1, %v2726_v63  ;;  %v17931_v51 = vrot.slane %v16922_v54, %v17852_v36  ;;  %v3210_v10 = vpop.permute.xlu1 %3209  ;;  %v3222_v54 = vsel %vm3215_vm7, %v3200_v0, %v3202_v2 }
 0x142   :  { %2986 = vmatpush1.msra.mxu0 %v2791_v32  ;;  %14782 = vmatmul.mubr.msk.f32.gmra.mrb[2].mxu1 %vm178_vm1, %v2727_v14  ;;  %v3212_v32 = vpop.permute.xlu0 %3211  ;;  %22811 = vst [vmem:[#allocation54_spill] sm:$0xff] %v17944_v17  ;;  %v3256_v2 = vmul.f32 %v17944_v17, %v3222_v54 }
 0x143   :  { %2877 = vmatprep.mubr.f32.mxu0 %v22800_v1  ;;  %2972 = vmatprep.mubr.f32.mxu1 %v22800_v1  ;;  %22810 = vst [vmem:[#allocation53_spill] sm:$0xff] %v17931_v51  ;;  %v3263_v49 = vmul.f32 %v17931_v51, %v3223_v20 }
 0x144   :  { %3276 = vmatprep.subr.mxu0 %v3257_v59  ;;  %v3258_v59 = vmul.f32 %v17923_v30, %v3220_v28  ;;  %v17953_v28 = vrot.slane %v16924_v8, %v17852_v36  ;;  %v3217_v30 = vsel %vm3215_vm7, %v3210_v10, %v3212_v32 }
 0x145   :  { %14778 = vmatmul.mubr.msk.f32.gmra.mrb[2].mxu0 %vm178_vm1, %v2727_v14  ;;  %v17971_v8 = vpop.permute.xlu1 %3676 }
 0x146   :  { %14783 = vmatmul.mubr.msk.f32.gmra.mrb[4].mxu1 %vm178_vm1, %v2728_v61  ;;  %2883 = vmatprep.mubr.f32.mxu0 %v22800_v1  ;;  %22812 = vst [vmem:[#allocation55_spill] sm:$0xff] %v17953_v28  ;;  %v3261_v0 = vmul.f32 %v17953_v28, %v3217_v30  ;;  %v14810_v28 = vld [vmem:[%s22508_s1 + $0x48] ss:$0 sm:$0xff] }
 0x147   :  { %2978 = vmatprep.mubr.f32.mxu1 %v22800_v1 }
 0x149   :  { %14779 = vmatmul.mubr.msk.f32.gmra.mrb[4].mxu0 %vm178_vm1, %v2728_v61  ;;  %v3671_v54 = vpop.permute.xlu1 %3670 }
 0x14a   :  { %14784 = vmatmul.mubr.msk.f32.gmra.mrb[6].mxu1 %vm178_vm1, %v2729_v50  ;;  %2889 = vmatprep.mubr.f32.mxu0 %v22800_v1 }
 0x14b   :  { %3138 = vmatprep.mubr.f32.mxu1 %v22800_v1 }
 0x14d   :  { %14780 = vmatmul.mubr.msk.f32.gmra.mrb[6].mxu0 %vm178_vm1, %v2729_v50 }
 0x14e   :  { %14789 = vmatmul.mubr.msk.f32.vlgmr.msra.gmra.mrb[8].mxu1 %vm178_vm1, %v2726_v63  ;;  %3049 = vmatprep.mubr.f32.mxu0 %v22800_v1 }
 0x14f   :  { %3144 = vmatprep.mubr.f32.mxu1 %v22800_v1  ;;  %3366 = vmatpush1.msra.mxu1 %v3258_v59  ;;  %v14812_v59 = vld [vmem:[%s22508_s1 + $0x58] ss:$0 sm:$0xff] }
 0x150   :  { %3543 = vmatprep.subr.mxu1 %v3263_v49  ;;  %v3675_v49 = vpop.permute.xlu0 %3674 }
 0x151   :  { %14785 = vmatmul.mubr.msk.f32.vlgmr.msra.gmra.mrb[8].mxu0 %vm178_vm1, %v2726_v63  ;;  %v16925_v63 = vld [vmem:[%s22508_s1 + $0x30] sm:$0xff]  ;;  %v3688_v20 = vsel %vm3684_vm8, %v3675_v49, %v17971_v8 }
 0x152   :  { %14790 = vmatmul.mubr.msk.f32.gmra.mrb[10].mxu1 %vm178_vm1, %v2727_v14  ;;  %3055 = vmatprep.mubr.f32.mxu0 %v22800_v1  ;;  %v17978_v30 = vrot.slane %v16925_v63, %v17852_v36  ;;  %v3218_v63 = vsel %vm3215_vm7, %v17858_v35, %v3210_v10  ;;  %v3197_v10 = vld [vmem:[%s22509_s2 + $0xf0] sm:$0xff] }
 0x153   :  { %3150 = vmatprep.mubr.f32.mxu1 %v22800_v1  ;;  %3277 = vmatpush1.msra.mxu0 %v3256_v2 }
 0x154   :  { %3454 = vmatprep.subr.mxu0 %v3261_v0  ;;  %22813 = vst [vmem:[#allocation56_spill] sm:$0xff] %v17978_v30  ;;  %v3673_v2 = vpop.permute.xlu0 %3672  ;;  %v3728_v0 = vmul.f32 %v14812_v59, %v3688_v20  ;;  %v3198_v59 = vld [vmem:[%s22509_s2 + $0xf8] sm:$0xff] }
 0x155   :  { %14786 = vmatmul.mubr.msk.f32.gmra.mrb[10].mxu0 %vm178_vm1, %v2727_v14  ;;  %v3216_v14 = vsel %vm3215_vm7, %v3212_v32, %v3214_v7  ;;  %v16926_v7 = vld [vmem:[%s22508_s1 + $0x20] sm:$0xff] }
 0x156   :  { %14791 = vmatmul.mubr.msk.f32.gmra.mrb[12].mxu1 %vm178_vm1, %v2728_v61  ;;  %3061 = vmatprep.mubr.f32.mxu0 %v22800_v1  ;;  %v3262_v6 = vmul.f32 %v17978_v30, %v3216_v14  ;;  %v18000_v32 = vrot.slane %v16926_v7, %v17852_v36  ;;  %v3690_v14 = vsel %vm3684_vm8, %v3671_v54, %v3673_v2  ;;  %v3196_v36 = vld [vmem:[%s22509_s2 + $0xe8] sm:$0xff] }
 0x157   :  { %3156 = vmatprep.mubr.f32.mxu1 %v22800_v1  ;;  %v3689_v7 = vsel %vm3684_vm8, %v3673_v2, %v3675_v49  ;;  %v14809_v49 = vld [vmem:[%s22508_s1 + $0x40] ss:$0 sm:$0xff] }
 0x158   :  { %22814 = vst [vmem:[#allocation57_spill] sm:$0xff] %v18000_v32  ;;  %v3260_v35 = vmul.f32 %v18000_v32, %v3218_v63  ;;  %v3669_v20 = vpop.permute.xlu0 %3668  ;;  %v14816_v63 = vld [vmem:[%s22508_s1 + $0x78] ss:$0 sm:$0xff] }
 0x159   :  { %14787 = vmatmul.mubr.msk.f32.gmra.mrb[12].mxu0 %vm178_vm1, %v2728_v61  ;;  %v3195_v61 = vld [vmem:[%s22509_s2 + $0xe0] sm:$0xff]  ;;  %v3691_v2 = vsel %vm3684_vm8, %v3669_v20, %v3671_v54 }
 0x15a   :  { %14792 = vmatmul.mubr.msk.f32.gmra.mrb[14].mxu1 %vm178_vm1, %v2729_v50  ;;  %3067 = vmatprep.mubr.f32.mxu0 %v22800_v1 }
 0x15b   :  { %3429 = vmatprep.mubr.f32.mxu1 %v22800_v1 }
 0x15d   :  { %14788 = vmatmul.mubr.msk.f32.gmra.mrb[14].mxu0 %vm178_vm1, %v2729_v50  ;;  %v3726_v50 = vmul.f32 %v14810_v28, %v3690_v14  ;;  %v3683_v28 = vpop.permute.xlu1 %3682  ;;  %v3681_v14 = vpop.permute.xlu0 %3680 }
 0x15e   :  { %14797 = vmatmul.mubr.msk.f32.vlgmr.msra.gmra.mrb[0].mxu1 %vm178_vm1, %v3195_v61  ;;  %3340 = vmatprep.mubr.f32.mxu0 %v22800_v1 }
 0x15f   :  { %3435 = vmatprep.mubr.f32.mxu1 %v22800_v1  ;;  %3544 = vmatpush1.msra.mxu1 %v3262_v6  ;;  %v14811_v6 = vld [vmem:[%s22508_s1 + $0x50] ss:$0 sm:$0xff] }
 0x160   :  { %3834 = vmatprep.subr.mxu1 %v3728_v0  ;;  %v3692_v0 = vsel %vm3684_vm8, %v3683_v28, %v3669_v20  ;;  %v14813_v20 = vld [vmem:[%s22508_s1 + $0x60] ss:$0 sm:$0xff] }
 0x161   :  { %14793 = vmatmul.mubr.msk.f32.vlgmr.msra.gmra.mrb[0].mxu0 %vm178_vm1, %v3195_v61  ;;  %v3732_v51 = vmul.f32 %v14816_v63, %v3692_v0 }
 0x162   :  { %3455 = vmatpush1.msra.mxu0 %v3260_v35  ;;  %14798 = vmatmul.mubr.msk.f32.gmra.mrb[2].mxu1 %vm178_vm1, %v3196_v36  ;;  %v3727_v35 = vmul.f32 %v14811_v6, %v3689_v7  ;;  %v14814_v6 = vld [vmem:[%s22508_s1 + $0x68] ss:$0 sm:$0xff]  ;;  %v3725_v7 = vmul.f32 %v14809_v49, %v3691_v2 }
 0x163   :  { %3346 = vmatprep.mubr.f32.mxu0 %v22800_v1  ;;  %3441 = vmatprep.mubr.f32.mxu1 %v22800_v1 }
 0x164   :  { %3745 = vmatprep.subr.mxu0 %v3726_v50  ;;  %v3679_v50 = vpop.permute.xlu1 %3678 }
 0x165   :  { %14794 = vmatmul.mubr.msk.f32.gmra.mrb[2].mxu0 %vm178_vm1, %v3196_v36  ;;  %v3686_v32 = vsel %vm3684_vm8, %v3679_v50, %v3681_v14 }
 0x166   :  { %14799 = vmatmul.mubr.msk.f32.gmra.mrb[4].mxu1 %vm178_vm1, %v3197_v10  ;;  %3352 = vmatprep.mubr.f32.mxu0 %v22800_v1  ;;  %v3730_v54 = vmul.f32 %v14814_v6, %v3686_v32 }
 0x167   :  { %3447 = vmatprep.mubr.f32.mxu1 %v22800_v1 }
 0x169   :  { %14795 = vmatmul.mubr.msk.f32.gmra.mrb[4].mxu0 %vm178_vm1, %v3197_v10 }
 0x16a   :  { %14800 = vmatmul.mubr.msk.f32.gmra.mrb[6].mxu1 %vm178_vm1, %v3198_v59  ;;  %3358 = vmatprep.mubr.f32.mxu0 %v22800_v1 }
 0x16b   :  { %3607 = vmatprep.mubr.f32.mxu1 %v22800_v1 }
 0x16d   :  { %14796 = vmatmul.mubr.msk.f32.gmra.mrb[6].mxu0 %vm178_vm1, %v3198_v59 }
 0x16e   :  { %14805 = vmatmul.mubr.msk.f32.vlgmr.msra.gmra.mrb[8].mxu1 %vm178_vm1, %v3195_v61  ;;  %3518 = vmatprep.mubr.f32.mxu0 %v22800_v1 }
 0x16f   :  { %3613 = vmatprep.mubr.f32.mxu1 %v22800_v1  ;;  %3835 = vmatpush1.msra.mxu1 %v3727_v35 }
 0x170   :  { %4012 = vmatprep.subr.mxu1 %v3732_v51  ;;  %v14815_v51 = vld [vmem:[%s22508_s1 + $0x70] ss:$0 sm:$0xff] }
 0x171   :  { %14801 = vmatmul.mubr.msk.f32.vlgmr.msra.gmra.mrb[8].mxu0 %vm178_vm1, %v3195_v61  ;;  %v3685_v61 = vsel %vm3684_vm8, %v3681_v14, %v3683_v28  ;;  %v3687_v28 = vsel %vm3684_vm8, %v17971_v8, %v3679_v50  ;;  %v3666_v8 = vld [vmem:[%s22509_s2 + $0x110] sm:$0xff] }
 0x172   :  { %14806 = vmatmul.mubr.msk.f32.gmra.mrb[10].mxu1 %vm178_vm1, %v3196_v36  ;;  %3524 = vmatprep.mubr.f32.mxu0 %v22800_v1  ;;  %v3731_v32 = vmul.f32 %v14815_v51, %v3685_v61  ;;  %v3729_v0 = vmul.f32 %v14813_v20, %v3687_v28 }
 0x173   :  { %3619 = vmatprep.mubr.f32.mxu1 %v22800_v1  ;;  %3746 = vmatpush1.msra.mxu0 %v3725_v7 }
 0x174   :  { %3923 = vmatprep.subr.mxu0 %v3730_v54 }
 0x175   :  { %14802 = vmatmul.mubr.msk.f32.gmra.mrb[10].mxu0 %vm178_vm1, %v3196_v36  ;;  %v3664_v36 = vld [vmem:[%s22509_s2 + $0x100] sm:$0xff] }
 0x176   :  { %14807 = vmatmul.mubr.msk.f32.gmra.mrb[12].mxu1 %vm178_vm1, %v3197_v10  ;;  %3530 = vmatprep.mubr.f32.mxu0 %v22800_v1 }
 0x177   :  { %3625 = vmatprep.mubr.f32.mxu1 %v22800_v1 }
 0x179   :  { %14803 = vmatmul.mubr.msk.f32.gmra.mrb[12].mxu0 %vm178_vm1, %v3197_v10  ;;  %v3665_v10 = vld [vmem:[%s22509_s2 + $0x108] sm:$0xff] }
 0x17a   :  { %14808 = vmatmul.mubr.msk.f32.gmra.mrb[14].mxu1 %vm178_vm1, %v3198_v59  ;;  %3536 = vmatprep.mubr.f32.mxu0 %v22800_v1 }
 0x17b   :  { %3898 = vmatprep.mubr.f32.mxu1 %v22800_v1 }
 0x17d   :  { %14804 = vmatmul.mubr.msk.f32.gmra.mrb[14].mxu0 %vm178_vm1, %v3198_v59  ;;  %v3667_v59 = vld [vmem:[%s22509_s2 + $0x118] sm:$0xff] }
 0x17e   :  { %14821 = vmatmul.mubr.msk.f32.vlgmr.msra.gmra.mrb[0].mxu1 %vm178_vm1, %v3664_v36  ;;  %3809 = vmatprep.mubr.f32.mxu0 %v22800_v1 }
 0x17f   :  { %3904 = vmatprep.mubr.f32.mxu1 %v22800_v1  ;;  %4013 = vmatpush1.msra.mxu1 %v3731_v32 }
 0x181   :  { %14817 = vmatmul.mubr.msk.f32.vlgmr.msra.gmra.mrb[0].mxu0 %vm178_vm1, %v3664_v36 }
 0x182   :  { %3924 = vmatpush1.msra.mxu0 %v3729_v0  ;;  %14822 = vmatmul.mubr.msk.f32.gmra.mrb[2].mxu1 %vm178_vm1, %v3665_v10 }
 0x183   :  { %3815 = vmatprep.mubr.f32.mxu0 %v22800_v1  ;;  %3910 = vmatprep.mubr.f32.mxu1 %v22800_v1 }
 0x185   :  { %14818 = vmatmul.mubr.msk.f32.gmra.mrb[2].mxu0 %vm178_vm1, %v3665_v10 }
 0x186   :  { %14823 = vmatmul.mubr.msk.f32.gmra.mrb[4].mxu1 %vm178_vm1, %v3666_v8  ;;  %3821 = vmatprep.mubr.f32.mxu0 %v22800_v1 }
 0x187   :  { %3916 = vmatprep.mubr.f32.mxu1 %v22800_v1 }
 0x189   :  { %14819 = vmatmul.mubr.msk.f32.gmra.mrb[4].mxu0 %vm178_vm1, %v3666_v8 }
 0x18a   :  { %14824 = vmatmul.mubr.msk.f32.gmra.mrb[6].mxu1 %vm178_vm1, %v3667_v59  ;;  %3827 = vmatprep.mubr.f32.mxu0 %v22800_v1 }
 0x18b   :  { %4076 = vmatprep.mubr.f32.mxu1 %v22800_v1 }
 0x18d   :  { %14820 = vmatmul.mubr.msk.f32.gmra.mrb[6].mxu0 %vm178_vm1, %v3667_v59 }
 0x18e   :  { %14829 = vmatmul.mubr.msk.f32.vlgmr.msra.gmra.mrb[8].mxu1 %vm178_vm1, %v3664_v36  ;;  %3987 = vmatprep.mubr.f32.mxu0 %v22800_v1 }
 0x18f   :  { %4082 = vmatprep.mubr.f32.mxu1 %v22800_v1 }
 0x191   :  { %14825 = vmatmul.mubr.msk.f32.vlgmr.msra.gmra.mrb[8].mxu0 %vm178_vm1, %v3664_v36 }
 0x192   :  { %14830 = vmatmul.mubr.msk.f32.gmra.mrb[10].mxu1 %vm178_vm1, %v3665_v10  ;;  %3993 = vmatprep.mubr.f32.mxu0 %v22800_v1 }
 0x193   :  { %4088 = vmatprep.mubr.f32.mxu1 %v22800_v1 }
 0x195   :  { %14826 = vmatmul.mubr.msk.f32.gmra.mrb[10].mxu0 %vm178_vm1, %v3665_v10 }
 0x196   :  { %14831 = vmatmul.mubr.msk.f32.gmra.mrb[12].mxu1 %vm178_vm1, %v3666_v8  ;;  %3999 = vmatprep.mubr.f32.mxu0 %v22800_v1 }
 0x197   :  { %4094 = vmatprep.mubr.f32.mxu1 %v22800_v1 }
 0x199   :  { %14827 = vmatmul.mubr.msk.f32.gmra.mrb[12].mxu0 %vm178_vm1, %v3666_v8 }
 0x19a   :  { %14832 = vmatmul.mubr.msk.f32.gmra.mrb[14].mxu1 %vm178_vm1, %v3667_v59  ;;  %4005 = vmatprep.mubr.f32.mxu0 %v22800_v1 }
 0x19b   :  { %4467 = vmatprep.mubr.f32.mxu1 %v22800_v1 }
 0x19d   :  { %14828 = vmatmul.mubr.msk.f32.gmra.mrb[14].mxu0 %vm178_vm1, %v3667_v59 }
 0x19e   :  { %4390 = vmatprep.mubr.f32.mxu0 %v22800_v1 }
 0x1a3   :  { %v18129_v63 = vpop.permute.xlu0 %4139 }
 0x1a4   :  { %v18131_v35 = vpop.permute.xlu1 %4144 }
 0x1a8   :  { %v18154_v8 = vpop.permute.xlu1 %4149 }
 0x251   :  { %v3900_v14 = vpop.f32.mrb[0].mxu1 }
 0x252   :  { %v3902_v50 = vpop.f32.mrb[1].mxu1  ;;  %v18134_v49 = vadd.f32 %v18129_v63, %v3900_v14 }
 0x253   :  { %v18137_v2 = vadd.f32 %v18129_v63, %v3902_v50 }
 0x254   :  { %v3811_v6 = vpop.f32.mrb[0].mxu0  ;;  %v22815_v30 = vmax.f32 %v18134_v49, 0.0  ;;  %v22841_v19 = vmax.f32 %v18134_v49, 0.0 }
 0x255   :  { %v18140_v7 = vadd.f32 %v18129_v63, %v3811_v6  ;;  %v3813_v54 = vpop.f32.mrb[1].mxu0  ;;  %v3906_v51 = vpop.f32.mrb[2].mxu1  ;;  %v22817_v6 = vmax.f32 %v18137_v2, 0.0 }
 0x256   :  { %v18143_v61 = vadd.f32 %v18129_v63, %v3813_v54  ;;  %v18146_v32 = vadd.f32 %v18131_v35, %v3906_v51  ;;  %v3908_v36 = vpop.f32.mrb[3].mxu1 }
 0x257   :  { %v18149_v20 = vadd.f32 %v18131_v35, %v3908_v36 }
 0x258   :  { %v3817_v59 = vpop.f32.mrb[2].mxu0  ;;  %v22816_v14 = vmax.f32 %v18146_v32, 0.0 }
 0x259   :  { %v18160_v54 = vadd.f32 %v18131_v35, %v3817_v59  ;;  %v3819_v51 = vpop.f32.mrb[3].mxu0  ;;  %v3912_v36 = vpop.f32.mrb[4].mxu1 }
 0x25a   :  { %v18163_v28 = vadd.f32 %v18131_v35, %v3819_v51  ;;  %v18166_v10 = vadd.f32 %v18154_v8, %v3912_v36  ;;  %v3914_v0 = vpop.f32.mrb[5].mxu1  ;;  %v18172_v17 = vpack.i.bf16 %v22816_v14, %v22815_v30  ;;  %v22818_v51 = vmax.f32 %v18149_v20, 0.0  ;;  %v18184_v36 = vpop.permute.xlu0 %4154 }
 0x25b   :  { %v22561_v50 = vmax.f32 %v18160_v54, 0.0  ;;  %v18176_v59 = vadd.f32 %v18154_v8, %v3914_v0  ;;  %v22820_v30 = vmax.f32 %v18143_v61, 0.0 }
 0x25c   :  { %v18182_v31 = vpack.i.bf16 %v22818_v51, %v22817_v6  ;;  %v3823_v3 = vpop.f32.mrb[4].mxu0  ;;  %15906 = vrot.lane.b32.xlu0 %v18172_v17, %s16953_s4  ;;  %15866 = vrot.lane.b32.xlu1 %v18172_v17, %s16950_s29  ;;  %v22819_v51 = vmax.f32 %v18140_v7, 0.0  ;;  %v22822_v26 = vmax.f32 %v18166_v10, 0.0 }
 0x25d   :  { %v18194_v0 = vadd.f32 %v18154_v8, %v3823_v3  ;;  %v3825_v14 = vpop.f32.mrb[5].mxu0  ;;  %v3918_v6 = vpop.f32.mrb[6].mxu1  ;;  %v22821_v3 = vmax.f32 %v18163_v28, 0.0  ;;  %v22847_v18 = vmax.f32 %v18176_v59, 0.0 }
 0x25e   :  { %v18200_v13 = vpack.i.bf16 %v22561_v50, %v22819_v51  ;;  %v18203_v12 = vadd.f32 %v18154_v8, %v3825_v14  ;;  %v18206_v22 = vadd.f32 %v18184_v36, %v3918_v6  ;;  %v3920_v41 = vpop.f32.mrb[7].mxu1 }
 0x25f   :  { %v18212_v58 = vpack.i.bf16 %v22821_v3, %v22820_v30  ;;  %v18216_v5 = vadd.f32 %v18184_v36, %v3920_v41  ;;  %v22826_v43 = vmax.f32 %v18194_v0, 0.0 }
 0x260   :  { %v3829_v50 = vpop.f32.mrb[6].mxu0  ;;  %15916 = vrot.lane.b32.xlu0 %v18182_v31, %s16950_s29  ;;  %15871 = vrot.lane.b32.xlu1 %v18200_v13, %s16950_s29  ;;  %v22823_v6 = vmax.f32 %v18206_v22, 0.0 }
 0x261   :  { %v18226_v30 = vadd.f32 %v18184_v36, %v3829_v50  ;;  %v3831_v3 = vpop.f32.mrb[7].mxu0  ;;  %v4078_v4 = vpop.f32.mrb[8].mxu1 }
 0x262   :  { %v18229_v41 = vadd.f32 %v18184_v36, %v3831_v3  ;;  %v18232_v51 = vadd.f32 %v18129_v63, %v4078_v4  ;;  %v4080_v14 = vpop.f32.mrb[9].mxu1  ;;  %v18242_v50 = vpack.i.bf16 %v22823_v6, %v22822_v26  ;;  %v22824_v4 = vmax.f32 %v18176_v59, 0.0 }
 0x263   :  { %v18236_v45 = vadd.f32 %v18129_v63, %v4080_v14  ;;  %v22825_v14 = vmax.f32 %v18216_v5, 0.0  ;;  %v22827_v16 = vmax.f32 %v18226_v30, 0.0  ;;  %v22857_v59 = vmax.f32 %v18226_v30, 0.0 }
 0x264   :  { %v3989_v44 = vpop.f32.mrb[8].mxu0  ;;  %15921 = vrot.lane.b32.xlu0 %v18212_v58, %s16950_s29  ;;  %15876 = vrot.lane.b32.xlu1 %v18172_v17, %s16949_s16  ;;  %v22851_v49 = vmax.f32 %v18229_v41, 0.0 }
 0x265   :  { %v18254_v60 = vpack.i.bf16 %v22825_v14, %v22824_v4  ;;  %v18258_v6 = vadd.f32 %v18129_v63, %v3989_v44  ;;  %v3991_v56 = vpop.f32.mrb[9].mxu0  ;;  %v4084_v3 = vpop.f32.mrb[10].mxu1  ;;  %v18264_v24 = vpack.i.bf16 %v22827_v16, %v22826_v43  ;;  %v22828_v14 = vmax.f32 %v18203_v12, 0.0 }
 0x266   :  { %v18267_v55 = vadd.f32 %v18129_v63, %v3991_v56  ;;  %v18270_v38 = vadd.f32 %v18131_v35, %v4084_v3  ;;  %v4086_v4 = vpop.f32.mrb[11].mxu1  ;;  %v22829_v44 = vmax.f32 %v18229_v41, 0.0 }
 0x267   :  { %v18280_v23 = vadd.f32 %v18131_v35, %v4086_v4 }
 0x268   :  { %v18276_v26 = vpack.i.bf16 %v22829_v44, %v22828_v14  ;;  %v3995_v56 = vpop.f32.mrb[10].mxu0  ;;  %15926 = vrot.lane.b32.xlu0 %v18182_v31, %s16949_s16  ;;  %15881 = vrot.lane.b32.xlu1 %v18200_v13, %s16949_s16 }
 0x269   :  { %v4204_v63 = vmax.f32 %v18280_v23, 0.0  ;;  %v18290_v3 = vadd.f32 %v18131_v35, %v3995_v56  ;;  %v3997_v14 = vpop.f32.mrb[11].mxu0  ;;  %v4090_v44 = vpop.f32.mrb[12].mxu1 }
 0x26a   :  { %v4170_v4 = vadd.f32 %v18131_v35, %v3997_v14  ;;  %v18294_v43 = vadd.f32 %v18154_v8, %v4090_v44  ;;  %v4092_v37 = vpop.f32.mrb[13].mxu1  ;;  %v22830_v44 = vmax.f32 %v18232_v51, 0.0 }
 0x26b   :  { %v4201_v16 = vmax.f32 %v18290_v3, 0.0  ;;  %v4180_v15 = vadd.f32 %v18154_v8, %v4092_v37  ;;  %v22831_v3 = vmax.f32 %v18270_v38, 0.0 }
 0x26c   :  { %v4202_v47 = vmax.f32 %v4170_v4, 0.0  ;;  %v4211_v48 = vmax.f32 %v18294_v43, 0.0  ;;  %v4001_v34 = vpop.f32.mrb[12].mxu0  ;;  %15931 = vrot.lane.b32.xlu0 %v18212_v58, %s16949_s16  ;;  %15886 = vrot.lane.b32.xlu1 %v18172_v17, %s16951_s0  ;;  %v22832_v43 = vmax.f32 %v18258_v6, 0.0 }
 0x26d   :  { %v4212_v23 = vmax.f32 %v4180_v15, 0.0  ;;  %v4177_v35 = vadd.f32 %v18154_v8, %v4001_v34  ;;  %v4003_v56 = vpop.f32.mrb[13].mxu0  ;;  %v4096_v14 = vpop.f32.mrb[14].mxu1  ;;  %v18308_v37 = vpack.i.bf16 %v22831_v3, %v22830_v44 }
 0x26e   :  { %v18312_v4 = vpack.i.bf16 %v4201_v16, %v22832_v43  ;;  %v4178_v46 = vadd.f32 %v18154_v8, %v4003_v56  ;;  %v4187_v33 = vadd.f32 %v18184_v36, %v4096_v14  ;;  %v4098_v25 = vpop.f32.mrb[15].mxu1  ;;  %v22833_v8 = vmax.f32 %v18236_v45, 0.0 }
 0x26f   :  { %v4209_v15 = vmax.f32 %v4177_v35, 0.0  ;;  %v4188_v34 = vadd.f32 %v18184_v36, %v4098_v25 }
 0x270   :  { %v4210_v42 = vmax.f32 %v4178_v46, 0.0  ;;  %v4219_v39 = vmax.f32 %v4187_v33, 0.0  ;;  %v4007_v52 = vpop.f32.mrb[14].mxu0  ;;  %15936 = vrot.lane.b32.xlu0 %v18182_v31, %s16951_s0  ;;  %15891 = vrot.lane.b32.xlu1 %v18200_v13, %s16951_s0  ;;  %v18324_v56 = vpack.i.bf16 %v4204_v63, %v22833_v8  ;;  %v22834_v46 = vmax.f32 %v18267_v55, 0.0 }
 0x271   :  { %v4220_v44 = vmax.f32 %v4188_v34, 0.0  ;;  %v4185_v3 = vadd.f32 %v18184_v36, %v4007_v52  ;;  %v4009_v43 = vpop.f32.mrb[15].mxu0 }
 0x272   :  { %v4186_v35 = vadd.f32 %v18184_v36, %v4009_v43  ;;  %v18329_v33 = vpack.i.bf16 %v4202_v47, %v22834_v46  ;;  %v18331_v25 = vpack.i.bf16 %v4219_v39, %v4211_v48  ;;  %v22835_v36 = vmax.f32 %v18137_v2, 0.0 }
 0x273   :  { %v4217_v14 = vmax.f32 %v4185_v3, 0.0  ;;  %v18337_v52 = vpack.i.bf16 %v4220_v44, %v4212_v23  ;;  %v22836_v3 = vmax.f32 %v18149_v20, 0.0  ;;  %v22839_v46 = vmax.f32 %v18163_v28, 0.0 }
 0x274   :  { %v4218_v40 = vmax.f32 %v4186_v35, 0.0  ;;  %15941 = vrot.lane.b32.xlu0 %v18212_v58, %s16951_s0  ;;  %15896 = vrot.lane.b32.xlu1 %v18172_v17, %s16952_s30  ;;  %v22838_v35 = vmax.f32 %v18143_v61, 0.0  ;;  %v22842_v2 = vmax.f32 %v18146_v32, 0.0  ;;  %v22844_v20 = vmax.f32 %v18140_v7, 0.0 }
 0x275   :  { %v18339_v34 = vpack.i.bf16 %v4217_v14, %v4209_v15  ;;  %v18363_v43 = vpack.c.bf16 %v22836_v3, %v22835_v36  ;;  %v22845_v36 = vmax.f32 %v18160_v54, 0.0  ;;  %v22848_v61 = vmax.f32 %v18216_v5, 0.0 }
 0x276   :  { %v18341_v8 = vpack.i.bf16 %v4218_v40, %v4210_v42  ;;  %v18373_v57 = vpack.c.bf16 %v22839_v46, %v22838_v35  ;;  %v18379_v29 = vpack.c.bf16 %v22842_v2, %v22841_v19  ;;  %v22850_v28 = vmax.f32 %v18203_v12, 0.0 }
 0x277   :  { %22837 = vst [vmem:[#allocation58_spill] sm:$0xff] %v18363_v43  ;;  %v18385_v3 = vpack.c.bf16 %v22845_v36, %v22844_v20  ;;  %v18391_v53 = vpack.c.bf16 %v22848_v61, %v22847_v18  ;;  %v22853_v19 = vmax.f32 %v18166_v10, 0.0  ;;  %v22854_v7 = vmax.f32 %v18206_v22, 0.0 }
 0x278   :  { %15946 = vrot.lane.b32.xlu0 %v18182_v31, %s16952_s30  ;;  %15901 = vrot.lane.b32.xlu1 %v18200_v13, %s16952_s30  ;;  %22840 = vst [vmem:[#allocation59_spill] sm:$0xff] %v18373_v57  ;;  %22843 = vst [vmem:[#allocation60_spill] sm:$0xff] %v18379_v29  ;;  %v18397_v35 = vpack.c.bf16 %v22851_v49, %v22850_v28  ;;  %v22856_v54 = vmax.f32 %v18194_v0, 0.0  ;;  %v22859_v18 = vmax.f32 %v18236_v45, 0.0  ;;  %v22861_v12 = vmax.f32 %v18267_v55, 0.0 }
 0x279   :  { %22846 = vst [vmem:[#allocation61_spill] sm:$0xff] %v18385_v3  ;;  %22849 = vst [vmem:[#allocation62_spill] sm:$0xff] %v18391_v53  ;;  %v18403_v32 = vpack.c.bf16 %v22854_v7, %v22853_v19  ;;  %v22863_v10 = vmax.f32 %v18232_v51, 0.0  ;;  %v22864_v22 = vmax.f32 %v18270_v38, 0.0  ;;  %v22866_v0 = vmax.f32 %v18258_v6, 0.0 }
 0x27a   :  { %22852 = vst [vmem:[#allocation63_spill] sm:$0xff] %v18397_v35  ;;  %v18409_v46 = vpack.c.bf16 %v22857_v59, %v22856_v54  ;;  %v18413_v5 = vpack.c.bf16 %v4204_v63, %v22859_v18  ;;  %v18417_v41 = vpack.c.bf16 %v4202_v47, %v22861_v12  ;;  %v18429_v30 = vpack.c.bf16 %v4220_v44, %v4212_v23 }
 0x27b   :  { %22855 = vst [vmem:[#allocation64_spill] sm:$0xff] %v18403_v32  ;;  %v18423_v2 = vpack.c.bf16 %v22864_v22, %v22863_v10  ;;  %v18427_v20 = vpack.c.bf16 %v4201_v16, %v22866_v0  ;;  %v18431_v36 = vpack.c.bf16 %v4218_v40, %v4210_v42  ;;  %v18433_v45 = vpack.c.bf16 %v4219_v39, %v4211_v48 }
 0x27c   :  { %15951 = vrot.lane.b32.xlu0 %v18212_v58, %s16952_s30  ;;  %15911 = vrot.lane.b32.xlu1 %v18200_v13, %s16953_s4  ;;  %22858 = vst [vmem:[#allocation65_spill] sm:$0xff] %v18409_v46  ;;  %22860 = vst [vmem:[#allocation66_spill] sm:$0xff] %v18413_v5  ;;  %v18435_v63 = vpack.c.bf16 %v4217_v14, %v4209_v15 }
 0x27d   :  { %22862 = vst [vmem:[#allocation67_spill] sm:$0xff] %v18417_v41  ;;  %22865 = vst [vmem:[#allocation68_spill] sm:$0xff] %v18423_v2 }
 0x27e   :  { %22867 = vst [vmem:[#allocation69_spill] sm:$0xff] %v18427_v20  ;;  %22868 = vst [vmem:[#allocation70_spill] sm:$0xff] %v18429_v30 }
 0x27f   :  { %22869 = vst [vmem:[#allocation71_spill] sm:$0xff] %v18431_v36  ;;  %22870 = vst [vmem:[#allocation72_spill] sm:$0xff] %v18433_v45 }
 0x280   :  { %15956 = vrot.lane.b32.xlu1 %v18182_v31, %s16953_s4  ;;  %15966 = vrot.lane.b32.xlu0 %v18242_v50, %s16950_s29  ;;  %22871 = vst [vmem:[#allocation73_spill] sm:$0xff] %v18435_v63 }
 0x284   :  { %15961 = vrot.lane.b32.xlu1 %v18212_v58, %s16953_s4  ;;  %15971 = vrot.lane.b32.xlu0 %v18264_v24, %s16950_s29 }
 0x288   :  { %16006 = vrot.lane.b32.xlu1 %v18254_v60, %s16950_s29  ;;  %15976 = vrot.lane.b32.xlu0 %v18242_v50, %s16949_s16 }
 0x28c   :  { %16011 = vrot.lane.b32.xlu1 %v18276_v26, %s16950_s29  ;;  %15981 = vrot.lane.b32.xlu0 %v18264_v24, %s16949_s16 }
 0x290   :  { %16016 = vrot.lane.b32.xlu1 %v18254_v60, %s16949_s16  ;;  %15986 = vrot.lane.b32.xlu0 %v18242_v50, %s16951_s0 }
 0x294   :  { %16021 = vrot.lane.b32.xlu1 %v18276_v26, %s16949_s16  ;;  %15991 = vrot.lane.b32.xlu0 %v18264_v24, %s16951_s0 }
 0x298   :  { %16026 = vrot.lane.b32.xlu1 %v18254_v60, %s16951_s0  ;;  %15996 = vrot.lane.b32.xlu0 %v18242_v50, %s16952_s30 }
 0x29c   :  { %16031 = vrot.lane.b32.xlu1 %v18276_v26, %s16951_s0  ;;  %16001 = vrot.lane.b32.xlu0 %v18264_v24, %s16952_s30 }
 0x2a0   :  { %16036 = vrot.lane.b32.xlu1 %v18254_v60, %s16952_s30  ;;  %16046 = vrot.lane.b32.xlu0 %v18254_v60, %s16953_s4 }
 0x2a4   :  { %16041 = vrot.lane.b32.xlu1 %v18276_v26, %s16952_s30  ;;  %16051 = vrot.lane.b32.xlu0 %v18276_v26, %s16953_s4 }
 0x2a8   :  { %16056 = vrot.lane.b32.xlu1 %v18308_v37, %s16950_s29  ;;  %16061 = vrot.lane.b32.xlu0 %v18312_v4, %s16950_s29 }
 0x2ac   :  { %16066 = vrot.lane.b32.xlu1 %v18308_v37, %s16949_s16  ;;  %16071 = vrot.lane.b32.xlu0 %v18312_v4, %s16949_s16 }
 0x2b0   :  { %16076 = vrot.lane.b32.xlu1 %v18308_v37, %s16951_s0  ;;  %16081 = vrot.lane.b32.xlu0 %v18312_v4, %s16951_s0 }
 0x2b4   :  { %16086 = vrot.lane.b32.xlu1 %v18308_v37, %s16952_s30  ;;  %16091 = vrot.lane.b32.xlu0 %v18312_v4, %s16952_s30 }
 0x2b8   :  { %16101 = vrot.lane.b32.xlu1 %v18324_v56, %s16950_s29  ;;  %16096 = vrot.lane.b32.xlu0 %v18312_v4, %s16953_s4 }
 0x2bc   :  { %16106 = vrot.lane.b32.xlu1 %v18329_v33, %s16950_s29  ;;  %16141 = vrot.lane.b32.xlu0 %v18331_v25, %s16950_s29 }
 0x2c0   :  { %16111 = vrot.lane.b32.xlu1 %v18324_v56, %s16949_s16  ;;  %16156 = vrot.lane.b32.xlu0 %v18264_v24, %s16953_s4 }
 0x2c4   :  { %16116 = vrot.lane.b32.xlu1 %v18329_v33, %s16949_s16  ;;  %16166 = vrot.lane.b32.xlu0 %v18331_v25, %s16949_s16 }
 0x2c8   :  { %16121 = vrot.lane.b32.xlu1 %v18324_v56, %s16951_s0  ;;  %16176 = vrot.lane.b32.xlu0 %v18331_v25, %s16951_s0 }
 0x2cc   :  { %16126 = vrot.lane.b32.xlu1 %v18329_v33, %s16951_s0  ;;  %16186 = vrot.lane.b32.xlu0 %v18331_v25, %s16952_s30 }
 0x2ce   :  { %v18505_v39 = vpop.permute.xlu0 %15906  ;;  %v15867_v42 = vpop.permute.xlu1 %15866 }
 0x2cf   :  { %v15869_v38 = vunpack.i.h.bf16 %v15867_v42  ;;  %v15868_v48 = vunpack.i.l.bf16 %v15867_v42 }
 0x2d0   :  { %16131 = vrot.lane.b32.xlu1 %v18324_v56, %s16952_s30  ;;  %16201 = vrot.lane.b32.xlu0 %v18337_v52, %s16950_s29 }
 0x2d2   :  { %v18511_v40 = vpop.permute.xlu0 %15916  ;;  %v18513_v47 = vpop.permute.xlu1 %15871 }
 0x2d3   :  { %v22619_v55 = vunpack.i.h.bf16 %v18511_v40  ;;  %v22618_v51 = vunpack.i.l.bf16 %v18511_v40  ;;  %v22620_v14 = vunpack.i.h.bf16 %v18513_v47  ;;  %v22621_v61 = vunpack.i.l.bf16 %v18513_v47 }
 0x2d4   :  { %16136 = vrot.lane.b32.xlu1 %v18329_v33, %s16952_s30  ;;  %16206 = vrot.lane.b32.xlu0 %v18329_v33, %s16953_s4 }
 0x2d5   :  { %v4303_v6 = vsel %vm60_vm2, %v15868_v48, %v22618_v51  ;;  %v4304_v16 = vsel %vm60_vm2, %v15869_v38, %v22619_v55 }
 0x2d6   :  { %v15922_v23 = vpop.permute.xlu0 %15921  ;;  %v18529_v15 = vpop.permute.xlu1 %15876  ;;  %v15045_v44 = vpack.c.bf16 %v4304_v16, %v4303_v6 }
 0x2d7   :  { %v15924_v28 = vunpack.i.h.bf16 %v15922_v23  ;;  %v15923_v49 = vunpack.i.l.bf16 %v15922_v23 }
 0x2d8   :  { %16146 = vrot.lane.b32.xlu1 %v18339_v34, %s16950_s29  ;;  %16216 = vrot.lane.b32.xlu0 %v18341_v8, %s16950_s29 }
 0x2d9   :  { %v4307_v19 = vsel %vm60_vm2, %v15923_v49, %v15868_v48  ;;  %v4308_v7 = vsel %vm60_vm2, %v15924_v28, %v15869_v38  ;;  %15046 = vmatprep.subr.bf16.mxu1 %v15045_v44  ;;  %v4311_v54 = vsel %vm60_vm2, %v22621_v61, %v15923_v49  ;;  %v4312_v59 = vsel %vm60_vm2, %v22620_v14, %v15924_v28 }
 0x2da   :  { %v18549_v18 = vpop.permute.xlu0 %15926  ;;  %v18551_v12 = vpop.permute.xlu1 %15881  ;;  %v15037_v10 = vpack.c.bf16 %v4312_v59, %v4311_v54  ;;  %v15047_v22 = vpack.c.bf16 %v4308_v7, %v4307_v19 }
 0x2dc   :  { %16151 = vrot.lane.b32.xlu1 %v18242_v50, %s16953_s4  ;;  %16221 = vrot.lane.b32.xlu0 %v18331_v25, %s16953_s4 }
 0x2dd   :  { %15038 = vmatprep.subr.bf16.mxu0 %v15037_v10  ;;  %15048 = vmatpush1.bf16.msra.mxu1 %v15047_v22 }
 0x2de   :  { %v18557_v0 = vpop.permute.xlu0 %15931  ;;  %v18559_v42 = vpop.permute.xlu1 %15886 }
 0x2e0   :  { %16161 = vrot.lane.b32.xlu1 %v18324_v56, %s16953_s4  ;;  %16231 = vrot.lane.b32.xlu0 %v18337_v52, %s16949_s16 }
 0x2e2   :  { %v18565_v38 = vpop.permute.xlu0 %15936  ;;  %v18567_v48 = vpop.permute.xlu1 %15891 }
 0x2e3   :  { %22872 = vst [vmem:[#allocation74_spill] sm:$0xff] %v18565_v38  ;;  %22873 = vst [vmem:[#allocation75_spill] sm:$0xff] %v18567_v48 }
 0x2e4   :  { %16171 = vrot.lane.b32.xlu1 %v18339_v34, %s16949_s16  ;;  %16236 = vrot.lane.b32.xlu0 %v18312_v4, %s16954_s5 }
 0x2e6   :  { %v18573_v6 = vpop.permute.xlu0 %15941  ;;  %v18575_v16 = vpop.permute.xlu1 %15896 }
 0x2e8   :  { %16181 = vrot.lane.b32.xlu1 %v18339_v34, %s16951_s0  ;;  %16246 = vrot.lane.b32.xlu0 %v18341_v8, %s16949_s16 }
 0x2ea   :  { %v18581_v23 = vpop.permute.xlu0 %15946  ;;  %v18583_v44 = vpop.permute.xlu1 %15901 }
 0x2eb   :  { %22874 = vst [vmem:[#allocation76_spill] sm:$0xff] %v18581_v23 }
 0x2ec   :  { %16191 = vrot.lane.b32.xlu1 %v18339_v34, %s16952_s30  ;;  %16251 = vrot.lane.b32.xlu0 %v18172_v17, %s16954_s5 }
 0x2ee   :  { %v18589_v28 = vpop.permute.xlu0 %15951  ;;  %v18591_v49 = vpop.permute.xlu1 %15911 }
 0x2f0   :  { %16196 = vrot.lane.b32.xlu1 %v18339_v34, %s16953_s4  ;;  %16261 = vrot.lane.b32.xlu0 %v18337_v52, %s16951_s0 }
 0x2f2   :  { %v15967_v19 = vpop.permute.xlu0 %15966  ;;  %v18597_v7 = vpop.permute.xlu1 %15956 }
 0x2f3   :  { %22875 = vst [vmem:[#allocation77_spill] sm:$0xff] %v18597_v7  ;;  %v15969_v51 = vunpack.i.h.bf16 %v15967_v19  ;;  %v15968_v55 = vunpack.i.l.bf16 %v15967_v19 }
 0x2f4   :  { %16211 = vrot.lane.b32.xlu1 %v18308_v37, %s16953_s4  ;;  %16266 = vrot.lane.b32.xlu0 %v18254_v60, %s16954_s5 }
 0x2f6   :  { %v18603_v54 = vpop.permute.xlu0 %15971  ;;  %v18605_v59 = vpop.permute.xlu1 %15961 }
 0x2f8   :  { %16226 = vrot.lane.b32.xlu1 %v18182_v31, %s16954_s5  ;;  %16276 = vrot.lane.b32.xlu0 %v18341_v8, %s16951_s0 }
 0x2fa   :  { %v18611_v10 = vpop.permute.xlu0 %15976  ;;  %v18613_v22 = vpop.permute.xlu1 %16006 }
 0x2fb   :  { %v22630_v14 = vunpack.i.h.bf16 %v18613_v22  ;;  %v22631_v61 = vunpack.i.l.bf16 %v18613_v22 }
 0x2fc   :  { %16241 = vrot.lane.b32.xlu1 %v18212_v58, %s16954_s5  ;;  %16281 = vrot.lane.b32.xlu0 %v18276_v26, %s16954_s5 }
 0x2fd   :  { %v4305_v21 = vsel %vm60_vm2, %v15968_v55, %v22631_v61  ;;  %v4306_v19 = vsel %vm60_vm2, %v15969_v51, %v22630_v14 }
 0x2fe   :  { %v18629_v62 = vpop.permute.xlu0 %15981  ;;  %v18631_v9 = vpop.permute.xlu1 %16011  ;;  %v15049_v27 = vpack.c.bf16 %v4306_v19, %v4305_v21 }
 0x2ff   :  { %v22632_v63 = vunpack.i.h.bf16 %v18631_v9  ;;  %v22633_v45 = vunpack.i.l.bf16 %v18631_v9 }
 0x300   :  { %16256 = vrot.lane.b32.xlu1 %v18200_v13, %s16954_s5  ;;  %16291 = vrot.lane.b32.xlu0 %v18337_v52, %s16952_s30 }
 0x301   :  { %v4310_v14 = vsel %vm60_vm2, %v22632_v63, %v15969_v51  ;;  %v4309_v21 = vsel %vm60_vm2, %v22633_v45, %v15968_v55  ;;  %15050 = vmatprep.subr.bf16.mxu1 %v15049_v27  ;;  %v18662_v27 = vld [vmem:[%s22509_s2 + $0x120] sm:$0xff] }
 0x302   :  { %v18647_v19 = vpop.permute.xlu0 %15986  ;;  %v18649_v61 = vpop.permute.xlu1 %16016  ;;  %v15051_v36 = vpack.c.bf16 %v4310_v14, %v4309_v21  ;;  %v18678_v14 = vld [vmem:[%s22509_s2 + $0x128] sm:$0xff] }
 0x303   :  { %22876 = vst [vmem:[#allocation78_spill] sm:$0xff] %v18647_v19 }
 0x304   :  { %16271 = vrot.lane.b32.xlu1 %v18339_v34, %s16954_s5  ;;  %16296 = vrot.lane.b32.xlu0 %v18264_v24, %s16954_s5 }
 0x305   :  { %15052 = vmatpush1.bf16.msra.mxu1 %v15051_v36 }
 0x306   :  { %v18655_v30 = vpop.permute.xlu0 %15991  ;;  %v18657_v51 = vpop.permute.xlu1 %16021 }
 0x307   :  { %22877 = vst [vmem:[#allocation79_spill] sm:$0xff] %v18655_v30  ;;  %v22895_v30 = vunpack.i.h.bf16 %v18513_v47 }
 0x308   :  { %16286 = vrot.lane.b32.xlu1 %v18242_v50, %s16954_s5  ;;  %16306 = vrot.lane.b32.xlu0 %v18341_v8, %s16952_s30 }
 0x309   :  { %14835 = vmatmul.mubr.msk.f32.vlgmr.msra.gmra.mrb[16].mxu1 %vm4319_vm9, %v18662_v27 }
 0x30a   :  { %v18670_v36 = vpop.permute.xlu0 %15996  ;;  %v18672_v55 = vpop.permute.xlu1 %16026  ;;  %4473 = vmatprep.mubr.f32.mxu1 %v22800_v1 }
 0x30b   :  { %22878 = vst [vmem:[#allocation80_spill] sm:$0xff] %v18670_v36  ;;  %22879 = vst [vmem:[#allocation81_spill] sm:$0xff] %v18672_v55 }
 0x30c   :  { %16301 = vrot.lane.b32.xlu1 %v18324_v56, %s16954_s5  ;;  %16311 = vrot.lane.b32.xlu0 %v18329_v33, %s16954_s5 }
 0x30d   :  { %14836 = vmatmul.mubr.msk.f32.gmra.mrb[18].mxu1 %vm4319_vm9, %v18678_v14 }
 0x30e   :  { %v18686_v21 = vpop.permute.xlu0 %16001  ;;  %v18688_v63 = vpop.permute.xlu1 %16031  ;;  %4621 = vmatprep.mubr.f32.mxu1 %v22800_v1 }
 0x30f   :  { %22880 = vst [vmem:[#allocation82_spill] sm:$0xff] %v18686_v21  ;;  %22881 = vst [vmem:[#allocation83_spill] sm:$0xff] %v18688_v63 }
 0x310   :  { %16316 = vrot.lane.b32.xlu1 %v18308_v37, %s16954_s5  ;;  %16321 = vrot.lane.b32.xlu0 %v18331_v25, %s16954_s5 }
 0x312   :  { %v18695_v45 = vpop.permute.xlu0 %16046  ;;  %v18697_v20 = vpop.permute.xlu1 %16036 }
 0x313   :  { %22882 = vst [vmem:[#allocation84_spill] sm:$0xff] %v18695_v45  ;;  %22883 = vst [vmem:[#allocation85_spill] sm:$0xff] %v18697_v20 }
 0x314   :  { %16326 = vrot.lane.b32.xlu1 %v18182_v31, %s16955_s6  ;;  %16331 = vrot.lane.b32.xlu0 %v18312_v4, %s16955_s6 }
 0x316   :  { %v18703_v2 = vpop.permute.xlu0 %16051  ;;  %v18705_v41 = vpop.permute.xlu1 %16041 }
 0x317   :  { %22884 = vst [vmem:[#allocation86_spill] sm:$0xff] %v18703_v2  ;;  %22885 = vst [vmem:[#allocation87_spill] sm:$0xff] %v18705_v41  ;;  %v22647_v2 = vunpack.i.l.bf16 %v18603_v54 }
 0x318   :  { %16336 = vrot.lane.b32.xlu1 %v18212_v58, %s16955_s6  ;;  %16341 = vrot.lane.b32.xlu0 %v18172_v17, %s16955_s6 }
 0x31a   :  { %v18711_v5 = vpop.permute.xlu0 %16061  ;;  %v16057_v46 = vpop.permute.xlu1 %16056 }
 0x31b   :  { %v16059_v41 = vunpack.i.h.bf16 %v16057_v46  ;;  %v16058_v20 = vunpack.i.l.bf16 %v16057_v46 }
 0x31c   :  { %16346 = vrot.lane.b32.xlu1 %v18200_v13, %s16955_s6  ;;  %16351 = vrot.lane.b32.xlu0 %v18254_v60, %s16955_s6 }
 0x31e   :  { %v18717_v32 = vpop.permute.xlu0 %16071  ;;  %v18719_v35 = vpop.permute.xlu1 %16066 }
 0x320   :  { %16361 = vrot.lane.b32.xlu0 %v18276_v26, %s16955_s6  ;;  %16356 = vrot.lane.b32.xlu1 %v18339_v34, %s16955_s6 }
 0x322   :  { %v18725_v53 = vpop.permute.xlu0 %16081  ;;  %v18727_v3 = vpop.permute.xlu1 %16076 }
 0x323   :  { %22886 = vst [vmem:[#allocation88_spill] sm:$0xff] %v18725_v53  ;;  %22887 = vst [vmem:[#allocation89_spill] sm:$0xff] %v18727_v3 }
 0x324   :  { %16371 = vrot.lane.b32.xlu0 %v18337_v52, %s16953_s4  ;;  %16366 = vrot.lane.b32.xlu1 %v18242_v50, %s16955_s6 }
 0x326   :  { %v18733_v29 = vpop.permute.xlu0 %16091  ;;  %v18735_v57 = vpop.permute.xlu1 %16086 }
 0x327   :  { %22888 = vst [vmem:[#allocation90_spill] sm:$0xff] %v18733_v29  ;;  %22889 = vst [vmem:[#allocation91_spill] sm:$0xff] %v18735_v57  ;;  %v22891_v57 = vunpack.i.l.bf16 %v18631_v9  ;;  %v22893_v29 = vunpack.i.h.bf16 %v18603_v54 }
 0x328   :  { %16376 = vrot.lane.b32.xlu0 %v18264_v24, %s16955_s6  ;;  %16381 = vrot.lane.b32.xlu1 %v18341_v8, %s16953_s4 }
 0x329   :  { %v4313_v43 = vsel %vm60_vm2, %v22647_v2, %v22891_v57 }
 0x32a   :  { %v18743_v45 = vpop.permute.xlu0 %16096  ;;  %v16102_v21 = vpop.permute.xlu1 %16101 }
 0x32b   :  { %22890 = vst [vmem:[#allocation92_spill] sm:$0xff] %v18743_v45  ;;  %v16104_v3 = vunpack.i.h.bf16 %v16102_v21  ;;  %v16103_v53 = vunpack.i.l.bf16 %v16102_v21  ;;  %v22892_v45 = vunpack.i.h.bf16 %v18631_v9  ;;  %v22894_v21 = vunpack.i.l.bf16 %v18513_v47 }
 0x32c   :  { %16391 = vrot.lane.b32.xlu0 %v18329_v33, %s16955_s6  ;;  %16386 = vrot.lane.b32.xlu1 %v18324_v56, %s16955_s6 }
 0x32d   :  { %v4314_v46 = vsel %vm60_vm2, %v22893_v29, %v22892_v45  ;;  %v4315_v36 = vsel %vm60_vm2, %v16103_v53, %v22894_v21  ;;  %v4316_v63 = vsel %vm60_vm2, %v16104_v3, %v22895_v30  ;;  %v4287_v57 = vsel %vm60_vm2, %v16058_v20, %v16103_v53 }
 0x32e   :  { %v4288_v9 = vsel %vm60_vm2, %v16059_v41, %v16104_v3  ;;  %v18773_v2 = vpop.permute.xlu0 %16141  ;;  %v18775_v55 = vpop.permute.xlu1 %16106  ;;  %v15039_v29 = vpack.c.bf16 %v4316_v63, %v4315_v36  ;;  %v15041_v53 = vpack.c.bf16 %v4314_v46, %v4313_v43  ;;  %v22653_v43 = vunpack.i.h.bf16 %v18549_v18 }
 0x32f   :  { %v15061_v45 = vpack.c.bf16 %v4288_v9, %v4287_v57  ;;  %v22650_v19 = vunpack.i.h.bf16 %v18775_v55  ;;  %v22651_v21 = vunpack.i.l.bf16 %v18775_v55  ;;  %v22652_v46 = vunpack.i.l.bf16 %v18549_v18 }
 0x330   :  { %16401 = vrot.lane.b32.xlu0 %v18331_v25, %s16955_s6  ;;  %16396 = vrot.lane.b32.xlu1 %v18308_v37, %s16955_s6 }
 0x331   :  { %v4291_v3 = vsel %vm60_vm2, %v22651_v21, %v16058_v20  ;;  %v4292_v30 = vsel %vm60_vm2, %v22650_v19, %v16059_v41  ;;  %15040 = vmatpush1.bf16.msra.mxu0 %v15039_v29  ;;  %15062 = vmatprep.subr.bf16.mxu1 %v15061_v45  ;;  %v15879_v41 = vunpack.i.h.bf16 %v18529_v15  ;;  %v15878_v20 = vunpack.i.l.bf16 %v18529_v15 }
 0x332   :  { %15042 = vmatprep.subr.bf16.mxu0 %v15041_v53  ;;  %v18791_v63 = vpop.permute.xlu0 %16156  ;;  %v18793_v47 = vpop.permute.xlu1 %16111  ;;  %v15063_v36 = vpack.c.bf16 %v4292_v30, %v4291_v3  ;;  %v15934_v29 = vunpack.i.h.bf16 %v18557_v0  ;;  %v15933_v45 = vunpack.i.l.bf16 %v18557_v0  ;;  %v15889_v19 = vunpack.i.h.bf16 %v18559_v42 }
 0x333   :  { %22896 = vst [vmem:[#allocation93_spill] sm:$0xff] %v18791_v63  ;;  %v18825_v15 = vsel %vm129_vm0, %v15879_v41, %v22653_v43  ;;  %v15888_v21 = vunpack.i.l.bf16 %v18559_v42  ;;  %v15898_v53 = vunpack.i.l.bf16 %v18575_v16 }
 0x334   :  { %16411 = vrot.lane.b32.xlu0 %v18337_v52, %s16954_s5  ;;  %16406 = vrot.lane.b32.xlu1 %v18182_v31, %s16956_s7  ;;  %v18819_v31 = vsel %vm129_vm0, %v15878_v20, %v22652_v46  ;;  %v18841_v0 = vsel %vm129_vm0, %v15933_v45, %v15878_v20  ;;  %v18845_v30 = vsel %vm129_vm0, %v15934_v29, %v15879_v41  ;;  %v15899_v46 = vunpack.i.h.bf16 %v18575_v16 }
 0x335   :  { %15064 = vmatpush1.bf16.msra.mxu1 %v15063_v36  ;;  %v15943_v36 = vunpack.i.l.bf16 %v18573_v6  ;;  %v22898_v20 = vunpack.i.l.bf16 %v18551_v12  ;;  %v22900_v16 = vunpack.i.l.bf16 %v18565_v38 }
 0x336   :  { %v18803_v57 = vpop.permute.xlu0 %16166  ;;  %v18805_v9 = vpop.permute.xlu1 %16116 }
 0x337   :  { %v18859_v41 = vsel %vm129_vm0, %v22898_v20, %v15933_v45  ;;  %v22903_v45 = vunpack.i.l.bf16 %v18567_v48 }
 0x338   :  { %16416 = vrot.lane.b32.xlu0 %v18312_v4, %s16956_s7  ;;  %16421 = vrot.lane.b32.xlu1 %v18341_v8, %s16954_s5  ;;  %v15944_v4 = vunpack.i.h.bf16 %v18573_v6  ;;  %v22899_v6 = vunpack.i.h.bf16 %v18551_v12 }
 0x339   :  { %v18883_v20 = vsel %vm935_vm3, %v22903_v45, %v15943_v36  ;;  %v22909_v45 = vunpack.i.l.bf16 %v18581_v23 }
 0x33a   :  { %v18835_v3 = vpop.permute.xlu0 %16176  ;;  %v18837_v43 = vpop.permute.xlu1 %16121  ;;  %v18865_v42 = vsel %vm129_vm0, %v22899_v6, %v15934_v29  ;;  %22904 = vst [vmem:[#allocation96_spill] sm:$0xff] %v18883_v20  ;;  %v22905_v29 = vunpack.i.h.bf16 %v18567_v48 }
 0x33b   :  { %22897 = vst [vmem:[#allocation94_spill] sm:$0xff] %v18835_v3  ;;  %v18907_v48 = vsel %vm1404_vm4, %v15898_v53, %v22909_v45  ;;  %v15953_v45 = vunpack.i.l.bf16 %v18589_v28 }
 0x33c   :  { %16431 = vrot.lane.b32.xlu0 %v18172_v17, %s16956_s7  ;;  %16426 = vrot.lane.b32.xlu1 %v18212_v58, %s16956_s7  ;;  %v18871_v17 = vsel %vm935_vm3, %v15888_v21, %v22900_v16  ;;  %v22902_v58 = vunpack.i.h.bf16 %v18565_v38  ;;  %v18889_v6 = vsel %vm935_vm3, %v22905_v29, %v15944_v4  ;;  %v18893_v16 = vsel %vm935_vm3, %v15943_v36, %v15888_v21 }
 0x33d   :  { %22901 = vst [vmem:[#allocation95_spill] sm:$0xff] %v18871_v17  ;;  %22906 = vst [vmem:[#allocation97_spill] sm:$0xff] %v18893_v16  ;;  %v22911_v29 = vunpack.i.h.bf16 %v18581_v23  ;;  %v16064_v36 = vunpack.i.h.bf16 %v18711_v5  ;;  %v22914_v23 = vunpack.i.l.bf16 %v18603_v54  ;;  %v22917_v16 = vunpack.i.h.bf16 %v18775_v55 }
 0x33e   :  { %v18877_v63 = vsel %vm935_vm3, %v15889_v19, %v22902_v58  ;;  %v18897_v58 = vsel %vm935_vm3, %v15944_v4, %v15889_v19  ;;  %v18899_v3 = vpop.permute.xlu0 %16186  ;;  %v18901_v38 = vpop.permute.xlu1 %16126  ;;  %22910 = vst [vmem:[#allocation100_spill] sm:$0xff] %v18907_v48  ;;  %v16063_v4 = vunpack.i.l.bf16 %v18711_v5  ;;  %v16144_v48 = vunpack.i.h.bf16 %v18773_v2 }
 0x33f   :  { %22907 = vst [vmem:[#allocation98_spill] sm:$0xff] %v18897_v58  ;;  %22908 = vst [vmem:[#allocation99_spill] sm:$0xff] %v18899_v3  ;;  %v18913_v21 = vsel %vm1404_vm4, %v15899_v46, %v22911_v29 }
 0x340   :  { %22912 = vst [vmem:[#allocation101_spill] sm:$0xff] %v18913_v21  ;;  %16441 = vrot.lane.b32.xlu0 %v18254_v60, %s16956_s7  ;;  %16436 = vrot.lane.b32.xlu1 %v18200_v13, %s16956_s7  ;;  %v15954_v13 = vunpack.i.h.bf16 %v18589_v28  ;;  %v16143_v28 = vunpack.i.l.bf16 %v18773_v2  ;;  %v22916_v60 = vunpack.i.l.bf16 %v18775_v55 }
 0x342   :  { %v16202_v17 = vpop.permute.xlu0 %16201  ;;  %v18941_v19 = vpop.permute.xlu1 %16131  ;;  %v4295_v2 = vsel %vm60_vm2, %v16063_v4, %v22916_v60  ;;  %v18980_v60 = vsel %vm1404_vm4, %v15953_v45, %v15898_v53  ;;  %v18984_v55 = vsel %vm1404_vm4, %v15954_v13, %v15899_v46  ;;  %v22923_v53 = vunpack.i.l.bf16 %v18505_v39 }
 0x343   :  { %22913 = vst [vmem:[#allocation102_spill] sm:$0xff] %v18941_v19  ;;  %v16204_v20 = vunpack.i.h.bf16 %v16202_v17  ;;  %v16203_v3 = vunpack.i.l.bf16 %v16202_v17  ;;  %v22915_v17 = vunpack.i.h.bf16 %v18603_v54 }
 0x344   :  { %16451 = vrot.lane.b32.xlu0 %v18337_v52, %s16955_s6  ;;  %16446 = vrot.lane.b32.xlu1 %v18339_v34, %s16956_s7  ;;  %v4296_v34 = vsel %vm60_vm2, %v16064_v36, %v22917_v16  ;;  %v22918_v16 = vunpack.i.l.bf16 %v18583_v44 }
 0x345   :  { %v4317_v5 = vsel %vm60_vm2, %v16203_v3, %v22914_v23  ;;  %v4318_v29 = vsel %vm60_vm2, %v16204_v20, %v22915_v17  ;;  %v4289_v17 = vsel %vm60_vm2, %v16143_v28, %v16203_v3  ;;  %v4290_v58 = vsel %vm60_vm2, %v16144_v48, %v16204_v20 }
 0x346   :  { %v18970_v19 = vpop.permute.xlu0 %16206  ;;  %v18972_v23 = vpop.permute.xlu1 %16136  ;;  %v15043_v54 = vpack.c.bf16 %v4318_v29, %v4317_v5  ;;  %v18990_v21 = vsel %vm1404_vm4, %v22918_v16, %v15953_v45  ;;  %v22919_v29 = vunpack.i.h.bf16 %v18583_v44  ;;  %v15065_v46 = vpack.c.bf16 %v4290_v58, %v4289_v17 }
 0x347   :  { %v15053_v5 = vpack.c.bf16 %v4296_v34, %v4295_v2  ;;  %v22920_v45 = vunpack.i.h.bf16 %v18597_v7  ;;  %v22921_v16 = vunpack.i.h.bf16 %v18505_v39  ;;  %v22924_v20 = vunpack.i.h.bf16 %v18511_v40 }
 0x348   :  { %v18996_v3 = vsel %vm1404_vm4, %v22919_v29, %v15954_v13  ;;  %16456 = vrot.lane.b32.xlu0 %v18276_v26, %s16956_s7  ;;  %16461 = vrot.lane.b32.xlu1 %v18341_v8, %s16955_s6  ;;  %v22922_v29 = vunpack.i.l.bf16 %v18597_v7  ;;  %v22925_v2 = vunpack.i.l.bf16 %v18511_v40  ;;  %v22926_v7 = vunpack.i.l.bf16 %v18649_v61 }
 0x349   :  { %v19010_v13 = vsel %vm2277_vm5, %v22921_v16, %v22920_v45  ;;  %v4300_v58 = vsel %vm60_vm2, %v22924_v20, %v16064_v36  ;;  %15044 = vmatpush1.bf16.msra.mxu0 %v15043_v54  ;;  %v15963_v45 = vunpack.i.l.bf16 %v18605_v59  ;;  %15066 = vmatprep.subr.bf16.mxu1 %v15065_v46  ;;  %v22927_v36 = vunpack.i.l.bf16 %v18611_v10 }
 0x34a   :  { %v19018_v26 = vsel %vm2277_vm5, %v22923_v53, %v22922_v29  ;;  %v4299_v34 = vsel %vm60_vm2, %v22925_v2, %v16063_v4  ;;  %15054 = vmatprep.subr.bf16.mxu0 %v15053_v5  ;;  %v16217_v53 = vpop.permute.xlu0 %16216  ;;  %v16147_v29 = vpop.permute.xlu1 %16146  ;;  %v16023_v17 = vunpack.i.l.bf16 %v18657_v51  ;;  %v22928_v5 = vunpack.i.h.bf16 %v18649_v61 }
 0x34b   :  { %v19037_v40 = vsel %vm129_vm0, %v22927_v36, %v22926_v7  ;;  %v16219_v4 = vunpack.i.h.bf16 %v16217_v53  ;;  %v16218_v54 = vunpack.i.l.bf16 %v16217_v53  ;;  %v16149_v20 = vunpack.i.h.bf16 %v16147_v29 }
 0x34c   :  { %v16148_v2 = vunpack.i.l.bf16 %v16147_v29  ;;  %16471 = vrot.lane.b32.xlu0 %v18264_v24, %s16956_s7  ;;  %16466 = vrot.lane.b32.xlu1 %v18242_v50, %s16956_s7  ;;  %v15055_v46 = vpack.c.bf16 %v4300_v58, %v4299_v34  ;;  %v22929_v7 = vunpack.i.h.bf16 %v18611_v10  ;;  %v22930_v24 = vunpack.i.l.bf16 %v18613_v22 }
 0x34d   :  { %v4293_v29 = vsel %vm60_vm2, %v16218_v54, %v16143_v28  ;;  %v4294_v36 = vsel %vm60_vm2, %v16219_v4, %v16144_v48  ;;  %v22931_v58 = vunpack.i.h.bf16 %v18613_v22  ;;  %14833 = vmatmul.mubr.msk.f32.vlgmr.msra.gmra.mrb[16].mxu0 %vm4319_vm9, %v18662_v27  ;;  %v4298_v22 = vsel %vm60_vm2, %v16149_v20, %v16219_v4 }
 0x34e   :  { %v19051_v53 = vsel %vm129_vm0, %v22929_v7, %v22928_v5  ;;  %v4301_v50 = vsel %vm60_vm2, %v22930_v24, %v16148_v2  ;;  %v16113_v5 = vunpack.i.l.bf16 %v18793_v47  ;;  %15056 = vmatpush1.bf16.msra.mxu0 %v15055_v46  ;;  %v19068_v28 = vpop.permute.xlu0 %16221  ;;  %v19070_v7 = vpop.permute.xlu1 %16151  ;;  %4396 = vmatprep.mubr.f32.mxu0 %v22800_v1  ;;  %v4297_v48 = vsel %vm60_vm2, %v16148_v2, %v16218_v54 }
 0x34f   :  { %v4302_v34 = vsel %vm60_vm2, %v22931_v58, %v16149_v20  ;;  %22932 = vst [vmem:[#allocation103_spill] sm:$0xff] %v19068_v28  ;;  %22933 = vst [vmem:[#allocation104_spill] sm:$0xff] %v19070_v7  ;;  %v15067_v24 = vpack.c.bf16 %v4294_v36, %v4293_v29  ;;  %v16024_v58 = vunpack.i.h.bf16 %v18657_v51  ;;  %v15133_v16 = vpack.c.bf16 %v18996_v3, %v18990_v21  ;;  %v22963_v28 = vld [vmem:[#allocation95_spill] sm:$0xff] }
 0x350   :  { %v22934_v7 = vunpack.i.l.bf16 %v18591_v49  ;;  %v15983_v4 = vunpack.i.l.bf16 %v18629_v62  ;;  %16481 = vrot.lane.b32.xlu0 %v18329_v33, %s16956_s7  ;;  %16476 = vrot.lane.b32.xlu1 %v18324_v56, %s16956_s7  ;;  %v15057_v51 = vpack.c.bf16 %v4298_v22, %v4297_v48  ;;  %v15059_v20 = vpack.c.bf16 %v4302_v34, %v4301_v50 }
 0x351   :  { %v22935_v2 = vunpack.i.h.bf16 %v18605_v59  ;;  %v22936_v29 = vunpack.i.h.bf16 %v18591_v49  ;;  %14834 = vmatmul.mubr.msk.f32.gmra.mrb[18].mxu0 %vm4319_vm9, %v18678_v14  ;;  %15068 = vmatpush1.bf16.msra.mxu1 %v15067_v24  ;;  %v15081_v33 = vpack.c.bf16 %v19051_v53, %v19037_v40  ;;  %v22937_v56 = vunpack.i.l.bf16 %v18505_v39 }
 0x352   :  { %v19088_v54 = vsel %vm2277_vm5, %v22934_v7, %v15963_v45  ;;  %v15984_v7 = vunpack.i.h.bf16 %v18629_v62  ;;  %v22938_v34 = vunpack.i.l.bf16 %v18551_v12  ;;  %v22939_v62 = vunpack.i.h.bf16 %v18551_v12  ;;  %15058 = vmatprep.subr.bf16.mxu0 %v15057_v51  ;;  %v19127_v53 = vpop.permute.xlu0 %16231  ;;  %4544 = vmatprep.mubr.f32.mxu0 %v22800_v1 }
 0x353   :  { %v19101_v36 = vsel %vm2277_vm5, %v22936_v29, %v22935_v2  ;;  %v19112_v50 = vsel %vm2277_vm5, %v15963_v45, %v22937_v56  ;;  %v22940_v22 = vunpack.i.h.bf16 %v18793_v47  ;;  %v22941_v40 = vpack.c.bf16 %v18825_v15, %v18819_v31  ;;  %v19129_v45 = vpop.permute.xlu1 %16161  ;;  %15060 = vmatpush1.bf16.msra.mxu0 %v15059_v20 }
 0x354   :  { %v4760_v48 = vsel %vm129_vm0, %v16113_v5, %v22938_v34  ;;  %v4758_v2 = vsel %vm129_vm0, %v15983_v4, %v16023_v17  ;;  %v16074_v29 = vunpack.i.h.bf16 %v18717_v32  ;;  %v16234_v12 = vunpack.i.h.bf16 %v19127_v53  ;;  %14839 = vmatmul.mubr.msk.f32.vlgmr.msra.gmra.mrb[20].mxu1 %vm4319_vm9, %v18662_v27  ;;  %16491 = vrot.lane.b32.xlu0 %v18337_v52, %s16956_s7 }
 0x355   :  { %v4761_v24 = vsel %vm129_vm0, %v22940_v22, %v22939_v62  ;;  %15078 = vmatprep.subr.bf16.mxu1 %v22941_v40  ;;  %v16233_v56 = vunpack.i.l.bf16 %v19127_v53  ;;  %v4759_v31 = vsel %vm129_vm0, %v15984_v7, %v16024_v58  ;;  %v16073_v15 = vunpack.i.l.bf16 %v18717_v32  ;;  %16486 = vrot.lane.b32.xlu1 %v18308_v37, %s16956_s7 }
 0x356   :  { %v16069_v51 = vunpack.i.h.bf16 %v18719_v35  ;;  %v16119_v34 = vunpack.i.h.bf16 %v18805_v9  ;;  %v16118_v62 = vunpack.i.l.bf16 %v18805_v9  ;;  %v22942_v20 = vpack.c.bf16 %v18865_v42, %v18859_v41  ;;  %14837 = vmatmul.mubr.msk.f32.vlgmr.msra.gmra.mrb[20].mxu0 %vm4319_vm9, %v18662_v27  ;;  %4627 = vmatprep.mubr.f32.mxu1 %v22800_v1 }
 0x357   :  { %v16068_v22 = vunpack.i.l.bf16 %v18719_v35  ;;  %v4762_v40 = vsel %vm129_vm0, %v16233_v56, %v15983_v4  ;;  %v4763_v32 = vsel %vm129_vm0, %v16234_v12, %v15984_v7  ;;  %v15071_v9 = vpack.c.bf16 %v4761_v24, %v4760_v48  ;;  %v19170_v7 = vpop.permute.xlu0 %16236  ;;  %v19172_v37 = vpop.permute.xlu1 %16171  ;;  %v22949_v24 = vld [vmem:[#allocation78_spill] sm:$0xff]  ;;  %4550 = vmatprep.mubr.f32.mxu0 %v22800_v1 }
 0x358   :  { %15070 = vmatprep.subr.bf16.mxu0 %v22942_v20  ;;  %v22943_v42 = vunpack.i.h.bf16 %v18611_v10  ;;  %v22944_v35 = vunpack.i.l.bf16 %v18611_v10  ;;  %v22945_v52 = vpack.c.bf16 %v18845_v30, %v18841_v0  ;;  %v15073_v48 = vpack.c.bf16 %v4759_v31, %v4758_v2  ;;  %14840 = vmatmul.mubr.msk.f32.gmra.mrb[22].mxu1 %vm4319_vm9, %v18678_v14 }
 0x359   :  { %15072 = vmatpush1.bf16.msra.mxu0 %v15071_v9  ;;  %v4732_v10 = vsel %vm129_vm0, %v16068_v22, %v16113_v5  ;;  %v22947_v27 = vunpack.i.h.bf16 %v18505_v39  ;;  %v22948_v0 = vunpack.i.h.bf16 %v18605_v59  ;;  %v15989_v53 = vunpack.i.h.bf16 %v22949_v24  ;;  %16501 = vrot.lane.b32.xlu0 %v18331_v25, %s16956_s7 }
 0x35a   :  { %v4755_v41 = vsel %vm129_vm0, %v16024_v58, %v22943_v42  ;;  %v4754_v4 = vsel %vm129_vm0, %v16023_v17, %v22944_v35  ;;  %15080 = vmatpush1.bf16.msra.mxu1 %v22945_v52  ;;  %v22946_v58 = vunpack.i.h.bf16 %v18793_v47  ;;  %15074 = vmatprep.subr.bf16.mxu0 %v15073_v48  ;;  %v4740_v47 = vsel %vm129_vm0, %v16073_v15, %v16118_v62  ;;  %v22953_v48 = vld [vmem:[#allocation83_spill] sm:$0xff] }
 0x35b   :  { %15082 = vmatprep.subr.bf16.mxu1 %v15081_v33  ;;  %v19186_v30 = vsel %vm2277_vm5, %v22948_v0, %v22947_v27  ;;  %v15075_v33 = vpack.c.bf16 %v4763_v32, %v4762_v40  ;;  %v4741_v5 = vsel %vm129_vm0, %v16074_v29, %v16119_v34  ;;  %v15988_v39 = vunpack.i.l.bf16 %v22949_v24  ;;  %16496 = vrot.lane.b32.xlu1 %v18341_v8, %s16956_s7  ;;  %v19225_v8 = vld [vmem:[%s22509_s2 + $0x130] sm:$0xff] }
 0x35c   :  { %v4733_v17 = vsel %vm129_vm0, %v16069_v51, %v22946_v58  ;;  %v22950_v59 = vunpack.i.h.bf16 %v18549_v18  ;;  %v22951_v31 = vunpack.i.l.bf16 %v18549_v18  ;;  %v15083_v40 = vpack.c.bf16 %v4755_v41, %v4754_v4  ;;  %14838 = vmatmul.mubr.msk.f32.gmra.mrb[22].mxu0 %vm4319_vm9, %v18678_v14  ;;  %v22952_v4 = vld [vmem:[#allocation81_spill] sm:$0xff]  ;;  %4911 = vmatprep.mubr.f32.mxu1 %v22800_v1 }
 0x35d   :  { %v16169_v32 = vunpack.i.h.bf16 %v18803_v57  ;;  %v16168_v9 = vunpack.i.l.bf16 %v18803_v57  ;;  %v4736_v42 = vsel %vm129_vm0, %v16118_v62, %v16068_v22  ;;  %v15093_v18 = vpack.c.bf16 %v4733_v17, %v4732_v10  ;;  %15076 = vmatpush1.bf16.msra.mxu0 %v15075_v33  ;;  %v8106_v17 = vld [vmem:[%s22509_s2 + $0x2a8] sm:$0xff]  ;;  %4834 = vmatprep.mubr.f32.mxu0 %v22800_v1 }
 0x35e   :  { %v4745_v2 = vsel %vm129_vm0, %v22950_v59, %v16074_v29  ;;  %v4744_v20 = vsel %vm129_vm0, %v22951_v31, %v16073_v15  ;;  %v16247_v29 = vpop.permute.xlu0 %16246  ;;  %v19214_v15 = vpop.permute.xlu1 %16181  ;;  %v4737_v41 = vsel %vm129_vm0, %v16119_v34, %v16069_v51  ;;  %15084 = vmatpush1.bf16.msra.mxu1 %v15083_v40  ;;  %v15085_v62 = vpack.c.bf16 %v4741_v5, %v4740_v47  ;;  %v8107_v51 = vld [vmem:[%s22509_s2 + $0x2b0] sm:$0xff] }
 0x35f   :  { %v16249_v57 = vunpack.i.h.bf16 %v16247_v29  ;;  %v16248_v35 = vunpack.i.l.bf16 %v16247_v29  ;;  %v16174_v22 = vunpack.i.h.bf16 %v19172_v37  ;;  %v16173_v25 = vunpack.i.l.bf16 %v19172_v37  ;;  %15094 = vmatprep.subr.bf16.mxu1 %v15093_v18  ;;  %8115 = vperm.xlu0 %15863, %v8107_v51  }
 0x360   :  { %v4734_v14 = vsel %vm129_vm0, %v16168_v9, %v16233_v56  ;;  %v4735_v34 = vsel %vm129_vm0, %v16169_v32, %v16234_v12  ;;  %v16029_v52 = vunpack.i.h.bf16 %v22952_v4  ;;  %v16028_v37 = vunpack.i.l.bf16 %v22952_v4  ;;  %15086 = vmatprep.subr.bf16.mxu0 %v15085_v62  ;;  %8110 = vperm.xlu1 %15864, %v8106_v17   ;;  %v22967_v62 = vld [vmem:[#allocation85_spill] sm:$0xff] }
 0x361   :  { %v16034_v10 = vunpack.i.h.bf16 %v22953_v48  ;;  %v4738_v58 = vsel %vm129_vm0, %v16248_v35, %v16168_v9  ;;  %v16033_v56 = vunpack.i.l.bf16 %v22953_v48  ;;  %v4739_v12 = vsel %vm129_vm0, %v16249_v57, %v16169_v32  ;;  %14843 = vmatmul.mubr.msk.f32.vlgmr.msra.gmra.mrb[24].mxu1 %vm4319_vm9, %v19225_v8  ;;  %14841 = vmatmul.mubr.msk.f32.vlgmr.msra.gmra.mrb[24].mxu0 %vm4319_vm9, %v19225_v8 }
 0x362   :  { %v19247_v27 = vpop.permute.xlu0 %16251  ;;  %v19249_v0 = vpop.permute.xlu1 %16191  ;;  %v4742_v33 = vsel %vm129_vm0, %v16173_v25, %v16248_v35  ;;  %v4743_v47 = vsel %vm129_vm0, %v16174_v22, %v16249_v57  ;;  %v16124_v5 = vunpack.i.h.bf16 %v18837_v43  ;;  %v15095_v59 = vpack.c.bf16 %v4737_v41, %v4736_v42  ;;  %v22956_v42 = vld [vmem:[#allocation79_spill] sm:$0xff]  ;;  %4917 = vmatprep.mubr.f32.mxu1 %v22800_v1  ;;  %4840 = vmatprep.mubr.f32.mxu0 %v22800_v1 }
 0x363   :  { %v15087_v31 = vpack.c.bf16 %v4745_v2, %v4744_v20  ;;  %v15097_v40 = vpack.c.bf16 %v4735_v34, %v4734_v14  ;;  %v16123_v32 = vunpack.i.l.bf16 %v18837_v43  ;;  %v22954_v9 = vunpack.i.l.bf16 %v18649_v61  ;;  %v19272_v2 = vld [vmem:[%s22509_s2 + $0x138] sm:$0xff] }
 0x364   :  { %v22955_v29 = vunpack.i.h.bf16 %v18649_v61  ;;  %v15089_v20 = vpack.c.bf16 %v4743_v47, %v4742_v33  ;;  %v15993_v41 = vunpack.i.l.bf16 %v22956_v42  ;;  %15096 = vmatpush1.bf16.msra.mxu1 %v15095_v59  ;;  %v15099_v35 = vpack.c.bf16 %v4739_v12, %v4738_v58  ;;  %v22957_v33 = vld [vmem:[#allocation80_spill] sm:$0xff]  ;;  %v22958_v59 = vld [vmem:[#allocation75_spill] sm:$0xff] }
 0x365   :  { %v4746_v18 = vsel %vm129_vm0, %v22954_v9, %v16173_v25  ;;  %15088 = vmatpush1.bf16.msra.mxu0 %v15087_v31  ;;  %v5194_v61 = vsel %vm935_vm3, %v15988_v39, %v16028_v37  ;;  %v19288_v25 = vsel %vm935_vm3, %v16034_v10, %v15989_v53  ;;  %v19294_v51 = vsel %vm935_vm3, %v16033_v56, %v15988_v39  ;;  %v22961_v9 = vld [vmem:[#allocation88_spill] sm:$0xff] }
 0x366   :  { %v4747_v57 = vsel %vm129_vm0, %v22955_v29, %v16174_v22  ;;  %v15994_v22 = vunpack.i.h.bf16 %v22956_v42  ;;  %15098 = vmatprep.subr.bf16.mxu1 %v15097_v40  ;;  %v19297_v14 = vpop.permute.xlu0 %16261  ;;  %v19299_v34 = vpop.permute.xlu1 %16196  ;;  %v5195_v48 = vsel %vm935_vm3, %v15989_v53, %v16029_v52  ;;  %14844 = vmatmul.mubr.msk.f32.gmra.mrb[26].mxu1 %vm4319_vm9, %v19272_v2  ;;  %v5202_v12 = vsel %vm935_vm3, %v15993_v41, %v16033_v56 }
 0x367   :  { %v15091_v39 = vpack.c.bf16 %v4747_v57, %v4746_v18  ;;  %v16264_v58 = vunpack.i.h.bf16 %v19297_v14  ;;  %v16263_v17 = vunpack.i.l.bf16 %v19297_v14  ;;  %v15999_v47 = vunpack.i.h.bf16 %v22957_v33  ;;  %14842 = vmatmul.mubr.msk.f32.gmra.mrb[26].mxu0 %vm4319_vm9, %v19272_v2  ;;  %15090 = vmatprep.subr.bf16.mxu0 %v15089_v20 }
 0x368   :  { %v22959_v24 = vunpack.i.l.bf16 %v22958_v59  ;;  %v22960_v31 = vunpack.i.h.bf16 %v22958_v59  ;;  %v5203_v56 = vsel %vm935_vm3, %v15994_v22, %v16034_v10  ;;  %v16084_v18 = vunpack.i.h.bf16 %v22961_v9  ;;  %15100 = vmatpush1.bf16.msra.mxu1 %v15099_v35  ;;  %v22962_v59 = vld [vmem:[#allocation89_spill] sm:$0xff]  ;;  %5065 = vmatprep.mubr.f32.mxu1 %v22800_v1 }
 0x369   :  { %v16083_v29 = vunpack.i.l.bf16 %v22961_v9  ;;  %v16129_v57 = vunpack.i.h.bf16 %v18901_v38  ;;  %v16128_v42 = vunpack.i.l.bf16 %v18901_v38  ;;  %15092 = vmatpush1.bf16.msra.mxu0 %v15091_v39  ;;  %v22964_v20 = vpack.c.bf16 %v18877_v63, %v22963_v28  ;;  %v22965_v63 = vld [vmem:[#allocation96_spill] sm:$0xff]  ;;  %4988 = vmatprep.mubr.f32.mxu0 %v22800_v1 }
 0x36a   :  { %v5204_v53 = vsel %vm935_vm3, %v16123_v32, %v22959_v24  ;;  %v5205_v40 = vsel %vm935_vm3, %v16124_v5, %v22960_v31  ;;  %v16079_v24 = vunpack.i.h.bf16 %v22962_v59  ;;  %v16078_v31 = vunpack.i.l.bf16 %v22962_v59  ;;  %v19347_v35 = vpop.permute.xlu0 %16266  ;;  %v19349_v39 = vpop.permute.xlu1 %16211 }
 0x36b   :  { %15110 = vmatprep.subr.bf16.mxu1 %v22964_v20  ;;  %v5206_v10 = vsel %vm935_vm3, %v16263_v17, %v15993_v41  ;;  %v5207_v38 = vsel %vm935_vm3, %v16264_v58, %v15994_v22  ;;  %v15998_v9 = vunpack.i.l.bf16 %v22957_v33  ;;  %v22966_v28 = vpack.c.bf16 %v18889_v6, %v22965_v63  ;;  %14847 = vmatmul.mubr.msk.f32.vlgmr.msra.gmra.mrb[28].mxu1 %vm4319_vm9, %v19225_v8 }
 0x36c   :  { %v15103_v41 = vpack.c.bf16 %v5205_v40, %v5204_v53  ;;  %v15113_v59 = vpack.c.bf16 %v5195_v48, %v5194_v61  ;;  %v15105_v20 = vpack.c.bf16 %v5203_v56, %v5202_v12  ;;  %v16039_v46 = vunpack.i.h.bf16 %v22967_v62  ;;  %14845 = vmatmul.mubr.msk.f32.vlgmr.msra.gmra.mrb[28].mxu0 %vm4319_vm9, %v19225_v8  ;;  %v22968_v12 = vld [vmem:[#allocation98_spill] sm:$0xff]  ;;  %v22969_v53 = vld [vmem:[#allocation97_spill] sm:$0xff]  ;;  %5071 = vmatprep.mubr.f32.mxu1 %v22800_v1 }
 0x36d   :  { %15102 = vmatprep.subr.bf16.mxu0 %v22966_v28  ;;  %v15115_v22 = vpack.c.bf16 %v19288_v25, %v19294_v51  ;;  %v5176_v6 = vsel %vm935_vm3, %v16078_v31, %v16123_v32  ;;  %v5177_v61 = vsel %vm935_vm3, %v16079_v24, %v16124_v5  ;;  %v16038_v48 = vunpack.i.l.bf16 %v22967_v62  ;;  %v22971_v32 = vld [vmem:[#allocation74_spill] sm:$0xff]  ;;  %4994 = vmatprep.mubr.f32.mxu0 %v22800_v1 }
 0x36e   :  { %v22970_v40 = vpack.c.bf16 %v22968_v12, %v22969_v53  ;;  %15104 = vmatpush1.bf16.msra.mxu0 %v15103_v41  ;;  %v15107_v56 = vpack.c.bf16 %v5207_v38, %v5206_v10  ;;  %v5184_v8 = vsel %vm935_vm3, %v16083_v29, %v16128_v42  ;;  %v5185_v25 = vsel %vm935_vm3, %v16084_v18, %v16129_v57  ;;  %v22974_v28 = vld [vmem:[#allocation94_spill] sm:$0xff]  ;;  %v16277_v38 = vpop.permute.xlu0 %16276  ;;  %v19388_v41 = vpop.permute.xlu1 %16226 }
 0x36f   :  { %v22972_v51 = vunpack.i.h.bf16 %v22971_v32  ;;  %v22973_v5 = vunpack.i.l.bf16 %v22971_v32  ;;  %v16179_v12 = vunpack.i.h.bf16 %v22974_v28  ;;  %v16178_v10 = vunpack.i.l.bf16 %v22974_v28  ;;  %15106 = vmatprep.subr.bf16.mxu0 %v15105_v20  ;;  %14848 = vmatmul.mubr.msk.f32.gmra.mrb[30].mxu1 %vm4319_vm9, %v19272_v2 }
 0x370   :  { %15112 = vmatpush1.bf16.msra.mxu1 %v22970_v40  ;;  %v16183_v53 = vunpack.i.l.bf16 %v19214_v15  ;;  %v16279_v40 = vunpack.i.h.bf16 %v16277_v38  ;;  %v16278_v32 = vunpack.i.l.bf16 %v16277_v38  ;;  %14846 = vmatmul.mubr.msk.f32.gmra.mrb[30].mxu0 %vm4319_vm9, %v19272_v2  ;;  %v15117_v20 = vpack.c.bf16 %v5185_v25, %v5184_v8 }
 0x371   :  { %v5189_v43 = vsel %vm935_vm3, %v22972_v51, %v16084_v18  ;;  %v5188_v63 = vsel %vm935_vm3, %v22973_v5, %v16083_v29  ;;  %15114 = vmatprep.subr.bf16.mxu1 %v15113_v59  ;;  %v15125_v18 = vpack.c.bf16 %v5177_v61, %v5176_v6  ;;  %v5180_v29 = vsel %vm935_vm3, %v16128_v42, %v16078_v31  ;;  %v22975_v5 = vld [vmem:[#allocation87_spill] sm:$0xff]  ;;  %v22976_v61 = vld [vmem:[#allocation102_spill] sm:$0xff] }
 0x372   :  { %v5181_v51 = vsel %vm935_vm3, %v16129_v57, %v16079_v24  ;;  %v16184_v59 = vunpack.i.h.bf16 %v19214_v15  ;;  %v16044_v28 = vunpack.i.h.bf16 %v22975_v5  ;;  %15108 = vmatpush1.bf16.msra.mxu0 %v15107_v56  ;;  %v5182_v6 = vsel %vm935_vm3, %v16278_v32, %v16178_v10  ;;  %v19407_v57 = vld [vmem:[%s22509_s2 + $0x140] sm:$0xff]  ;;  %5355 = vmatprep.mubr.f32.mxu1 %v22800_v1  ;;  %v19421_v31 = vpop.permute.xlu0 %16281 }
 0x373   :  { %v5178_v15 = vsel %vm935_vm3, %v16178_v10, %v16263_v17  ;;  %v5179_v2 = vsel %vm935_vm3, %v16179_v12, %v16264_v58  ;;  %v16043_v42 = vunpack.i.l.bf16 %v22975_v5  ;;  %v5183_v24 = vsel %vm935_vm3, %v16279_v40, %v16179_v12  ;;  %15118 = vmatprep.subr.bf16.mxu0 %v15117_v20  ;;  %5278 = vmatprep.mubr.f32.mxu0 %v22800_v1 }
 0x374   :  { %15116 = vmatpush1.bf16.msra.mxu1 %v15115_v22  ;;  %v19423_v22 = vpop.permute.xlu1 %16241  ;;  %v5186_v17 = vsel %vm935_vm3, %v16183_v53, %v16278_v32  ;;  %v5187_v14 = vsel %vm935_vm3, %v16184_v59, %v16279_v40  ;;  %v16134_v58 = vunpack.i.h.bf16 %v22976_v61  ;;  %v5190_v56 = vsel %vm935_vm3, %v16028_v37, %v16183_v53  ;;  %v22977_v53 = vld [vmem:[#allocation82_spill] sm:$0xff] }
 0x375   :  { %15126 = vmatprep.subr.bf16.mxu1 %v15125_v18  ;;  %v15127_v8 = vpack.c.bf16 %v5181_v51, %v5180_v29  ;;  %v15119_v25 = vpack.c.bf16 %v5189_v43, %v5188_v63  ;;  %v16133_v12 = vunpack.i.l.bf16 %v22976_v61  ;;  %v5191_v10 = vsel %vm935_vm3, %v16029_v52, %v16184_v59  ;;  %14849 = vmatmul.mubr.msk.f32.vlgmr.msra.gmra.mrb[32].mxu0 %vm4319_vm9, %v19407_v57  ;;  %v19448_v43 = vld [vmem:[%s22509_s2 + $0x148] sm:$0xff] }
 0x376   :  { %v15129_v38 = vpack.c.bf16 %v5179_v2, %v5178_v15  ;;  %v15121_v37 = vpack.c.bf16 %v5187_v14, %v5186_v17  ;;  %v16003_v18 = vunpack.i.l.bf16 %v22977_v53  ;;  %v15131_v4 = vpack.c.bf16 %v5183_v24, %v5182_v6  ;;  %v19472_v51 = vpop.permute.xlu0 %16291  ;;  %5284 = vmatprep.mubr.f32.mxu0 %v22800_v1 }
 0x377   :  { %14851 = vmatmul.mubr.msk.f32.vlgmr.msra.gmra.mrb[32].mxu1 %vm4319_vm9, %v19407_v57  ;;  %15120 = vmatpush1.bf16.msra.mxu0 %v15119_v25  ;;  %v5638_v52 = vsel %vm1404_vm4, %v15998_v9, %v16038_v48  ;;  %v16004_v40 = vunpack.i.h.bf16 %v22977_v53  ;;  %v19463_v32 = vsel %vm1404_vm4, %v16044_v28, %v15999_v47  ;;  %v19469_v29 = vsel %vm1404_vm4, %v16043_v42, %v15998_v9 }
 0x378   :  { %15128 = vmatpush1.bf16.msra.mxu1 %v15127_v8  ;;  %5361 = vmatprep.mubr.f32.mxu1 %v22800_v1  ;;  %v19474_v59 = vpop.permute.xlu1 %16256  ;;  %v5639_v20 = vsel %vm1404_vm4, %v15999_v47, %v16039_v46  ;;  %v15123_v5 = vpack.c.bf16 %v5191_v10, %v5190_v56  ;;  %v16294_v9 = vunpack.i.h.bf16 %v19472_v51  ;;  %v16293_v6 = vunpack.i.l.bf16 %v19472_v51  ;;  %v22981_v8 = vld [vmem:[#allocation91_spill] sm:$0xff]  ;;  %v22992_v51 = vld [vmem:[#allocation92_spill] sm:$0xff] }
 0x379   :  { %15130 = vmatprep.subr.bf16.mxu1 %v15129_v38  ;;  %15122 = vmatprep.subr.bf16.mxu0 %v15121_v37  ;;  %v5646_v15 = vsel %vm1404_vm4, %v16003_v18, %v16043_v42  ;;  %v22978_v2 = vunpack.i.l.bf16 %v18583_v44  ;;  %v22979_v33 = vunpack.i.h.bf16 %v18583_v44  ;;  %v5647_v17 = vsel %vm1404_vm4, %v16004_v40, %v16044_v28  ;;  %v22980_v42 = vld [vmem:[#allocation90_spill] sm:$0xff]  ;;  %v22982_v38 = vld [vmem:[#allocation101_spill] sm:$0xff]  ;;  %v22983_v37 = vld [vmem:[#allocation100_spill] sm:$0xff] }
 0x37a   :  { %14850 = vmatmul.mubr.msk.f32.gmra.mrb[34].mxu0 %vm4319_vm9, %v19448_v43  ;;  %v16094_v14 = vunpack.i.h.bf16 %v22980_v42  ;;  %v16093_v61 = vunpack.i.l.bf16 %v22980_v42  ;;  %v16139_v56 = vunpack.i.h.bf16 %v18972_v23  ;;  %v16138_v44 = vunpack.i.l.bf16 %v18972_v23  ;;  %v19517_v23 = vpop.permute.xlu0 %16296 }
 0x37b   :  { %v5648_v24 = vsel %vm1404_vm4, %v16133_v12, %v22978_v2  ;;  %v5649_v47 = vsel %vm1404_vm4, %v16134_v58, %v22979_v33  ;;  %14852 = vmatmul.mubr.msk.f32.gmra.mrb[34].mxu1 %vm4319_vm9, %v19448_v43  ;;  %15124 = vmatpush1.bf16.msra.mxu0 %v15123_v5  ;;  %v16089_v25 = vunpack.i.h.bf16 %v22981_v8  ;;  %v16088_v10 = vunpack.i.l.bf16 %v22981_v8  ;;  %22985 = vst [vmem:[#allocation78_spill] sm:$0xff] %v19517_v23 }
 0x37c   :  { %15132 = vmatpush1.bf16.msra.mxu1 %v15131_v4  ;;  %v22984_v53 = vpack.c.bf16 %v22982_v38, %v22983_v37  ;;  %v5650_v28 = vsel %vm1404_vm4, %v16293_v6, %v16003_v18  ;;  %v5651_v2 = vsel %vm1404_vm4, %v16294_v9, %v16004_v40  ;;  %5509 = vmatprep.mubr.f32.mxu1 %v22800_v1  ;;  %v19519_v4 = vpop.permute.xlu1 %16271  ;;  %v16194_v37 = vunpack.i.h.bf16 %v19249_v0 }
 0x37d   :  { %22986 = vst [vmem:[#allocation81_spill] sm:$0xff] %v19519_v4  ;;  %15134 = vmatprep.subr.bf16.mxu0 %v15133_v16  ;;  %5432 = vmatprep.mubr.f32.mxu0 %v22800_v1  ;;  %v15135_v5 = vpack.c.bf16 %v5649_v47, %v5648_v24  ;;  %v15145_v33 = vpack.c.bf16 %v5639_v20, %v5638_v52  ;;  %v22988_v20 = vld [vmem:[#allocation76_spill] sm:$0xff] }
 0x37e   :  { %15142 = vmatprep.subr.bf16.mxu1 %v22984_v53  ;;  %v15137_v18 = vpack.c.bf16 %v5647_v17, %v5646_v15  ;;  %14853 = vmatmul.mubr.msk.f32.vlgmr.msra.gmra.mrb[36].mxu0 %vm4319_vm9, %v19407_v57  ;;  %v15147_v40 = vpack.c.bf16 %v19463_v32, %v19469_v29  ;;  %v5620_v42 = vsel %vm1404_vm4, %v16088_v10, %v16133_v12  ;;  %v22989_v32 = vunpack.i.h.bf16 %v22988_v20  ;;  %v16307_v24 = vpop.permute.xlu0 %16306 }
 0x37f   :  { %14855 = vmatmul.mubr.msk.f32.vlgmr.msra.gmra.mrb[36].mxu1 %vm4319_vm9, %v19407_v57  ;;  %v5621_v21 = vsel %vm1404_vm4, %v16089_v25, %v16134_v58  ;;  %v22987_v3 = vpack.c.bf16 %v18984_v55, %v18980_v60  ;;  %15136 = vmatpush1.bf16.msra.mxu0 %v15135_v5  ;;  %v15139_v16 = vpack.c.bf16 %v5651_v2, %v5650_v28  ;;  %v22990_v29 = vunpack.i.l.bf16 %v22988_v20  ;;  %v22991_v60 = vld [vmem:[#allocation99_spill] sm:$0xff]  ;;  %v19571_v28 = vld [vmem:[%s22509_s2 + $0x150] sm:$0xff] }
 0x380   :  { %v5628_v52 = vsel %vm1404_vm4, %v16093_v61, %v16138_v44  ;;  %v5629_v57 = vsel %vm1404_vm4, %v16094_v14, %v16139_v56  ;;  %v5633_v12 = vsel %vm1404_vm4, %v22989_v32, %v16094_v14  ;;  %v16189_v55 = vunpack.i.h.bf16 %v22991_v60  ;;  %5515 = vmatprep.mubr.f32.mxu1 %v22800_v1  ;;  %v19553_v47 = vpop.permute.xlu1 %16286  ;;  %15138 = vmatprep.subr.bf16.mxu0 %v15137_v18  ;;  %v22994_v32 = vld [vmem:[#allocation84_spill] sm:$0xff] }
 0x381   :  { %15144 = vmatpush1.bf16.msra.mxu1 %v22987_v3  ;;  %v5632_v58 = vsel %vm1404_vm4, %v22990_v29, %v16093_v61  ;;  %v16188_v15 = vunpack.i.l.bf16 %v22991_v60  ;;  %v5624_v17 = vsel %vm1404_vm4, %v16138_v44, %v16088_v10  ;;  %v16193_v14 = vunpack.i.l.bf16 %v19249_v0  ;;  %5438 = vmatprep.mubr.f32.mxu0 %v22800_v1 }
 0x382   :  { %15146 = vmatprep.subr.bf16.mxu1 %v15145_v33  ;;  %v16309_v8 = vunpack.i.h.bf16 %v16307_v24  ;;  %v16308_v61 = vunpack.i.l.bf16 %v16307_v24  ;;  %v5625_v38 = vsel %vm1404_vm4, %v16139_v56, %v16089_v25  ;;  %14854 = vmatmul.mubr.msk.f32.gmra.mrb[38].mxu0 %vm4319_vm9, %v19448_v43  ;;  %v15157_v53 = vpack.c.bf16 %v5621_v21, %v5620_v42  ;;  %v19582_v25 = vpop.permute.xlu0 %16311 }
 0x383   :  { %14856 = vmatmul.mubr.msk.f32.gmra.mrb[38].mxu1 %vm4319_vm9, %v19448_v43  ;;  %v15149_v44 = vpack.c.bf16 %v5629_v57, %v5628_v52  ;;  %15140 = vmatpush1.bf16.msra.mxu0 %v15139_v16  ;;  %v5622_v0 = vsel %vm1404_vm4, %v16188_v15, %v16293_v6  ;;  %v5623_v43 = vsel %vm1404_vm4, %v16189_v55, %v16294_v9  ;;  %v16099_v33 = vunpack.i.h.bf16 %v22992_v51  ;;  %v22993_v16 = vld [vmem:[#allocation93_spill] sm:$0xff] }
 0x384   :  { %v5626_v10 = vsel %vm1404_vm4, %v16308_v61, %v16188_v15  ;;  %v5627_v56 = vsel %vm1404_vm4, %v16309_v8, %v16189_v55  ;;  %5799 = vmatprep.mubr.f32.mxu1 %v22800_v1  ;;  %v19584_v2 = vpop.permute.xlu1 %16301  ;;  %v5630_v5 = vsel %vm1404_vm4, %v16193_v14, %v16308_v61  ;;  %v5631_v6 = vsel %vm1404_vm4, %v16194_v37, %v16309_v8 }
 0x385   :  { %15148 = vmatpush1.bf16.msra.mxu1 %v15147_v40  ;;  %v5634_v9 = vsel %vm1404_vm4, %v16038_v48, %v16193_v14  ;;  %15150 = vmatprep.subr.bf16.mxu0 %v15149_v44  ;;  %v15159_v18 = vpack.c.bf16 %v5625_v38, %v5624_v17  ;;  %v15151_v40 = vpack.c.bf16 %v5633_v12, %v5632_v58  ;;  %v16098_v42 = vunpack.i.l.bf16 %v22992_v51  ;;  %v22995_v58 = vld [vmem:[#allocation104_spill] sm:$0xff]  ;;  %v22997_v14 = vld [vmem:[#allocation86_spill] sm:$0xff]  ;;  %v22998_v44 = vld [vmem:[#allocation77_spill] sm:$0xff] }
 0x386   :  { %15158 = vmatprep.subr.bf16.mxu1 %v15157_v53  ;;  %5722 = vmatprep.mubr.f32.mxu0 %v22800_v1  ;;  %v5635_v21 = vsel %vm1404_vm4, %v16039_v46, %v16194_v37  ;;  %v15161_v3 = vpack.c.bf16 %v5623_v43, %v5622_v0  ;;  %v15153_v48 = vpack.c.bf16 %v5631_v6, %v5630_v5  ;;  %v22676_v52 = vunpack.i.h.bf16 %v22993_v16  ;;  %v19611_v46 = vld [vmem:[%s22509_s2 + $0x158] sm:$0xff]  ;;  %v19618_v15 = vpop.permute.xlu0 %16321 }
 0x387   :  { %14857 = vmatmul.mubr.msk.f32.vlgmr.msra.gmra.mrb[40].mxu0 %vm4319_vm9, %v19571_v28  ;;  %v22677_v57 = vunpack.i.l.bf16 %v22993_v16  ;;  %v16208_v20 = vunpack.i.l.bf16 %v18970_v19  ;;  %v15163_v62 = vpack.c.bf16 %v5627_v56, %v5626_v10  ;;  %v16049_v12 = vunpack.i.h.bf16 %v22994_v32  ;;  %22996 = vst [vmem:[#allocation83_spill] sm:$0xff] %v19618_v15  ;;  %v23025_v15 = vld [vmem:[#allocation73_spill] sm:$0xff] }
 0x388   :  { %14859 = vmatmul.mubr.msk.f32.vlgmr.msra.gmra.mrb[40].mxu1 %vm4319_vm9, %v19571_v28  ;;  %15152 = vmatpush1.bf16.msra.mxu0 %v15151_v40  ;;  %v16209_v29 = vunpack.i.h.bf16 %v18970_v19  ;;  %v16154_v60 = vunpack.i.h.bf16 %v22995_v58  ;;  %v16153_v55 = vunpack.i.l.bf16 %v22995_v58  ;;  %v19620_v24 = vpop.permute.xlu1 %16316  ;;  %v16048_v17 = vunpack.i.l.bf16 %v22994_v32  ;;  %v23001_v40 = vld [vmem:[#allocation58_spill] sm:$0xff] }
 0x389   :  { %15160 = vmatpush1.bf16.msra.mxu1 %v15159_v18  ;;  %5805 = vmatprep.mubr.f32.mxu1 %v22800_v1  ;;  %v16054_v8 = vunpack.i.h.bf16 %v22997_v14  ;;  %v16053_v61 = vunpack.i.l.bf16 %v22997_v14  ;;  %v15155_v38 = vpack.c.bf16 %v5635_v21, %v5634_v9  ;;  %v16164_v37 = vunpack.i.h.bf16 %v19129_v45 }
 0x38a   :  { %15162 = vmatprep.subr.bf16.mxu1 %v15161_v3  ;;  %5728 = vmatprep.mubr.f32.mxu0 %v22800_v1  ;;  %v16163_v53 = vunpack.i.l.bf16 %v19129_v45  ;;  %v22999_v10 = vunpack.i.l.bf16 %v22998_v44  ;;  %v23000_v43 = vunpack.i.h.bf16 %v22998_v44  ;;  %v19660_v6 = vsel %vm2277_vm5, %v16098_v42, %v16208_v20 }
 0x38b   :  { %15154 = vmatprep.subr.bf16.mxu0 %v15153_v48  ;;  %14858 = vmatmul.mubr.msk.f32.gmra.mrb[42].mxu0 %vm4319_vm9, %v19611_v46  ;;  %v19648_v45 = vsel %vm2277_vm5, %v22677_v57, %v16053_v61  ;;  %v19654_v5 = vsel %vm2277_vm5, %v22676_v52, %v16054_v8  ;;  %v19666_v51 = vsel %vm2277_vm5, %v16099_v33, %v16209_v29  ;;  %v22675_v3 = vunpack.i.h.bf16 %v19299_v34  ;;  %v23002_v48 = vld [vmem:[#allocation59_spill] sm:$0xff]  ;;  %v23010_v52 = vld [vmem:[#allocation65_spill] sm:$0xff] }
 0x38c   :  { %14860 = vmatmul.mubr.msk.f32.gmra.mrb[42].mxu1 %vm4319_vm9, %v19611_v46  ;;  %v19636_v0 = vsel %vm2277_vm5, %v22999_v10, %v16098_v42  ;;  %v19642_v56 = vsel %vm2277_vm5, %v23000_v43, %v16099_v33  ;;  %15156 = vmatpush1.bf16.msra.mxu0 %v15155_v38  ;;  %v19670_v9 = vsel %vm2277_vm5, %v16154_v60, %v16049_v12  ;;  %v19678_v42 = vpop.permute.xlu0 %16331  ;;  %v19680_v21 = vpop.permute.xlu1 %16326  ;;  %v22674_v33 = vunpack.i.l.bf16 %v19299_v34  ;;  %v23008_v10 = vld [vmem:[#allocation63_spill] sm:$0xff] }
 0x38d   :  { %15164 = vmatpush1.bf16.msra.mxu1 %v15163_v62  ;;  %v19674_v18 = vsel %vm2277_vm5, %v16153_v55, %v16048_v17  ;;  %5953 = vmatprep.mubr.f32.mxu1 %v22800_v1  ;;  %v19688_v62 = vsel %vm2277_vm5, %v16053_v61, %v16153_v55  ;;  %v19692_v32 = vsel %vm2277_vm5, %v16054_v8, %v16154_v60  ;;  %v16214_v58 = vunpack.i.h.bf16 %v19349_v39  ;;  %v23005_v8 = vld [vmem:[#allocation60_spill] sm:$0xff] }
 0x38e   :  { %15174 = vmatprep.subr.bf16.mxu1 %v23001_v40  ;;  %15166 = vmatprep.subr.bf16.mxu0 %v23002_v48  ;;  %v16213_v14 = vunpack.i.l.bf16 %v19349_v39  ;;  %v23003_v38 = vunpack.i.l.bf16 %v18591_v49  ;;  %v23004_v61 = vunpack.i.h.bf16 %v18591_v49  ;;  %v23006_v39 = vld [vmem:[#allocation61_spill] sm:$0xff]  ;;  %v22678_v43 = vunpack.i.h.bf16 %v19170_v7  ;;  %v23007_v40 = vld [vmem:[#allocation62_spill] sm:$0xff] }
 0x38f   :  { %5876 = vmatprep.mubr.f32.mxu0 %v22800_v1  ;;  %v22679_v49 = vunpack.i.l.bf16 %v19170_v7  ;;  %v19798_v57 = vsel %vm2277_vm5, %v16209_v29, %v16214_v58  ;;  %v16283_v29 = vunpack.i.l.bf16 %v19421_v31 }
 0x390   :  { %14863 = vmatmul.mubr.msk.f32.vlgmr.msra.gmra.mrb[44].mxu1 %vm4319_vm9, %v19571_v28  ;;  %14861 = vmatmul.mubr.msk.f32.vlgmr.msra.gmra.mrb[44].mxu0 %vm4319_vm9, %v19571_v28  ;;  %v19704_v55 = vsel %vm2277_vm5, %v16163_v53, %v23003_v38  ;;  %v19710_v60 = vsel %vm2277_vm5, %v16164_v37, %v23004_v61  ;;  %v19724_v48 = vpop.permute.xlu0 %16341  ;;  %v19726_v38 = vpop.permute.xlu1 %16336  ;;  %v19745_v28 = vsel %vm2277_vm5, %v16049_v12, %v22675_v3  ;;  %v16253_v12 = vunpack.i.l.bf16 %v19247_v27  ;;  %v19827_v3 = vld [vmem:[%s22509_s2 + $0x168] sm:$0xff] }
 0x391   :  { %15176 = vmatpush1.bf16.msra.mxu1 %v23005_v8  ;;  %15168 = vmatpush1.bf16.msra.mxu0 %v23006_v39  ;;  %v16254_v39 = vunpack.i.h.bf16 %v19247_v27  ;;  %v19755_v61 = vsel %vm2277_vm5, %v16214_v58, %v16164_v37  ;;  %v16243_v8 = vunpack.i.l.bf16 %v19423_v22  ;;  %v23009_v37 = vld [vmem:[#allocation64_spill] sm:$0xff]  ;;  %v23011_v27 = vld [vmem:[#allocation66_spill] sm:$0xff] }
 0x392   :  { %15178 = vmatprep.subr.bf16.mxu1 %v23007_v40  ;;  %5959 = vmatprep.mubr.f32.mxu1 %v22800_v1  ;;  %v19739_v40 = vsel %vm2277_vm5, %v16048_v17, %v22674_v33  ;;  %v16229_v17 = vunpack.i.h.bf16 %v19388_v41  ;;  %v16228_v33 = vunpack.i.l.bf16 %v19388_v41  ;;  %v19772_v41 = vld [vmem:[%s22509_s2 + $0x160] sm:$0xff]  ;;  %v23015_v58 = vld [vmem:[#allocation68_spill] sm:$0xff] }
 0x393   :  { %15170 = vmatprep.subr.bf16.mxu0 %v23008_v10  ;;  %5882 = vmatprep.mubr.f32.mxu0 %v22800_v1  ;;  %v19751_v10 = vsel %vm2277_vm5, %v16213_v14, %v16163_v53  ;;  %v16244_v53 = vunpack.i.h.bf16 %v19423_v22 }
 0x394   :  { %14864 = vmatmul.mubr.msk.f32.gmra.mrb[46].mxu1 %vm4319_vm9, %v19611_v46  ;;  %14862 = vmatmul.mubr.msk.f32.gmra.mrb[46].mxu0 %vm4319_vm9, %v19611_v46  ;;  %v22681_v46 = vunpack.i.l.bf16 %v19474_v59  ;;  %v19778_v63 = vpop.permute.xlu0 %16351  ;;  %v19780_v22 = vpop.permute.xlu1 %16346  ;;  %v19819_v19 = vsel %vm2746_vm6, %v16228_v33, %v22679_v49  ;;  %v19833_v44 = vsel %vm2746_vm6, %v16229_v17, %v22678_v43  ;;  %v23018_v49 = vld [vmem:[#allocation70_spill] sm:$0xff]  ;;  %v16288_v43 = vunpack.i.l.bf16 %v19553_v47 }
 0x395   :  { %15180 = vmatpush1.bf16.msra.mxu1 %v23009_v37  ;;  %15172 = vmatpush1.bf16.msra.mxu0 %v23010_v52  ;;  %23012 = vst [vmem:[#allocation79_spill] sm:$0xff] %v19778_v63  ;;  %23013 = vst [vmem:[#allocation80_spill] sm:$0xff] %v19780_v22  ;;  %v19788_v37 = vsel %vm2277_vm5, %v16208_v20, %v16213_v14  ;;  %v19804_v20 = vsel %vm2746_vm6, %v16254_v39, %v16229_v17  ;;  %v23016_v52 = vld [vmem:[#allocation69_spill] sm:$0xff]  ;;  %v23028_v22 = vunpack.i.h.bf16 %v19519_v4 }
 0x396   :  { %15190 = vmatprep.subr.bf16.mxu1 %v23011_v27  ;;  %6147 = vmatprep.mubr.f32.mxu1 %v22800_v1  ;;  %v23014_v27 = vld [vmem:[#allocation67_spill] sm:$0xff]  ;;  %v19808_v14 = vsel %vm2746_vm6, %v16253_v12, %v16228_v33  ;;  %v19837_v33 = vsel %vm2746_vm6, %v16243_v8, %v16253_v12 }
 0x397   :  { %15182 = vmatprep.subr.bf16.mxu0 %v23014_v27  ;;  %6070 = vmatprep.mubr.f32.mxu0 %v22800_v1  ;;  %v16284_v27 = vunpack.i.h.bf16 %v19421_v31  ;;  %v19841_v31 = vsel %vm2746_vm6, %v16244_v53, %v16254_v39  ;;  %v23023_v12 = vld [vmem:[#allocation71_spill] sm:$0xff] }
 0x398   :  { %14867 = vmatmul.mubr.msk.f32.vlgmr.msra.gmra.mrb[48].mxu1 %vm4319_vm9, %v19772_v41  ;;  %14865 = vmatmul.mubr.msk.f32.vlgmr.msra.gmra.mrb[48].mxu0 %vm4319_vm9, %v19772_v41  ;;  %v19859_v39 = vpop.permute.xlu0 %16361  ;;  %v19861_v63 = vpop.permute.xlu1 %16356 }
 0x399   :  { %15192 = vmatpush1.bf16.msra.mxu1 %v23015_v58  ;;  %15184 = vmatpush1.bf16.msra.mxu0 %v23016_v52  ;;  %v19847_v52 = vsel %vm2746_vm6, %v22681_v46, %v16243_v8  ;;  %v23017_v58 = vunpack.i.h.bf16 %v19474_v59  ;;  %23019 = vst [vmem:[#allocation75_spill] sm:$0xff] %v19859_v39  ;;  %23020 = vst [vmem:[#allocation88_spill] sm:$0xff] %v19861_v63  ;;  %v23021_v8 = vunpack.i.l.bf16 %v19517_v23  ;;  %v16268_v39 = vunpack.i.l.bf16 %v19347_v35  ;;  %v23024_v63 = vld [vmem:[#allocation72_spill] sm:$0xff] }
 0x39a   :  { %15194 = vmatprep.subr.bf16.mxu1 %v23018_v49  ;;  %6153 = vmatprep.mubr.f32.mxu1 %v22800_v1  ;;  %v16289_v49 = vunpack.i.h.bf16 %v19553_v47 }
 0x39b   :  { %v19853_v17 = vsel %vm2746_vm6, %v23017_v58, %v16244_v53  ;;  %v19867_v46 = vsel %vm2746_vm6, %v23021_v8, %v16283_v29  ;;  %v23022_v53 = vunpack.i.h.bf16 %v19517_v23  ;;  %15186 = vmatprep.subr.bf16.mxu0 %v23023_v12  ;;  %6076 = vmatprep.mubr.f32.mxu0 %v22800_v1  ;;  %v23029_v8 = vunpack.i.h.bf16 %v19347_v35 }
 0x39c   :  { %14868 = vmatmul.mubr.msk.f32.gmra.mrb[50].mxu1 %vm4319_vm9, %v19827_v3  ;;  %14866 = vmatmul.mubr.msk.f32.gmra.mrb[50].mxu0 %vm4319_vm9, %v19827_v3  ;;  %v19902_v47 = vpop.permute.xlu0 %16371  ;;  %v19904_v12 = vpop.permute.xlu1 %16366  ;;  %v23031_v35 = vunpack.i.l.bf16 %v19582_v25 }
 0x39d   :  { %v19873_v58 = vsel %vm2746_vm6, %v23022_v53, %v16284_v27  ;;  %15196 = vmatpush1.bf16.msra.mxu1 %v23024_v63  ;;  %15188 = vmatpush1.bf16.msra.mxu0 %v23025_v15  ;;  %v23026_v53 = vpack.c.bf16 %v19642_v56, %v19636_v0  ;;  %v23027_v63 = vunpack.i.l.bf16 %v19519_v4  ;;  %v19918_v0 = vsel %vm2746_vm6, %v23029_v8, %v23028_v22 }
 0x39e   :  { %6301 = vmatprep.mubr.f32.mxu1 %v22800_v1  ;;  %6224 = vmatprep.mubr.f32.mxu0 %v22800_v1  ;;  %v16373_v23 = vunpack.i.l.bf16 %v19902_v47  ;;  %v19930_v4 = vsel %vm2746_vm6, %v16283_v29, %v16288_v43  ;;  %v19934_v22 = vsel %vm2746_vm6, %v16284_v27, %v16289_v49  ;;  %v23032_v27 = vunpack.i.l.bf16 %v19170_v7 }
 0x39f   :  { %15206 = vmatprep.subr.bf16.mxu1 %v23026_v53  ;;  %v19910_v15 = vsel %vm2746_vm6, %v16268_v39, %v23027_v63  ;;  %v23030_v53 = vpack.c.bf16 %v19186_v30, %v19112_v50  ;;  %v16374_v63 = vunpack.i.h.bf16 %v19902_v47  ;;  %v19940_v50 = vsel %vm2746_vm6, %v16289_v49, %v23029_v8 }
 0x3a0   :  { %v19944_v30 = vsel %vm2746_vm6, %v16288_v43, %v16268_v39  ;;  %v16304_v47 = vunpack.i.h.bf16 %v19584_v2  ;;  %14871 = vmatmul.mubr.msk.f32.vlgmr.msra.gmra.mrb[52].mxu1 %vm4319_vm9, %v19772_v41  ;;  %14869 = vmatmul.mubr.msk.f32.vlgmr.msra.gmra.mrb[52].mxu0 %vm4319_vm9, %v19772_v41  ;;  %v19958_v29 = vsel %vm2746_vm6, %v23032_v27, %v23031_v35  ;;  %v23033_v43 = vunpack.i.h.bf16 %v19582_v25  ;;  %v23037_v27 = vld [vmem:[#allocation103_spill] sm:$0xff] }
 0x3a1   :  { %15198 = vmatprep.subr.bf16.mxu0 %v23030_v53  ;;  %v16303_v53 = vunpack.i.l.bf16 %v19584_v2  ;;  %v23034_v39 = vunpack.i.h.bf16 %v19170_v7  ;;  %v16318_v49 = vunpack.i.l.bf16 %v19620_v24  ;;  %v23035_v41 = vpack.c.bf16 %v19010_v13, %v19018_v26  ;;  %6307 = vmatprep.mubr.f32.mxu1 %v22800_v1 }
 0x3a2   :  { %v23036_v8 = vpack.c.bf16 %v19101_v36, %v19088_v54  ;;  %v15241_v35 = vpack.c.bf16 %v19918_v0, %v19910_v15  ;;  %v16224_v56 = vunpack.i.h.bf16 %v23037_v27  ;;  %v23038_v7 = vpack.c.bf16 %v19745_v28, %v19739_v40  ;;  %6230 = vmatprep.mubr.f32.mxu0 %v22800_v1 }
 0x3a3   :  { %v19966_v2 = vsel %vm2746_vm6, %v23034_v39, %v23033_v43  ;;  %15208 = vmatpush1.bf16.msra.mxu1 %v23035_v41  ;;  %v19982_v43 = vpop.permute.xlu0 %16376  ;;  %v16382_v39 = vpop.permute.xlu1 %16381  ;;  %v23039_v13 = vunpack.i.l.bf16 %v22993_v16  ;;  %v23040_v54 = vunpack.i.h.bf16 %v22993_v16  ;;  %v15233_v41 = vpack.c.bf16 %v19934_v22, %v19930_v4 }
 0x3a4   :  { %15200 = vmatpush1.bf16.msra.mxu0 %v23036_v8  ;;  %15210 = vmatprep.subr.bf16.mxu1 %v23038_v7  ;;  %v16319_v28 = vunpack.i.h.bf16 %v19620_v24  ;;  %v23041_v40 = vpack.c.bf16 %v19692_v32, %v19688_v62  ;;  %v16384_v8 = vunpack.i.h.bf16 %v16382_v39  ;;  %v16383_v7 = vunpack.i.l.bf16 %v16382_v39 }
 0x3a5   :  { %v6426_v26 = vsel %vm2277_vm5, %v16373_v23, %v23039_v13  ;;  %v6427_v36 = vsel %vm2277_vm5, %v16374_v63, %v23040_v54  ;;  %v16223_v16 = vunpack.i.l.bf16 %v23037_v27  ;;  %14872 = vmatmul.mubr.msk.f32.gmra.mrb[54].mxu1 %vm4319_vm9, %v19827_v3  ;;  %14870 = vmatmul.mubr.msk.f32.gmra.mrb[54].mxu0 %vm4319_vm9, %v19827_v3  ;;  %v23042_v54 = vunpack.i.l.bf16 %v19474_v59  ;;  %v20039_v27 = vld [vmem:[%s22509_s2 + $0x170] sm:$0xff] }
 0x3a6   :  { %15202 = vmatprep.subr.bf16.mxu0 %v23041_v40  ;;  %v23043_v32 = vunpack.i.h.bf16 %v19474_v59  ;;  %v20024_v3 = vsel %vm2746_vm6, %v16318_v49, %v16303_v53  ;;  %v23044_v40 = vpack.c.bf16 %v19670_v9, %v19674_v18  ;;  %v23045_v59 = vpack.c.bf16 %v19654_v5, %v19648_v45  ;;  %6575 = vmatprep.mubr.f32.mxu1 %v22800_v1 }
 0x3a7   :  { %v20010_v62 = vsel %vm2746_vm6, %v16303_v53, %v23042_v54  ;;  %v23046_v54 = vunpack.i.l.bf16 %v19299_v34  ;;  %v15225_v53 = vpack.c.bf16 %v6427_v36, %v6426_v26  ;;  %v23047_v13 = vpack.c.bf16 %v19710_v60, %v19704_v55  ;;  %v20049_v5 = vpop.permute.xlu0 %16391  ;;  %v20051_v18 = vpop.permute.xlu1 %16386  ;;  %6498 = vmatprep.mubr.f32.mxu0 %v22800_v1 }
 0x3a8   :  { %v20016_v39 = vsel %vm2746_vm6, %v16304_v47, %v23043_v32  ;;  %15212 = vmatpush1.bf16.msra.mxu1 %v23044_v40  ;;  %15204 = vmatpush1.bf16.msra.mxu0 %v23045_v59  ;;  %v23048_v9 = vunpack.i.h.bf16 %v19299_v34  ;;  %v6402_v40 = vsel %vm2277_vm5, %v16383_v7, %v16223_v16  ;;  %v6403_v26 = vsel %vm2277_vm5, %v16384_v8, %v16224_v56 }
 0x3a9   :  { %v6406_v32 = vsel %vm2277_vm5, %v23046_v54, %v16383_v7  ;;  %15222 = vmatprep.subr.bf16.mxu1 %v23047_v13  ;;  %v20059_v55 = vsel %vm2746_vm6, %v16319_v28, %v16304_v47  ;;  %v16334_v34 = vunpack.i.h.bf16 %v19678_v42  ;;  %v16333_v60 = vunpack.i.l.bf16 %v19678_v42 }
 0x3aa   :  { %v6407_v45 = vsel %vm2277_vm5, %v23048_v9, %v16384_v8  ;;  %v16329_v36 = vunpack.i.h.bf16 %v19680_v21  ;;  %v23049_v13 = vpack.c.bf16 %v19798_v57, %v19788_v37  ;;  %v16328_v7 = vunpack.i.l.bf16 %v19680_v21  ;;  %v23052_v9 = vld [vmem:[#allocation80_spill] sm:$0xff] }
 0x3ab   :  { %v6398_v8 = vsel %vm2277_vm5, %v16223_v16, %v16373_v23  ;;  %v6399_v47 = vsel %vm2277_vm5, %v16224_v56, %v16374_v63  ;;  %14875 = vmatmul.mubr.msk.f32.vlgmr.msra.gmra.mrb[56].mxu1 %vm4319_vm9, %v20039_v27  ;;  %14873 = vmatmul.mubr.msk.f32.vlgmr.msra.gmra.mrb[56].mxu0 %vm4319_vm9, %v20039_v27  ;;  %v15217_v59 = vpack.c.bf16 %v6403_v26, %v6402_v40  ;;  %v16344_v57 = vunpack.i.h.bf16 %v19724_v48  ;;  %v20089_v56 = vld [vmem:[%s22509_s2 + $0x178] sm:$0xff]  ;;  %v23055_v26 = vld [vmem:[#allocation83_spill] sm:$0xff] }
 0x3ac   :  { %15214 = vmatprep.subr.bf16.mxu0 %v23049_v13  ;;  %v16343_v37 = vunpack.i.l.bf16 %v19724_v48  ;;  %v16338_v54 = vunpack.i.l.bf16 %v19726_v38  ;;  %v23050_v21 = vpack.c.bf16 %v19755_v61, %v19751_v10  ;;  %v23051_v23 = vpack.c.bf16 %v19666_v51, %v19660_v6  ;;  %6581 = vmatprep.mubr.f32.mxu1 %v22800_v1  ;;  %v20095_v61 = vpop.permute.xlu0 %16401  ;;  %v20097_v10 = vpop.permute.xlu1 %16396 }
 0x3ad   :  { %v15219_v63 = vpack.c.bf16 %v6407_v45, %v6406_v32  ;;  %v16339_v16 = vunpack.i.h.bf16 %v19726_v38  ;;  %v22690_v48 = vunpack.i.h.bf16 %v23052_v9  ;;  %v22691_v40 = vunpack.i.l.bf16 %v23052_v9  ;;  %6504 = vmatprep.mubr.f32.mxu0 %v22800_v1 }
 0x3ae   :  { %15224 = vmatpush1.bf16.msra.mxu1 %v23050_v21  ;;  %15216 = vmatpush1.bf16.msra.mxu0 %v23051_v23  ;;  %v15253_v6 = vpack.c.bf16 %v20016_v39, %v20010_v62  ;;  %v15227_v51 = vpack.c.bf16 %v6399_v47, %v6398_v8  ;;  %v23053_v38 = vunpack.i.l.bf16 %v19582_v25  ;;  %v16324_v13 = vunpack.i.h.bf16 %v23055_v26 }
 0x3af   :  { %15226 = vmatprep.subr.bf16.mxu1 %v15225_v53  ;;  %15218 = vmatprep.subr.bf16.mxu0 %v15217_v59  ;;  %v23054_v53 = vunpack.i.h.bf16 %v19582_v25  ;;  %v15255_v24 = vpack.c.bf16 %v20059_v55, %v20024_v3  ;;  %v20127_v25 = vsel %vm3215_vm7, %v16328_v7, %v16333_v60  ;;  %v20138_v8 = vsel %vm3215_vm7, %v16343_v37, %v16328_v7 }
 0x3b0   :  { %v20108_v32 = vsel %vm2746_vm6, %v23053_v38, %v16318_v49  ;;  %14876 = vmatmul.mubr.msk.f32.gmra.mrb[58].mxu1 %vm4319_vm9, %v20089_v56  ;;  %14874 = vmatmul.mubr.msk.f32.gmra.mrb[58].mxu0 %vm4319_vm9, %v20089_v56  ;;  %v20133_v49 = vsel %vm3215_vm7, %v16329_v36, %v16334_v34  ;;  %v20142_v47 = vsel %vm3215_vm7, %v16344_v57, %v16329_v36  ;;  %v23056_v36 = vld [vmem:[#allocation88_spill] sm:$0xff]  ;;  %v16379_v0 = vunpack.i.h.bf16 %v19982_v43 }
 0x3b1   :  { %v20114_v45 = vsel %vm2746_vm6, %v23054_v53, %v16319_v28  ;;  %v16323_v28 = vunpack.i.l.bf16 %v23055_v26  ;;  %v20146_v59 = vsel %vm3215_vm7, %v16338_v54, %v16343_v37  ;;  %v20152_v21 = vsel %vm3215_vm7, %v22691_v40, %v16338_v54  ;;  %6729 = vmatprep.mubr.f32.mxu1 %v22800_v1  ;;  %v20165_v37 = vpop.permute.xlu0 %16411  ;;  %6652 = vmatprep.mubr.f32.mxu0 %v22800_v1 }
 0x3b2   :  { %15228 = vmatpush1.bf16.msra.mxu1 %v15227_v51  ;;  %15220 = vmatpush1.bf16.msra.mxu0 %v15219_v63  ;;  %v20158_v7 = vsel %vm3215_vm7, %v22690_v48, %v16339_v16  ;;  %v22692_v23 = vunpack.i.l.bf16 %v23056_v36  ;;  %v23057_v63 = vpack.c.bf16 %v19833_v44, %v19819_v19  ;;  %v20167_v51 = vpop.permute.xlu1 %16406  ;;  %v20171_v54 = vsel %vm3215_vm7, %v16339_v16, %v16344_v57  ;;  %v23059_v48 = vld [vmem:[#allocation79_spill] sm:$0xff] }
 0x3b3   :  { %v23058_v38 = vpack.c.bf16 %v19841_v31, %v19837_v33  ;;  %v16414_v53 = vunpack.i.h.bf16 %v20165_v37  ;;  %v16413_v44 = vunpack.i.l.bf16 %v20165_v37  ;;  %v15245_v19 = vpack.c.bf16 %v20114_v45, %v20108_v32 }
 0x3b4   :  { %15238 = vmatprep.subr.bf16.mxu1 %v23057_v63  ;;  %v16353_v40 = vunpack.i.l.bf16 %v23059_v48  ;;  %v16359_v57 = vunpack.i.h.bf16 %v23056_v36  ;;  %v16369_v16 = vunpack.i.h.bf16 %v19904_v12  ;;  %v16368_v33 = vunpack.i.l.bf16 %v19904_v12 }
 0x3b5   :  { %15230 = vmatprep.subr.bf16.mxu0 %v23058_v38  ;;  %14879 = vmatmul.mubr.msk.f32.vlgmr.msra.gmra.mrb[60].mxu1 %vm4319_vm9, %v20039_v27  ;;  %v16354_v31 = vunpack.i.h.bf16 %v23059_v48  ;;  %v23060_v32 = vpack.c.bf16 %v19804_v20, %v19808_v14  ;;  %v23061_v45 = vpack.c.bf16 %v19853_v17, %v19847_v52  ;;  %v15261_v37 = vpack.c.bf16 %v20171_v54, %v20146_v59  ;;  %v20209_v20 = vpop.permute.xlu0 %16416  ;;  %v23063_v52 = vld [vmem:[#allocation78_spill] sm:$0xff] }
 0x3b6   :  { %14877 = vmatmul.mubr.msk.f32.vlgmr.msra.gmra.mrb[60].mxu0 %vm4319_vm9, %v20039_v27  ;;  %v15271_v12 = vpack.c.bf16 %v20142_v47, %v20138_v8  ;;  %v23062_v27 = vld [vmem:[#allocation75_spill] sm:$0xff]  ;;  %6735 = vmatprep.mubr.f32.mxu1 %v22800_v1  ;;  %v16422_v14 = vpop.permute.xlu1 %16421  ;;  %v23064_v17 = vunpack.i.l.bf16 %v23063_v52  ;;  %v20223_v15 = vsel %vm3215_vm7, %v16353_v40, %v22692_v23  ;;  %v20238_v23 = vsel %vm3215_vm7, %v16368_v33, %v16353_v40 }
 0x3b7   :  { %15240 = vmatpush1.bf16.msra.mxu1 %v23060_v32  ;;  %15232 = vmatpush1.bf16.msra.mxu0 %v23061_v45  ;;  %v16363_v63 = vunpack.i.l.bf16 %v23062_v27  ;;  %v23065_v32 = vunpack.i.h.bf16 %v23063_v52  ;;  %v16424_v52 = vunpack.i.h.bf16 %v16422_v14  ;;  %v20234_v38 = vsel %vm3215_vm7, %v16369_v16, %v16354_v31 }
 0x3b8   :  { %15242 = vmatprep.subr.bf16.mxu1 %v15241_v35  ;;  %v6870_v48 = vsel %vm2746_vm6, %v16413_v44, %v23064_v17  ;;  %v16378_v35 = vunpack.i.l.bf16 %v19982_v43  ;;  %15234 = vmatprep.subr.bf16.mxu0 %v15233_v41  ;;  %v16423_v17 = vunpack.i.l.bf16 %v16422_v14  ;;  %v20248_v4 = vsel %vm3215_vm7, %v16354_v31, %v16359_v57 }
 0x3b9   :  { %v6871_v45 = vsel %vm2746_vm6, %v16414_v53, %v23065_v32  ;;  %6658 = vmatprep.mubr.f32.mxu0 %v22800_v1  ;;  %v16364_v32 = vunpack.i.h.bf16 %v23062_v27  ;;  %14880 = vmatmul.mubr.msk.f32.gmra.mrb[62].mxu1 %vm4319_vm9, %v20089_v56  ;;  %v16394_v22 = vunpack.i.h.bf16 %v20049_v5  ;;  %v23066_v41 = vpack.c.bf16 %v19940_v50, %v19944_v30 }
 0x3ba   :  { %14878 = vmatmul.mubr.msk.f32.gmra.mrb[62].mxu0 %vm4319_vm9, %v20089_v56  ;;  %v23067_v40 = vpack.c.bf16 %v19873_v58, %v19867_v46  ;;  %v20260_v56 = vld [vmem:[%s22509_s2 + $0x180] sm:$0xff]  ;;  %v15257_v27 = vpack.c.bf16 %v6871_v45, %v6870_v48  ;;  %v6846_v31 = vsel %vm2746_vm6, %v16423_v17, %v16323_v28  ;;  %v20268_v14 = vsel %vm3215_vm7, %v16363_v63, %v16368_v33  ;;  %v23068_v46 = vld [vmem:[#allocation81_spill] sm:$0xff]  ;;  %v20283_v33 = vpop.permute.xlu0 %16431 }
 0x3bb   :  { %15244 = vmatpush1.bf16.msra.mxu1 %v23066_v41  ;;  %v16393_v50 = vunpack.i.l.bf16 %v20049_v5  ;;  %v23069_v58 = vunpack.i.l.bf16 %v23068_v46  ;;  %v23070_v48 = vunpack.i.h.bf16 %v23068_v46  ;;  %7019 = vmatprep.mubr.f32.mxu1 %v22800_v1  ;;  %v20285_v41 = vpop.permute.xlu1 %16426  ;;  %v6847_v62 = vsel %vm2746_vm6, %v16424_v52, %v16324_v13 }
 0x3bc   :  { %15236 = vmatpush1.bf16.msra.mxu0 %v23067_v40  ;;  %15254 = vmatprep.subr.bf16.mxu1 %v15253_v6  ;;  %v20295_v39 = vsel %vm3215_vm7, %v16378_v35, %v16363_v63  ;;  %v20301_v6 = vsel %vm3215_vm7, %v16379_v0, %v16364_v32  ;;  %v16388_v40 = vunpack.i.l.bf16 %v20051_v18  ;;  %v6842_v63 = vsel %vm2746_vm6, %v16323_v28, %v16413_v44 }
 0x3bd   :  { %v6850_v30 = vsel %vm2746_vm6, %v23069_v58, %v16423_v17  ;;  %v6851_v45 = vsel %vm2746_vm6, %v23070_v48, %v16424_v52  ;;  %v16389_v17 = vunpack.i.h.bf16 %v20051_v18  ;;  %15246 = vmatprep.subr.bf16.mxu0 %v15245_v19  ;;  %6942 = vmatprep.mubr.f32.mxu0 %v22800_v1  ;;  %v20307_v52 = vsel %vm3215_vm7, %v16364_v32, %v16369_v16 }
 0x3be   :  { %v6843_v46 = vsel %vm2746_vm6, %v16324_v13, %v16414_v53  ;;  %14883 = vmatmul.mubr.msk.f32.vlgmr.msra.gmra.mrb[64].mxu1 %vm4319_vm9, %v20260_v56  ;;  %v15249_v19 = vpack.c.bf16 %v6847_v62, %v6846_v31  ;;  %v16399_v16 = vunpack.i.h.bf16 %v20097_v10  ;;  %v16398_v18 = vunpack.i.l.bf16 %v20097_v10  ;;  %v20333_v13 = vld [vmem:[%s22509_s2 + $0x188] sm:$0xff] }
 0x3bf   :  { %14881 = vmatmul.mubr.msk.f32.vlgmr.msra.gmra.mrb[64].mxu0 %vm4319_vm9, %v20260_v56  ;;  %15256 = vmatpush1.bf16.msra.mxu1 %v15255_v24  ;;  %v23071_v26 = vpack.c.bf16 %v19966_v2, %v19958_v29  ;;  %v15251_v28 = vpack.c.bf16 %v6851_v45, %v6850_v30  ;;  %v15273_v53 = vpack.c.bf16 %v20248_v4, %v20223_v15  ;;  %v20352_v2 = vpop.permute.xlu0 %16441  ;;  %v20354_v3 = vpop.permute.xlu1 %16436  ;;  %v16419_v24 = vunpack.i.h.bf16 %v20209_v20 }
 0x3c0   :  { %v20341_v10 = vsel %vm3215_vm7, %v16333_v60, %v16393_v50  ;;  %v20349_v29 = vsel %vm3215_vm7, %v16334_v34, %v16394_v22  ;;  %15258 = vmatprep.subr.bf16.mxu1 %v15257_v27  ;;  %7025 = vmatprep.mubr.f32.mxu1 %v22800_v1  ;;  %v15265_v55 = vpack.c.bf16 %v20307_v52, %v20268_v14  ;;  %v16418_v44 = vunpack.i.l.bf16 %v20209_v20 }
 0x3c1   :  { %15248 = vmatpush1.bf16.msra.mxu0 %v23071_v26  ;;  %6948 = vmatprep.mubr.f32.mxu0 %v22800_v1  ;;  %v15259_v60 = vpack.c.bf16 %v6843_v46, %v6842_v63  ;;  %v15275_v42 = vpack.c.bf16 %v20234_v38, %v20238_v23  ;;  %v15267_v34 = vpack.c.bf16 %v20301_v6, %v20295_v39  ;;  %v23072_v15 = vunpack.i.l.bf16 %v23052_v9 }
 0x3c2   :  { %15250 = vmatprep.subr.bf16.mxu0 %v15249_v19  ;;  %14884 = vmatmul.mubr.msk.f32.gmra.mrb[66].mxu1 %vm4319_vm9, %v20333_v13  ;;  %v23073_v23 = vunpack.i.h.bf16 %v23052_v9  ;;  %v20379_v4 = vsel %vm3215_vm7, %v16398_v18, %v16388_v40  ;;  %v20383_v27 = vsel %vm3215_vm7, %v16399_v16, %v16389_v17  ;;  %v20387_v31 = vsel %vm3215_vm7, %v16393_v50, %v16398_v18 }
 0x3c3   :  { %14882 = vmatmul.mubr.msk.f32.gmra.mrb[66].mxu0 %vm4319_vm9, %v20333_v13  ;;  %v7312_v32 = vsel %vm3215_vm7, %v16388_v40, %v23072_v15  ;;  %15260 = vmatpush1.bf16.msra.mxu1 %v15259_v60  ;;  %v16409_v14 = vunpack.i.h.bf16 %v20167_v51  ;;  %v16408_v9 = vunpack.i.l.bf16 %v20167_v51  ;;  %v16433_v58 = vunpack.i.l.bf16 %v20283_v33  ;;  %v16452_v48 = vpop.permute.xlu0 %16451  ;;  %v20396_v45 = vpop.permute.xlu1 %16446 }
 0x3c4   :  { %v7313_v38 = vsel %vm3215_vm7, %v16389_v17, %v23073_v23  ;;  %v23074_v30 = vpack.c.bf16 %v20133_v49, %v20127_v25  ;;  %7173 = vmatprep.mubr.f32.mxu1 %v22800_v1  ;;  %v7289_v50 = vsel %vm3215_vm7, %v16394_v22, %v16399_v16  ;;  %v16434_v62 = vunpack.i.h.bf16 %v20283_v33  ;;  %7096 = vmatprep.mubr.f32.mxu0 %v22800_v1  ;;  %v20481_v16 = vld [vmem:[%s22509_s2 + $0x190] sm:$0xff] }
 0x3c5   :  { %15252 = vmatpush1.bf16.msra.mxu0 %v15251_v28  ;;  %v16454_v25 = vunpack.i.h.bf16 %v16452_v48  ;;  %v16453_v49 = vunpack.i.l.bf16 %v16452_v48  ;;  %v15279_v51 = vpack.c.bf16 %v20349_v29, %v20341_v10  ;;  %v16429_v39 = vunpack.i.h.bf16 %v20285_v41 }
 0x3c6   :  { %15270 = vmatprep.subr.bf16.mxu1 %v23074_v30  ;;  %15262 = vmatprep.subr.bf16.mxu0 %v15261_v37  ;;  %v16428_v5 = vunpack.i.l.bf16 %v20285_v41  ;;  %v20419_v59 = vsel %vm3684_vm8, %v16408_v9, %v16418_v44  ;;  %v20425_v54 = vsel %vm3684_vm8, %v16409_v14, %v16419_v24  ;;  %v16404_v37 = vunpack.i.h.bf16 %v20095_v61 }
 0x3c7   :  { %14887 = vmatmul.mubr.msk.f32.vlgmr.msra.gmra.mrb[68].mxu1 %vm4319_vm9, %v20260_v56  ;;  %v23075_v22 = vpack.c.bf16 %v20158_v7, %v20152_v21  ;;  %v15277_v33 = vpack.c.bf16 %v7289_v50, %v20387_v31  ;;  %v15287_v41 = vpack.c.bf16 %v20383_v27, %v20379_v4  ;;  %v16403_v6 = vunpack.i.l.bf16 %v20095_v61  ;;  %v20443_v8 = vpop.permute.xlu0 %16456  ;;  %v16462_v47 = vpop.permute.xlu1 %16461  ;;  %v20521_v27 = vld [vmem:[%s22509_s2 + $0x198] sm:$0xff] }
 0x3c8   :  { %14885 = vmatmul.mubr.msk.f32.vlgmr.msra.gmra.mrb[68].mxu0 %vm4319_vm9, %v20260_v56  ;;  %15272 = vmatpush1.bf16.msra.mxu1 %v15271_v12  ;;  %v15285_v56 = vpack.c.bf16 %v7313_v38, %v7312_v32  ;;  %v20440_v17 = vsel %vm3684_vm8, %v16433_v58, %v16408_v9  ;;  %v7314_v21 = vsel %vm3215_vm7, %v16453_v49, %v16378_v35  ;;  %v16464_v12 = vunpack.i.h.bf16 %v16462_v47 }
 0x3c9   :  { %15264 = vmatpush1.bf16.msra.mxu0 %v23075_v22  ;;  %15274 = vmatprep.subr.bf16.mxu1 %v15273_v53  ;;  %v7315_v61 = vsel %vm3215_vm7, %v16454_v25, %v16379_v0  ;;  %v20455_v7 = vsel %vm3684_vm8, %v16434_v62, %v16409_v14  ;;  %v16463_v52 = vunpack.i.l.bf16 %v16462_v47  ;;  %v15301_v40 = vpack.c.bf16 %v20425_v54, %v20419_v59 }
 0x3ca   :  { %7179 = vmatprep.mubr.f32.mxu1 %v22800_v1  ;;  %15266 = vmatprep.subr.bf16.mxu0 %v15265_v55  ;;  %v16438_v63 = vunpack.i.l.bf16 %v20354_v3  ;;  %v7286_v43 = vsel %vm3215_vm7, %v16403_v6, %v16453_v49  ;;  %v20469_v0 = vsel %vm3684_vm8, %v16428_v5, %v16433_v58  ;;  %v20473_v35 = vsel %vm3684_vm8, %v16429_v39, %v16434_v62 }
 0x3cb   :  { %7102 = vmatprep.mubr.f32.mxu0 %v22800_v1  ;;  %14888 = vmatmul.mubr.msk.f32.gmra.mrb[70].mxu1 %vm4319_vm9, %v20333_v13  ;;  %v16439_v46 = vunpack.i.h.bf16 %v20354_v3  ;;  %v7287_v19 = vsel %vm3215_vm7, %v16404_v37, %v16454_v25  ;;  %v15289_v18 = vpack.c.bf16 %v7315_v61, %v7314_v21  ;;  %v7290_v26 = vsel %vm3215_vm7, %v16463_v52, %v16403_v6  ;;  %v20495_v29 = vpop.permute.xlu0 %16471  ;;  %v16467_v55 = vpop.permute.xlu1 %16466 }
 0x3cc   :  { %14886 = vmatmul.mubr.msk.f32.gmra.mrb[70].mxu0 %vm4319_vm9, %v20333_v13  ;;  %15276 = vmatpush1.bf16.msra.mxu1 %v15275_v42  ;;  %v16448_v13 = vunpack.i.l.bf16 %v20396_v45  ;;  %v23076_v28 = vunpack.i.l.bf16 %v23056_v36  ;;  %v7295_v10 = vsel %vm3215_vm7, %v16359_v57, %v16464_v12  ;;  %v7291_v60 = vsel %vm3215_vm7, %v16464_v12, %v16404_v37 }
 0x3cd   :  { %15268 = vmatpush1.bf16.msra.mxu0 %v15267_v34  ;;  %15286 = vmatprep.subr.bf16.mxu1 %v15285_v56  ;;  %v16444_v42 = vunpack.i.h.bf16 %v20352_v2  ;;  %v16449_v34 = vunpack.i.h.bf16 %v20396_v45  ;;  %v16469_v15 = vunpack.i.h.bf16 %v16467_v55  ;;  %v15303_v36 = vpack.c.bf16 %v20455_v7, %v20440_v17  ;;  %v7663_v45 = vld [vmem:[%s22509_s2 + $0x1a8] sm:$0xff] }
 0x3ce   :  { %v7294_v53 = vsel %vm3215_vm7, %v23076_v28, %v16463_v52  ;;  %7463 = vmatprep.mubr.f32.mxu1 %v22800_v1  ;;  %15278 = vmatprep.subr.bf16.mxu0 %v15277_v33  ;;  %v16443_v57 = vunpack.i.l.bf16 %v20352_v2  ;;  %v7752_v32 = vsel %vm3684_vm8, %v16438_v63, %v16428_v5  ;;  %v16468_v23 = vunpack.i.l.bf16 %v16467_v55 }
 0x3cf   :  { %7386 = vmatprep.mubr.f32.mxu0 %v22800_v1  ;;  %14891 = vmatmul.mubr.msk.f32.vlgmr.msra.gmra.mrb[72].mxu1 %vm4319_vm9, %v20481_v16  ;;  %v15281_v38 = vpack.c.bf16 %v7291_v60, %v7290_v26  ;;  %v7753_v4 = vsel %vm3684_vm8, %v16439_v46, %v16429_v39  ;;  %v16473_v2 = vunpack.i.l.bf16 %v20495_v29  ;;  %v15291_v31 = vpack.c.bf16 %v7287_v19, %v7286_v43  ;;  %v16482_v48 = vpop.permute.xlu0 %16481  ;;  %v16477_v50 = vpop.permute.xlu1 %16476 }
 0x3d0   :  { %14889 = vmatmul.mubr.msk.f32.vlgmr.msra.gmra.mrb[72].mxu0 %vm4319_vm9, %v20481_v16  ;;  %15288 = vmatpush1.bf16.msra.mxu1 %v15287_v41  ;;  %v15283_v14 = vpack.c.bf16 %v7295_v10, %v7294_v53  ;;  %v16459_v9 = vunpack.i.h.bf16 %v20443_v8  ;;  %v16458_v58 = vunpack.i.l.bf16 %v20443_v8  ;;  %v16474_v30 = vunpack.i.h.bf16 %v20495_v29 }
 0x3d1   :  { %15280 = vmatpush1.bf16.msra.mxu0 %v15279_v51  ;;  %15290 = vmatprep.subr.bf16.mxu1 %v15289_v18  ;;  %v7742_v62 = vsel %vm3684_vm8, %v16443_v57, %v16448_v13  ;;  %v7747_v25 = vsel %vm3684_vm8, %v16469_v15, %v16444_v42  ;;  %v16479_v49 = vunpack.i.h.bf16 %v16477_v50  ;;  %v16478_v51 = vunpack.i.l.bf16 %v16477_v50 }
 0x3d2   :  { %7469 = vmatprep.mubr.f32.mxu1 %v22800_v1  ;;  %7392 = vmatprep.mubr.f32.mxu0 %v22800_v1  ;;  %v7743_v39 = vsel %vm3684_vm8, %v16444_v42, %v16449_v34  ;;  %v7746_v5 = vsel %vm3684_vm8, %v16468_v23, %v16443_v57  ;;  %v7750_v37 = vsel %vm3684_vm8, %v16458_v58, %v16468_v23  ;;  %v16483_v33 = vunpack.i.l.bf16 %v16482_v48 }
 0x3d3   :  { %15282 = vmatprep.subr.bf16.mxu0 %v15281_v38  ;;  %14892 = vmatmul.mubr.msk.f32.gmra.mrb[74].mxu1 %vm4319_vm9, %v20521_v27  ;;  %v7751_v22 = vsel %vm3684_vm8, %v16459_v9, %v16469_v15  ;;  %v7754_v56 = vsel %vm3684_vm8, %v16473_v2, %v16458_v58  ;;  %v15293_v41 = vpack.c.bf16 %v20473_v35, %v20469_v0  ;;  %v16484_v21 = vunpack.i.h.bf16 %v16482_v48  ;;  %v16492_v7 = vpop.permute.xlu0 %16491  ;;  %v16487_v59 = vpop.permute.xlu1 %16486 }
 0x3d4   :  { %14890 = vmatmul.mubr.msk.f32.gmra.mrb[74].mxu0 %vm4319_vm9, %v20521_v27  ;;  %15292 = vmatpush1.bf16.msra.mxu1 %v15291_v31  ;;  %v15295_v6 = vpack.c.bf16 %v7753_v4, %v7752_v32  ;;  %v7755_v17 = vsel %vm3684_vm8, %v16474_v30, %v16459_v9  ;;  %v7756_v8 = vsel %vm3684_vm8, %v16478_v51, %v16438_v63  ;;  %v16494_v52 = vunpack.i.h.bf16 %v16492_v7 }
 0x3d5   :  { %15284 = vmatpush1.bf16.msra.mxu0 %v15283_v14  ;;  %15302 = vmatprep.subr.bf16.mxu1 %v15301_v40  ;;  %v7757_v47 = vsel %vm3684_vm8, %v16479_v49, %v16439_v46  ;;  %v15305_v61 = vpack.c.bf16 %v7743_v39, %v7742_v62  ;;  %v15297_v54 = vpack.c.bf16 %v7751_v22, %v7750_v37  ;;  %v16493_v3 = vunpack.i.l.bf16 %v16492_v7  ;;  %v23080_v7 = vld [vmem:[#allocation4_spill] sm:$0xff] }
 0x3d6   :  { %7617 = vmatprep.mubr.f32.mxu1 %v22800_v1  ;;  %15294 = vmatprep.subr.bf16.mxu0 %v15293_v41  ;;  %v15307_v12 = vpack.c.bf16 %v7747_v25, %v7746_v5  ;;  %v16489_v40 = vunpack.i.h.bf16 %v16487_v59  ;;  %v16488_v63 = vunpack.i.l.bf16 %v16487_v59  ;;  %v7736_v43 = vsel %vm3684_vm8, %v16418_v44, %v16483_v33  ;;  %v23077_v41 = vld [vmem:[#allocation14_spill] sm:$0xff] }
 0x3d7   :  { %7540 = vmatprep.mubr.f32.mxu0 %v22800_v1  ;;  %14895 = vmatmul.mubr.msk.f32.vlgmr.msra.gmra.mrb[76].mxu1 %vm4319_vm9, %v20481_v16  ;;  %v15299_v0 = vpack.c.bf16 %v7755_v17, %v7754_v56  ;;  %v15317_v35 = vpack.c.bf16 %v7757_v47, %v7756_v8  ;;  %v7737_v44 = vsel %vm3684_vm8, %v16419_v24, %v16484_v21  ;;  %v16502_v20 = vpop.permute.xlu0 %16501  ;;  %v16497_v28 = vpop.permute.xlu1 %16496  ;;  %v23078_v8 = vld [vmem:[#allocation12_spill] sm:$0xff] }
 0x3d8   :  { %14893 = vmatmul.mubr.msk.f32.vlgmr.msra.gmra.mrb[76].mxu0 %vm4319_vm9, %v20481_v16  ;;  %15304 = vmatpush1.bf16.msra.mxu1 %v15303_v36  ;;  %v7728_v46 = vsel %vm3684_vm8, %v16488_v63, %v16478_v51  ;;  %v7729_v19 = vsel %vm3684_vm8, %v16489_v40, %v16479_v49  ;;  %v7732_v16 = vsel %vm3684_vm8, %v16483_v33, %v16488_v63  ;;  %v16504_v55 = vunpack.i.h.bf16 %v16502_v20  ;;  %v7662_v36 = vld [vmem:[%s22509_s2 + $0x1a0] sm:$0xff] }
 0x3d9   :  { %15296 = vmatpush1.bf16.msra.mxu0 %v15295_v6  ;;  %15306 = vmatprep.subr.bf16.mxu1 %v15305_v61  ;;  %v7733_v18 = vsel %vm3684_vm8, %v16484_v21, %v16489_v40  ;;  %v7758_v26 = vsel %vm3684_vm8, %v16493_v3, %v16473_v2  ;;  %v15319_v53 = vpack.c.bf16 %v7729_v19, %v7728_v46  ;;  %v16503_v60 = vunpack.i.l.bf16 %v16502_v20  ;;  %v23079_v21 = vld [vmem:[#allocation11_spill] sm:$0xff]  ;;  %v23082_v40 = vld [vmem:[#allocation2_spill] sm:$0xff] }
 0x3da   :  { %7623 = vmatprep.mubr.f32.mxu1 %v22800_v1  ;;  %15298 = vmatprep.subr.bf16.mxu0 %v15297_v54  ;;  %v15309_v24 = vpack.c.bf16 %v7733_v18, %v7732_v16  ;;  %v7759_v10 = vsel %vm3684_vm8, %v16494_v52, %v16474_v30  ;;  %v16499_v42 = vunpack.i.h.bf16 %v16497_v28  ;;  %v16498_v15 = vunpack.i.l.bf16 %v16497_v28  ;;  %v23084_v19 = vld [vmem:[#allocation3_spill] sm:$0xff] }
 0x3db   :  { %7546 = vmatprep.mubr.f32.mxu0 %v22800_v1  ;;  %14896 = vmatmul.mubr.msk.f32.gmra.mrb[78].mxu1 %vm4319_vm9, %v20521_v27  ;;  %v15321_v57 = vpack.c.bf16 %v7759_v10, %v7758_v26  ;;  %v7730_v29 = vsel %vm3684_vm8, %v16503_v60, %v16493_v3  ;;  %v7731_v32 = vsel %vm3684_vm8, %v16504_v55, %v16494_v52  ;;  %v23081_v52 = vld [vmem:[#allocation10_spill] sm:$0xff] }
 0x3dc   :  { %14894 = vmatmul.mubr.msk.f32.gmra.mrb[78].mxu0 %vm4319_vm9, %v20521_v27  ;;  %15308 = vmatpush1.bf16.msra.mxu1 %v15307_v12  ;;  %v7738_v23 = vsel %vm3684_vm8, %v16448_v13, %v16498_v15  ;;  %v7739_v38 = vsel %vm3684_vm8, %v16449_v34, %v16499_v42  ;;  %v15311_v4 = vpack.c.bf16 %v7737_v44, %v7736_v43  ;;  %v4469_v14 = vpop.f32.mrb[16].mxu1  ;;  %v23083_v43 = vld [vmem:[#allocation5_spill] sm:$0xff] }
 0x3dd   :  { %15300 = vmatpush1.bf16.msra.mxu0 %v15299_v0  ;;  %15318 = vmatprep.subr.bf16.mxu1 %v15317_v35  ;;  %v7734_v2 = vsel %vm3684_vm8, %v16498_v15, %v16503_v60  ;;  %v7735_v27 = vsel %vm3684_vm8, %v16499_v42, %v16504_v55  ;;  %v15323_v34 = vpack.c.bf16 %v7731_v32, %v7730_v29  ;;  %v4471_v9 = vpop.f32.mrb[17].mxu1 }
 0x3de   :  { %7907 = vmatprep.mubr.f32.mxu1 %v22800_v1  ;;  %7830 = vmatprep.mubr.f32.mxu0 %v22800_v1  ;;  %v15313_v13 = vpack.c.bf16 %v7735_v27, %v7734_v2  ;;  %v15315_v31 = vpack.c.bf16 %v7739_v38, %v7738_v23  ;;  %v4636_v47 = vmul.f32 %v4469_v14, %v23078_v8  ;;  %v23085_v23 = vld [vmem:[#allocation18_spill] sm:$0xff]  ;;  %v23086_v27 = vld [vmem:[#allocation15_spill] sm:$0xff]  ;;  %v23087_v14 = vld [vmem:[#allocation16_spill] sm:$0xff] }
 0x3df   :  { %14899 = vmatmul.mubr.msk.f32.vlgmr.msra.gmra.mrb[80].mxu1 %vm4319_vm9, %v7662_v36  ;;  %15310 = vmatprep.subr.bf16.mxu0 %v15309_v24  ;;  %v4637_v3 = vmul.f32 %v4471_v9, %v23081_v52 }
 0x3e0   :  { %14897 = vmatmul.mubr.msk.f32.vlgmr.msra.gmra.mrb[80].mxu0 %vm4319_vm9, %v7662_v36  ;;  %15320 = vmatpush1.bf16.msra.mxu1 %v15319_v53  ;;  %v4475_v58 = vpop.f32.mrb[18].mxu1 }
 0x3e1   :  { %15312 = vmatpush1.bf16.msra.mxu0 %v15311_v4  ;;  %15322 = vmatprep.subr.bf16.mxu1 %v15321_v57  ;;  %v4477_v30 = vpop.f32.mrb[19].mxu1  ;;  %v4644_v28 = vmul.f32 %v4475_v58, %v23078_v8  ;;  %v23088_v58 = vld [vmem:[#allocation7_spill] sm:$0xff] }
 0x3e2   :  { %7913 = vmatprep.mubr.f32.mxu1 %v22800_v1  ;;  %7836 = vmatprep.mubr.f32.mxu0 %v22800_v1  ;;  %v4645_v42 = vmul.f32 %v4477_v30, %v23081_v52 }
 0x3e3   :  { %14900 = vmatmul.mubr.msk.f32.gmra.mrb[82].mxu1 %vm4319_vm9, %v7663_v45  ;;  %15314 = vmatprep.subr.bf16.mxu0 %v15313_v13 }
 0x3e4   :  { %14898 = vmatmul.mubr.msk.f32.gmra.mrb[82].mxu0 %vm4319_vm9, %v7663_v45  ;;  %15324 = vmatpush1.bf16.msra.mxu1 %v15323_v34 }
 0x3e5   :  { %15316 = vmatpush1.bf16.msra.mxu0 %v15315_v31  ;;  %8061 = vmatprep.mubr.f32.mxu1 %v22800_v1 }
 0x3e6   :  { %7984 = vmatprep.mubr.f32.mxu0 %v22800_v1 }
 0x3e7   :  { %14903 = vmatmul.mubr.msk.f32.vlgmr.msra.gmra.mrb[84].mxu1 %vm4319_vm9, %v7662_v36 }
 0x3e8   :  { %14901 = vmatmul.mubr.msk.f32.vlgmr.msra.gmra.mrb[84].mxu0 %vm4319_vm9, %v7662_v36  ;;  %8067 = vmatprep.mubr.f32.mxu1 %v22800_v1 }
 0x3e9   :  { %7990 = vmatprep.mubr.f32.mxu0 %v22800_v1 }
 0x3eb   :  { %14904 = vmatmul.mubr.msk.f32.gmra.mrb[86].mxu1 %vm4319_vm9, %v7663_v45 }
 0x3ec   :  { %14902 = vmatmul.mubr.msk.f32.gmra.mrb[86].mxu0 %vm4319_vm9, %v7663_v45  ;;  %8338 = vmatprep.mubr.f32.mxu1 %v22800_v1 }
 0x3ed   :  { %8267 = vmatprep.mubr.f32.mxu0 %v22800_v1 }
 0x420   :  { %v4392_v48 = vpop.f32.mrb[16].mxu0 }
 0x421   :  { %v4394_v50 = vpop.f32.mrb[17].mxu0  ;;  %v4634_v6 = vmul.f32 %v4392_v48, %v23077_v41 }
 0x422   :  { %v4635_v61 = vmul.f32 %v4394_v50, %v23079_v21  ;;  %v23089_v50 = vld [vmem:[#allocation8_spill] sm:$0xff] }
 0x424   :  { %v4398_v62 = vpop.f32.mrb[18].mxu0 }
 0x425   :  { %v4400_v25 = vpop.f32.mrb[19].mxu0  ;;  %v4642_v44 = vmul.f32 %v4398_v62, %v23077_v41 }
 0x426   :  { %v4643_v24 = vmul.f32 %v4400_v25, %v23079_v21 }
 0x427   :  { %v4623_v49 = vpop.f32.mrb[20].mxu1 }
 0x428   :  { %v4625_v51 = vpop.f32.mrb[21].mxu1  ;;  %v4640_v9 = vmul.f32 %v4623_v49, %v23087_v14 }
 0x429   :  { %v4546_v39 = vpop.f32.mrb[20].mxu0 }
 0x42a   :  { %v4548_v5 = vpop.f32.mrb[21].mxu0  ;;  %v4638_v38 = vmul.f32 %v4546_v39, %v23085_v23  ;;  %v23092_v39 = vld [vmem:[#allocation9_spill] sm:$0xff] }
 0x42b   :  { %v4629_v37 = vpop.f32.mrb[22].mxu1  ;;  %v4639_v45 = vmul.f32 %v4548_v5, %v23086_v27 }
 0x42c   :  { %v4631_v22 = vpop.f32.mrb[23].mxu1 }
 0x42f   :  { %v4552_v56 = vpop.f32.mrb[22].mxu0 }
 0x430   :  { %v4554_v33 = vpop.f32.mrb[23].mxu0 }
 0x434   :  { %v4913_v17 = vpop.f32.mrb[24].mxu1  ;;  %v4836_v12 = vpop.f32.mrb[24].mxu0 }
 0x435   :  { %v5080_v59 = vmul.f32 %v4913_v17, %v23080_v7  ;;  %v4915_v54 = vpop.f32.mrb[25].mxu1  ;;  %v5078_v0 = vmul.f32 %v4836_v12, %v23083_v43  ;;  %v4838_v35 = vpop.f32.mrb[25].mxu0 }
 0x436   :  { %v5081_v63 = vmul.f32 %v4915_v54, %v23082_v40  ;;  %v5079_v16 = vmul.f32 %v4838_v35, %v23084_v19  ;;  %v4646_v54 = vmul.f32 %v4552_v56, %v23085_v23 }
 0x437   :  { %v5096_v46 = vadd.f32 %v5080_v59, %v4636_v47  ;;  %v5094_v20 = vadd.f32 %v5078_v0, %v4634_v6  ;;  %v23090_v6 = vld [vmem:[#allocation13_spill] sm:$0xff]  ;;  %v23091_v47 = vld [vmem:[#allocation6_spill] sm:$0xff] }
 0x438   :  { %v5097_v18 = vadd.f32 %v5081_v63, %v4637_v3  ;;  %v5095_v55 = vadd.f32 %v5079_v16, %v4635_v61  ;;  %v4641_v17 = vmul.f32 %v4625_v51, %v23090_v6  ;;  %v4647_v3 = vmul.f32 %v4554_v33, %v23086_v27 }
 0x439   :  { %v4919_v26 = vpop.f32.mrb[26].mxu1  ;;  %v4648_v16 = vmul.f32 %v4629_v37, %v23087_v14 }
 0x43a   :  { %v5088_v53 = vmul.f32 %v4919_v26, %v23080_v7  ;;  %v4921_v10 = vpop.f32.mrb[27].mxu1  ;;  %v4842_v60 = vpop.f32.mrb[26].mxu0 }
 0x43b   :  { %v5089_v15 = vmul.f32 %v4921_v10, %v23082_v40  ;;  %v5086_v36 = vmul.f32 %v4842_v60, %v23083_v43  ;;  %v4844_v57 = vpop.f32.mrb[27].mxu0 }
 0x43c   :  { %v5104_v29 = vadd.f32 %v5088_v53, %v4644_v28  ;;  %v5087_v32 = vmul.f32 %v4844_v57, %v23084_v19  ;;  %v23093_v57 = vld [vmem:[#allocation20_spill] sm:$0xff] }
 0x43d   :  { %v5105_v4 = vadd.f32 %v5089_v15, %v4645_v42  ;;  %v5102_v2 = vadd.f32 %v5086_v36, %v4642_v44 }
 0x43e   :  { %v5067_v13 = vpop.f32.mrb[28].mxu1  ;;  %v5103_v34 = vadd.f32 %v5087_v32, %v4643_v24  ;;  %v4649_v24 = vmul.f32 %v4631_v22, %v23090_v6  ;;  %v23094_v32 = vld [vmem:[#allocation22_spill] sm:$0xff] }
 0x43f   :  { %v4990_v31 = vpop.f32.mrb[28].mxu0  ;;  %v5084_v30 = vmul.f32 %v5067_v13, %v23088_v58  ;;  %v5069_v48 = vpop.f32.mrb[29].mxu1 }
 0x440   :  { %v5082_v62 = vmul.f32 %v4990_v31, %v23089_v50  ;;  %v4992_v25 = vpop.f32.mrb[29].mxu0  ;;  %v5085_v61 = vmul.f32 %v5069_v48, %v23091_v47  ;;  %v23095_v31 = vld [vmem:[#allocation17_spill] sm:$0xff] }
 0x441   :  { %v5083_v59 = vmul.f32 %v4992_v25, %v23092_v39  ;;  %v5100_v5 = vadd.f32 %v5084_v30, %v4640_v9  ;;  %v23096_v30 = vld [vmem:[#allocation19_spill] sm:$0xff] }
 0x442   :  { %v5098_v12 = vadd.f32 %v5082_v62, %v4638_v38  ;;  %v5101_v63 = vadd.f32 %v5085_v61, %v4641_v17  ;;  %v5073_v49 = vpop.f32.mrb[30].mxu1 }
 0x443   :  { %v5099_v0 = vadd.f32 %v5083_v59, %v4639_v45  ;;  %v4996_v35 = vpop.f32.mrb[30].mxu0  ;;  %v5092_v44 = vmul.f32 %v5073_v49, %v23088_v58  ;;  %v5075_v26 = vpop.f32.mrb[31].mxu1 }
 0x444   :  { %v5090_v51 = vmul.f32 %v4996_v35, %v23089_v50  ;;  %v4998_v28 = vpop.f32.mrb[31].mxu0  ;;  %v5093_v56 = vmul.f32 %v5075_v26, %v23091_v47 }
 0x445   :  { %v5091_v53 = vmul.f32 %v4998_v28, %v23092_v39  ;;  %v5108_v10 = vadd.f32 %v5092_v44, %v4648_v16 }
 0x446   :  { %v5106_v33 = vadd.f32 %v5090_v51, %v4646_v54  ;;  %v5109_v60 = vadd.f32 %v5093_v56, %v4649_v24  ;;  %v23098_v56 = vld [vmem:[#allocation26_spill] sm:$0xff] }
 0x447   :  { %v5107_v42 = vadd.f32 %v5091_v53, %v4647_v3 }
 0x448   :  { %v5280_v36 = vpop.f32.mrb[32].mxu0 }
 0x449   :  { %v5522_v38 = vmul.f32 %v5280_v36, %v23094_v32  ;;  %v5282_v13 = vpop.f32.mrb[33].mxu0 }
 0x44a   :  { %v5357_v15 = vpop.f32.mrb[32].mxu1  ;;  %v5523_v22 = vmul.f32 %v5282_v13, %v23096_v30 }
 0x44b   :  { %v5524_v37 = vmul.f32 %v5357_v15, %v23093_v57  ;;  %v5359_v45 = vpop.f32.mrb[33].mxu1  ;;  %v5538_v62 = vadd.f32 %v5522_v38, %v5094_v20 }
 0x44c   :  { %v5525_v9 = vmul.f32 %v5359_v45, %v23095_v31  ;;  %v5539_v17 = vadd.f32 %v5523_v22, %v5095_v55  ;;  %v23100_v45 = vld [vmem:[#allocation23_spill] sm:$0xff] }
 0x44d   :  { %v5540_v48 = vadd.f32 %v5524_v37, %v5096_v46  ;;  %v5286_v59 = vpop.f32.mrb[34].mxu0  ;;  %v23099_v37 = vld [vmem:[#allocation21_spill] sm:$0xff] }
 0x44e   :  { %v5541_v25 = vadd.f32 %v5525_v9, %v5097_v18  ;;  %v5363_v61 = vpop.f32.mrb[34].mxu1  ;;  %v5530_v3 = vmul.f32 %v5286_v59, %v23094_v32  ;;  %v5288_v35 = vpop.f32.mrb[35].mxu0  ;;  %v23097_v18 = vld [vmem:[#allocation24_spill] sm:$0xff] }
 0x44f   :  { %v5532_v54 = vmul.f32 %v5363_v61, %v23093_v57  ;;  %v5365_v49 = vpop.f32.mrb[35].mxu1  ;;  %v5531_v44 = vmul.f32 %v5288_v35, %v23096_v30 }
 0x450   :  { %v5533_v16 = vmul.f32 %v5365_v49, %v23095_v31  ;;  %v5546_v51 = vadd.f32 %v5530_v3, %v5102_v2 }
 0x451   :  { %v5548_v26 = vadd.f32 %v5532_v54, %v5104_v29  ;;  %v5547_v24 = vadd.f32 %v5531_v44, %v5103_v34  ;;  %v5434_v20 = vpop.f32.mrb[36].mxu0 }
 0x452   :  { %v5549_v28 = vadd.f32 %v5533_v16, %v5105_v4  ;;  %v5511_v46 = vpop.f32.mrb[36].mxu1  ;;  %v5526_v53 = vmul.f32 %v5434_v20, %v23098_v56  ;;  %v5436_v36 = vpop.f32.mrb[37].mxu0 }
 0x453   :  { %v5528_v55 = vmul.f32 %v5511_v46, %v23097_v18  ;;  %v5513_v15 = vpop.f32.mrb[37].mxu1  ;;  %v5527_v13 = vmul.f32 %v5436_v36, %v23100_v45 }
 0x454   :  { %v5529_v38 = vmul.f32 %v5513_v15, %v23099_v37  ;;  %v5542_v22 = vadd.f32 %v5526_v53, %v5098_v12 }
 0x455   :  { %v5544_v9 = vadd.f32 %v5528_v55, %v5100_v5  ;;  %v5543_v59 = vadd.f32 %v5527_v13, %v5099_v0  ;;  %v5440_v2 = vpop.f32.mrb[38].mxu0  ;;  %v23102_v55 = vld [vmem:[#allocation30_spill] sm:$0xff] }
 0x456   :  { %v5545_v61 = vadd.f32 %v5529_v38, %v5101_v63  ;;  %v5517_v29 = vpop.f32.mrb[38].mxu1  ;;  %v5534_v34 = vmul.f32 %v5440_v2, %v23098_v56  ;;  %v5442_v3 = vpop.f32.mrb[39].mxu0  ;;  %v23101_v63 = vld [vmem:[#allocation28_spill] sm:$0xff]  ;;  %v23103_v38 = vld [vmem:[#allocation25_spill] sm:$0xff] }
 0x457   :  { %v5536_v4 = vmul.f32 %v5517_v29, %v23097_v18  ;;  %v5519_v54 = vpop.f32.mrb[39].mxu1  ;;  %v5535_v35 = vmul.f32 %v5442_v3, %v23100_v45  ;;  %v23104_v29 = vld [vmem:[#allocation27_spill] sm:$0xff] }
 0x458   :  { %v5537_v49 = vmul.f32 %v5519_v54, %v23099_v37  ;;  %v5550_v44 = vadd.f32 %v5534_v34, %v5106_v33 }
 0x459   :  { %v5552_v16 = vadd.f32 %v5536_v4, %v5108_v10  ;;  %v5551_v20 = vadd.f32 %v5535_v35, %v5107_v42 }
 0x45a   :  { %v5553_v46 = vadd.f32 %v5537_v49, %v5109_v60  ;;  %v5724_v12 = vpop.f32.mrb[40].mxu0 }
 0x45b   :  { %v5801_v5 = vpop.f32.mrb[40].mxu1  ;;  %v5966_v53 = vmul.f32 %v5724_v12, %v23102_v55  ;;  %v5726_v36 = vpop.f32.mrb[41].mxu0 }
 0x45c   :  { %v5968_v0 = vmul.f32 %v5801_v5, %v23101_v63  ;;  %v5803_v15 = vpop.f32.mrb[41].mxu1  ;;  %v5967_v2 = vmul.f32 %v5726_v36, %v23104_v29 }
 0x45d   :  { %v5969_v13 = vmul.f32 %v5803_v15, %v23103_v38  ;;  %v5982_v54 = vadd.f32 %v5966_v53, %v5538_v62 }
 0x45e   :  { %v5984_v56 = vadd.f32 %v5968_v0, %v5540_v48  ;;  %v5730_v3 = vpop.f32.mrb[42].mxu0  ;;  %v5983_v33 = vadd.f32 %v5967_v2, %v5539_v17  ;;  %v23105_v0 = vld [vmem:[#allocation32_spill] sm:$0xff]  ;;  %v23107_v2 = vld [vmem:[#allocation29_spill] sm:$0xff] }
 0x45f   :  { %v5807_v37 = vpop.f32.mrb[42].mxu1  ;;  %v5985_v10 = vadd.f32 %v5969_v13, %v5541_v25  ;;  %v5974_v42 = vmul.f32 %v5730_v3, %v23102_v55  ;;  %v5732_v34 = vpop.f32.mrb[43].mxu0  ;;  %v23106_v25 = vld [vmem:[#allocation33_spill] sm:$0xff]  ;;  %v23108_v55 = vld [vmem:[#allocation31_spill] sm:$0xff] }
 0x460   :  { %v5976_v60 = vmul.f32 %v5807_v37, %v23101_v63  ;;  %v5809_v4 = vpop.f32.mrb[43].mxu1  ;;  %v5975_v35 = vmul.f32 %v5732_v34, %v23104_v29 }
 0x461   :  { %v5977_v49 = vmul.f32 %v5809_v4, %v23103_v38  ;;  %v5990_v12 = vadd.f32 %v5974_v42, %v5546_v51 }
 0x462   :  { %v5992_v5 = vadd.f32 %v5976_v60, %v5548_v26  ;;  %v5991_v62 = vadd.f32 %v5975_v35, %v5547_v24 }
 0x463   :  { %v5955_v15 = vpop.f32.mrb[44].mxu1  ;;  %v5878_v36 = vpop.f32.mrb[44].mxu0  ;;  %v5993_v48 = vadd.f32 %v5977_v49, %v5549_v28 }
 0x464   :  { %v5972_v53 = vmul.f32 %v5955_v15, %v23105_v0  ;;  %v5970_v17 = vmul.f32 %v5878_v36, %v23106_v25  ;;  %v5957_v13 = vpop.f32.mrb[45].mxu1  ;;  %v5880_v37 = vpop.f32.mrb[45].mxu0 }
 0x465   :  { %v5973_v3 = vmul.f32 %v5957_v13, %v23107_v2  ;;  %v5971_v63 = vmul.f32 %v5880_v37, %v23108_v55 }
 0x466   :  { %v5988_v45 = vadd.f32 %v5972_v53, %v5544_v9  ;;  %v5986_v4 = vadd.f32 %v5970_v17, %v5542_v22 }
 0x467   :  { %v5961_v38 = vpop.f32.mrb[46].mxu1  ;;  %v5884_v34 = vpop.f32.mrb[46].mxu0  ;;  %v5989_v26 = vadd.f32 %v5973_v3, %v5545_v61  ;;  %v5987_v51 = vadd.f32 %v5971_v63, %v5543_v59 }
 0x468   :  { %v5980_v60 = vmul.f32 %v5961_v38, %v23105_v0  ;;  %v5978_v28 = vmul.f32 %v5884_v34, %v23106_v25  ;;  %v5963_v24 = vpop.f32.mrb[47].mxu1  ;;  %v5886_v42 = vpop.f32.mrb[47].mxu0 }
 0x469   :  { %v5981_v49 = vmul.f32 %v5963_v24, %v23107_v2  ;;  %v5979_v35 = vmul.f32 %v5886_v42, %v23108_v55 }
 0x46a   :  { %v5996_v15 = vadd.f32 %v5980_v60, %v5552_v16  ;;  %v5994_v36 = vadd.f32 %v5978_v28, %v5550_v44 }
 0x46b   :  { %v6149_v13 = vpop.f32.mrb[48].mxu1  ;;  %v6072_v37 = vpop.f32.mrb[48].mxu0  ;;  %v5997_v9 = vadd.f32 %v5981_v49, %v5553_v46  ;;  %v5995_v22 = vadd.f32 %v5979_v35, %v5551_v20 }
 0x46c   :  { %v6316_v53 = vadd.f32 %v6149_v13, %v5984_v56  ;;  %v6314_v17 = vadd.f32 %v6072_v37, %v5982_v54  ;;  %v6151_v61 = vpop.f32.mrb[49].mxu1  ;;  %v6074_v59 = vpop.f32.mrb[49].mxu0 }
 0x46d   :  { %v6317_v63 = vadd.f32 %v6151_v61, %v5985_v10  ;;  %v6315_v38 = vadd.f32 %v6074_v59, %v5983_v33 }
 0x46f   :  { %v6155_v3 = vpop.f32.mrb[50].mxu1  ;;  %v6078_v34 = vpop.f32.mrb[50].mxu0 }
 0x470   :  { %v6324_v25 = vadd.f32 %v6155_v3, %v5992_v5  ;;  %v6322_v0 = vadd.f32 %v6078_v34, %v5990_v12  ;;  %v6157_v29 = vpop.f32.mrb[51].mxu1  ;;  %v6080_v24 = vpop.f32.mrb[51].mxu0  ;;  %v23111_v34 = vld [vmem:[#allocation34_spill] sm:$0xff] }
 0x471   :  { %v6325_v2 = vadd.f32 %v6157_v29, %v5993_v48  ;;  %v6323_v42 = vadd.f32 %v6080_v24, %v5991_v62  ;;  %v23109_v29 = vld [vmem:[#allocation36_spill] sm:$0xff]  ;;  %v23110_v62 = vld [vmem:[#allocation38_spill] sm:$0xff] }
 0x473   :  { %v6303_v16 = vpop.f32.mrb[52].mxu1  ;;  %v6226_v44 = vpop.f32.mrb[52].mxu0 }
 0x474   :  { %v6320_v60 = vadd.f32 %v6303_v16, %v5988_v45  ;;  %v6318_v28 = vadd.f32 %v6226_v44, %v5986_v4  ;;  %v6305_v46 = vpop.f32.mrb[53].mxu1  ;;  %v6228_v20 = vpop.f32.mrb[53].mxu0 }
 0x475   :  { %v6321_v56 = vadd.f32 %v6305_v46, %v5989_v26  ;;  %v6319_v54 = vadd.f32 %v6228_v20, %v5987_v51  ;;  %v23112_v26 = vld [vmem:[#allocation35_spill] sm:$0xff] }
 0x478   :  { %v6309_v49 = vpop.f32.mrb[54].mxu1  ;;  %v6232_v35 = vpop.f32.mrb[54].mxu0 }
 0x479   :  { %v6328_v10 = vadd.f32 %v6309_v49, %v5996_v15  ;;  %v6326_v33 = vadd.f32 %v6232_v35, %v5994_v36  ;;  %v6311_v13 = vpop.f32.mrb[55].mxu1  ;;  %v6234_v37 = vpop.f32.mrb[55].mxu0 }
 0x47a   :  { %v6329_v5 = vadd.f32 %v6311_v13, %v5997_v9  ;;  %v6327_v12 = vadd.f32 %v6234_v37, %v5995_v22 }
 0x47e   :  { %v6577_v61 = vpop.f32.mrb[56].mxu1  ;;  %v6500_v59 = vpop.f32.mrb[56].mxu0 }
 0x47f   :  { %v6744_v48 = vmul.f32 %v6577_v61, %v23109_v29  ;;  %v6742_v3 = vmul.f32 %v6500_v59, %v23110_v62  ;;  %v6579_v45 = vpop.f32.mrb[57].mxu1  ;;  %v6502_v4 = vpop.f32.mrb[57].mxu0 }
 0x480   :  { %v6745_v24 = vmul.f32 %v6579_v45, %v23111_v34  ;;  %v6743_v51 = vmul.f32 %v6502_v4, %v23112_v26 }
 0x481   :  { %v6760_v16 = vadd.f32 %v6744_v48, %v6316_v53  ;;  %v6758_v44 = vadd.f32 %v6742_v3, %v6314_v17  ;;  %v23114_v48 = vld [vmem:[#allocation42_spill] sm:$0xff] }
 0x482   :  { %v6761_v15 = vadd.f32 %v6745_v24, %v6317_v63  ;;  %v6759_v36 = vadd.f32 %v6743_v51, %v6315_v38  ;;  %v23113_v63 = vld [vmem:[#allocation40_spill] sm:$0xff] }
 0x483   :  { %v6583_v46 = vpop.f32.mrb[58].mxu1  ;;  %v6506_v20 = vpop.f32.mrb[58].mxu0 }
 0x484   :  { %v6752_v9 = vmul.f32 %v6583_v46, %v23109_v29  ;;  %v6750_v22 = vmul.f32 %v6506_v20, %v23110_v62  ;;  %v6585_v49 = vpop.f32.mrb[59].mxu1  ;;  %v6508_v35 = vpop.f32.mrb[59].mxu0  ;;  %v23115_v46 = vld [vmem:[#allocation37_spill] sm:$0xff]  ;;  %v23116_v62 = vld [vmem:[#allocation39_spill] sm:$0xff] }
 0x485   :  { %v6753_v13 = vmul.f32 %v6585_v49, %v23111_v34  ;;  %v6751_v37 = vmul.f32 %v6508_v35, %v23112_v26 }
 0x486   :  { %v6768_v61 = vadd.f32 %v6752_v9, %v6324_v25  ;;  %v6766_v59 = vadd.f32 %v6750_v22, %v6322_v0 }
 0x487   :  { %v6769_v45 = vadd.f32 %v6753_v13, %v6325_v2  ;;  %v6767_v4 = vadd.f32 %v6751_v37, %v6323_v42 }
 0x488   :  { %v6731_v53 = vpop.f32.mrb[60].mxu1 }
 0x489   :  { %v6654_v17 = vpop.f32.mrb[60].mxu0  ;;  %v6748_v38 = vmul.f32 %v6731_v53, %v23113_v63  ;;  %v6733_v24 = vpop.f32.mrb[61].mxu1 }
 0x48a   :  { %v6746_v3 = vmul.f32 %v6654_v17, %v23114_v48  ;;  %v6656_v51 = vpop.f32.mrb[61].mxu0  ;;  %v6749_v20 = vmul.f32 %v6733_v24, %v23115_v46 }
 0x48b   :  { %v6747_v29 = vmul.f32 %v6656_v51, %v23116_v62  ;;  %v6764_v55 = vadd.f32 %v6748_v38, %v6320_v60 }
 0x48c   :  { %v6762_v49 = vadd.f32 %v6746_v3, %v6318_v28  ;;  %v6765_v34 = vadd.f32 %v6749_v20, %v6321_v56  ;;  %v6737_v25 = vpop.f32.mrb[62].mxu1  ;;  %v23117_v56 = vld [vmem:[#allocation44_spill] sm:$0xff] }
 0x48d   :  { %v6763_v35 = vadd.f32 %v6747_v29, %v6319_v54  ;;  %v6660_v0 = vpop.f32.mrb[62].mxu0  ;;  %v6756_v2 = vmul.f32 %v6737_v25, %v23113_v63  ;;  %v6739_v9 = vpop.f32.mrb[63].mxu1  ;;  %v23118_v29 = vld [vmem:[#allocation46_spill] sm:$0xff]  ;;  %v23119_v25 = vld [vmem:[#allocation41_spill] sm:$0xff] }
 0x48e   :  { %v6754_v42 = vmul.f32 %v6660_v0, %v23114_v48  ;;  %v6662_v22 = vpop.f32.mrb[63].mxu0  ;;  %v6757_v13 = vmul.f32 %v6739_v9, %v23115_v46  ;;  %v23120_v48 = vld [vmem:[#allocation43_spill] sm:$0xff] }
 0x48f   :  { %v6755_v37 = vmul.f32 %v6662_v22, %v23116_v62  ;;  %v6772_v53 = vadd.f32 %v6756_v2, %v6328_v10 }
 0x490   :  { %v6770_v17 = vadd.f32 %v6754_v42, %v6326_v33  ;;  %v6773_v24 = vadd.f32 %v6757_v13, %v6329_v5 }
 0x491   :  { %v6771_v51 = vadd.f32 %v6755_v37, %v6327_v12  ;;  %v7021_v60 = vpop.f32.mrb[64].mxu1 }
 0x492   :  { %v6944_v28 = vpop.f32.mrb[64].mxu0  ;;  %v7188_v54 = vmul.f32 %v7021_v60, %v23117_v56  ;;  %v7023_v3 = vpop.f32.mrb[65].mxu1 }
 0x493   :  { %v7186_v38 = vmul.f32 %v6944_v28, %v23118_v29  ;;  %v6946_v20 = vpop.f32.mrb[65].mxu0  ;;  %v7189_v0 = vmul.f32 %v7023_v3, %v23119_v25 }
 0x494   :  { %v7187_v63 = vmul.f32 %v6946_v20, %v23120_v48  ;;  %v7204_v26 = vadd.f32 %v7188_v54, %v6760_v16 }
 0x495   :  { %v7202_v9 = vadd.f32 %v7186_v38, %v6758_v44  ;;  %v7205_v46 = vadd.f32 %v7189_v0, %v6761_v15  ;;  %v7027_v10 = vpop.f32.mrb[66].mxu1  ;;  %v23121_v15 = vld [vmem:[#allocation48_spill] sm:$0xff] }
 0x496   :  { %v7203_v22 = vadd.f32 %v7187_v63, %v6759_v36  ;;  %v6950_v33 = vpop.f32.mrb[66].mxu0  ;;  %v7196_v5 = vmul.f32 %v7027_v10, %v23117_v56  ;;  %v7029_v2 = vpop.f32.mrb[67].mxu1  ;;  %v23122_v63 = vld [vmem:[#allocation50_spill] sm:$0xff]  ;;  %v23123_v10 = vld [vmem:[#allocation45_spill] sm:$0xff] }
 0x497   :  { %v7194_v12 = vmul.f32 %v6950_v33, %v23118_v29  ;;  %v6952_v42 = vpop.f32.mrb[67].mxu0  ;;  %v7197_v13 = vmul.f32 %v7029_v2, %v23119_v25  ;;  %v23124_v29 = vld [vmem:[#allocation47_spill] sm:$0xff] }
 0x498   :  { %v7195_v37 = vmul.f32 %v6952_v42, %v23120_v48  ;;  %v7212_v60 = vadd.f32 %v7196_v5, %v6768_v61 }
 0x499   :  { %v7210_v28 = vadd.f32 %v7194_v12, %v6766_v59  ;;  %v7213_v3 = vadd.f32 %v7197_v13, %v6769_v45 }
 0x49a   :  { %v7211_v20 = vadd.f32 %v7195_v37, %v6767_v4  ;;  %v7175_v16 = vpop.f32.mrb[68].mxu1 }
 0x49b   :  { %v7098_v44 = vpop.f32.mrb[68].mxu0  ;;  %v7192_v36 = vmul.f32 %v7175_v16, %v23121_v15  ;;  %v7177_v38 = vpop.f32.mrb[69].mxu1 }
 0x49c   :  { %v7190_v54 = vmul.f32 %v7098_v44, %v23122_v63  ;;  %v7100_v0 = vpop.f32.mrb[69].mxu0  ;;  %v7193_v33 = vmul.f32 %v7177_v38, %v23123_v10 }
 0x49d   :  { %v7191_v56 = vmul.f32 %v7100_v0, %v23124_v29  ;;  %v7208_v62 = vadd.f32 %v7192_v36, %v6764_v55 }
 0x49e   :  { %v7206_v2 = vadd.f32 %v7190_v54, %v6762_v49  ;;  %v7209_v25 = vadd.f32 %v7193_v33, %v6765_v34  ;;  %v7181_v61 = vpop.f32.mrb[70].mxu1  ;;  %v23125_v34 = vld [vmem:[#allocation52_spill] sm:$0xff] }
 0x49f   :  { %v7207_v42 = vadd.f32 %v7191_v56, %v6763_v35  ;;  %v7104_v59 = vpop.f32.mrb[70].mxu0  ;;  %v7200_v45 = vmul.f32 %v7181_v61, %v23121_v15  ;;  %v7183_v5 = vpop.f32.mrb[71].mxu1  ;;  %v23126_v56 = vld [vmem:[#allocation54_spill] sm:$0xff]  ;;  %v23127_v61 = vld [vmem:[#allocation49_spill] sm:$0xff] }
 0x4a0   :  { %v7198_v4 = vmul.f32 %v7104_v59, %v23122_v63  ;;  %v7106_v12 = vpop.f32.mrb[71].mxu0  ;;  %v7201_v13 = vmul.f32 %v7183_v5, %v23123_v10  ;;  %v23128_v63 = vld [vmem:[#allocation51_spill] sm:$0xff] }
 0x4a1   :  { %v7199_v37 = vmul.f32 %v7106_v12, %v23124_v29  ;;  %v7216_v16 = vadd.f32 %v7200_v45, %v6772_v53 }
 0x4a2   :  { %v7214_v44 = vadd.f32 %v7198_v4, %v6770_v17  ;;  %v7217_v38 = vadd.f32 %v7201_v13, %v6773_v24  ;;  %v7465_v55 = vpop.f32.mrb[72].mxu1 }
 0x4a3   :  { %v7215_v0 = vadd.f32 %v7199_v37, %v6771_v51  ;;  %v7388_v49 = vpop.f32.mrb[72].mxu0  ;;  %v7632_v35 = vmul.f32 %v7465_v55, %v23125_v34  ;;  %v7467_v54 = vpop.f32.mrb[73].mxu1 }
 0x4a4   :  { %v7630_v36 = vmul.f32 %v7388_v49, %v23126_v56  ;;  %v7390_v33 = vpop.f32.mrb[73].mxu0  ;;  %v7633_v59 = vmul.f32 %v7467_v54, %v23127_v61 }
 0x4a5   :  { %v7631_v15 = vmul.f32 %v7390_v33, %v23128_v63  ;;  %v7648_v48 = vadd.f32 %v7632_v35, %v7204_v26 }
 0x4a6   :  { %v7646_v5 = vadd.f32 %v7630_v36, %v7202_v9  ;;  %v7649_v10 = vadd.f32 %v7633_v59, %v7205_v46  ;;  %v7471_v53 = vpop.f32.mrb[74].mxu1  ;;  %v23129_v46 = vld [vmem:[#allocation56_spill] sm:$0xff] }
 0x4a7   :  { %v7647_v12 = vadd.f32 %v7631_v15, %v7203_v22  ;;  %v7394_v17 = vpop.f32.mrb[74].mxu0  ;;  %v7640_v24 = vmul.f32 %v7471_v53, %v23125_v34  ;;  %v7473_v45 = vpop.f32.mrb[75].mxu1  ;;  %v23130_v15 = vld [vmem:[#allocation57_spill] sm:$0xff] }
 0x4a8   :  { %v7638_v51 = vmul.f32 %v7394_v17, %v23126_v56  ;;  %v7396_v4 = vpop.f32.mrb[75].mxu0  ;;  %v7641_v13 = vmul.f32 %v7473_v45, %v23127_v61  ;;  %v23131_v53 = vld [vmem:[#allocation53_spill] sm:$0xff]  ;;  %v23132_v56 = vld [vmem:[#allocation55_spill] sm:$0xff] }
 0x4a9   :  { %v7639_v37 = vmul.f32 %v7396_v4, %v23128_v63  ;;  %v7656_v55 = vadd.f32 %v7640_v24, %v7212_v60 }
 0x4aa   :  { %v7654_v49 = vadd.f32 %v7638_v51, %v7210_v28  ;;  %v7657_v54 = vadd.f32 %v7641_v13, %v7213_v3  ;;  %v7619_v26 = vpop.f32.mrb[76].mxu1 }
 0x4ab   :  { %v7655_v33 = vadd.f32 %v7639_v37, %v7211_v20  ;;  %v7542_v9 = vpop.f32.mrb[76].mxu0  ;;  %v7636_v22 = vmul.f32 %v7619_v26, %v23129_v46  ;;  %v7621_v36 = vpop.f32.mrb[77].mxu1 }
 0x4ac   :  { %v7634_v35 = vmul.f32 %v7542_v9, %v23130_v15  ;;  %v7544_v59 = vpop.f32.mrb[77].mxu0  ;;  %v7637_v17 = vmul.f32 %v7621_v36, %v23131_v53  ;;  %v16928_v36 = vld [vmem:[%s22508_s1 + $0x40] ss:$0 sm:$0xff] }
 0x4ad   :  { %v7635_v34 = vmul.f32 %v7544_v59, %v23132_v56  ;;  %v20753_v29 = vadd.f32 %v7636_v22, %v7208_v62  ;;  %v16927_v22 = vld [vmem:[%s22508_s1 + $0x50] ss:$0 sm:$0xff] }
 0x4ae   :  { %v20755_v45 = vadd.f32 %v7634_v35, %v7206_v2  ;;  %v20757_v60 = vadd.f32 %v7637_v17, %v7209_v25  ;;  %v7625_v3 = vpop.f32.mrb[78].mxu1 }
 0x4af   :  { %v20759_v28 = vadd.f32 %v7635_v34, %v7207_v42  ;;  %v7548_v20 = vpop.f32.mrb[78].mxu0  ;;  %v7644_v24 = vmul.f32 %v7625_v3, %v23129_v46  ;;  %v7627_v4 = vpop.f32.mrb[79].mxu1 }
 0x4b0   :  { %v7642_v51 = vmul.f32 %v7548_v20, %v23130_v15  ;;  %v7550_v13 = vpop.f32.mrb[79].mxu0  ;;  %v7645_v37 = vmul.f32 %v7627_v4, %v23131_v53  ;;  %v8111_v20 = vpop.permute.xlu1 %8110 }
 0x4b1   :  { %v7643_v26 = vmul.f32 %v7550_v13, %v23132_v56  ;;  %v20765_v62 = vadd.f32 %v7644_v24, %v7216_v16 }
 0x4b2   :  { %v20767_v2 = vadd.f32 %v7642_v51, %v7214_v44  ;;  %v20769_v25 = vadd.f32 %v7645_v37, %v7217_v38  ;;  %v7909_v34 = vpop.f32.mrb[80].mxu1  ;;  %v16929_v44 = vld [vmem:[%s22508_s1 + $0x58] ss:$0 sm:$0xff] }
 0x4b3   :  { %v20771_v42 = vadd.f32 %v7643_v26, %v7215_v0  ;;  %v7832_v9 = vpop.f32.mrb[80].mxu0  ;;  %v8076_v35 = vmul.f32 %v16927_v22, %v7909_v34  ;;  %v7911_v16 = vpop.f32.mrb[81].mxu1  ;;  %v16930_v0 = vld [vmem:[%s22508_s1 + $0x48] ss:$0 sm:$0xff] }
 0x4b4   :  { %v8074_v59 = vmul.f32 %v16928_v36, %v7832_v9  ;;  %v7834_v17 = vpop.f32.mrb[81].mxu0  ;;  %v8077_v38 = vmul.f32 %v16929_v44, %v7911_v16 }
 0x4b5   :  { %v8075_v3 = vmul.f32 %v16930_v0, %v7834_v17  ;;  %v8092_v24 = vadd.f32 %v8076_v35, %v7648_v48 }
 0x4b6   :  { %v8090_v51 = vadd.f32 %v8074_v59, %v7646_v5  ;;  %v8093_v4 = vadd.f32 %v8077_v38, %v7649_v10  ;;  %v7915_v37 = vpop.f32.mrb[82].mxu1 }
 0x4b7   :  { %v8091_v13 = vadd.f32 %v8075_v3, %v7647_v12  ;;  %v7838_v26 = vpop.f32.mrb[82].mxu0  ;;  %v20785_v34 = vadd.f32 %v8111_v20, %v8092_v24  ;;  %v8084_v56 = vmul.f32 %v16927_v22, %v7915_v37  ;;  %v7917_v15 = vpop.f32.mrb[83].mxu1 }
 0x4b8   :  { %v20787_v9 = vadd.f32 %v8111_v20, %v8090_v51  ;;  %v8082_v53 = vmul.f32 %v16928_v36, %v7838_v26  ;;  %v7840_v16 = vpop.f32.mrb[83].mxu0  ;;  %v20789_v46 = vadd.f32 %v8111_v20, %v8093_v4  ;;  %v8085_v17 = vmul.f32 %v16929_v44, %v7917_v15  ;;  %v8116_v12 = vpop.permute.xlu0 %8115  ;;  %v16931_v15 = vld [vmem:[%s22508_s1 + $0x70] ss:$0 sm:$0xff] }
 0x4b9   :  { %v20791_v63 = vadd.f32 %v8111_v20, %v8091_v13  ;;  %v8083_v61 = vmul.f32 %v16930_v0, %v7840_v16  ;;  %v8136_v48 = vmax.f32 %v20785_v34, 0.0  ;;  %v8100_v10 = vadd.f32 %v8084_v56, %v7656_v55  ;;  %v16934_v16 = vld [vmem:[%s22508_s1 + $0x68] ss:$0 sm:$0xff] }
 0x4ba   :  { %v8098_v5 = vadd.f32 %v8082_v53, %v7654_v49  ;;  %v8101_v38 = vadd.f32 %v8085_v17, %v7657_v54  ;;  %v8063_v36 = vpop.f32.mrb[84].mxu1 }
 0x4bb   :  { %v8099_v22 = vadd.f32 %v8083_v61, %v7655_v33  ;;  %v20797_v24 = vadd.f32 %v8116_v12, %v8100_v10  ;;  %v8080_v56 = vmul.f32 %v16931_v15, %v8063_v36  ;;  %v7986_v55 = vpop.f32.mrb[84].mxu0  ;;  %v8065_v49 = vpop.f32.mrb[85].mxu1  ;;  %v16932_v61 = vld [vmem:[%s22508_s1 + $0x60] ss:$0 sm:$0xff]  ;;  %v16933_v33 = vld [vmem:[%s22508_s1 + $0x78] ss:$0 sm:$0xff] }
 0x4bc   :  { %v20799_v51 = vadd.f32 %v8116_v12, %v8098_v5  ;;  %v20804_v53 = vadd.f32 %v8116_v12, %v8101_v38  ;;  %v8078_v54 = vmul.f32 %v16932_v61, %v7986_v55  ;;  %v8081_v0 = vmul.f32 %v16933_v33, %v8065_v49  ;;  %v7988_v4 = vpop.f32.mrb[85].mxu0 }
 0x4bd   :  { %v20806_v44 = vadd.f32 %v8116_v12, %v8099_v22  ;;  %v8144_v13 = vmax.f32 %v20797_v24, 0.0  ;;  %v8096_v26 = vadd.f32 %v8080_v56, %v20753_v29  ;;  %v8079_v17 = vmul.f32 %v16934_v16, %v7988_v4 }
 0x4be   :  { %v8142_v37 = vmax.f32 %v20799_v51, 0.0  ;;  %v8145_v10 = vmax.f32 %v20804_v53, 0.0  ;;  %v8094_v38 = vadd.f32 %v8078_v54, %v20755_v45  ;;  %v8097_v22 = vadd.f32 %v8081_v0, %v20757_v60  ;;  %v8069_v36 = vpop.f32.mrb[86].mxu1 }
 0x4bf   :  { %v8143_v5 = vmax.f32 %v20806_v44, 0.0  ;;  %v8124_v55 = vadd.f32 %v8111_v20, %v8096_v26  ;;  %v8095_v24 = vadd.f32 %v8079_v17, %v20759_v28  ;;  %v8088_v51 = vmul.f32 %v16931_v15, %v8069_v36  ;;  %v7992_v49 = vpop.f32.mrb[86].mxu0  ;;  %v8071_v29 = vpop.f32.mrb[87].mxu1 }
 0x4c0   :  { %v20827_v56 = vpack.i.bf16 %v8144_v13, %v8136_v48  ;;  %v8122_v4 = vadd.f32 %v8111_v20, %v8094_v38  ;;  %v8125_v3 = vadd.f32 %v8111_v20, %v8097_v22  ;;  %v8086_v53 = vmul.f32 %v16932_v61, %v7992_v49  ;;  %v7994_v44 = vpop.f32.mrb[87].mxu0 }
 0x4c1   :  { %v8089_v35 = vmul.f32 %v16933_v33, %v8071_v29  ;;  %v8140_v59 = vmax.f32 %v8124_v55, 0.0  ;;  %v8123_v45 = vadd.f32 %v8111_v20, %v8095_v24  ;;  %v8104_v60 = vadd.f32 %v8088_v51, %v20765_v62 }
 0x4c2   :  { %v8087_v54 = vmul.f32 %v16934_v16, %v7994_v44  ;;  %16506 = vrot.lane.b32.xlu1 %v20827_v56, %s16950_s29  ;;  %v8138_v28 = vmax.f32 %v8122_v4, 0.0  ;;  %v8141_v15 = vmax.f32 %v8125_v3, 0.0  ;;  %v8102_v0 = vadd.f32 %v8086_v53, %v20767_v2 }
 0x4c3   :  { %v8105_v26 = vadd.f32 %v8089_v35, %v20769_v25  ;;  %v8139_v17 = vmax.f32 %v8123_v45, 0.0  ;;  %v8132_v38 = vadd.f32 %v8116_v12, %v8104_v60  ;;  %v23133_v33 = vmax.f32 %v20789_v46, 0.0 }
 0x4c4   :  { %v8103_v61 = vadd.f32 %v8087_v54, %v20771_v42  ;;  %v8130_v20 = vadd.f32 %v8116_v12, %v8102_v0  ;;  %v23134_v25 = vmax.f32 %v20787_v9, 0.0  ;;  %v23135_v35 = vmax.f32 %v20791_v63, 0.0 }
 0x4c5   :  { %v20837_v22 = vpack.i.bf16 %v8145_v10, %v23133_v33  ;;  %v8133_v62 = vadd.f32 %v8116_v12, %v8105_v26  ;;  %v8148_v16 = vmax.f32 %v8132_v38, 0.0  ;;  %v23136_v4 = vmov %v23133_v33  ;;  %v11263_v33 = vld [vmem:[%s22509_s2 + $0x2b8] sm:$0xff] }
 0x4c6   :  { %v8131_v36 = vadd.f32 %v8116_v12, %v8103_v61  ;;  %v8146_v3 = vmax.f32 %v8130_v20, 0.0  ;;  %16511 = vrot.lane.b32.xlu1 %v20827_v56, %s16949_s16  ;;  %v20845_v42 = vpack.i.bf16 %v8142_v37, %v23134_v25  ;;  %v20849_v24 = vpack.i.bf16 %v8143_v5, %v23135_v35 }
 0x4c7   :  { %16531 = vrot.lane.b32.xlu0 %v20837_v22, %s16950_s29  ;;  %v8149_v55 = vmax.f32 %v8133_v62, 0.0  ;;  %v20853_v12 = vpack.i.bf16 %v8148_v16, %v8140_v59  ;;  %v20873_v53 = vpack.c.bf16 %v8145_v10, %v23136_v4  ;;  %v23137_v44 = vmov %v23135_v35 }
 0x4c8   :  { %v8147_v2 = vmax.f32 %v8131_v36, 0.0  ;;  %v16650_v49 = vpack.i.bf16 %v8146_v3, %v8138_v28  ;;  %v20877_v45 = vpack.c.bf16 %v8143_v5, %v23137_v44  ;;  %v20881_v60 = vpack.c.bf16 %v8144_v13, %v8136_v48 }
 0x4c9   :  { %v20857_v51 = vpack.i.bf16 %v8149_v55, %v8141_v15  ;;  %v23138_v54 = vmov %v23134_v25  ;;  %v20889_v26 = vpack.c.bf16 %v8149_v55, %v8141_v15  ;;  %v20893_v10 = vpack.c.bf16 %v8148_v16, %v8140_v59 }
 0x4ca   :  { %16516 = vrot.lane.b32.xlu1 %v20827_v56, %s16951_s0  ;;  %v20859_v29 = vpack.i.bf16 %v8147_v2, %v8139_v17  ;;  %v20887_v0 = vpack.c.bf16 %v8142_v37, %v23138_v54  ;;  %v20891_v46 = vpack.c.bf16 %v8147_v2, %v8139_v17  ;;  %v20895_v63 = vpack.c.bf16 %v8146_v3, %v8138_v28 }
 0x4cb   :  { %16536 = vrot.lane.b32.xlu0 %v20837_v22, %s16949_s16 }
 0x4cc   :  { %23139 = vst [vmem:[#allocation89_spill] sm:$0xff] %v20895_v63 }
 0x4ce   :  { %16521 = vrot.lane.b32.xlu1 %v20827_v56, %s16952_s30 }
 0x4cf   :  { %16541 = vrot.lane.b32.xlu0 %v20837_v22, %s16951_s0 }
 0x4d2   :  { %16526 = vrot.lane.b32.xlu1 %v20827_v56, %s16953_s4 }
 0x4d3   :  { %16546 = vrot.lane.b32.xlu0 %v20837_v22, %s16952_s30 }
 0x4d6   :  { %16551 = vrot.lane.b32.xlu1 %v20837_v22, %s16953_s4 }
 0x4d7   :  { %16556 = vrot.lane.b32.xlu0 %v20845_v42, %s16950_s29 }
 0x4da   :  { %16576 = vrot.lane.b32.xlu1 %v20845_v42, %s16953_s4 }
 0x4db   :  { %16561 = vrot.lane.b32.xlu0 %v20845_v42, %s16949_s16 }
 0x4de   :  { %16581 = vrot.lane.b32.xlu1 %v20849_v24, %s16950_s29 }
 0x4df   :  { %16566 = vrot.lane.b32.xlu0 %v20845_v42, %s16951_s0 }
 0x4e2   :  { %16586 = vrot.lane.b32.xlu1 %v20853_v12, %s16950_s29 }
 0x4e3   :  { %16571 = vrot.lane.b32.xlu0 %v20845_v42, %s16952_s30 }
 0x4e6   :  { %16591 = vrot.lane.b32.xlu1 %v20849_v24, %s16949_s16 }
 0x4e7   :  { %16621 = vrot.lane.b32.xlu0 %v20849_v24, %s16953_s4 }
 0x4ea   :  { %16596 = vrot.lane.b32.xlu1 %v20853_v12, %s16949_s16 }
 0x4eb   :  { %16626 = vrot.lane.b32.xlu0 %v20857_v51, %s16950_s29 }
 0x4ee   :  { %16601 = vrot.lane.b32.xlu1 %v20849_v24, %s16951_s0 }
 0x4ef   :  { %16631 = vrot.lane.b32.xlu0 %v20857_v51, %s16949_s16 }
 0x4f2   :  { %16606 = vrot.lane.b32.xlu1 %v20853_v12, %s16951_s0 }
 0x4f3   :  { %16636 = vrot.lane.b32.xlu0 %v20857_v51, %s16951_s0 }
 0x4f6   :  { %16611 = vrot.lane.b32.xlu1 %v20849_v24, %s16952_s30 }
 0x4f7   :  { %16641 = vrot.lane.b32.xlu0 %v20857_v51, %s16952_s30 }
 0x4fa   :  { %16616 = vrot.lane.b32.xlu1 %v20853_v12, %s16952_s30 }
 0x4fb   :  { %16646 = vrot.lane.b32.xlu0 %v20857_v51, %s16953_s4 }
 0x4fe   :  { %16676 = vrot.lane.b32.xlu1 %v20859_v29, %s16950_s29 }
 0x4ff   :  { %16651 = vrot.lane.b32.xlu0 %v16650_v49, %s16950_s29 }
 0x502   :  { %16681 = vrot.lane.b32.xlu1 %v20853_v12, %s16953_s4 }
 0x503   :  { %16656 = vrot.lane.b32.xlu0 %v16650_v49, %s16949_s16 }
 0x506   :  { %16686 = vrot.lane.b32.xlu1 %v20859_v29, %s16949_s16 }
 0x507   :  { %16661 = vrot.lane.b32.xlu0 %v16650_v49, %s16951_s0 }
 0x50a   :  { %16691 = vrot.lane.b32.xlu1 %v20837_v22, %s16954_s5 }
 0x50b   :  { %16666 = vrot.lane.b32.xlu0 %v16650_v49, %s16952_s30 }
 0x50e   :  { %16701 = vrot.lane.b32.xlu1 %v20859_v29, %s16951_s0 }
 0x50f   :  { %16671 = vrot.lane.b32.xlu0 %v16650_v49, %s16953_s4 }
 0x512   :  { %16706 = vrot.lane.b32.xlu1 %v20827_v56, %s16954_s5 }
 0x513   :  { %16696 = vrot.lane.b32.xlu0 %v16650_v49, %s16954_s5 }
 0x516   :  { %16716 = vrot.lane.b32.xlu1 %v20859_v29, %s16952_s30 }
 0x517   :  { %16711 = vrot.lane.b32.xlu0 %v20849_v24, %s16954_s5 }
 0x51a   :  { %16721 = vrot.lane.b32.xlu1 %v20845_v42, %s16954_s5 }
 0x51b   :  { %16726 = vrot.lane.b32.xlu0 %v20857_v51, %s16954_s5 }
 0x51e   :  { %16731 = vrot.lane.b32.xlu1 %v20853_v12, %s16954_s5 }
 0x51f   :  { %16741 = vrot.lane.b32.xlu0 %v16650_v49, %s16955_s6 }
 0x522   :  { %16736 = vrot.lane.b32.xlu1 %v20837_v22, %s16955_s6 }
 0x523   :  { %16751 = vrot.lane.b32.xlu0 %v20849_v24, %s16955_s6 }
 0x526   :  { %16746 = vrot.lane.b32.xlu1 %v20827_v56, %s16955_s6 }
 0x527   :  { %16761 = vrot.lane.b32.xlu0 %v20859_v29, %s16953_s4 }
 0x52a   :  { %16756 = vrot.lane.b32.xlu1 %v20845_v42, %s16955_s6 }
 0x52b   :  { %16766 = vrot.lane.b32.xlu0 %v20857_v51, %s16955_s6 }
 0x52e   :  { %16771 = vrot.lane.b32.xlu1 %v20853_v12, %s16955_s6 }
 0x52f   :  { %16781 = vrot.lane.b32.xlu0 %v20859_v29, %s16954_s5 }
 0x532   :  { %16776 = vrot.lane.b32.xlu1 %v20837_v22, %s16956_s7 }
 0x533   :  { %16786 = vrot.lane.b32.xlu0 %v16650_v49, %s16956_s7 }
 0x534   :  { %v16507_v34 = vpop.permute.xlu1 %16506 }
 0x535   :  { %v16509_v9 = vunpack.i.h.bf16 %v16507_v34  ;;  %v16508_v48 = vunpack.i.l.bf16 %v16507_v34 }
 0x536   :  { %16791 = vrot.lane.b32.xlu1 %v20827_v56, %s16956_s7 }
 0x537   :  { %16796 = vrot.lane.b32.xlu0 %v20859_v29, %s16955_s6 }
 0x538   :  { %v20989_v5 = vpop.permute.xlu1 %16511 }
 0x539   :  { %v20985_v59 = vpop.permute.xlu0 %16531 }
 0x53a   :  { %v22729_v13 = vunpack.i.h.bf16 %v20985_v59  ;;  %v22728_v37 = vunpack.i.l.bf16 %v20985_v59  ;;  %16806 = vrot.lane.b32.xlu1 %v20845_v42, %s16956_s7  ;;  %v23150_v40 = vunpack.i.h.bf16 %v20985_v59 }
 0x53b   :  { %16801 = vrot.lane.b32.xlu0 %v20849_v24, %s16956_s7 }
 0x53c   :  { %v8191_v28 = vsel %vm60_vm2, %v16508_v48, %v22728_v37  ;;  %v8192_v56 = vsel %vm60_vm2, %v16509_v9, %v22729_v13  ;;  %v21005_v38 = vpop.permute.xlu1 %16516 }
 0x53d   :  { %v21003_v15 = vpop.permute.xlu0 %16536  ;;  %v15329_v17 = vpack.c.bf16 %v8192_v56, %v8191_v28  ;;  %v23142_v32 = vunpack.i.h.bf16 %v21005_v38 }
 0x53e   :  { %16816 = vrot.lane.b32.xlu1 %v20853_v12, %s16956_s7  ;;  %v22733_v13 = vunpack.i.l.bf16 %v21003_v15 }
 0x53f   :  { %15330 = vmatprep.subr.bf16.mxu1 %v15329_v17  ;;  %16811 = vrot.lane.b32.xlu0 %v20857_v51, %s16956_s7 }
 0x540   :  { %v21016_v22 = vpop.permute.xlu1 %16521 }
 0x541   :  { %v21011_v61 = vpop.permute.xlu0 %16541  ;;  %v23145_v50 = vunpack.i.l.bf16 %v21016_v22  ;;  %v23147_v39 = vunpack.i.h.bf16 %v21016_v22 }
 0x542   :  { %11266 = vperm.xlu1 %15864, %v11263_v33  }
 0x543   :  { %16821 = vrot.lane.b32.xlu0 %v20859_v29, %s16956_s7 }
 0x544   :  { %v21022_v62 = vpop.permute.xlu1 %16526 }
 0x545   :  { %v21020_v20 = vpop.permute.xlu0 %16546 }
 0x546   :  { %v23144_v27 = vunpack.i.l.bf16 %v21020_v20 }
 0x548   :  { %v21024_v36 = vpop.permute.xlu1 %16551 }
 0x549   :  { %v16557_v16 = vpop.permute.xlu0 %16556 }
 0x54a   :  { %v16559_v42 = vunpack.i.h.bf16 %v16557_v16  ;;  %v16558_v35 = vunpack.i.l.bf16 %v16557_v16 }
 0x54c   :  { %v21028_v55 = vpop.permute.xlu1 %16576 }
 0x54d   :  { %v21026_v3 = vpop.permute.xlu0 %16561 }
 0x54e   :  { %v16564_v23 = vunpack.i.h.bf16 %v21026_v3 }
 0x550   :  { %v16582_v25 = vpop.permute.xlu1 %16581 }
 0x551   :  { %v21030_v2 = vpop.permute.xlu0 %16566  ;;  %v16584_v24 = vunpack.i.h.bf16 %v16582_v25  ;;  %v16583_v12 = vunpack.i.l.bf16 %v16582_v25 }
 0x553   :  { %v8194_v51 = vsel %vm60_vm2, %v16584_v24, %v16509_v9  ;;  %v8193_v49 = vsel %vm60_vm2, %v16583_v12, %v16508_v48  ;;  %v8195_v4 = vsel %vm60_vm2, %v16558_v35, %v16583_v12  ;;  %v8196_v44 = vsel %vm60_vm2, %v16559_v42, %v16584_v24  ;;  %v21047_v9 = vld [vmem:[%s22509_s2 + $0x1b0] sm:$0xff] }
 0x554   :  { %v21042_v54 = vpop.permute.xlu1 %16586  ;;  %v15325_v34 = vpack.c.bf16 %v8196_v44, %v8195_v4  ;;  %v15331_v28 = vpack.c.bf16 %v8194_v51, %v8193_v49 }
 0x555   :  { %v21036_v29 = vpop.permute.xlu0 %16571  ;;  %v22730_v33 = vunpack.i.h.bf16 %v21042_v54  ;;  %v22731_v16 = vunpack.i.l.bf16 %v21042_v54  ;;  %v23153_v41 = vunpack.i.h.bf16 %v21042_v54 }
 0x556   :  { %15326 = vmatprep.subr.bf16.mxu0 %v15325_v34  ;;  %15332 = vmatpush1.bf16.msra.mxu1 %v15331_v28 }
 0x558   :  { %v21051_v56 = vpop.permute.xlu1 %16591 }
 0x559   :  { %v21049_v48 = vpop.permute.xlu0 %16621  ;;  %14906 = vmatmul.mubr.msk.f32.vlgmr.msra.gmra.mrb[88].mxu1 %vm8199_vm10, %v21047_v9  ;;  %v16594_v57 = vunpack.i.h.bf16 %v21051_v56  ;;  %v16593_v31 = vunpack.i.l.bf16 %v21051_v56  ;;  %v23149_v56 = vunpack.i.l.bf16 %v21022_v62 }
 0x55a   :  { %8480 = vmatprep.mubr.f32.mxu1 %v22800_v1 }
 0x55c   :  { %v21058_v12 = vpop.permute.xlu1 %16596 }
 0x55d   :  { %v16627_v17 = vpop.permute.xlu0 %16626  ;;  %v16599_v6 = vunpack.i.h.bf16 %v21058_v12  ;;  %v16598_v19 = vunpack.i.l.bf16 %v21058_v12  ;;  %v8549_v12 = vsel %vm129_vm0, %v16564_v23, %v16594_v57 }
 0x55e   :  { %v16629_v25 = vunpack.i.h.bf16 %v16627_v17  ;;  %v16628_v24 = vunpack.i.l.bf16 %v16627_v17 }
 0x560   :  { %v8198_v51 = vsel %vm60_vm2, %v16629_v25, %v16559_v42  ;;  %v8197_v49 = vsel %vm60_vm2, %v16628_v24, %v16558_v35  ;;  %v8183_v4 = vsel %vm60_vm2, %v22731_v16, %v16628_v24  ;;  %v8184_v44 = vsel %vm60_vm2, %v22730_v33, %v16629_v25  ;;  %v21074_v37 = vpop.permute.xlu1 %16601 }
 0x561   :  { %v21072_v34 = vpop.permute.xlu0 %16631  ;;  %v15327_v28 = vpack.c.bf16 %v8198_v51, %v8197_v49  ;;  %v15337_v17 = vpack.c.bf16 %v8184_v44, %v8183_v4  ;;  %v16513_v35 = vunpack.i.l.bf16 %v20989_v5  ;;  %v16514_v25 = vunpack.i.h.bf16 %v20989_v5 }
 0x562   :  { %v22736_v51 = vunpack.i.h.bf16 %v21003_v15  ;;  %v22739_v4 = vunpack.i.l.bf16 %v21011_v61  ;;  %v23141_v49 = vunpack.i.h.bf16 %v21011_v61 }
 0x563   :  { %15328 = vmatpush1.bf16.msra.mxu0 %v15327_v28  ;;  %15338 = vmatprep.subr.bf16.mxu1 %v15337_v17  ;;  %v21099_v5 = vsel %vm129_vm0, %v16513_v35, %v22733_v13  ;;  %v23140_v28 = vunpack.i.l.bf16 %v21005_v38 }
 0x564   :  { %v21080_v24 = vpop.permute.xlu1 %16606  ;;  %v8545_v44 = vsel %vm129_vm0, %v16514_v25, %v22736_v51  ;;  %v21124_v51 = vsel %vm935_vm3, %v23142_v32, %v23141_v49  ;;  %v23143_v32 = vunpack.i.h.bf16 %v21024_v36 }
 0x565   :  { %v21076_v42 = vpop.permute.xlu0 %16636  ;;  %v21113_v18 = vsel %vm935_vm3, %v23140_v28, %v22739_v4  ;;  %v22743_v4 = vunpack.i.h.bf16 %v21022_v62  ;;  %v15345_v16 = vpack.c.bf16 %v8545_v44, %v21099_v5  ;;  %v21152_v44 = vsel %vm1404_vm4, %v23145_v50, %v23144_v27 }
 0x566   :  { %14905 = vmatmul.mubr.msk.f32.vlgmr.msra.gmra.mrb[88].mxu0 %vm8199_vm10, %v21047_v9  ;;  %v23146_v5 = vunpack.i.h.bf16 %v21020_v20  ;;  %v16563_v27 = vunpack.i.l.bf16 %v21026_v3  ;;  %v8547_v50 = vsel %vm129_vm0, %v16594_v57, %v16514_v25  ;;  %v23151_v25 = vunpack.i.l.bf16 %v20985_v59 }
 0x567   :  { %8409 = vmatprep.mubr.f32.mxu0 %v22800_v1  ;;  %v21143_v49 = vsel %vm2277_vm5, %v22743_v4, %v23143_v32  ;;  %v23148_v32 = vunpack.i.l.bf16 %v21024_v36  ;;  %v8546_v57 = vsel %vm129_vm0, %v16593_v31, %v16513_v35  ;;  %v16569_v35 = vunpack.i.h.bf16 %v21030_v2 }
 0x568   :  { %v21093_v33 = vpop.permute.xlu1 %16611  ;;  %v21160_v30 = vsel %vm1404_vm4, %v23147_v39, %v23146_v5  ;;  %v16634_v39 = vunpack.i.h.bf16 %v21072_v34 }
 0x569   :  { %v21091_v17 = vpop.permute.xlu0 %16641  ;;  %v21168_v4 = vsel %vm2277_vm5, %v23149_v56, %v23148_v32  ;;  %v16633_v32 = vunpack.i.l.bf16 %v21072_v34  ;;  %v23152_v34 = vunpack.i.l.bf16 %v21042_v54 }
 0x56a   :  { %v8551_v7 = vsel %vm129_vm0, %v16634_v39, %v16564_v23 }
 0x56c   :  { %v21131_v13 = vpop.permute.xlu1 %16616 }
 0x56d   :  { %v21128_v28 = vpop.permute.xlu0 %16646 }
 0x570   :  { %v16677_v14 = vpop.permute.xlu1 %16676 }
 0x571   :  { %v16652_v47 = vpop.permute.xlu0 %16651  ;;  %v16679_v56 = vunpack.i.h.bf16 %v16677_v14  ;;  %v16678_v21 = vunpack.i.l.bf16 %v16677_v14 }
 0x572   :  { %v16654_v5 = vunpack.i.h.bf16 %v16652_v47  ;;  %v16653_v58 = vunpack.i.l.bf16 %v16652_v47  ;;  %v8548_v47 = vsel %vm129_vm0, %v16563_v27, %v16593_v31  ;;  %v16603_v31 = vunpack.i.l.bf16 %v21074_v37 }
 0x573   :  { %v8185_v14 = vsel %vm60_vm2, %v16678_v21, %v23152_v34  ;;  %v15341_v23 = vpack.c.bf16 %v8549_v12, %v8548_v47 }
 0x574   :  { %v8190_v3 = vsel %vm60_vm2, %v23150_v40, %v16654_v5  ;;  %v8189_v43 = vsel %vm60_vm2, %v23151_v25, %v16653_v58  ;;  %v8186_v40 = vsel %vm60_vm2, %v16679_v56, %v23153_v41  ;;  %v8187_v25 = vsel %vm60_vm2, %v16653_v58, %v16678_v21  ;;  %v21206_v8 = vpop.permute.xlu1 %16681 }
 0x575   :  { %v16657_v59 = vpop.permute.xlu0 %16656  ;;  %v8188_v52 = vsel %vm60_vm2, %v16654_v5, %v16679_v56  ;;  %v15339_v54 = vpack.c.bf16 %v8186_v40, %v8185_v14  ;;  %v8550_v41 = vsel %vm129_vm0, %v16633_v32, %v16563_v27  ;;  %v15335_v63 = vpack.c.bf16 %v8190_v3, %v8189_v43 }
 0x576   :  { %v15333_v34 = vpack.c.bf16 %v8188_v52, %v8187_v25  ;;  %v8536_v21 = vsel %vm129_vm0, %v16598_v19, %v16633_v32  ;;  %v8537_v58 = vsel %vm129_vm0, %v16599_v6, %v16634_v39  ;;  %v16604_v5 = vunpack.i.h.bf16 %v21074_v37 }
 0x577   :  { %15340 = vmatpush1.bf16.msra.mxu1 %v15339_v54  ;;  %v15377_v52 = vpack.c.bf16 %v21160_v30, %v21152_v44  ;;  %v16568_v43 = vunpack.i.l.bf16 %v21030_v2  ;;  %v16659_v27 = vunpack.i.h.bf16 %v16657_v59  ;;  %v15411_v39 = vpack.c.bf16 %v21143_v49, %v21168_v4 }
 0x578   :  { %15334 = vmatprep.subr.bf16.mxu0 %v15333_v34  ;;  %15346 = vmatprep.subr.bf16.mxu1 %v15345_v16  ;;  %v16658_v32 = vunpack.i.l.bf16 %v16657_v59  ;;  %v16687_v37 = vpop.permute.xlu1 %16686  ;;  %v15347_v3 = vpack.c.bf16 %v8547_v50, %v8546_v57  ;;  %v15343_v47 = vpack.c.bf16 %v8551_v7, %v8550_v41  ;;  %v15353_v12 = vpack.c.bf16 %v8537_v58, %v8536_v21  ;;  %v21238_v7 = vld [vmem:[%s22509_s2 + $0x1b8] sm:$0xff] }
 0x579   :  { %v21220_v56 = vpop.permute.xlu0 %16661  ;;  %15336 = vmatpush1.bf16.msra.mxu0 %v15335_v63  ;;  %v16609_v14 = vunpack.i.h.bf16 %v21080_v24  ;;  %v16608_v40 = vunpack.i.l.bf16 %v21080_v24  ;;  %v16689_v25 = vunpack.i.h.bf16 %v16687_v37  ;;  %v16688_v2 = vunpack.i.l.bf16 %v16687_v37 }
 0x57a   :  { %15342 = vmatprep.subr.bf16.mxu0 %v15341_v23  ;;  %14908 = vmatmul.mubr.msk.f32.vlgmr.msra.gmra.mrb[90].mxu1 %vm8199_vm10, %v21047_v9  ;;  %v23154_v63 = vunpack.i.h.bf16 %v21005_v38  ;;  %v16639_v59 = vunpack.i.h.bf16 %v21076_v42  ;;  %v8900_v50 = vsel %vm935_vm3, %v16568_v43, %v16603_v31  ;;  %v8901_v57 = vsel %vm935_vm3, %v16569_v35, %v16604_v5 }
 0x57b   :  { %15348 = vmatpush1.bf16.msra.mxu1 %v15347_v3  ;;  %v16638_v34 = vunpack.i.l.bf16 %v21076_v42  ;;  %v23155_v54 = vunpack.i.h.bf16 %v21003_v15  ;;  %v8539_v21 = vsel %vm129_vm0, %v16689_v25, %v16599_v6  ;;  %v23156_v23 = vunpack.i.l.bf16 %v21003_v15  ;;  %8690 = vmatprep.mubr.f32.mxu1 %v22800_v1 }
 0x57c   :  { %v8899_v16 = vsel %vm935_vm3, %v16604_v5, %v23154_v63  ;;  %14907 = vmatmul.mubr.msk.f32.vlgmr.msra.gmra.mrb[90].mxu0 %vm8199_vm10, %v21047_v9  ;;  %v8538_v9 = vsel %vm129_vm0, %v16688_v2, %v16598_v19  ;;  %15354 = vmatprep.subr.bf16.mxu1 %v15353_v12  ;;  %v21259_v37 = vpop.permute.xlu1 %16691  ;;  %v8540_v19 = vsel %vm129_vm0, %v16658_v32, %v16688_v2  ;;  %v23157_v6 = vunpack.i.l.bf16 %v21005_v38 }
 0x57d   :  { %v8543_v41 = vsel %vm129_vm0, %v23155_v54, %v16659_v27  ;;  %v21253_v58 = vpop.permute.xlu0 %16666  ;;  %15344 = vmatpush1.bf16.msra.mxu0 %v15343_v47  ;;  %v8542_v42 = vsel %vm129_vm0, %v23156_v23, %v16658_v32  ;;  %v15355_v5 = vpack.c.bf16 %v8539_v21, %v8538_v9  ;;  %8619 = vmatprep.mubr.f32.mxu0 %v22800_v1  ;;  %v16574_v38 = vunpack.i.h.bf16 %v21036_v29 }
 0x57e   :  { %v8898_v3 = vsel %vm935_vm3, %v16603_v31, %v23157_v6  ;;  %14910 = vmatmul.mubr.msk.f32.vlgmr.msra.gmra.mrb[92].mxu1 %vm8199_vm10, %v21238_v7  ;;  %v8541_v15 = vsel %vm129_vm0, %v16659_v27, %v16689_v25  ;;  %v8888_v47 = vsel %vm935_vm3, %v16608_v40, %v16638_v34  ;;  %v8889_v32 = vsel %vm935_vm3, %v16609_v14, %v16639_v59 }
 0x57f   :  { %v16644_v31 = vunpack.i.h.bf16 %v21091_v17  ;;  %v15349_v12 = vpack.c.bf16 %v8541_v15, %v8540_v19  ;;  %15356 = vmatpush1.bf16.msra.mxu1 %v15355_v5  ;;  %v15357_v27 = vpack.c.bf16 %v8901_v57, %v8900_v50  ;;  %v16573_v25 = vunpack.i.l.bf16 %v21036_v29  ;;  %8832 = vmatprep.mubr.f32.mxu1 %v22800_v1 }
 0x580   :  { %14909 = vmatmul.mubr.msk.f32.vlgmr.msra.gmra.mrb[92].mxu0 %vm8199_vm10, %v21238_v7  ;;  %v8903_v2 = vsel %vm935_vm3, %v16639_v59, %v16569_v35  ;;  %v8902_v63 = vsel %vm935_vm3, %v16638_v34, %v16568_v43  ;;  %v15351_v9 = vpack.c.bf16 %v8543_v41, %v8542_v42  ;;  %v23158_v21 = vpack.c.bf16 %v21124_v51, %v21113_v18  ;;  %v16702_v29 = vpop.permute.xlu1 %16701 }
 0x581   :  { %v21290_v54 = vpop.permute.xlu0 %16671  ;;  %v16664_v23 = vunpack.i.h.bf16 %v21220_v56  ;;  %v16663_v50 = vunpack.i.l.bf16 %v21220_v56  ;;  %15350 = vmatprep.subr.bf16.mxu0 %v15349_v12  ;;  %8761 = vmatprep.mubr.f32.mxu0 %v22800_v1  ;;  %v15363_v35 = vpack.c.bf16 %v8899_v16, %v8898_v3  ;;  %v15369_v59 = vpack.c.bf16 %v8889_v32, %v8888_v47 }
 0x582   :  { %15362 = vmatprep.subr.bf16.mxu1 %v23158_v21  ;;  %v16614_v43 = vunpack.i.h.bf16 %v21093_v33  ;;  %v16613_v57 = vunpack.i.l.bf16 %v21093_v33  ;;  %15352 = vmatpush1.bf16.msra.mxu0 %v15351_v9  ;;  %v16704_v34 = vunpack.i.h.bf16 %v16702_v29  ;;  %v16703_v18 = vunpack.i.l.bf16 %v16702_v29 }
 0x583   :  { %14912 = vmatmul.mubr.msk.f32.vlgmr.msra.gmra.mrb[94].mxu1 %vm8199_vm10, %v21238_v7  ;;  %v21305_v51 = vsel %vm1404_vm4, %v16644_v31, %v16574_v38  ;;  %v16643_v56 = vunpack.i.l.bf16 %v21091_v17  ;;  %v16619_v41 = vunpack.i.h.bf16 %v21131_v13  ;;  %15358 = vmatprep.subr.bf16.mxu0 %v15357_v27  ;;  %v15359_v16 = vpack.c.bf16 %v8903_v2, %v8902_v63  ;;  %v8855_v17 = vld [vmem:[%s22509_s2 + $0x1c0] sm:$0xff] }
 0x584   :  { %15364 = vmatpush1.bf16.msra.mxu1 %v15363_v35  ;;  %v16618_v42 = vunpack.i.l.bf16 %v21131_v13  ;;  %v8890_v33 = vsel %vm935_vm3, %v16703_v18, %v16608_v40  ;;  %v8891_v5 = vsel %vm935_vm3, %v16704_v34, %v16609_v14  ;;  %9042 = vmatprep.mubr.f32.mxu1 %v22800_v1  ;;  %v8892_v13 = vsel %vm935_vm3, %v16663_v50, %v16703_v18  ;;  %v21336_v15 = vpop.permute.xlu1 %16706 }
 0x585   :  { %v21318_v19 = vpop.permute.xlu0 %16696  ;;  %15370 = vmatprep.subr.bf16.mxu1 %v15369_v59  ;;  %v23159_v6 = vunpack.i.h.bf16 %v21011_v61  ;;  %v23160_v40 = vunpack.i.l.bf16 %v21011_v61  ;;  %v15371_v3 = vpack.c.bf16 %v8891_v5, %v8890_v33  ;;  %14911 = vmatmul.mubr.msk.f32.vlgmr.msra.gmra.mrb[94].mxu0 %vm8199_vm10, %v21238_v7  ;;  %v8893_v47 = vsel %vm935_vm3, %v16664_v23, %v16704_v34 }
 0x586   :  { %15360 = vmatpush1.bf16.msra.mxu0 %v15359_v16  ;;  %8971 = vmatprep.mubr.f32.mxu0 %v22800_v1  ;;  %v15365_v32 = vpack.c.bf16 %v8893_v47, %v8892_v13  ;;  %v9252_v12 = vsel %vm1404_vm4, %v16573_v25, %v16613_v57  ;;  %v9253_v61 = vsel %vm1404_vm4, %v16574_v38, %v16614_v43  ;;  %v23161_v7 = vunpack.i.h.bf16 %v21016_v22 }
 0x587   :  { %v8895_v24 = vsel %vm935_vm3, %v23159_v6, %v16664_v23  ;;  %v8894_v14 = vsel %vm935_vm3, %v23160_v40, %v16663_v50  ;;  %v9254_v27 = vsel %vm1404_vm4, %v16643_v56, %v16573_v25  ;;  %v23162_v63 = vunpack.i.l.bf16 %v21016_v22  ;;  %14914 = vmatmul.mubr.msk.f32.vlgmr.msra.gmra.mrb[96].mxu1 %vm8199_vm10, %v8855_v17 }
 0x588   :  { %v9251_v2 = vsel %vm1404_vm4, %v16614_v43, %v23161_v7  ;;  %v16669_v21 = vunpack.i.h.bf16 %v21253_v58  ;;  %v16579_v23 = vunpack.i.h.bf16 %v21028_v55  ;;  %v15367_v38 = vpack.c.bf16 %v8895_v24, %v8894_v14  ;;  %15366 = vmatprep.subr.bf16.mxu0 %v15365_v32  ;;  %15372 = vmatpush1.bf16.msra.mxu1 %v15371_v3  ;;  %v16717_v43 = vpop.permute.xlu1 %16716  ;;  %v9207_v14 = vld [vmem:[%s22509_s2 + $0x1c8] sm:$0xff] }
 0x589   :  { %v9250_v9 = vsel %vm1404_vm4, %v16613_v57, %v23162_v63  ;;  %v21358_v50 = vpop.permute.xlu0 %16711  ;;  %v9240_v25 = vsel %vm1404_vm4, %v16618_v42, %v16643_v56  ;;  %v9241_v22 = vsel %vm1404_vm4, %v16619_v41, %v16644_v31  ;;  %v16624_v29 = vunpack.i.h.bf16 %v21049_v48  ;;  %14913 = vmatmul.mubr.msk.f32.vlgmr.msra.gmra.mrb[96].mxu0 %vm8199_vm10, %v8855_v17  ;;  %15378 = vmatprep.subr.bf16.mxu1 %v15377_v52 }
 0x58a   :  { %v16623_v35 = vunpack.i.l.bf16 %v21049_v48  ;;  %v16668_v59 = vunpack.i.l.bf16 %v21253_v58  ;;  %v15373_v57 = vpack.c.bf16 %v9253_v61, %v9252_v12  ;;  %v16649_v34 = vunpack.i.h.bf16 %v21128_v28  ;;  %15368 = vmatpush1.bf16.msra.mxu0 %v15367_v38  ;;  %9184 = vmatprep.mubr.f32.mxu1 %v22800_v1 }
 0x58b   :  { %v16719_v18 = vunpack.i.h.bf16 %v16717_v43  ;;  %v16718_v56 = vunpack.i.l.bf16 %v16717_v43  ;;  %v15379_v31 = vpack.c.bf16 %v9251_v2, %v9250_v9  ;;  %v16648_v48 = vunpack.i.l.bf16 %v21128_v28  ;;  %9113 = vmatprep.mubr.f32.mxu0 %v22800_v1  ;;  %14916 = vmatmul.mubr.msk.f32.vlgmr.msra.gmra.mrb[98].mxu1 %vm8199_vm10, %v8855_v17 }
 0x58c   :  { %v23163_v58 = vunpack.i.h.bf16 %v21020_v20  ;;  %15374 = vmatprep.subr.bf16.mxu0 %v15373_v57  ;;  %v15375_v30 = vpack.c.bf16 %v21305_v51, %v9254_v27  ;;  %v15385_v44 = vpack.c.bf16 %v9241_v22, %v9240_v25  ;;  %v16578_v24 = vunpack.i.l.bf16 %v21028_v55  ;;  %9394 = vmatprep.mubr.f32.mxu1 %v22800_v1 }
 0x58d   :  { %v9242_v52 = vsel %vm1404_vm4, %v16718_v56, %v16618_v42  ;;  %v9243_v33 = vsel %vm1404_vm4, %v16719_v18, %v16619_v41  ;;  %v21384_v5 = vpop.permute.xlu0 %16726  ;;  %v9244_v13 = vsel %vm1404_vm4, %v16668_v59, %v16718_v56  ;;  %v9245_v6 = vsel %vm1404_vm4, %v16669_v21, %v16719_v18  ;;  %14915 = vmatmul.mubr.msk.f32.vlgmr.msra.gmra.mrb[98].mxu0 %vm8199_vm10, %v8855_v17  ;;  %v21397_v41 = vpop.permute.xlu1 %16721 }
 0x58e   :  { %v9247_v16 = vsel %vm1404_vm4, %v23163_v58, %v16669_v21  ;;  %v23164_v51 = vunpack.i.l.bf16 %v21020_v20  ;;  %v15387_v40 = vpack.c.bf16 %v9243_v33, %v9242_v52  ;;  %15380 = vmatpush1.bf16.msra.mxu1 %v15379_v31  ;;  %v15381_v3 = vpack.c.bf16 %v9245_v6, %v9244_v13  ;;  %15376 = vmatpush1.bf16.msra.mxu0 %v15375_v30 }
 0x58f   :  { %v21404_v47 = vsel %vm2277_vm5, %v16579_v23, %v16624_v29  ;;  %15386 = vmatprep.subr.bf16.mxu1 %v15385_v44  ;;  %v23165_v20 = vunpack.i.l.bf16 %v21022_v62  ;;  %v23166_v17 = vunpack.i.h.bf16 %v21022_v62  ;;  %v21420_v12 = vsel %vm2277_vm5, %v16578_v24, %v16623_v35  ;;  %9323 = vmatprep.mubr.f32.mxu0 %v22800_v1 }
 0x590   :  { %v9246_v42 = vsel %vm1404_vm4, %v23164_v51, %v16668_v59  ;;  %v21426_v61 = vsel %vm2277_vm5, %v16648_v48, %v16578_v24  ;;  %v21432_v62 = vsel %vm2277_vm5, %v16649_v34, %v16579_v23  ;;  %v16684_v27 = vunpack.i.h.bf16 %v21206_v8  ;;  %15382 = vmatprep.subr.bf16.mxu0 %v15381_v3 }
 0x591   :  { %v21410_v55 = vsel %vm2277_vm5, %v16623_v35, %v23165_v20  ;;  %v21416_v32 = vsel %vm2277_vm5, %v16624_v29, %v23166_v17  ;;  %v16683_v7 = vunpack.i.l.bf16 %v21206_v8  ;;  %v15383_v2 = vpack.c.bf16 %v9247_v16, %v9246_v42  ;;  %v21437_v9 = vpop.permute.xlu0 %16741  ;;  %14918 = vmatmul.mubr.msk.f32.vlgmr.msra.gmra.mrb[100].mxu1 %vm8199_vm10, %v9207_v14  ;;  %14917 = vmatmul.mubr.msk.f32.vlgmr.msra.gmra.mrb[100].mxu0 %vm8199_vm10, %v9207_v14  ;;  %v21444_v23 = vpop.permute.xlu1 %16731 }
 0x592   :  { %v16673_v63 = vunpack.i.l.bf16 %v21290_v54  ;;  %v16674_v21 = vunpack.i.h.bf16 %v21290_v54  ;;  %v16699_v38 = vunpack.i.h.bf16 %v21318_v19  ;;  %v16698_v25 = vunpack.i.l.bf16 %v21318_v19  ;;  %15388 = vmatpush1.bf16.msra.mxu1 %v15387_v40  ;;  %9536 = vmatprep.mubr.f32.mxu1 %v22800_v1  ;;  %v9855_v54 = vld [vmem:[%s22509_s2 + $0x1d8] sm:$0xff] }
 0x593   :  { %v15405_v22 = vpack.c.bf16 %v21416_v32, %v21410_v55  ;;  %v16709_v29 = vunpack.i.h.bf16 %v21336_v15  ;;  %v16708_v35 = vunpack.i.l.bf16 %v21336_v15  ;;  %15384 = vmatpush1.bf16.msra.mxu0 %v15383_v2  ;;  %15394 = vmatprep.subr.bf16.mxu1 %v20873_v53  ;;  %v15407_v59 = vpack.c.bf16 %v21404_v47, %v21420_v12  ;;  %v23169_v32 = vld [vmem:[#allocation89_spill] sm:$0xff] }
 0x594   :  { %v15417_v43 = vpack.c.bf16 %v21432_v62, %v21426_v61  ;;  %v16694_v57 = vunpack.i.h.bf16 %v21259_v37  ;;  %v16693_v18 = vunpack.i.l.bf16 %v21259_v37  ;;  %v16714_v56 = vunpack.i.h.bf16 %v21358_v50  ;;  %15390 = vmatprep.subr.bf16.mxu0 %v20877_v45  ;;  %9465 = vmatprep.mubr.f32.mxu0 %v22800_v1 }
 0x595   :  { %v16713_v31 = vunpack.i.l.bf16 %v21358_v50  ;;  %v21465_v53 = vsel %vm2277_vm5, %v16683_v7, %v16648_v48  ;;  %v21473_v37 = vsel %vm2277_vm5, %v16684_v27, %v16649_v34  ;;  %v21475_v15 = vpop.permute.xlu0 %16751  ;;  %14920 = vmatmul.mubr.msk.f32.vlgmr.msra.gmra.mrb[102].mxu1 %vm8199_vm10, %v9207_v14  ;;  %v23167_v45 = vunpack.i.l.bf16 %v21024_v36  ;;  %v21487_v28 = vpop.permute.xlu1 %16736  ;;  %v9559_v34 = vld [vmem:[%s22509_s2 + $0x1d0] sm:$0xff] }
 0x596   :  { %14919 = vmatmul.mubr.msk.f32.vlgmr.msra.gmra.mrb[102].mxu0 %vm8199_vm10, %v9207_v14  ;;  %15396 = vmatpush1.bf16.msra.mxu1 %v20881_v60  ;;  %v23168_v48 = vunpack.i.h.bf16 %v21024_v36  ;;  %v21502_v16 = vsel %vm2746_vm6, %v16693_v18, %v16698_v25  ;;  %v21508_v60 = vsel %vm2746_vm6, %v16694_v57, %v16699_v38  ;;  %v21512_v30 = vsel %vm2746_vm6, %v16708_v35, %v16693_v18 }
 0x597   :  { %v9894_v50 = vsel %vm2277_vm5, %v23167_v45, %v16673_v63  ;;  %v21516_v36 = vsel %vm2746_vm6, %v16709_v29, %v16694_v57  ;;  %v16724_v44 = vunpack.i.h.bf16 %v21397_v41  ;;  %v16723_v52 = vunpack.i.l.bf16 %v21397_v41  ;;  %15392 = vmatpush1.bf16.msra.mxu0 %v20887_v0  ;;  %15402 = vmatprep.subr.bf16.mxu1 %v20889_v26 }
 0x598   :  { %v9895_v58 = vsel %vm2277_vm5, %v23168_v48, %v16674_v21  ;;  %9698 = vmatprep.mubr.f32.mxu1 %v22800_v1  ;;  %15398 = vmatprep.subr.bf16.mxu0 %v20891_v46  ;;  %v15419_v33 = vpack.c.bf16 %v21473_v37, %v21465_v53  ;;  %v21528_v13 = vsel %vm2746_vm6, %v16713_v31, %v16708_v35  ;;  %v16734_v24 = vunpack.i.h.bf16 %v21444_v23 }
 0x599   :  { %v21532_v6 = vsel %vm2746_vm6, %v16714_v56, %v16709_v29  ;;  %v16733_v0 = vunpack.i.l.bf16 %v21444_v23  ;;  %v16762_v26 = vpop.permute.xlu0 %16761  ;;  %9627 = vmatprep.mubr.f32.mxu0 %v22800_v1  ;;  %14922 = vmatmul.mubr.msk.f32.vlgmr.msra.gmra.mrb[104].mxu1 %vm8199_vm10, %v9559_v34  ;;  %v15409_v46 = vpack.c.bf16 %v9895_v58, %v9894_v50  ;;  %v15425_v51 = vpack.c.bf16 %v21508_v60, %v21502_v16  ;;  %v21545_v3 = vpop.permute.xlu1 %16746 }
 0x59a   :  { %v15427_v42 = vpack.c.bf16 %v21516_v36, %v21512_v30  ;;  %v16728_v40 = vunpack.i.l.bf16 %v21384_v5  ;;  %v16764_v41 = vunpack.i.h.bf16 %v16762_v26  ;;  %v16763_v14 = vunpack.i.l.bf16 %v16762_v26  ;;  %14921 = vmatmul.mubr.msk.f32.vlgmr.msra.gmra.mrb[104].mxu0 %vm8199_vm10, %v9559_v34  ;;  %15404 = vmatpush1.bf16.msra.mxu1 %v20893_v10 }
 0x59b   :  { %v16729_v20 = vunpack.i.h.bf16 %v21384_v5  ;;  %v21550_v55 = vsel %vm2746_vm6, %v16723_v52, %v16713_v31  ;;  %v21554_v17 = vsel %vm2746_vm6, %v16724_v44, %v16714_v56  ;;  %15400 = vmatpush1.bf16.msra.mxu0 %v23169_v32  ;;  %15410 = vmatprep.subr.bf16.mxu1 %v15409_v46  ;;  %v15421_v2 = vpack.c.bf16 %v21532_v6, %v21528_v13 }
 0x59c   :  { %v16739_v10 = vunpack.i.h.bf16 %v21487_v28  ;;  %v16738_v29 = vunpack.i.l.bf16 %v21487_v28  ;;  %9840 = vmatprep.mubr.f32.mxu1 %v22800_v1  ;;  %15406 = vmatprep.subr.bf16.mxu0 %v15405_v22  ;;  %v9890_v5 = vsel %vm2277_vm5, %v16763_v14, %v16683_v7  ;;  %v21568_v35 = vsel %vm2746_vm6, %v16728_v40, %v16723_v52 }
 0x59d   :  { %v16744_v57 = vunpack.i.h.bf16 %v21437_v9  ;;  %v21575_v18 = vsel %vm2746_vm6, %v16733_v0, %v16728_v40  ;;  %v21581_v22 = vsel %vm2746_vm6, %v16734_v24, %v16729_v20  ;;  %v21583_v56 = vpop.permute.xlu0 %16766  ;;  %9769 = vmatprep.mubr.f32.mxu0 %v22800_v1  ;;  %14924 = vmatmul.mubr.msk.f32.vlgmr.msra.gmra.mrb[106].mxu1 %vm8199_vm10, %v9559_v34  ;;  %v10255_v7 = vsel %vm2746_vm6, %v16729_v20, %v16724_v44  ;;  %v21602_v28 = vpop.permute.xlu1 %16756 }
 0x59e   :  { %v16743_v31 = vunpack.i.l.bf16 %v21437_v9  ;;  %v9892_v45 = vsel %vm2277_vm5, %v16673_v63, %v16763_v14  ;;  %v9893_v50 = vsel %vm2277_vm5, %v16674_v21, %v16764_v41  ;;  %14923 = vmatmul.mubr.msk.f32.vlgmr.msra.gmra.mrb[106].mxu0 %vm8199_vm10, %v9559_v34  ;;  %15412 = vmatpush1.bf16.msra.mxu1 %v15411_v39  ;;  %v9891_v48 = vsel %vm2277_vm5, %v16764_v41, %v16684_v27 }
 0x59f   :  { %v15423_v63 = vpack.c.bf16 %v21554_v17, %v21550_v55  ;;  %v16749_v21 = vunpack.i.h.bf16 %v21545_v3  ;;  %v16748_v34 = vunpack.i.l.bf16 %v21545_v3  ;;  %15408 = vmatpush1.bf16.msra.mxu0 %v15407_v59  ;;  %15418 = vmatprep.subr.bf16.mxu1 %v15417_v43  ;;  %v15413_v8 = vpack.c.bf16 %v9891_v48, %v9890_v5 }
 0x5a0   :  { %10042 = vmatprep.mubr.f32.mxu1 %v22800_v1  ;;  %9971 = vmatprep.mubr.f32.mxu0 %v22800_v1  ;;  %v15433_v4 = vpack.c.bf16 %v10255_v7, %v21568_v35  ;;  %v21628_v49 = vsel %vm3215_vm7, %v16738_v29, %v16743_v31  ;;  %v21634_v39 = vsel %vm3215_vm7, %v16739_v10, %v16744_v57  ;;  %v16759_v61 = vunpack.i.h.bf16 %v21602_v28 }
 0x5a1   :  { %v15435_v47 = vpack.c.bf16 %v21581_v22, %v21575_v18  ;;  %v15415_v12 = vpack.c.bf16 %v9893_v50, %v9892_v45  ;;  %v16758_v62 = vunpack.i.l.bf16 %v21602_v28  ;;  %15414 = vmatprep.subr.bf16.mxu0 %v15413_v8  ;;  %v16782_v27 = vpop.permute.xlu0 %16781  ;;  %14926 = vmatmul.mubr.msk.f32.vlgmr.msra.gmra.mrb[108].mxu1 %vm8199_vm10, %v9855_v54  ;;  %v16754_v59 = vunpack.i.h.bf16 %v21475_v15  ;;  %v21647_v52 = vpop.permute.xlu1 %16771 }
 0x5a2   :  { %v16753_v43 = vunpack.i.l.bf16 %v21475_v15  ;;  %v16784_v58 = vunpack.i.h.bf16 %v16782_v27  ;;  %v16783_v44 = vunpack.i.l.bf16 %v16782_v27  ;;  %14925 = vmatmul.mubr.msk.f32.vlgmr.msra.gmra.mrb[108].mxu0 %vm8199_vm10, %v9855_v54  ;;  %15420 = vmatpush1.bf16.msra.mxu1 %v15419_v33  ;;  %v21651_v13 = vsel %vm3215_vm7, %v16748_v34, %v16738_v29 }
 0x5a3   :  { %v21655_v6 = vsel %vm3215_vm7, %v16749_v21, %v16739_v10  ;;  %15416 = vmatpush1.bf16.msra.mxu0 %v15415_v12  ;;  %15426 = vmatprep.subr.bf16.mxu1 %v15425_v51  ;;  %v15441_v15 = vpack.c.bf16 %v21634_v39, %v21628_v49  ;;  %v16769_v53 = vunpack.i.h.bf16 %v21583_v56  ;;  %v10603_v16 = vsel %vm3215_vm7, %v16754_v59, %v16749_v21  ;;  %v10559_v39 = vld [vmem:[%s22509_s2 + $0x1e8] sm:$0xff] }
 0x5a4   :  { %10184 = vmatprep.mubr.f32.mxu1 %v22800_v1  ;;  %15422 = vmatprep.subr.bf16.mxu0 %v15421_v2  ;;  %v10242_v37 = vsel %vm2746_vm6, %v16783_v44, %v16733_v0  ;;  %v10602_v33 = vsel %vm3215_vm7, %v16753_v43, %v16748_v34  ;;  %v21674_v60 = vsel %vm3215_vm7, %v16758_v62, %v16753_v43  ;;  %v16774_v46 = vunpack.i.h.bf16 %v21647_v52 }
 0x5a5   :  { %v21678_v26 = vsel %vm3215_vm7, %v16759_v61, %v16754_v59  ;;  %v16773_v51 = vunpack.i.l.bf16 %v21647_v52  ;;  %v21682_v40 = vpop.permute.xlu0 %16786  ;;  %10113 = vmatprep.mubr.f32.mxu0 %v22800_v1  ;;  %14928 = vmatmul.mubr.msk.f32.vlgmr.msra.gmra.mrb[110].mxu1 %vm8199_vm10, %v9855_v54  ;;  %v16768_v0 = vunpack.i.l.bf16 %v21583_v56  ;;  %v10244_v41 = vsel %vm2746_vm6, %v16698_v25, %v16783_v44  ;;  %v16777_v3 = vpop.permute.xlu1 %16776  ;;  %v10207_v25 = vld [vmem:[%s22509_s2 + $0x1e0] sm:$0xff] }
 0x5a6   :  { %v10245_v14 = vsel %vm2746_vm6, %v16699_v38, %v16784_v58  ;;  %14927 = vmatmul.mubr.msk.f32.vlgmr.msra.gmra.mrb[110].mxu0 %vm8199_vm10, %v9855_v54  ;;  %15428 = vmatpush1.bf16.msra.mxu1 %v15427_v42  ;;  %v10243_v20 = vsel %vm2746_vm6, %v16784_v58, %v16734_v24  ;;  %v16779_v19 = vunpack.i.h.bf16 %v16777_v3  ;;  %v16778_v38 = vunpack.i.l.bf16 %v16777_v3 }
 0x5a7   :  { %15424 = vmatpush1.bf16.msra.mxu0 %v15423_v63  ;;  %15434 = vmatprep.subr.bf16.mxu1 %v15433_v4  ;;  %v15429_v55 = vpack.c.bf16 %v10243_v20, %v10242_v37  ;;  %v15437_v17 = vpack.c.bf16 %v10603_v16, %v10602_v33  ;;  %v16789_v32 = vunpack.i.h.bf16 %v21682_v40  ;;  %v16788_v30 = vunpack.i.l.bf16 %v21682_v40 }
 0x5a8   :  { %10394 = vmatprep.mubr.f32.mxu1 %v22800_v1  ;;  %10323 = vmatprep.mubr.f32.mxu0 %v22800_v1  ;;  %v10606_v23 = vsel %vm3215_vm7, %v16768_v0, %v16758_v62  ;;  %v10607_v36 = vsel %vm3215_vm7, %v16769_v53, %v16759_v61  ;;  %v15431_v24 = vpack.c.bf16 %v10245_v14, %v10244_v41 }
 0x5a9   :  { %v10592_v42 = vsel %vm3215_vm7, %v16773_v51, %v16768_v0  ;;  %v10593_v2 = vsel %vm3215_vm7, %v16774_v46, %v16769_v53  ;;  %15430 = vmatprep.subr.bf16.mxu0 %v15429_v55  ;;  %v16797_v10 = vpop.permute.xlu0 %16796  ;;  %14930 = vmatmul.mubr.msk.f32.vlgmr.msra.gmra.mrb[112].mxu1 %vm8199_vm10, %v10207_v25  ;;  %v16792_v35 = vpop.permute.xlu1 %16791  ;;  %v10950_v18 = vsel %vm3684_vm8, %v16778_v38, %v16788_v30 }
 0x5aa   :  { %v16799_v29 = vunpack.i.h.bf16 %v16797_v10  ;;  %v16798_v5 = vunpack.i.l.bf16 %v16797_v10  ;;  %14929 = vmatmul.mubr.msk.f32.vlgmr.msra.gmra.mrb[112].mxu0 %vm8199_vm10, %v10207_v25  ;;  %15436 = vmatpush1.bf16.msra.mxu1 %v15435_v47  ;;  %v10951_v22 = vsel %vm3684_vm8, %v16779_v19, %v16789_v32  ;;  %v15443_v56 = vpack.c.bf16 %v21655_v6, %v21651_v13 }
 0x5ab   :  { %v15439_v7 = vpack.c.bf16 %v21678_v26, %v21674_v60  ;;  %15432 = vmatpush1.bf16.msra.mxu0 %v15431_v24  ;;  %15442 = vmatprep.subr.bf16.mxu1 %v15441_v15  ;;  %v16793_v45 = vunpack.i.l.bf16 %v16792_v35  ;;  %v16794_v48 = vunpack.i.h.bf16 %v16792_v35  ;;  %v15451_v63 = vpack.c.bf16 %v10593_v2, %v10592_v42 }
 0x5ac   :  { %v10596_v50 = vsel %vm3215_vm7, %v16743_v31, %v16798_v5  ;;  %v10597_v28 = vsel %vm3215_vm7, %v16744_v57, %v16799_v29  ;;  %10536 = vmatprep.mubr.f32.mxu1 %v22800_v1  ;;  %15438 = vmatprep.subr.bf16.mxu0 %v15437_v17  ;;  %v10594_v54 = vsel %vm3215_vm7, %v16798_v5, %v16773_v51 }
 0x5ad   :  { %v16802_v21 = vpop.permute.xlu0 %16801  ;;  %10465 = vmatprep.mubr.f32.mxu0 %v22800_v1  ;;  %14932 = vmatmul.mubr.msk.f32.vlgmr.msra.gmra.mrb[114].mxu1 %vm8199_vm10, %v10207_v25  ;;  %v15449_v34 = vpack.c.bf16 %v10607_v36, %v10606_v23  ;;  %v15457_v31 = vpack.c.bf16 %v10951_v22, %v10950_v18  ;;  %v15447_v8 = vpack.c.bf16 %v10597_v28, %v10596_v50  ;;  %v16807_v57 = vpop.permute.xlu1 %16806  ;;  %v23170_v18 = vld [vmem:[#allocation12_spill] sm:$0xff]  ;;  %v23172_v28 = vld [vmem:[#allocation10_spill] sm:$0xff] }
 0x5ae   :  { %v16804_v9 = vunpack.i.h.bf16 %v16802_v21  ;;  %v16803_v4 = vunpack.i.l.bf16 %v16802_v21  ;;  %14931 = vmatmul.mubr.msk.f32.vlgmr.msra.gmra.mrb[114].mxu0 %vm8199_vm10, %v10207_v25  ;;  %15444 = vmatpush1.bf16.msra.mxu1 %v15443_v56  ;;  %v10595_v49 = vsel %vm3215_vm7, %v16799_v29, %v16774_v46  ;;  %v10952_v47 = vsel %vm3684_vm8, %v16793_v45, %v16778_v38  ;;  %v23171_v56 = vld [vmem:[#allocation4_spill] sm:$0xff]  ;;  %v23174_v21 = vld [vmem:[#allocation5_spill] sm:$0xff] }
 0x5af   :  { %15440 = vmatpush1.bf16.msra.mxu0 %v15439_v7  ;;  %15450 = vmatprep.subr.bf16.mxu1 %v15449_v34  ;;  %v16809_v12 = vunpack.i.h.bf16 %v16807_v57  ;;  %v16808_v61 = vunpack.i.l.bf16 %v16807_v57  ;;  %v15445_v62 = vpack.c.bf16 %v10595_v49, %v10594_v54  ;;  %v10953_v27 = vsel %vm3684_vm8, %v16794_v48, %v16779_v19  ;;  %v10911_v19 = vld [vmem:[%s22509_s2 + $0x1f0] sm:$0xff]  ;;  %v23173_v54 = vld [vmem:[#allocation14_spill] sm:$0xff] }
 0x5b0   :  { %10746 = vmatprep.mubr.f32.mxu1 %v22800_v1  ;;  %10675 = vmatprep.mubr.f32.mxu0 %v22800_v1  ;;  %v10954_v59 = vsel %vm3684_vm8, %v16803_v4, %v16793_v45  ;;  %v10955_v43 = vsel %vm3684_vm8, %v16804_v9, %v16794_v48  ;;  %v15459_v60 = vpack.c.bf16 %v10953_v27, %v10952_v47  ;;  %v23178_v27 = vld [vmem:[#allocation16_spill] sm:$0xff] }
 0x5b1   :  { %v10956_v58 = vsel %vm3684_vm8, %v16808_v61, %v16803_v4  ;;  %v10957_v44 = vsel %vm3684_vm8, %v16809_v12, %v16804_v9  ;;  %15446 = vmatprep.subr.bf16.mxu0 %v15445_v62  ;;  %v16812_v52 = vpop.permute.xlu0 %16811  ;;  %14934 = vmatmul.mubr.msk.f32.vlgmr.msra.gmra.mrb[116].mxu1 %vm8199_vm10, %v10559_v39  ;;  %v15453_v13 = vpack.c.bf16 %v10955_v43, %v10954_v59  ;;  %v16817_v53 = vpop.permute.xlu1 %16816  ;;  %v23176_v4 = vld [vmem:[#allocation11_spill] sm:$0xff] }
 0x5b2   :  { %v16814_v6 = vunpack.i.h.bf16 %v16812_v52  ;;  %v16813_v15 = vunpack.i.l.bf16 %v16812_v52  ;;  %14933 = vmatmul.mubr.msk.f32.vlgmr.msra.gmra.mrb[116].mxu0 %vm8199_vm10, %v10559_v39  ;;  %15452 = vmatpush1.bf16.msra.mxu1 %v15451_v63  ;;  %v15455_v37 = vpack.c.bf16 %v10957_v44, %v10956_v58  ;;  %v16819_v33 = vunpack.i.h.bf16 %v16817_v53  ;;  %v23179_v58 = vld [vmem:[#allocation7_spill] sm:$0xff] }
 0x5b3   :  { %15448 = vmatpush1.bf16.msra.mxu0 %v15447_v8  ;;  %15458 = vmatprep.subr.bf16.mxu1 %v15457_v31  ;;  %v16818_v16 = vunpack.i.l.bf16 %v16817_v53  ;;  %v23175_v31 = vld [vmem:[#allocation2_spill] sm:$0xff] }
 0x5b4   :  { %10888 = vmatprep.mubr.f32.mxu1 %v22800_v1  ;;  %15454 = vmatprep.subr.bf16.mxu0 %v15453_v13  ;;  %v10958_v26 = vsel %vm3684_vm8, %v16813_v15, %v16808_v61  ;;  %v10959_v46 = vsel %vm3684_vm8, %v16814_v6, %v16809_v12  ;;  %v10945_v0 = vsel %vm3684_vm8, %v16819_v33, %v16814_v6  ;;  %v23180_v13 = vld [vmem:[#allocation13_spill] sm:$0xff] }
 0x5b5   :  { %v10944_v51 = vsel %vm3684_vm8, %v16818_v16, %v16813_v15  ;;  %v16822_v41 = vpop.permute.xlu0 %16821  ;;  %10817 = vmatprep.mubr.f32.mxu0 %v22800_v1  ;;  %14936 = vmatmul.mubr.msk.f32.vlgmr.msra.gmra.mrb[118].mxu1 %vm8199_vm10, %v10559_v39  ;;  %v15465_v14 = vpack.c.bf16 %v10959_v46, %v10958_v26  ;;  %v23181_v15 = vld [vmem:[#allocation6_spill] sm:$0xff]  ;;  %v23183_v26 = vld [vmem:[#allocation8_spill] sm:$0xff] }
 0x5b6   :  { %v15467_v3 = vpack.c.bf16 %v10945_v0, %v10944_v51  ;;  %v16824_v20 = vunpack.i.h.bf16 %v16822_v41  ;;  %v16823_v25 = vunpack.i.l.bf16 %v16822_v41  ;;  %14935 = vmatmul.mubr.msk.f32.vlgmr.msra.gmra.mrb[118].mxu0 %vm8199_vm10, %v10559_v39  ;;  %15460 = vmatpush1.bf16.msra.mxu1 %v15459_v60  ;;  %v23177_v39 = vld [vmem:[#allocation3_spill] sm:$0xff] }
 0x5b7   :  { %15456 = vmatpush1.bf16.msra.mxu0 %v15455_v37  ;;  %15466 = vmatprep.subr.bf16.mxu1 %v15465_v14  ;;  %v23184_v41 = vld [vmem:[#allocation15_spill] sm:$0xff] }
 0x5b8   :  { %v10948_v38 = vsel %vm3684_vm8, %v16788_v30, %v16823_v25  ;;  %v10949_v55 = vsel %vm3684_vm8, %v16789_v32, %v16824_v20  ;;  %11098 = vmatprep.mubr.f32.mxu1 %v22800_v1  ;;  %11027 = vmatprep.mubr.f32.mxu0 %v22800_v1  ;;  %v10946_v17 = vsel %vm3684_vm8, %v16823_v25, %v16818_v16  ;;  %v23182_v16 = vld [vmem:[#allocation18_spill] sm:$0xff] }
 0x5b9   :  { %v15463_v23 = vpack.c.bf16 %v10949_v55, %v10948_v38  ;;  %14938 = vmatmul.mubr.msk.f32.vlgmr.msra.gmra.mrb[120].mxu1 %vm8199_vm10, %v10911_v19  ;;  %v10947_v36 = vsel %vm3684_vm8, %v16824_v20, %v16819_v33  ;;  %v23186_v38 = vld [vmem:[#allocation20_spill] sm:$0xff] }
 0x5ba   :  { %14937 = vmatmul.mubr.msk.f32.vlgmr.msra.gmra.mrb[120].mxu0 %vm8199_vm10, %v10911_v19  ;;  %15468 = vmatpush1.bf16.msra.mxu1 %v15467_v3  ;;  %v15461_v40 = vpack.c.bf16 %v10947_v36, %v10946_v17  ;;  %v23185_v3 = vld [vmem:[#allocation9_spill] sm:$0xff] }
 0x5bb   :  { %11240 = vmatprep.mubr.f32.mxu1 %v22800_v1  ;;  %11169 = vmatprep.mubr.f32.mxu0 %v22800_v1 }
 0x5bc   :  { %15462 = vmatprep.subr.bf16.mxu0 %v15461_v40  ;;  %v23187_v40 = vld [vmem:[#allocation17_spill] sm:$0xff] }
 0x5bd   :  { %15464 = vmatpush1.bf16.msra.mxu0 %v15463_v23  ;;  %14940 = vmatmul.mubr.msk.f32.vlgmr.msra.gmra.mrb[122].mxu1 %vm8199_vm10, %v10911_v19 }
 0x5be   :  { %11540 = vmatprep.mubr.f32.mxu1 %v22800_v1 }
 0x5c0   :  { %14939 = vmatmul.mubr.msk.f32.vlgmr.msra.gmra.mrb[122].mxu0 %vm8199_vm10, %v10911_v19 }
 0x5c1   :  { %11463 = vmatprep.mubr.f32.mxu0 %v22800_v1 }
 0x62c   :  { %v8340_v32 = vpop.f32.mrb[88].mxu1 }
 0x62d   :  { %v8342_v30 = vpop.f32.mrb[89].mxu1  ;;  %v8489_v22 = vmul.f32 %v8340_v32, %v23170_v18 }
 0x62e   :  { %v8490_v48 = vmul.f32 %v8342_v30, %v23172_v28 }
 0x639   :  { %v8269_v24 = vpop.f32.mrb[88].mxu0 }
 0x63a   :  { %v8271_v42 = vpop.f32.mrb[89].mxu0  ;;  %v8487_v63 = vmul.f32 %v8269_v24, %v23173_v54  ;;  %v23188_v24 = vld [vmem:[#allocation22_spill] sm:$0xff] }
 0x63b   :  { %v8488_v57 = vmul.f32 %v8271_v42, %v23176_v4 }
 0x64d   :  { %v8482_v2 = vpop.f32.mrb[90].mxu1 }
 0x64e   :  { %v8484_v10 = vpop.f32.mrb[91].mxu1  ;;  %v8493_v59 = vmul.f32 %v8482_v2, %v23178_v27 }
 0x64f   :  { %v8411_v29 = vpop.f32.mrb[90].mxu0  ;;  %v8494_v6 = vmul.f32 %v8484_v10, %v23180_v13 }
 0x650   :  { %v8413_v5 = vpop.f32.mrb[91].mxu0  ;;  %v8491_v60 = vmul.f32 %v8411_v29, %v23182_v16  ;;  %v23189_v29 = vld [vmem:[#allocation19_spill] sm:$0xff] }
 0x651   :  { %v8692_v35 = vpop.f32.mrb[92].mxu1  ;;  %v8492_v14 = vmul.f32 %v8413_v5, %v23184_v41 }
 0x652   :  { %v8841_v7 = vmul.f32 %v8692_v35, %v23171_v56  ;;  %v8694_v50 = vpop.f32.mrb[93].mxu1 }
 0x653   :  { %v8621_v45 = vpop.f32.mrb[92].mxu0  ;;  %v8842_v8 = vmul.f32 %v8694_v50, %v23175_v31 }
 0x654   :  { %v8839_v34 = vmul.f32 %v8621_v45, %v23174_v21  ;;  %v8623_v9 = vpop.f32.mrb[93].mxu0  ;;  %v8849_v49 = vadd.f32 %v8841_v7, %v8489_v22  ;;  %v23190_v45 = vld [vmem:[#allocation24_spill] sm:$0xff] }
 0x655   :  { %v8840_v47 = vmul.f32 %v8623_v9, %v23177_v39  ;;  %v8850_v61 = vadd.f32 %v8842_v8, %v8490_v48  ;;  %v23192_v9 = vld [vmem:[#allocation21_spill] sm:$0xff] }
 0x656   :  { %v8847_v12 = vadd.f32 %v8839_v34, %v8487_v63  ;;  %v8834_v62 = vpop.f32.mrb[94].mxu1  ;;  %v23191_v34 = vld [vmem:[#allocation26_spill] sm:$0xff] }
 0x657   :  { %v8848_v43 = vadd.f32 %v8840_v47, %v8488_v57  ;;  %v8845_v44 = vmul.f32 %v8834_v62, %v23179_v58  ;;  %v8836_v52 = vpop.f32.mrb[95].mxu1 }
 0x658   :  { %v8846_v53 = vmul.f32 %v8836_v52, %v23181_v15  ;;  %v8763_v33 = vpop.f32.mrb[94].mxu0 }
 0x659   :  { %v8853_v37 = vadd.f32 %v8845_v44, %v8493_v59  ;;  %v8843_v46 = vmul.f32 %v8763_v33, %v23183_v26  ;;  %v8765_v0 = vpop.f32.mrb[95].mxu0 }
 0x65a   :  { %v8854_v51 = vadd.f32 %v8846_v53, %v8494_v6  ;;  %v8844_v20 = vmul.f32 %v8765_v0, %v23185_v3  ;;  %v9044_v25 = vpop.f32.mrb[96].mxu1  ;;  %v23194_v53 = vld [vmem:[#allocation28_spill] sm:$0xff]  ;;  %v23196_v0 = vld [vmem:[#allocation25_spill] sm:$0xff] }
 0x65b   :  { %v8851_v19 = vadd.f32 %v8843_v46, %v8491_v60  ;;  %v9193_v55 = vmul.f32 %v9044_v25, %v23186_v38  ;;  %v9046_v17 = vpop.f32.mrb[97].mxu1  ;;  %v23195_v60 = vld [vmem:[#allocation30_spill] sm:$0xff]  ;;  %v23197_v25 = vld [vmem:[#allocation27_spill] sm:$0xff] }
 0x65c   :  { %v8852_v23 = vadd.f32 %v8844_v20, %v8492_v14  ;;  %v8973_v36 = vpop.f32.mrb[96].mxu0  ;;  %v9194_v32 = vmul.f32 %v9046_v17, %v23187_v40 }
 0x65d   :  { %v9201_v30 = vadd.f32 %v9193_v55, %v8849_v49  ;;  %v9191_v42 = vmul.f32 %v8973_v36, %v23188_v24  ;;  %v8975_v2 = vpop.f32.mrb[97].mxu0  ;;  %v23193_v49 = vld [vmem:[#allocation23_spill] sm:$0xff] }
 0x65e   :  { %v9202_v10 = vadd.f32 %v9194_v32, %v8850_v61  ;;  %v9192_v35 = vmul.f32 %v8975_v2, %v23189_v29  ;;  %v9186_v5 = vpop.f32.mrb[98].mxu1 }
 0x65f   :  { %v9199_v22 = vadd.f32 %v9191_v42, %v8847_v12  ;;  %v9197_v50 = vmul.f32 %v9186_v5, %v23190_v45  ;;  %v9188_v63 = vpop.f32.mrb[99].mxu1  ;;  %v23198_v42 = vld [vmem:[#allocation32_spill] sm:$0xff] }
 0x660   :  { %v9200_v7 = vadd.f32 %v9192_v35, %v8848_v43  ;;  %v9115_v48 = vpop.f32.mrb[98].mxu0  ;;  %v9198_v57 = vmul.f32 %v9188_v63, %v23192_v9  ;;  %v23199_v35 = vld [vmem:[#allocation33_spill] sm:$0xff] }
 0x661   :  { %v9195_v8 = vmul.f32 %v9115_v48, %v23191_v34  ;;  %v9117_v47 = vpop.f32.mrb[99].mxu0  ;;  %v9205_v62 = vadd.f32 %v9197_v50, %v8853_v37  ;;  %v23200_v50 = vld [vmem:[#allocation29_spill] sm:$0xff] }
 0x662   :  { %v9196_v59 = vmul.f32 %v9117_v47, %v23193_v49  ;;  %v9206_v52 = vadd.f32 %v9198_v57, %v8854_v51 }
 0x663   :  { %v9203_v44 = vadd.f32 %v9195_v8, %v8851_v19  ;;  %v23201_v8 = vld [vmem:[#allocation31_spill] sm:$0xff] }
 0x664   :  { %v9396_v61 = vpop.f32.mrb[100].mxu1  ;;  %v9204_v6 = vadd.f32 %v9196_v59, %v8852_v23  ;;  %v9325_v33 = vpop.f32.mrb[100].mxu0 }
 0x665   :  { %v9545_v12 = vmul.f32 %v9396_v61, %v23194_v53  ;;  %v9398_v43 = vpop.f32.mrb[101].mxu1  ;;  %v9543_v46 = vmul.f32 %v9325_v33, %v23195_v60  ;;  %v9327_v20 = vpop.f32.mrb[101].mxu0 }
 0x666   :  { %v9546_v14 = vmul.f32 %v9398_v43, %v23196_v0  ;;  %v9544_v55 = vmul.f32 %v9327_v20, %v23197_v25 }
 0x667   :  { %v9553_v17 = vadd.f32 %v9545_v12, %v9201_v30  ;;  %v9551_v37 = vadd.f32 %v9543_v46, %v9199_v22 }
 0x668   :  { %v9538_v36 = vpop.f32.mrb[102].mxu1  ;;  %v9554_v32 = vadd.f32 %v9546_v14, %v9202_v10  ;;  %v9552_v23 = vadd.f32 %v9544_v55, %v9200_v7 }
 0x669   :  { %v9549_v19 = vmul.f32 %v9538_v36, %v23198_v42  ;;  %v9467_v51 = vpop.f32.mrb[102].mxu0  ;;  %v9540_v2 = vpop.f32.mrb[103].mxu1 }
 0x66a   :  { %v9547_v5 = vmul.f32 %v9467_v51, %v23199_v35  ;;  %v9550_v48 = vmul.f32 %v9540_v2, %v23200_v50  ;;  %v9469_v63 = vpop.f32.mrb[103].mxu0 }
 0x66b   :  { %v9548_v57 = vmul.f32 %v9469_v63, %v23201_v8  ;;  %v9557_v47 = vadd.f32 %v9549_v19, %v9205_v62  ;;  %v23202_v19 = vld [vmem:[#allocation36_spill] sm:$0xff] }
 0x66c   :  { %v9700_v59 = vpop.f32.mrb[104].mxu1  ;;  %v9555_v61 = vadd.f32 %v9547_v5, %v9203_v44  ;;  %v9558_v33 = vadd.f32 %v9550_v48, %v9206_v52  ;;  %v23203_v5 = vld [vmem:[#allocation38_spill] sm:$0xff] }
 0x66d   :  { %v9849_v30 = vadd.f32 %v9700_v59, %v9553_v17  ;;  %v9629_v12 = vpop.f32.mrb[104].mxu0  ;;  %v9702_v22 = vpop.f32.mrb[105].mxu1  ;;  %v9556_v10 = vadd.f32 %v9548_v57, %v9204_v6  ;;  %v23204_v6 = vld [vmem:[#allocation34_spill] sm:$0xff] }
 0x66e   :  { %v9847_v43 = vadd.f32 %v9629_v12, %v9551_v37  ;;  %v9850_v46 = vadd.f32 %v9702_v22, %v9554_v32  ;;  %v9631_v14 = vpop.f32.mrb[105].mxu0 }
 0x66f   :  { %v9848_v20 = vadd.f32 %v9631_v14, %v9552_v23  ;;  %v23205_v23 = vld [vmem:[#allocation35_spill] sm:$0xff] }
 0x670   :  { %v9842_v7 = vpop.f32.mrb[106].mxu1 }
 0x671   :  { %v9853_v55 = vadd.f32 %v9842_v7, %v9557_v47  ;;  %v9771_v36 = vpop.f32.mrb[106].mxu0  ;;  %v9844_v51 = vpop.f32.mrb[107].mxu1  ;;  %v23207_v7 = vld [vmem:[#allocation42_spill] sm:$0xff] }
 0x672   :  { %v9851_v2 = vadd.f32 %v9771_v36, %v9555_v61  ;;  %v9854_v50 = vadd.f32 %v9844_v51, %v9558_v33  ;;  %v9773_v42 = vpop.f32.mrb[107].mxu0  ;;  %v23206_v33 = vld [vmem:[#allocation40_spill] sm:$0xff]  ;;  %v23208_v51 = vld [vmem:[#allocation37_spill] sm:$0xff] }
 0x673   :  { %v9852_v63 = vadd.f32 %v9773_v42, %v9556_v10 }
 0x674   :  { %v10044_v62 = vpop.f32.mrb[108].mxu1 }
 0x675   :  { %v10193_v44 = vmul.f32 %v10044_v62, %v23202_v19  ;;  %v9973_v52 = vpop.f32.mrb[108].mxu0  ;;  %v10046_v17 = vpop.f32.mrb[109].mxu1 }
 0x676   :  { %v10191_v48 = vmul.f32 %v9973_v52, %v23203_v5  ;;  %v10194_v37 = vmul.f32 %v10046_v17, %v23204_v6  ;;  %v9975_v32 = vpop.f32.mrb[109].mxu0  ;;  %v23209_v5 = vld [vmem:[#allocation39_spill] sm:$0xff] }
 0x677   :  { %v10201_v57 = vadd.f32 %v10193_v44, %v9849_v30  ;;  %v10192_v59 = vmul.f32 %v9975_v32, %v23205_v23 }
 0x678   :  { %v10199_v47 = vadd.f32 %v10191_v48, %v9847_v43  ;;  %v10202_v12 = vadd.f32 %v10194_v37, %v9850_v46  ;;  %v10186_v22 = vpop.f32.mrb[110].mxu1  ;;  %v23210_v43 = vld [vmem:[#allocation44_spill] sm:$0xff]  ;;  %v23211_v37 = vld [vmem:[#allocation46_spill] sm:$0xff] }
 0x679   :  { %v10200_v61 = vadd.f32 %v10192_v59, %v9848_v20  ;;  %v10197_v14 = vmul.f32 %v10186_v22, %v23206_v33  ;;  %v10115_v42 = vpop.f32.mrb[110].mxu0  ;;  %v10188_v10 = vpop.f32.mrb[111].mxu1  ;;  %v23212_v22 = vld [vmem:[#allocation41_spill] sm:$0xff] }
 0x67a   :  { %v10195_v36 = vmul.f32 %v10115_v42, %v23207_v7  ;;  %v10198_v62 = vmul.f32 %v10188_v10, %v23208_v51  ;;  %v10117_v19 = vpop.f32.mrb[111].mxu0  ;;  %v23213_v7 = vld [vmem:[#allocation43_spill] sm:$0xff] }
 0x67b   :  { %v10205_v52 = vadd.f32 %v10197_v14, %v9853_v55  ;;  %v10196_v17 = vmul.f32 %v10117_v19, %v23209_v5 }
 0x67c   :  { %v10203_v6 = vadd.f32 %v10195_v36, %v9851_v2  ;;  %v10206_v30 = vadd.f32 %v10198_v62, %v9854_v50  ;;  %v10396_v44 = vpop.f32.mrb[112].mxu1  ;;  %v23214_v2 = vld [vmem:[#allocation48_spill] sm:$0xff]  ;;  %v23215_v62 = vld [vmem:[#allocation50_spill] sm:$0xff] }
 0x67d   :  { %v10204_v32 = vadd.f32 %v10196_v17, %v9852_v63  ;;  %v10545_v46 = vmul.f32 %v10396_v44, %v23210_v43  ;;  %v10325_v48 = vpop.f32.mrb[112].mxu0  ;;  %v10398_v20 = vpop.f32.mrb[113].mxu1  ;;  %v23216_v44 = vld [vmem:[#allocation45_spill] sm:$0xff] }
 0x67e   :  { %v10543_v59 = vmul.f32 %v10325_v48, %v23211_v37  ;;  %v10546_v33 = vmul.f32 %v10398_v20, %v23212_v22  ;;  %v10327_v23 = vpop.f32.mrb[113].mxu0  ;;  %v23217_v37 = vld [vmem:[#allocation47_spill] sm:$0xff] }
 0x67f   :  { %v10553_v42 = vadd.f32 %v10545_v46, %v10201_v57  ;;  %v10544_v10 = vmul.f32 %v10327_v23, %v23213_v7 }
 0x680   :  { %v10551_v51 = vadd.f32 %v10543_v59, %v10199_v47  ;;  %v10554_v55 = vadd.f32 %v10546_v33, %v10202_v12  ;;  %v10538_v14 = vpop.f32.mrb[114].mxu1  ;;  %v23218_v47 = vld [vmem:[#allocation52_spill] sm:$0xff]  ;;  %v23219_v59 = vld [vmem:[#allocation54_spill] sm:$0xff] }
 0x681   :  { %v10552_v19 = vadd.f32 %v10544_v10, %v10200_v61  ;;  %v10549_v50 = vmul.f32 %v10538_v14, %v23214_v2  ;;  %v10467_v36 = vpop.f32.mrb[114].mxu0  ;;  %v10540_v63 = vpop.f32.mrb[115].mxu1  ;;  %v23220_v14 = vld [vmem:[#allocation49_spill] sm:$0xff] }
 0x682   :  { %v10547_v17 = vmul.f32 %v10467_v36, %v23215_v62  ;;  %v10550_v43 = vmul.f32 %v10540_v63, %v23216_v44  ;;  %v10469_v5 = vpop.f32.mrb[115].mxu0  ;;  %v23221_v62 = vld [vmem:[#allocation51_spill] sm:$0xff] }
 0x683   :  { %v10557_v48 = vadd.f32 %v10549_v50, %v10205_v52  ;;  %v10548_v20 = vmul.f32 %v10469_v5, %v23217_v37 }
 0x684   :  { %v10555_v22 = vadd.f32 %v10547_v17, %v10203_v6  ;;  %v10558_v57 = vadd.f32 %v10550_v43, %v10206_v30  ;;  %v10748_v46 = vpop.f32.mrb[116].mxu1  ;;  %v23222_v6 = vld [vmem:[#allocation56_spill] sm:$0xff]  ;;  %v23223_v17 = vld [vmem:[#allocation57_spill] sm:$0xff] }
 0x685   :  { %v10556_v23 = vadd.f32 %v10548_v20, %v10204_v32  ;;  %v10897_v12 = vmul.f32 %v10748_v46, %v23218_v47  ;;  %v10677_v33 = vpop.f32.mrb[116].mxu0  ;;  %v10750_v61 = vpop.f32.mrb[117].mxu1  ;;  %v23224_v46 = vld [vmem:[#allocation53_spill] sm:$0xff] }
 0x686   :  { %v10895_v10 = vmul.f32 %v10677_v33, %v23219_v59  ;;  %v10898_v2 = vmul.f32 %v10750_v61, %v23220_v14  ;;  %v10679_v7 = vpop.f32.mrb[117].mxu0  ;;  %v23225_v59 = vld [vmem:[#allocation55_spill] sm:$0xff] }
 0x687   :  { %v10905_v36 = vadd.f32 %v10897_v12, %v10553_v42  ;;  %v10896_v63 = vmul.f32 %v10679_v7, %v23221_v62 }
 0x688   :  { %v10903_v44 = vadd.f32 %v10895_v10, %v10551_v51  ;;  %v10906_v52 = vadd.f32 %v10898_v2, %v10554_v55  ;;  %v10890_v50 = vpop.f32.mrb[118].mxu1  ;;  %v16935_v51 = vld [vmem:[%s22508_s1 + $0x50] ss:$0 sm:$0xff]  ;;  %v16936_v10 = vld [vmem:[%s22508_s1 + $0x40] ss:$0 sm:$0xff] }
 0x689   :  { %v10904_v5 = vadd.f32 %v10896_v63, %v10552_v19  ;;  %v10901_v30 = vmul.f32 %v10890_v50, %v23222_v6  ;;  %v10819_v43 = vpop.f32.mrb[118].mxu0  ;;  %v10892_v32 = vpop.f32.mrb[119].mxu1 }
 0x68a   :  { %v10899_v20 = vmul.f32 %v10819_v43, %v23223_v17  ;;  %v10902_v47 = vmul.f32 %v10892_v32, %v23224_v46  ;;  %v10821_v37 = vpop.f32.mrb[119].mxu0  ;;  %v11267_v50 = vpop.permute.xlu1 %11266 }
 0x68b   :  { %v10909_v33 = vadd.f32 %v10901_v30, %v10557_v48  ;;  %v10900_v61 = vmul.f32 %v10821_v37, %v23225_v59  ;;  %v21869_v37 = vld [vmem:[%s22508_s1 + $0x58] ss:$0 sm:$0xff] }
 0x68c   :  { %v10907_v14 = vadd.f32 %v10899_v20, %v10555_v22  ;;  %v10910_v42 = vadd.f32 %v10902_v47, %v10558_v57  ;;  %v11100_v12 = vpop.f32.mrb[120].mxu1 }
 0x68d   :  { %v10908_v7 = vadd.f32 %v10900_v61, %v10556_v23  ;;  %v11249_v55 = vmul.f32 %v16935_v51, %v11100_v12  ;;  %v11029_v19 = vpop.f32.mrb[120].mxu0  ;;  %v11102_v2 = vpop.f32.mrb[121].mxu1  ;;  %v21875_v23 = vld [vmem:[%s22508_s1 + $0x48] ss:$0 sm:$0xff]  ;;  %v16939_v12 = vld [vmem:[%s22508_s1 + $0x70] ss:$0 sm:$0xff] }
 0x68e   :  { %v11247_v63 = vmul.f32 %v16936_v10, %v11029_v19  ;;  %v11250_v22 = vmul.f32 %v21869_v37, %v11102_v2  ;;  %v11031_v48 = vpop.f32.mrb[121].mxu0  ;;  %23226 = vst [vmem:[#allocation95_spill] sm:$0xff] %v21875_v23  ;;  %v16940_v2 = vld [vmem:[%s22508_s1 + $0x78] ss:$0 sm:$0xff] }
 0x68f   :  { %v11257_v57 = vadd.f32 %v11249_v55, %v10905_v36  ;;  %v11248_v47 = vmul.f32 %v21875_v23, %v11031_v48 }
 0x690   :  { %v11255_v30 = vadd.f32 %v11247_v63, %v10903_v44  ;;  %v11258_v43 = vadd.f32 %v11250_v22, %v10906_v52  ;;  %v11242_v32 = vpop.f32.mrb[122].mxu1 }
 0x691   :  { %v11271_v20 = vadd.f32 %v11267_v50, %v11257_v57  ;;  %v11256_v61 = vadd.f32 %v11248_v47, %v10904_v5  ;;  %v11253_v51 = vmul.f32 %v16939_v12, %v11242_v32  ;;  %v11244_v19 = vpop.f32.mrb[123].mxu1  ;;  %v16941_v57 = vld [vmem:[%s22508_s1 + $0x60] ss:$0 sm:$0xff]  ;;  %v21890_v12 = vld [vmem:[%s22508_s1 + $0x68] ss:$0 sm:$0xff] }
 0x692   :  { %v11269_v36 = vadd.f32 %v11267_v50, %v11255_v30  ;;  %v11272_v55 = vadd.f32 %v11267_v50, %v11258_v43  ;;  %v11254_v10 = vmul.f32 %v16940_v2, %v11244_v19 }
 0x693   :  { %v14943_v48 = vmul.f32 -1.442695, %v11271_v20  ;;  %v11270_v23 = vadd.f32 %v11267_v50, %v11256_v61  ;;  %v11261_v44 = vadd.f32 %v11253_v51, %v10909_v33  ;;  %v11171_v52 = vpop.f32.mrb[122].mxu0 }
 0x694   :  { %v14941_v63 = vmul.f32 -1.442695, %v11269_v36  ;;  %v14944_v22 = vmul.f32 -1.442695, %v11272_v55  ;;  %v11262_v5 = vadd.f32 %v11254_v10, %v10910_v42  ;;  %v11251_v47 = vmul.f32 %v16941_v57, %v11171_v52  ;;  %v11173_v32 = vpop.f32.mrb[123].mxu0 }
 0x695   :  { %16825 = vpow2.f32 %v14943_v48  ;;  %v14942_v30 = vmul.f32 -1.442695, %v11270_v23  ;;  %v11275_v43 = vadd.f32 %v11267_v50, %v11261_v44  ;;  %v11252_v33 = vmul.f32 %v21890_v12, %v11173_v32 }
 0x696   :  { %16827 = vpow2.f32 %v14941_v63  ;;  %v11276_v20 = vadd.f32 %v11267_v50, %v11262_v5  ;;  %v11259_v61 = vadd.f32 %v11251_v47, %v10907_v14 }
 0x697   :  { %16829 = vpow2.f32 %v14944_v22  ;;  %v14947_v42 = vmul.f32 -1.442695, %v11275_v43  ;;  %v11260_v51 = vadd.f32 %v11252_v33, %v10908_v7 }
 0x698   :  { %16831 = vpow2.f32 %v14942_v30  ;;  %v14948_v19 = vmul.f32 -1.442695, %v11276_v20  ;;  %v11273_v36 = vadd.f32 %v11267_v50, %v11259_v61 }
 0x699   :  { %v11274_v55 = vadd.f32 %v11267_v50, %v11260_v51 }
 0x69a   :  { %16833 = vpow2.f32 %v14948_v19  ;;  %v14945_v23 = vmul.f32 -1.442695, %v11273_v36 }
 0x69b   :  { %16835 = vpow2.f32 %v14947_v42  ;;  %v14946_v2 = vmul.f32 -1.442695, %v11274_v55 }
 0x69d   :  { %16837 = vpow2.f32 %v14946_v2 }
 0x69e   :  { %16839 = vpow2.f32 %v14945_v23 }
 0x69f   :  { %v16826_v10 = vpop.eup %16825 }
 0x6a0   :  { %v16828_v48 = vpop.eup %16827  ;;  %v11303_v44 = vadd.f32 1.0, %v16826_v10 }
 0x6a1   :  { %v16830_v52 = vpop.eup %16829  ;;  %v11301_v14 = vadd.f32 1.0, %v16828_v48 }
 0x6a2   :  { %v16832_v63 = vpop.eup %16831  ;;  %16841 = vrcp.f32 %v11303_v44  ;;  %v11304_v22 = vadd.f32 1.0, %v16830_v52 }
 0x6a3   :  { %v11302_v7 = vadd.f32 1.0, %v16832_v63 }
 0x6a4   :  { %v16834_v5 = vpop.eup %16833  ;;  %16843 = vrcp.f32 %v11304_v22 }
 0x6a5   :  { %v16836_v57 = vpop.eup %16835  ;;  %16845 = vrcp.f32 %v11301_v14  ;;  %v11308_v50 = vadd.f32 1.0, %v16834_v5 }
 0x6a6   :  { %16847 = vrcp.f32 %v11302_v7  ;;  %v11307_v32 = vadd.f32 1.0, %v16836_v57  ;;  %v11359_v57 = vld [vmem:[%s22509_s2 + $0x208] sm:$0xff] }
 0x6a7   :  { %v16838_v47 = vpop.eup %16837  ;;  %16849 = vrcp.f32 %v11308_v50 }
 0x6a8   :  { %v16840_v30 = vpop.eup %16839  ;;  %v11306_v43 = vadd.f32 1.0, %v16838_v47  ;;  %16851 = vrcp.f32 %v11307_v32 }
 0x6a9   :  { %v11305_v20 = vadd.f32 1.0, %v16840_v30 }
 0x6aa   :  { %16853 = vrcp.f32 %v11306_v43  ;;  %v11360_v43 = vld [vmem:[%s22509_s2 + $0x210] sm:$0xff] }
 0x6ab   :  { %16855 = vrcp.f32 %v11305_v20 }
 0x6ac   :  { %v21893_v33 = vpop.eup %16841 }
 0x6ad   :  { %11365 = vrot.lane.b32.xlu0 %v21893_v33, %s16949_s16 }
 0x6ae   :  { %v21897_v61 = vpop.eup %16843 }
 0x6af   :  { %11367 = vrot.lane.b32.xlu1 %v21897_v61, %s16949_s16  ;;  %v21901_v42 = vpop.eup %16845 }
 0x6b0   :  { %v21905_v51 = vpop.eup %16847 }
 0x6b1   :  { %11361 = vrot.lane.b32.xlu0 %v21901_v42, %s16949_s16  ;;  %v21909_v19 = vpop.eup %16849 }
 0x6b2   :  { %v21913_v36 = vpop.eup %16851 }
 0x6b3   :  { %11363 = vrot.lane.b32.xlu1 %v21905_v51, %s16949_s16 }
 0x6b4   :  { %v21917_v55 = vpop.eup %16853 }
 0x6b5   :  { %11375 = vrot.lane.b32.xlu0 %v21909_v19, %s16949_s16  ;;  %v21921_v23 = vpop.eup %16855 }
 0x6b7   :  { %11373 = vrot.lane.b32.xlu1 %v21913_v36, %s16949_s16 }
 0x6b9   :  { %11371 = vrot.lane.b32.xlu0 %v21917_v55, %s16949_s16 }
 0x6bb   :  { %11369 = vrot.lane.b32.xlu1 %v21921_v23, %s16949_s16 }
 0x6bd   :  { %11327 = vrot.lane.b32.xlu0 %v21901_v42, %s16950_s29 }
 0x6bf   :  { %11329 = vrot.lane.b32.xlu1 %v21905_v51, %s16950_s29 }
 0x6c1   :  { %11331 = vrot.lane.b32.xlu0 %v21893_v33, %s16950_s29 }
 0x6c3   :  { %11333 = vrot.lane.b32.xlu1 %v21897_v61, %s16950_s29 }
 0x6c5   :  { %11341 = vrot.lane.b32.xlu0 %v21909_v19, %s16950_s29 }
 0x6c7   :  { %11335 = vrot.lane.b32.xlu1 %v21921_v23, %s16950_s29 }
 0x6c9   :  { %11337 = vrot.lane.b32.xlu0 %v21917_v55, %s16950_s29 }
 0x6cb   :  { %11339 = vrot.lane.b32.xlu1 %v21913_v36, %s16950_s29 }
 0x6cd   :  { %12023 = vrot.lane.b32.xlu0 %v21901_v42, %s16951_s0 }
 0x6cf   :  { %12025 = vrot.lane.b32.xlu1 %v21905_v51, %s16951_s0 }
 0x6d1   :  { %12027 = vrot.lane.b32.xlu0 %v21893_v33, %s16951_s0 }
 0x6d3   :  { %12029 = vrot.lane.b32.xlu1 %v21897_v61, %s16951_s0 }
 0x6d5   :  { %12037 = vrot.lane.b32.xlu0 %v21909_v19, %s16951_s0 }
 0x6d7   :  { %12031 = vrot.lane.b32.xlu1 %v21921_v23, %s16951_s0 }
 0x6d9   :  { %12033 = vrot.lane.b32.xlu0 %v21917_v55, %s16951_s0 }
 0x6db   :  { %12035 = vrot.lane.b32.xlu1 %v21913_v36, %s16951_s0 }
 0x6dd   :  { %12387 = vrot.lane.b32.xlu0 %v21901_v42, %s16952_s30 }
 0x6df   :  { %12389 = vrot.lane.b32.xlu1 %v21905_v51, %s16952_s30 }
 0x6e1   :  { %12391 = vrot.lane.b32.xlu0 %v21893_v33, %s16952_s30 }
 0x6e3   :  { %12393 = vrot.lane.b32.xlu1 %v21897_v61, %s16952_s30 }
 0x6e5   :  { %12401 = vrot.lane.b32.xlu0 %v21909_v19, %s16952_s30 }
 0x6e7   :  { %12395 = vrot.lane.b32.xlu1 %v21921_v23, %s16952_s30 }
 0x6e9   :  { %12397 = vrot.lane.b32.xlu0 %v21917_v55, %s16952_s30 }
 0x6eb   :  { %12399 = vrot.lane.b32.xlu1 %v21913_v36, %s16952_s30 }
 0x6ed   :  { %13085 = vrot.lane.b32.xlu0 %v21905_v51, %s16953_s4 }
 0x6ef   :  { %13087 = vrot.lane.b32.xlu1 %v21893_v33, %s16953_s4 }
 0x6f1   :  { %13089 = vrot.lane.b32.xlu0 %v21897_v61, %s16953_s4 }
 0x6f3   :  { %13091 = vrot.lane.b32.xlu1 %v21921_v23, %s16953_s4 }
 0x6f5   :  { %13083 = vrot.lane.b32.xlu0 %v21901_v42, %s16953_s4 }
 0x6f7   :  { %13097 = vrot.lane.b32.xlu1 %v21909_v19, %s16953_s4 }
 0x6f9   :  { %13095 = vrot.lane.b32.xlu0 %v21913_v36, %s16953_s4 }
 0x6fb   :  { %13093 = vrot.lane.b32.xlu1 %v21917_v55, %s16953_s4 }
 0x6fd   :  { %13449 = vrot.lane.b32.xlu0 %v21905_v51, %s16954_s5 }
 0x6ff   :  { %13451 = vrot.lane.b32.xlu1 %v21893_v33, %s16954_s5 }
 0x701   :  { %13453 = vrot.lane.b32.xlu0 %v21897_v61, %s16954_s5 }
 0x703   :  { %13455 = vrot.lane.b32.xlu1 %v21921_v23, %s16954_s5 }
 0x705   :  { %13447 = vrot.lane.b32.xlu0 %v21901_v42, %s16954_s5 }
 0x707   :  { %13461 = vrot.lane.b32.xlu1 %v21909_v19, %s16954_s5 }
 0x709   :  { %13459 = vrot.lane.b32.xlu0 %v21913_v36, %s16954_s5 }
 0x70b   :  { %13457 = vrot.lane.b32.xlu1 %v21917_v55, %s16954_s5 }
 0x70d   :  { %13813 = vrot.lane.b32.xlu0 %v21905_v51, %s16955_s6 }
 0x70f   :  { %13815 = vrot.lane.b32.xlu1 %v21893_v33, %s16955_s6 }
 0x711   :  { %13817 = vrot.lane.b32.xlu0 %v21897_v61, %s16955_s6 }
 0x713   :  { %13819 = vrot.lane.b32.xlu1 %v21921_v23, %s16955_s6 }
 0x715   :  { %13811 = vrot.lane.b32.xlu0 %v21901_v42, %s16955_s6 }
 0x717   :  { %13825 = vrot.lane.b32.xlu1 %v21909_v19, %s16955_s6 }
 0x719   :  { %13823 = vrot.lane.b32.xlu0 %v21913_v36, %s16955_s6 }
 0x71b   :  { %13821 = vrot.lane.b32.xlu1 %v21917_v55, %s16955_s6 }
 0x71d   :  { %14177 = vrot.lane.b32.xlu0 %v21905_v51, %s16956_s7 }
 0x71f   :  { %14179 = vrot.lane.b32.xlu1 %v21893_v33, %s16956_s7  ;;  %v11366_v2 = vpop.permute.xlu0 %11365 }
 0x721   :  { %v11368_v10 = vpop.permute.xlu1 %11367  ;;  %14181 = vrot.lane.b32.xlu0 %v21897_v61, %s16956_s7 }
 0x722   :  { %v11381_v48 = vsel %vm129_vm0, %v11366_v2, %v11368_v10 }
 0x723   :  { %v11388_v44 = vmul.f32 %v11381_v48, %v23175_v31  ;;  %14183 = vrot.lane.b32.xlu1 %v21921_v23, %s16956_s7  ;;  %v11362_v52 = vpop.permute.xlu0 %11361 }
 0x725   :  { %11476 = vmatprep.subr.mxu1 %v11388_v44  ;;  %v11364_v63 = vpop.permute.xlu1 %11363  ;;  %14175 = vrot.lane.b32.xlu0 %v21901_v42, %s16956_s7 }
 0x726   :  { %v11382_v14 = vsel %vm129_vm0, %v11364_v63, %v11366_v2  ;;  %v11383_v22 = vsel %vm129_vm0, %v11362_v52, %v11364_v63 }
 0x727   :  { %v11386_v5 = vmul.f32 %v11383_v22, %v23177_v39  ;;  %v11387_v7 = vmul.f32 %v11382_v14, %v23171_v56  ;;  %14185 = vrot.lane.b32.xlu1 %v21917_v55, %s16956_s7  ;;  %v11376_v31 = vpop.permute.xlu0 %11375 }
 0x728   :  { %v11384_v50 = vsel %vm129_vm0, %v11376_v31, %v11362_v52 }
 0x729   :  { %v11385_v47 = vmul.f32 %v11384_v50, %v23174_v21  ;;  %11399 = vmatprep.subr.mxu0 %v11386_v5  ;;  %11477 = vmatpush1.msra.mxu1 %v11387_v7  ;;  %v11374_v32 = vpop.permute.xlu1 %11373  ;;  %v14537_v21 = vld [vmem:[%s22509_s2 + $0x2c0] sm:$0xff] }
 0x72a   :  { %v11377_v39 = vsel %vm129_vm0, %v11374_v32, %v11376_v31  ;;  %14187 = vrot.lane.b32.xlu0 %v21913_v36, %s16956_s7  ;;  %14951 = vmatmul.mubr.msk.f32.vlgmr.msra.gmra.mrb[124].mxu1 %vm178_vm1, %v11359_v57 }
 0x72b   :  { %v11392_v56 = vmul.f32 %v11377_v39, %v23181_v15  ;;  %14189 = vrot.lane.b32.xlu1 %v21909_v19, %s16956_s7  ;;  %11400 = vmatpush1.msra.mxu0 %v11385_v47  ;;  %v11372_v30 = vpop.permute.xlu0 %11371  ;;  %v14538_v15 = vld [vmem:[%s22509_s2 + $0x2c8] sm:$0xff] }
 0x72c   :  { %v11378_v20 = vsel %vm129_vm0, %v11372_v30, %v11374_v32  ;;  %14949 = vmatmul.mubr.msk.f32.vlgmr.msra.gmra.mrb[124].mxu0 %vm178_vm1, %v11359_v57  ;;  %11546 = vmatprep.mubr.f32.mxu1 %v22800_v1  ;;  %v11325_v32 = vld [vmem:[%s22509_s2 + $0x1f8] sm:$0xff] }
 0x72d   :  { %v11391_v2 = vmul.f32 %v11378_v20, %v23179_v58  ;;  %v11370_v48 = vpop.permute.xlu1 %11369  ;;  %11630 = vmatprep.subr.mxu1 %v11392_v56  ;;  %11469 = vmatprep.mubr.f32.mxu0 %v22800_v1 }
 0x72e   :  { %v11379_v44 = vsel %vm129_vm0, %v11370_v48, %v11372_v30  ;;  %v11380_v52 = vsel %vm129_vm0, %v11368_v10, %v11370_v48  ;;  %14541 = vperm.xlu0 %15863, %v14537_v21   ;;  %14952 = vmatmul.mubr.msk.f32.gmra.mrb[126].mxu1 %vm178_vm1, %v11360_v43 }
 0x72f   :  { %v11389_v63 = vmul.f32 %v11380_v52, %v23183_v26  ;;  %v11390_v14 = vmul.f32 %v11379_v44, %v23185_v3  ;;  %14546 = vperm.xlu1 %15864, %v14538_v15   ;;  %11631 = vmatpush1.msra.mxu1 %v11391_v2  ;;  %v11328_v58 = vpop.permute.xlu0 %11327 }
 0x730   :  { %14950 = vmatmul.mubr.msk.f32.gmra.mrb[126].mxu0 %vm178_vm1, %v11360_v43  ;;  %11694 = vmatprep.mubr.f32.mxu1 %v22800_v1 }
 0x731   :  { %v11330_v22 = vpop.permute.xlu1 %11329  ;;  %11553 = vmatprep.subr.mxu0 %v11390_v14  ;;  %11617 = vmatprep.mubr.f32.mxu0 %v22800_v1 }
 0x732   :  { %v11349_v10 = vsel %vm60_vm2, %v11328_v58, %v11330_v22  ;;  %11554 = vmatpush1.msra.mxu0 %v11389_v63  ;;  %14955 = vmatmul.mubr.msk.f32.vlgmr.msra.gmra.mrb[128].mxu1 %vm178_vm1, %v11359_v57 }
 0x733   :  { %v11352_v26 = vmul.f32 %v11349_v10, %v23176_v4  ;;  %v11332_v3 = vpop.permute.xlu0 %11331  ;;  %11700 = vmatprep.mubr.f32.mxu1 %v22800_v1 }
 0x734   :  { %14953 = vmatmul.mubr.msk.f32.vlgmr.msra.gmra.mrb[128].mxu0 %vm178_vm1, %v11359_v57  ;;  %v11348_v5 = vsel %vm60_vm2, %v11330_v22, %v11332_v3 }
 0x735   :  { %v11334_v7 = vpop.permute.xlu1 %11333  ;;  %11713 = vmatprep.subr.mxu0 %v11352_v26  ;;  %11623 = vmatprep.mubr.f32.mxu0 %v22800_v1  ;;  %v11353_v47 = vmul.f32 %v11348_v5, %v23170_v18 }
 0x736   :  { %v11347_v31 = vsel %vm60_vm2, %v11332_v3, %v11334_v7  ;;  %14956 = vmatmul.mubr.msk.f32.gmra.mrb[130].mxu1 %vm178_vm1, %v11360_v43  ;;  %v12021_v3 = vld [vmem:[%s22509_s2 + $0x218] sm:$0xff] }
 0x737   :  { %v11354_v50 = vmul.f32 %v11347_v31, %v23172_v28  ;;  %v11342_v4 = vpop.permute.xlu0 %11341  ;;  %11854 = vmatprep.mubr.f32.mxu1 %v22800_v1 }
 0x738   :  { %v11350_v57 = vsel %vm60_vm2, %v11342_v4, %v11328_v58  ;;  %14954 = vmatmul.mubr.msk.f32.gmra.mrb[130].mxu0 %vm178_vm1, %v11360_v43 }
 0x739   :  { %v11351_v39 = vmul.f32 %v11350_v57, %v23173_v54  ;;  %v11336_v56 = vpop.permute.xlu1 %11335  ;;  %11790 = vmatprep.subr.mxu1 %v11354_v50  ;;  %11777 = vmatprep.mubr.f32.mxu0 %v22800_v1  ;;  %v11326_v54 = vld [vmem:[%s22509_s2 + $0x200] sm:$0xff] }
 0x73a   :  { %11791 = vmatpush1.msra.mxu1 %v11353_v47  ;;  %v11346_v28 = vsel %vm60_vm2, %v11334_v7, %v11336_v56 }
 0x73b   :  { %14959 = vmatmul.mubr.msk.f32.vlgmr.msra.gmra.mrb[124].mxu1 %vm178_vm1, %v11325_v32  ;;  %11714 = vmatpush1.msra.mxu0 %v11351_v39  ;;  %v11338_v18 = vpop.permute.xlu0 %11337  ;;  %v11355_v2 = vmul.f32 %v11346_v28, %v23182_v16 }
 0x73c   :  { %v11345_v30 = vsel %vm60_vm2, %v11336_v56, %v11338_v18  ;;  %14957 = vmatmul.mubr.msk.f32.vlgmr.msra.gmra.mrb[124].mxu0 %vm178_vm1, %v11325_v32  ;;  %11860 = vmatprep.mubr.f32.mxu1 %v22800_v1 }
 0x73d   :  { %v11356_v21 = vmul.f32 %v11345_v30, %v23184_v41  ;;  %v11340_v43 = vpop.permute.xlu1 %11339  ;;  %11783 = vmatprep.mubr.f32.mxu0 %v22800_v1 }
 0x73e   :  { %v11343_v20 = vsel %vm60_vm2, %v11340_v43, %v11342_v4  ;;  %v11344_v15 = vsel %vm60_vm2, %v11338_v18, %v11340_v43 }
 0x73f   :  { %v11357_v48 = vmul.f32 %v11344_v15, %v23178_v27  ;;  %v11358_v44 = vmul.f32 %v11343_v20, %v23180_v13  ;;  %14960 = vmatmul.mubr.msk.f32.gmra.mrb[126].mxu1 %vm178_vm1, %v11326_v54  ;;  %11867 = vmatprep.subr.mxu0 %v11356_v21  ;;  %v12024_v52 = vpop.permute.xlu0 %12023  ;;  %v12385_v15 = vld [vmem:[%s22509_s2 + $0x228] sm:$0xff] }
 0x740   :  { %14958 = vmatmul.mubr.msk.f32.gmra.mrb[126].mxu0 %vm178_vm1, %v11326_v54  ;;  %12008 = vmatprep.mubr.f32.mxu1 %v22800_v1 }
 0x741   :  { %v12026_v41 = vpop.permute.xlu1 %12025  ;;  %11868 = vmatpush1.msra.mxu0 %v11355_v2  ;;  %11944 = vmatprep.subr.mxu1 %v11358_v44 }
 0x742   :  { %v12045_v63 = vsel %vm935_vm3, %v12024_v52, %v12026_v41  ;;  %11945 = vmatpush1.msra.mxu1 %v11357_v48  ;;  %11931 = vmatprep.mubr.f32.mxu0 %v22800_v1 }
 0x743   :  { %v12048_v27 = vmul.f32 %v12045_v63, %v23189_v29  ;;  %14963 = vmatmul.mubr.msk.f32.vlgmr.msra.gmra.mrb[128].mxu1 %vm178_vm1, %v11325_v32  ;;  %v12028_v13 = vpop.permute.xlu0 %12027 }
 0x744   :  { %14961 = vmatmul.mubr.msk.f32.vlgmr.msra.gmra.mrb[128].mxu0 %vm178_vm1, %v11325_v32  ;;  %12014 = vmatprep.mubr.f32.mxu1 %v22800_v1  ;;  %v12044_v16 = vsel %vm935_vm3, %v12026_v41, %v12028_v13 }
 0x745   :  { %v12030_v14 = vpop.permute.xlu1 %12029  ;;  %12061 = vmatprep.subr.mxu0 %v12048_v27  ;;  %11937 = vmatprep.mubr.f32.mxu0 %v22800_v1  ;;  %v12049_v10 = vmul.f32 %v12044_v16, %v23186_v38  ;;  %v23227_v16 = vld [vmem:[#allocation32_spill] sm:$0xff] }
 0x746   :  { %v12043_v58 = vsel %vm935_vm3, %v12028_v13, %v12030_v14 }
 0x747   :  { %v12050_v22 = vmul.f32 %v12043_v58, %v23187_v40  ;;  %14964 = vmatmul.mubr.msk.f32.gmra.mrb[130].mxu1 %vm178_vm1, %v11326_v54  ;;  %v12038_v29 = vpop.permute.xlu0 %12037  ;;  %v23228_v58 = vld [vmem:[#allocation29_spill] sm:$0xff] }
 0x748   :  { %v12046_v26 = vsel %vm935_vm3, %v12038_v29, %v12024_v52  ;;  %14962 = vmatmul.mubr.msk.f32.gmra.mrb[130].mxu0 %vm178_vm1, %v11326_v54  ;;  %12202 = vmatprep.mubr.f32.mxu1 %v22800_v1 }
 0x749   :  { %v12047_v5 = vmul.f32 %v12046_v26, %v23188_v24  ;;  %v12032_v7 = vpop.permute.xlu1 %12031  ;;  %12138 = vmatprep.subr.mxu1 %v12050_v22  ;;  %12125 = vmatprep.mubr.f32.mxu0 %v22800_v1  ;;  %v12022_v24 = vld [vmem:[%s22509_s2 + $0x220] sm:$0xff] }
 0x74a   :  { %12139 = vmatpush1.msra.mxu1 %v12049_v10  ;;  %v12042_v40 = vsel %vm935_vm3, %v12030_v14, %v12032_v7 }
 0x74b   :  { %14967 = vmatmul.mubr.msk.f32.vlgmr.msra.gmra.mrb[124].mxu1 %vm178_vm1, %v12021_v3  ;;  %12062 = vmatpush1.msra.mxu0 %v12047_v5  ;;  %v12034_v38 = vpop.permute.xlu0 %12033  ;;  %v12051_v32 = vmul.f32 %v12042_v40, %v23191_v34  ;;  %v12750_v5 = vld [vmem:[%s22509_s2 + $0x240] sm:$0xff] }
 0x74c   :  { %v12041_v31 = vsel %vm935_vm3, %v12032_v7, %v12034_v38  ;;  %14965 = vmatmul.mubr.msk.f32.vlgmr.msra.gmra.mrb[124].mxu0 %vm178_vm1, %v12021_v3  ;;  %12208 = vmatprep.mubr.f32.mxu1 %v22800_v1  ;;  %v23230_v7 = vld [vmem:[#allocation35_spill] sm:$0xff] }
 0x74d   :  { %v12052_v50 = vmul.f32 %v12041_v31, %v23193_v49  ;;  %v12036_v4 = vpop.permute.xlu1 %12035  ;;  %12131 = vmatprep.mubr.f32.mxu0 %v22800_v1 }
 0x74e   :  { %v12039_v47 = vsel %vm935_vm3, %v12036_v4, %v12038_v29  ;;  %v12040_v57 = vsel %vm935_vm3, %v12034_v38, %v12036_v4 }
 0x74f   :  { %v12053_v39 = vmul.f32 %v12040_v57, %v23190_v45  ;;  %v12054_v56 = vmul.f32 %v12039_v47, %v23192_v9  ;;  %14968 = vmatmul.mubr.msk.f32.gmra.mrb[126].mxu1 %vm178_vm1, %v12022_v24  ;;  %12215 = vmatprep.subr.mxu0 %v12052_v50  ;;  %v12388_v18 = vpop.permute.xlu0 %12387 }
 0x750   :  { %14966 = vmatmul.mubr.msk.f32.gmra.mrb[126].mxu0 %vm178_vm1, %v12022_v24  ;;  %12356 = vmatprep.mubr.f32.mxu1 %v22800_v1 }
 0x751   :  { %v12390_v49 = vpop.permute.xlu1 %12389  ;;  %12216 = vmatpush1.msra.mxu0 %v12051_v32  ;;  %12292 = vmatprep.subr.mxu1 %v12054_v56  ;;  %v23232_v32 = vld [vmem:[#allocation37_spill] sm:$0xff] }
 0x752   :  { %v12409_v28 = vsel %vm1404_vm4, %v12388_v18, %v12390_v49  ;;  %12293 = vmatpush1.msra.mxu1 %v12053_v39  ;;  %12279 = vmatprep.mubr.f32.mxu0 %v22800_v1 }
 0x753   :  { %v12412_v45 = vmul.f32 %v12409_v28, %v23197_v25  ;;  %14971 = vmatmul.mubr.msk.f32.vlgmr.msra.gmra.mrb[128].mxu1 %vm178_vm1, %v12021_v3  ;;  %v12392_v34 = vpop.permute.xlu0 %12391  ;;  %v23234_v28 = vld [vmem:[#allocation39_spill] sm:$0xff] }
 0x754   :  { %14969 = vmatmul.mubr.msk.f32.vlgmr.msra.gmra.mrb[128].mxu0 %vm178_vm1, %v12021_v3  ;;  %12362 = vmatprep.mubr.f32.mxu1 %v22800_v1  ;;  %v12408_v9 = vsel %vm1404_vm4, %v12390_v49, %v12392_v34 }
 0x755   :  { %v12394_v30 = vpop.permute.xlu1 %12393  ;;  %12425 = vmatprep.subr.mxu0 %v12412_v45  ;;  %12285 = vmatprep.mubr.f32.mxu0 %v22800_v1  ;;  %v12413_v43 = vmul.f32 %v12408_v9, %v23194_v53 }
 0x756   :  { %v12407_v54 = vsel %vm1404_vm4, %v12392_v34, %v12394_v30 }
 0x757   :  { %v12414_v21 = vmul.f32 %v12407_v54, %v23196_v0  ;;  %14972 = vmatmul.mubr.msk.f32.gmra.mrb[130].mxu1 %vm178_vm1, %v12022_v24  ;;  %v12402_v25 = vpop.permute.xlu0 %12401 }
 0x758   :  { %v12410_v20 = vsel %vm1404_vm4, %v12402_v25, %v12388_v18  ;;  %14970 = vmatmul.mubr.msk.f32.gmra.mrb[130].mxu0 %vm178_vm1, %v12022_v24  ;;  %12566 = vmatprep.mubr.f32.mxu1 %v22800_v1  ;;  %v23233_v18 = vld [vmem:[#allocation38_spill] sm:$0xff] }
 0x759   :  { %v12411_v2 = vmul.f32 %v12410_v20, %v23195_v60  ;;  %v12396_v48 = vpop.permute.xlu1 %12395  ;;  %12502 = vmatprep.subr.mxu1 %v12414_v21  ;;  %12489 = vmatprep.mubr.f32.mxu0 %v22800_v1  ;;  %v12386_v60 = vld [vmem:[%s22509_s2 + $0x230] sm:$0xff]  ;;  %v13081_v21 = vld [vmem:[%s22509_s2 + $0x248] sm:$0xff] }
 0x75a   :  { %12503 = vmatpush1.msra.mxu1 %v12413_v43  ;;  %v12406_v0 = vsel %vm1404_vm4, %v12394_v30, %v12396_v48  ;;  %v23235_v20 = vld [vmem:[#allocation40_spill] sm:$0xff] }
 0x75b   :  { %14975 = vmatmul.mubr.msk.f32.vlgmr.msra.gmra.mrb[124].mxu1 %vm178_vm1, %v12385_v15  ;;  %12426 = vmatpush1.msra.mxu0 %v12411_v2  ;;  %v12398_v53 = vpop.permute.xlu0 %12397  ;;  %v12415_v13 = vmul.f32 %v12406_v0, %v23199_v35 }
 0x75c   :  { %v12405_v44 = vsel %vm1404_vm4, %v12396_v48, %v12398_v53  ;;  %14973 = vmatmul.mubr.msk.f32.vlgmr.msra.gmra.mrb[124].mxu0 %vm178_vm1, %v12385_v15  ;;  %12572 = vmatprep.mubr.f32.mxu1 %v22800_v1  ;;  %v23236_v48 = vld [vmem:[#allocation41_spill] sm:$0xff] }
 0x75d   :  { %v12416_v52 = vmul.f32 %v12405_v44, %v23201_v8  ;;  %v12400_v41 = vpop.permute.xlu1 %12399  ;;  %12495 = vmatprep.mubr.f32.mxu0 %v22800_v1  ;;  %v23237_v44 = vld [vmem:[#allocation42_spill] sm:$0xff] }
 0x75e   :  { %v12403_v63 = vsel %vm1404_vm4, %v12400_v41, %v12402_v25  ;;  %v12404_v27 = vsel %vm1404_vm4, %v12398_v53, %v12400_v41  ;;  %v23238_v41 = vld [vmem:[#allocation43_spill] sm:$0xff] }
 0x75f   :  { %v12417_v14 = vmul.f32 %v12404_v27, %v23227_v16  ;;  %v12418_v22 = vmul.f32 %v12403_v63, %v23228_v58  ;;  %14976 = vmatmul.mubr.msk.f32.gmra.mrb[126].mxu1 %vm178_vm1, %v12386_v60  ;;  %12579 = vmatprep.subr.mxu0 %v12416_v52  ;;  %v13086_v29 = vpop.permute.xlu0 %13085  ;;  %v13082_v52 = vld [vmem:[%s22509_s2 + $0x250] sm:$0xff] }
 0x760   :  { %14974 = vmatmul.mubr.msk.f32.gmra.mrb[126].mxu0 %vm178_vm1, %v12386_v60  ;;  %12720 = vmatprep.mubr.f32.mxu1 %v22800_v1 }
 0x761   :  { %v13088_v8 = vpop.permute.xlu1 %13087  ;;  %12580 = vmatpush1.msra.mxu0 %v12415_v13  ;;  %12656 = vmatprep.subr.mxu1 %v12418_v22 }
 0x762   :  { %12657 = vmatpush1.msra.mxu1 %v12417_v14  ;;  %12757 = vmatprep.subr.mxu0 %v21905_v51 }
 0x763   :  { %14979 = vmatmul.mubr.msk.f32.vlgmr.msra.gmra.mrb[128].mxu1 %vm178_vm1, %v12385_v15  ;;  %12834 = vmatprep.subr.mxu1 %v21897_v61  ;;  %v13090_v35 = vpop.permute.xlu0 %13089 }
 0x764   :  { %12643 = vmatprep.mubr.f32.mxu0 %v22800_v1  ;;  %12835 = vmatpush1.msra.mxu1 %v21893_v33  ;;  %v12749_v33 = vld [vmem:[%s22509_s2 + $0x238] sm:$0xff]  ;;  %v13103_v31 = vsel %vm2277_vm5, %v13088_v8, %v13090_v35 }
 0x765   :  { %v13092_v10 = vpop.permute.xlu1 %13091  ;;  %14977 = vmatmul.mubr.msk.f32.vlgmr.msra.gmra.mrb[128].mxu0 %vm178_vm1, %v12385_v15  ;;  %12988 = vmatprep.subr.mxu1 %v21909_v19 }
 0x766   :  { %12758 = vmatpush1.msra.mxu0 %v21901_v42  ;;  %12726 = vmatprep.mubr.f32.mxu1 %v22800_v1  ;;  %v13102_v61 = vsel %vm2277_vm5, %v13090_v35, %v13092_v10  ;;  %v13104_v42 = vsel %vm2277_vm5, %v13086_v29, %v13088_v8 }
 0x767   :  { %12911 = vmatprep.subr.mxu0 %v21917_v55  ;;  %14980 = vmatmul.mubr.msk.f32.gmra.mrb[130].mxu1 %vm178_vm1, %v12386_v60  ;;  %v13084_v51 = vpop.permute.xlu0 %13083  ;;  %v23229_v55 = vld [vmem:[#allocation34_spill] sm:$0xff]  ;;  %v13108_v38 = vmul.f32 %v13104_v42, %v23230_v7  ;;  %v23242_v42 = vld [vmem:[#allocation47_spill] sm:$0xff] }
 0x768   :  { %12649 = vmatprep.mubr.f32.mxu0 %v22800_v1  ;;  %12898 = vmatprep.mubr.f32.mxu1 %v22800_v1  ;;  %v13110_v26 = vmul.f32 %v13102_v61, %v23229_v55  ;;  %v13105_v50 = vsel %vm2277_vm5, %v13084_v51, %v13086_v29  ;;  %v23239_v29 = vld [vmem:[#allocation44_spill] sm:$0xff] }
 0x769   :  { %v13098_v19 = vpop.permute.xlu1 %13097  ;;  %14978 = vmatmul.mubr.msk.f32.gmra.mrb[130].mxu0 %vm178_vm1, %v12386_v60  ;;  %v13107_v49 = vmul.f32 %v13105_v50, %v23233_v18 }
 0x76a   :  { %12821 = vmatprep.mubr.f32.mxu0 %v22800_v1  ;;  %v13106_v24 = vsel %vm2277_vm5, %v13098_v19, %v13084_v51 }
 0x76b   :  { %14983 = vmatmul.mubr.msk.f32.vlgmr.msra.gmra.mrb[124].mxu1 %vm178_vm1, %v12749_v33  ;;  %v13096_v3 = vpop.permute.xlu0 %13095  ;;  %v13114_v39 = vmul.f32 %v13106_v24, %v23232_v32 }
 0x76c   :  { %12989 = vmatpush1.msra.mxu1 %v21913_v36  ;;  %12904 = vmatprep.mubr.f32.mxu1 %v22800_v1  ;;  %v13099_v9 = vsel %vm2277_vm5, %v13096_v3, %v13098_v19 }
 0x76d   :  { %13198 = vmatprep.subr.mxu1 %v13110_v26  ;;  %v13094_v40 = vpop.permute.xlu1 %13093  ;;  %14981 = vmatmul.mubr.msk.f32.vlgmr.msra.gmra.mrb[124].mxu0 %vm178_vm1, %v12749_v33  ;;  %v13113_v15 = vmul.f32 %v13099_v9, %v23235_v20  ;;  %v23246_v9 = vld [vmem:[#allocation52_spill] sm:$0xff] }
 0x76e   :  { %12912 = vmatpush1.msra.mxu0 %v21921_v23  ;;  %12827 = vmatprep.mubr.f32.mxu0 %v22800_v1  ;;  %v23231_v23 = vld [vmem:[#allocation36_spill] sm:$0xff]  ;;  %v13100_v57 = vsel %vm2277_vm5, %v13094_v40, %v13096_v3  ;;  %v13101_v25 = vsel %vm2277_vm5, %v13092_v10, %v13094_v40  ;;  %v23240_v10 = vld [vmem:[#allocation45_spill] sm:$0xff] }
 0x76f   :  { %13121 = vmatprep.subr.mxu0 %v13108_v38  ;;  %14984 = vmatmul.mubr.msk.f32.gmra.mrb[126].mxu1 %vm178_vm1, %v12750_v5  ;;  %v13450_v36 = vpop.permute.xlu0 %13449  ;;  %v13109_v47 = vmul.f32 %v13103_v31, %v23231_v23  ;;  %v13112_v45 = vmul.f32 %v13100_v57, %v23234_v28  ;;  %v13111_v60 = vmul.f32 %v13101_v25, %v23237_v44  ;;  %v13445_v38 = vld [vmem:[%s22509_s2 + $0x258] sm:$0xff]  ;;  %v23245_v57 = vld [vmem:[#allocation50_spill] sm:$0xff] }
 0x770   :  { %13052 = vmatprep.mubr.f32.mxu1 %v22800_v1 }
 0x771   :  { %v13452_v4 = vpop.permute.xlu1 %13451  ;;  %14982 = vmatmul.mubr.msk.f32.gmra.mrb[126].mxu0 %vm178_vm1, %v12750_v5 }
 0x772   :  { %12975 = vmatprep.mubr.f32.mxu0 %v22800_v1  ;;  %v13468_v2 = vsel %vm2746_vm6, %v13450_v36, %v13452_v4 }
 0x773   :  { %14987 = vmatmul.mubr.msk.f32.vlgmr.msra.gmra.mrb[128].mxu1 %vm178_vm1, %v12749_v33  ;;  %v13454_v56 = vpop.permute.xlu0 %13453  ;;  %v13472_v63 = vmul.f32 %v13468_v2, %v23238_v41 }
 0x774   :  { %13199 = vmatpush1.msra.mxu1 %v13109_v47  ;;  %13058 = vmatprep.mubr.f32.mxu1 %v22800_v1  ;;  %v13467_v13 = vsel %vm2746_vm6, %v13452_v4, %v13454_v56  ;;  %v23244_v4 = vld [vmem:[#allocation49_spill] sm:$0xff] }
 0x775   :  { %13352 = vmatprep.subr.mxu1 %v13114_v39  ;;  %v13456_v34 = vpop.permute.xlu1 %13455  ;;  %14985 = vmatmul.mubr.msk.f32.vlgmr.msra.gmra.mrb[128].mxu0 %vm178_vm1, %v12749_v33  ;;  %v13473_v8 = vmul.f32 %v13467_v13, %v23239_v29  ;;  %v23241_v33 = vld [vmem:[#allocation46_spill] sm:$0xff]  ;;  %v23248_v13 = vld [vmem:[#allocation95_spill] sm:$0xff] }
 0x776   :  { %13122 = vmatpush1.msra.mxu0 %v13107_v49  ;;  %12981 = vmatprep.mubr.f32.mxu0 %v22800_v1  ;;  %v13466_v54 = vsel %vm2746_vm6, %v13454_v56, %v13456_v34  ;;  %v13446_v39 = vld [vmem:[%s22509_s2 + $0x260] sm:$0xff] }
 0x777   :  { %13275 = vmatprep.subr.mxu0 %v13112_v45  ;;  %14988 = vmatmul.mubr.msk.f32.gmra.mrb[130].mxu1 %vm178_vm1, %v12750_v5  ;;  %v13448_v30 = vpop.permute.xlu0 %13447  ;;  %v13474_v53 = vmul.f32 %v13466_v54, %v23236_v48 }
 0x778   :  { %13262 = vmatprep.mubr.f32.mxu1 %v22800_v1  ;;  %v13469_v58 = vsel %vm2746_vm6, %v13448_v30, %v13450_v36  ;;  %v23243_v36 = vld [vmem:[#allocation48_spill] sm:$0xff] }
 0x779   :  { %v13462_v43 = vpop.permute.xlu1 %13461  ;;  %14986 = vmatmul.mubr.msk.f32.gmra.mrb[130].mxu0 %vm178_vm1, %v12750_v5  ;;  %v13471_v19 = vmul.f32 %v13469_v58, %v23241_v33 }
 0x77a   :  { %13185 = vmatprep.mubr.f32.mxu0 %v22800_v1  ;;  %v13470_v14 = vsel %vm2746_vm6, %v13462_v43, %v13448_v30 }
 0x77b   :  { %14991 = vmatmul.mubr.msk.f32.vlgmr.msra.gmra.mrb[124].mxu1 %vm178_vm1, %v13081_v21  ;;  %v13460_v0 = vpop.permute.xlu0 %13459  ;;  %v13478_v51 = vmul.f32 %v13470_v14, %v23240_v10 }
 0x77c   :  { %13353 = vmatpush1.msra.mxu1 %v13113_v15  ;;  %13268 = vmatprep.mubr.f32.mxu1 %v22800_v1  ;;  %v13463_v3 = vsel %vm2746_vm6, %v13460_v0, %v13462_v43  ;;  %v23247_v43 = vld [vmem:[#allocation54_spill] sm:$0xff] }
 0x77d   :  { %13562 = vmatprep.subr.mxu1 %v13474_v53  ;;  %v13458_v27 = vpop.permute.xlu1 %13457  ;;  %14989 = vmatmul.mubr.msk.f32.vlgmr.msra.gmra.mrb[124].mxu0 %vm178_vm1, %v13081_v21  ;;  %v13477_v24 = vmul.f32 %v13463_v3, %v23243_v36  ;;  %v16947_v3 = vld [vmem:[%s22508_s1 + $0x60] ss:$0 sm:$0xff] }
 0x77e   :  { %13276 = vmatpush1.msra.mxu0 %v13111_v60  ;;  %13191 = vmatprep.mubr.f32.mxu0 %v22800_v1  ;;  %v13464_v35 = vsel %vm2746_vm6, %v13458_v27, %v13460_v0  ;;  %v13465_v40 = vsel %vm2746_vm6, %v13456_v34, %v13458_v27  ;;  %v13810_v27 = vld [vmem:[%s22509_s2 + $0x270] sm:$0xff] }
 0x77f   :  { %13485 = vmatprep.subr.mxu0 %v13472_v63  ;;  %14992 = vmatmul.mubr.msk.f32.gmra.mrb[126].mxu1 %vm178_vm1, %v13082_v52  ;;  %v13814_v16 = vpop.permute.xlu0 %13813  ;;  %v13476_v55 = vmul.f32 %v13464_v35, %v23242_v42  ;;  %v13475_v32 = vmul.f32 %v13465_v40, %v23245_v57  ;;  %v16944_v35 = vld [vmem:[%s22508_s1 + $0x78] ss:$0 sm:$0xff] }
 0x780   :  { %13416 = vmatprep.mubr.f32.mxu1 %v22800_v1  ;;  %v14173_v42 = vld [vmem:[%s22509_s2 + $0x278] sm:$0xff] }
 0x781   :  { %v13816_v22 = vpop.permute.xlu1 %13815  ;;  %14990 = vmatmul.mubr.msk.f32.gmra.mrb[126].mxu0 %vm178_vm1, %v13082_v52 }
 0x782   :  { %13339 = vmatprep.mubr.f32.mxu0 %v22800_v1  ;;  %v13832_v50 = vsel %vm3215_vm7, %v13814_v16, %v13816_v22 }
 0x783   :  { %14995 = vmatmul.mubr.msk.f32.vlgmr.msra.gmra.mrb[128].mxu1 %vm178_vm1, %v13081_v21  ;;  %v13818_v61 = vpop.permute.xlu0 %13817  ;;  %v13836_v56 = vmul.f32 %v13832_v50, %v23221_v62 }
 0x784   :  { %13563 = vmatpush1.msra.mxu1 %v13473_v8  ;;  %13422 = vmatprep.mubr.f32.mxu1 %v22800_v1  ;;  %v13831_v49 = vsel %vm3215_vm7, %v13816_v22, %v13818_v61  ;;  %v16943_v22 = vld [vmem:[%s22508_s1 + $0x50] ss:$0 sm:$0xff] }
 0x785   :  { %13716 = vmatprep.subr.mxu1 %v13478_v51  ;;  %v13820_v26 = vpop.permute.xlu1 %13819  ;;  %14993 = vmatmul.mubr.msk.f32.vlgmr.msra.gmra.mrb[128].mxu0 %vm178_vm1, %v13081_v21  ;;  %v13837_v30 = vmul.f32 %v13831_v49, %v23246_v9  ;;  %v16945_v51 = vld [vmem:[%s22508_s1 + $0x40] ss:$0 sm:$0xff] }
 0x786   :  { %13486 = vmatpush1.msra.mxu0 %v13471_v19  ;;  %13345 = vmatprep.mubr.f32.mxu0 %v22800_v1  ;;  %v13830_v7 = vsel %vm3215_vm7, %v13818_v61, %v13820_v26 }
 0x787   :  { %13639 = vmatprep.subr.mxu0 %v13476_v55  ;;  %14996 = vmatmul.mubr.msk.f32.gmra.mrb[130].mxu1 %vm178_vm1, %v13082_v52  ;;  %v13812_v5 = vpop.permute.xlu0 %13811  ;;  %v13838_v23 = vmul.f32 %v13830_v7, %v23244_v4  ;;  %v16946_v55 = vld [vmem:[%s22508_s1 + $0x70] ss:$0 sm:$0xff] }
 0x788   :  { %13626 = vmatprep.mubr.f32.mxu1 %v22800_v1  ;;  %v13833_v62 = vsel %vm3215_vm7, %v13812_v5, %v13814_v16 }
 0x789   :  { %v13826_v31 = vpop.permute.xlu1 %13825  ;;  %14994 = vmatmul.mubr.msk.f32.gmra.mrb[130].mxu0 %vm178_vm1, %v13082_v52  ;;  %v13835_v20 = vmul.f32 %v13833_v62, %v23247_v43 }
 0x78a   :  { %13549 = vmatprep.mubr.f32.mxu0 %v22800_v1  ;;  %v13834_v45 = vsel %vm3215_vm7, %v13826_v31, %v13812_v5 }
 0x78b   :  { %14999 = vmatmul.mubr.msk.f32.vlgmr.msra.gmra.mrb[124].mxu1 %vm178_vm1, %v13445_v38  ;;  %v13824_v47 = vpop.permute.xlu0 %13823  ;;  %v13842_v21 = vmul.f32 %v13834_v45, %v23224_v46 }
 0x78c   :  { %13717 = vmatpush1.msra.mxu1 %v13477_v24  ;;  %13632 = vmatprep.mubr.f32.mxu1 %v22800_v1  ;;  %v13827_v46 = vsel %vm3215_vm7, %v13824_v47, %v13826_v31 }
 0x78d   :  { %13926 = vmatprep.subr.mxu1 %v13838_v23  ;;  %v13822_v18 = vpop.permute.xlu1 %13821  ;;  %14997 = vmatmul.mubr.msk.f32.vlgmr.msra.gmra.mrb[124].mxu0 %vm178_vm1, %v13445_v38  ;;  %v13841_v60 = vmul.f32 %v13827_v46, %v23222_v6 }
 0x78e   :  { %13640 = vmatpush1.msra.mxu0 %v13475_v32  ;;  %13555 = vmatprep.mubr.f32.mxu0 %v22800_v1  ;;  %v13828_v54 = vsel %vm3215_vm7, %v13822_v18, %v13824_v47  ;;  %v13829_v53 = vsel %vm3215_vm7, %v13820_v26, %v13822_v18 }
 0x78f   :  { %13849 = vmatprep.subr.mxu0 %v13836_v56  ;;  %15000 = vmatmul.mubr.msk.f32.gmra.mrb[126].mxu1 %vm178_vm1, %v13446_v39  ;;  %v14178_v28 = vpop.permute.xlu0 %14177  ;;  %v13840_v15 = vmul.f32 %v13828_v54, %v23225_v59  ;;  %v13809_v59 = vld [vmem:[%s22509_s2 + $0x268] sm:$0xff]  ;;  %v13839_v63 = vmul.f32 %v13829_v53, %v23223_v17 }
 0x790   :  { %13780 = vmatprep.mubr.f32.mxu1 %v22800_v1 }
 0x791   :  { %v14180_v34 = vpop.permute.xlu1 %14179  ;;  %14998 = vmatmul.mubr.msk.f32.gmra.mrb[126].mxu0 %vm178_vm1, %v13446_v39 }
 0x792   :  { %13703 = vmatprep.mubr.f32.mxu0 %v22800_v1  ;;  %v14196_v52 = vsel %vm3684_vm8, %v14178_v28, %v14180_v34 }
 0x793   :  { %15003 = vmatmul.mubr.msk.f32.vlgmr.msra.gmra.mrb[128].mxu1 %vm178_vm1, %v13445_v38  ;;  %v14182_v25 = vpop.permute.xlu0 %14181  ;;  %v14200_v6 = vmul.f32 %v23248_v13, %v14196_v52 }
 0x794   :  { %13927 = vmatpush1.msra.mxu1 %v13837_v30  ;;  %13786 = vmatprep.mubr.f32.mxu1 %v22800_v1 }
 0x795   :  { %14080 = vmatprep.subr.mxu1 %v13842_v21  ;;  %v14184_v2 = vpop.permute.xlu1 %14183  ;;  %15001 = vmatmul.mubr.msk.f32.vlgmr.msra.gmra.mrb[128].mxu0 %vm178_vm1, %v13445_v38 }
 0x796   :  { %13850 = vmatpush1.msra.mxu0 %v13835_v20  ;;  %13709 = vmatprep.mubr.f32.mxu0 %v22800_v1  ;;  %v14194_v48 = vsel %vm3684_vm8, %v14182_v25, %v14184_v2 }
 0x797   :  { %14003 = vmatprep.subr.mxu0 %v13840_v15  ;;  %15004 = vmatmul.mubr.msk.f32.gmra.mrb[130].mxu1 %vm178_vm1, %v13446_v39  ;;  %v14176_v0 = vpop.permute.xlu0 %14175  ;;  %v14202_v41 = vmul.f32 %v21869_v37, %v14194_v48  ;;  %v14195_v37 = vsel %vm3684_vm8, %v14180_v34, %v14182_v25 }
 0x798   :  { %13990 = vmatprep.mubr.f32.mxu1 %v22800_v1  ;;  %v14197_v58 = vsel %vm3684_vm8, %v14176_v0, %v14178_v28  ;;  %v14201_v29 = vmul.f32 %v16943_v22, %v14195_v37 }
 0x799   :  { %v14186_v44 = vpop.permute.xlu1 %14185  ;;  %15002 = vmatmul.mubr.msk.f32.gmra.mrb[130].mxu0 %vm178_vm1, %v13446_v39  ;;  %v14199_v61 = vmul.f32 %v16945_v51, %v14197_v58 }
 0x79a   :  { %13913 = vmatprep.mubr.f32.mxu0 %v22800_v1 }
 0x79b   :  { %15007 = vmatmul.mubr.msk.f32.vlgmr.msra.gmra.mrb[124].mxu1 %vm178_vm1, %v13809_v59 }
 0x79c   :  { %14081 = vmatpush1.msra.mxu1 %v13841_v60  ;;  %13996 = vmatprep.mubr.f32.mxu1 %v22800_v1  ;;  %v14188_v17 = vpop.permute.xlu0 %14187 }
 0x79d   :  { %14290 = vmatprep.subr.mxu1 %v14202_v41  ;;  %v14190_v16 = vpop.permute.xlu1 %14189  ;;  %15005 = vmatmul.mubr.msk.f32.vlgmr.msra.gmra.mrb[124].mxu0 %vm178_vm1, %v13809_v59  ;;  %v14192_v8 = vsel %vm3684_vm8, %v14186_v44, %v14188_v17 }
 0x79e   :  { %14004 = vmatpush1.msra.mxu0 %v13839_v63  ;;  %13919 = vmatprep.mubr.f32.mxu0 %v22800_v1  ;;  %v14198_v14 = vsel %vm3684_vm8, %v14190_v16, %v14176_v0  ;;  %v14204_v33 = vmul.f32 %v21890_v12, %v14192_v8  ;;  %v14191_v19 = vsel %vm3684_vm8, %v14188_v17, %v14190_v16 }
 0x79f   :  { %14213 = vmatprep.subr.mxu0 %v14200_v6  ;;  %15008 = vmatmul.mubr.msk.f32.gmra.mrb[126].mxu1 %vm178_vm1, %v13810_v27  ;;  %v14206_v10 = vmul.f32 %v16944_v35, %v14198_v14  ;;  %v14193_v12 = vsel %vm3684_vm8, %v14184_v2, %v14186_v44  ;;  %v14205_v26 = vmul.f32 %v16946_v55, %v14191_v19 }
 0x7a0   :  { %14144 = vmatprep.mubr.f32.mxu1 %v22800_v1  ;;  %v14203_v5 = vmul.f32 %v16947_v3, %v14193_v12 }
 0x7a1   :  { %15006 = vmatmul.mubr.msk.f32.gmra.mrb[126].mxu0 %vm178_vm1, %v13810_v27 }
 0x7a2   :  { %14067 = vmatprep.mubr.f32.mxu0 %v22800_v1 }
 0x7a3   :  { %15011 = vmatmul.mubr.msk.f32.vlgmr.msra.gmra.mrb[128].mxu1 %vm178_vm1, %v13809_v59 }
 0x7a4   :  { %14291 = vmatpush1.msra.mxu1 %v14201_v29  ;;  %14150 = vmatprep.mubr.f32.mxu1 %v22800_v1 }
 0x7a5   :  { %14444 = vmatprep.subr.mxu1 %v14206_v10  ;;  %15009 = vmatmul.mubr.msk.f32.vlgmr.msra.gmra.mrb[128].mxu0 %vm178_vm1, %v13809_v59 }
 0x7a6   :  { %14214 = vmatpush1.msra.mxu0 %v14199_v61  ;;  %14073 = vmatprep.mubr.f32.mxu0 %v22800_v1 }
 0x7a7   :  { %14367 = vmatprep.subr.mxu0 %v14204_v33  ;;  %15012 = vmatmul.mubr.msk.f32.gmra.mrb[130].mxu1 %vm178_vm1, %v13810_v27 }
 0x7a8   :  { %14354 = vmatprep.mubr.f32.mxu1 %v22800_v1 }
 0x7a9   :  { %15010 = vmatmul.mubr.msk.f32.gmra.mrb[130].mxu0 %vm178_vm1, %v13810_v27 }
 0x7aa   :  { %14277 = vmatprep.mubr.f32.mxu0 %v22800_v1 }
 0x7ab   :  { %15015 = vmatmul.mubr.msk.f32.vlgmr.msra.gmra.mrb[124].mxu1 %vm178_vm1, %v14173_v42 }
 0x7ac   :  { %14445 = vmatpush1.msra.mxu1 %v14205_v26  ;;  %14360 = vmatprep.mubr.f32.mxu1 %v22800_v1 }
 0x7ad   :  { %15013 = vmatmul.mubr.msk.f32.vlgmr.msra.gmra.mrb[124].mxu0 %vm178_vm1, %v14173_v42  ;;  %v14542_v7 = vpop.permute.xlu0 %14541 }
 0x7ae   :  { %14368 = vmatpush1.msra.mxu0 %v14203_v5  ;;  %14283 = vmatprep.mubr.f32.mxu0 %v22800_v1  ;;  %v22449_v47 = vpop.permute.xlu1 %14546 }
 0x7af   :  { %15016 = vmatmul.mubr.msk.f32.gmra.mrb[126].mxu1 %vm178_vm1, %v14174_v11 }
 0x7b0   :  { %14508 = vmatprep.mubr.f32.mxu1 %v22800_v1 }
 0x7b1   :  { %15014 = vmatmul.mubr.msk.f32.gmra.mrb[126].mxu0 %vm178_vm1, %v14174_v11 }
 0x7b2   :  { %14431 = vmatprep.mubr.f32.mxu0 %v22800_v1 }
 0x7b3   :  { %15019 = vmatmul.mubr.msk.f32.vlgmr.msra.gmra.mrb[128].mxu1 %vm178_vm1, %v14173_v42 }
 0x7b4   :  { %14514 = vmatprep.mubr.f32.mxu1 %v22800_v1 }
 0x7b5   :  { %15017 = vmatmul.mubr.msk.f32.vlgmr.msra.gmra.mrb[128].mxu0 %vm178_vm1, %v14173_v42 }
 0x7b6   :  { %14437 = vmatprep.mubr.f32.mxu0 %v22800_v1 }
 0x7b7   :  { %15020 = vmatmul.mubr.msk.f32.gmra.mrb[130].mxu1 %vm178_vm1, %v14174_v11 }
 0x7b9   :  { %15018 = vmatmul.mubr.msk.f32.gmra.mrb[130].mxu0 %vm178_vm1, %v14174_v11 }
 0x87e   :  { %v14356_v38 = vpop.f32.mrb[124].mxu1 }
 0x87f   :  { %v14551_v40 = vadd.f32 %v14542_v7, %v14356_v38  ;;  %v14358_v31 = vpop.f32.mrb[125].mxu1 }
 0x880   :  { %v14552_v36 = vadd.f32 %v14542_v7, %v14358_v31  ;;  %v14279_v24 = vpop.f32.mrb[124].mxu0 }
 0x881   :  { %v15023_v50 = vmul.f32 -1.442695, %v14551_v40  ;;  %v14549_v4 = vadd.f32 %v14542_v7, %v14279_v24  ;;  %v14281_v23 = vpop.f32.mrb[125].mxu0 }
 0x882   :  { %v15024_v57 = vmul.f32 -1.442695, %v14552_v36  ;;  %v14550_v32 = vadd.f32 %v14542_v7, %v14281_v23  ;;  %v14362_v39 = vpop.f32.mrb[126].mxu1 }
 0x883   :  { %16857 = vpow2.f32 %v15023_v50  ;;  %v15021_v1 = vmul.f32 -1.442695, %v14549_v4  ;;  %v14559_v56 = vadd.f32 %v22449_v47, %v14362_v39  ;;  %v14364_v18 = vpop.f32.mrb[127].mxu1 }
 0x884   :  { %16859 = vpow2.f32 %v15024_v57  ;;  %v15022_v49 = vmul.f32 -1.442695, %v14550_v32  ;;  %v14560_v28 = vadd.f32 %v22449_v47, %v14364_v18  ;;  %v14285_v45 = vpop.f32.mrb[126].mxu0 }
 0x885   :  { %16861 = vpow2.f32 %v15021_v1  ;;  %v15031_v62 = vmul.f32 -1.442695, %v14559_v56  ;;  %v14557_v34 = vadd.f32 %v22449_v47, %v14285_v45  ;;  %v14287_v9 = vpop.f32.mrb[127].mxu0 }
 0x886   :  { %16863 = vpow2.f32 %v15022_v49  ;;  %v15032_v30 = vmul.f32 -1.442695, %v14560_v28  ;;  %v14558_v54 = vadd.f32 %v22449_v47, %v14287_v9  ;;  %v14510_v21 = vpop.f32.mrb[128].mxu1 }
 0x887   :  { %16865 = vpow2.f32 %v15031_v62  ;;  %v15029_v25 = vmul.f32 -1.442695, %v14557_v34  ;;  %v14555_v43 = vadd.f32 %v14542_v7, %v14510_v21  ;;  %v14512_v20 = vpop.f32.mrb[129].mxu1 }
 0x888   :  { %16867 = vpow2.f32 %v15032_v30  ;;  %v15030_v15 = vmul.f32 -1.442695, %v14558_v54  ;;  %v14556_v2 = vadd.f32 %v14542_v7, %v14512_v20  ;;  %v14433_v46 = vpop.f32.mrb[128].mxu0 }
 0x889   :  { %16869 = vpow2.f32 %v15029_v25  ;;  %v15027_v48 = vmul.f32 -1.442695, %v14555_v43  ;;  %v14553_v59 = vadd.f32 %v14542_v7, %v14433_v46  ;;  %v14435_v53 = vpop.f32.mrb[129].mxu0 }
 0x88a   :  { %16871 = vpow2.f32 %v15030_v15  ;;  %v15028_v0 = vmul.f32 -1.442695, %v14556_v2  ;;  %v14554_v44 = vadd.f32 %v14542_v7, %v14435_v53  ;;  %v14516_v60 = vpop.f32.mrb[130].mxu1 }
 0x88b   :  { %16873 = vpow2.f32 %v15027_v48  ;;  %v15025_v52 = vmul.f32 -1.442695, %v14553_v59  ;;  %v14563_v41 = vadd.f32 %v22449_v47, %v14516_v60  ;;  %v14518_v63 = vpop.f32.mrb[131].mxu1 }
 0x88c   :  { %16875 = vpow2.f32 %v15028_v0  ;;  %v15026_v27 = vmul.f32 -1.442695, %v14554_v44  ;;  %v14439_v13 = vpop.f32.mrb[130].mxu0  ;;  %v14564_v3 = vadd.f32 %v22449_v47, %v14518_v63 }
 0x88d   :  { %v16858_v6 = vpop.eup %16857  ;;  %16877 = vpow2.f32 %v15025_v52  ;;  %v15035_v16 = vmul.f32 -1.442695, %v14563_v41  ;;  %v14441_v37 = vpop.f32.mrb[131].mxu0  ;;  %v14561_v7 = vadd.f32 %v22449_v47, %v14439_v13 }
 0x88e   :  { %v16860_v17 = vpop.eup %16859  ;;  %v14615_v14 = vadd.f32 1.0, %v16858_v6  ;;  %16879 = vpow2.f32 %v15026_v27  ;;  %v14562_v31 = vadd.f32 %v22449_v47, %v14441_v37  ;;  %v15036_v23 = vmul.f32 -1.442695, %v14564_v3 }
 0x88f   :  { %v16862_v58 = vpop.eup %16861  ;;  %v14616_v22 = vadd.f32 1.0, %v16860_v17  ;;  %16881 = vpow2.f32 %v15035_v16  ;;  %v15033_v39 = vmul.f32 -1.442695, %v14561_v7 }
 0x890   :  { %v16864_v29 = vpop.eup %16863  ;;  %16883 = vrcp.f32 %v14615_v14  ;;  %v14613_v8 = vadd.f32 1.0, %v16862_v58  ;;  %v15034_v56 = vmul.f32 -1.442695, %v14562_v31 }
 0x891   :  { %v16866_v35 = vpop.eup %16865  ;;  %16885 = vrcp.f32 %v14616_v22  ;;  %v14614_v10 = vadd.f32 1.0, %v16864_v29 }
 0x892   :  { %v16868_v51 = vpop.eup %16867  ;;  %16887 = vrcp.f32 %v14613_v8  ;;  %v14623_v61 = vadd.f32 1.0, %v16866_v35 }
 0x893   :  { %v16870_v33 = vpop.eup %16869  ;;  %16889 = vrcp.f32 %v14614_v10  ;;  %v14624_v19 = vadd.f32 1.0, %v16868_v51 }
 0x894   :  { %v16872_v42 = vpop.eup %16871  ;;  %16891 = vrcp.f32 %v14623_v61  ;;  %v14621_v12 = vadd.f32 1.0, %v16870_v33 }
 0x895   :  { %v16874_v55 = vpop.eup %16873  ;;  %16893 = vrcp.f32 %v14624_v19  ;;  %v14622_v26 = vadd.f32 1.0, %v16872_v42 }
 0x896   :  { %v16876_v5 = vpop.eup %16875  ;;  %16895 = vrcp.f32 %v14621_v12  ;;  %v14619_v11 = vadd.f32 1.0, %v16874_v55 }
 0x897   :  { %v16878_v38 = vpop.eup %16877  ;;  %16897 = vrcp.f32 %v14622_v26  ;;  %v14620_v40 = vadd.f32 1.0, %v16876_v5 }
 0x898   :  { %v16880_v36 = vpop.eup %16879  ;;  %16899 = vrcp.f32 %v14619_v11  ;;  %v14617_v24 = vadd.f32 1.0, %v16878_v38 }
 0x899   :  { %v16882_v50 = vpop.eup %16881  ;;  %16901 = vrcp.f32 %v14620_v40  ;;  %v14618_v4 = vadd.f32 1.0, %v16880_v36 }
 0x89a   :  { %v16884_v57 = vpop.eup %16883  ;;  %16903 = vrcp.f32 %v14617_v24  ;;  %v14627_v32 = vadd.f32 1.0, %v16882_v50 }
 0x89b   :  { %v16886_v1 = vpop.eup %16885  ;;  %14663 = vst [vmem:[%s22510_s3 + $0x10] sm:$0xff] %v16884_v57  ;;  %16905 = vrcp.f32 %v14618_v4 }
 0x89c   :  { %v16888_v18 = vpop.eup %16887  ;;  %14664 = vst [vmem:[%s22510_s3 + $0x18] sm:$0xff] %v16886_v1  ;;  %16907 = vrcp.f32 %v14627_v32 }
 0x89d   :  { %v16890_v47 = vpop.eup %16889  ;;  %14661 = vst [vmem:[%s22510_s3] sm:$0xff] %v16888_v18  ;;  %16909 = vpow2.f32 %v15036_v23 }
 0x89e   :  { %v16892_v49 = vpop.eup %16891  ;;  %14662 = vst [vmem:[%s22510_s3 + $0x8] sm:$0xff] %v16890_v47  ;;  %16911 = vpow2.f32 %v15033_v39 }
 0x89f   :  { %v16894_v28 = vpop.eup %16893  ;;  %14671 = vst [vmem:[%s22510_s3 + $0x50] sm:$0xff] %v16892_v49  ;;  %16913 = vpow2.f32 %v15034_v56 }
 0x8a0   :  { %v16896_v45 = vpop.eup %16895  ;;  %14672 = vst [vmem:[%s22510_s3 + $0x58] sm:$0xff] %v16894_v28 }
 0x8a1   :  { %v16898_v62 = vpop.eup %16897  ;;  %14669 = vst [vmem:[%s22510_s3 + $0x40] sm:$0xff] %v16896_v45 }
 0x8a2   :  { %v16900_v34 = vpop.eup %16899  ;;  %14670 = vst [vmem:[%s22510_s3 + $0x48] sm:$0xff] %v16898_v62 }
 0x8a3   :  { %v16902_v9 = vpop.eup %16901  ;;  %14667 = vst [vmem:[%s22510_s3 + $0x30] sm:$0xff] %v16900_v34 }
 0x8a4   :  { %v16904_v30 = vpop.eup %16903  ;;  %14668 = vst [vmem:[%s22510_s3 + $0x38] sm:$0xff] %v16902_v9 }
 0x8a5   :  { %v16906_v54 = vpop.eup %16905  ;;  %14665 = vst [vmem:[%s22510_s3 + $0x20] sm:$0xff] %v16904_v30 }
 0x8a6   :  { %v16908_v21 = vpop.eup %16907  ;;  %14666 = vst [vmem:[%s22510_s3 + $0x28] sm:$0xff] %v16906_v54 }
 0x8a7   :  { %v16910_v25 = vpop.eup %16909  ;;  %14675 = vst [vmem:[%s22510_s3 + $0x70] sm:$0xff] %v16908_v21 }
 0x8a8   :  { %v16912_v43 = vpop.eup %16911  ;;  %v14628_v20 = vadd.f32 1.0, %v16910_v25 }
 0x8a9   :  { %v16914_v15 = vpop.eup %16913  ;;  %v14625_v2 = vadd.f32 1.0, %v16912_v43 }
 0x8aa   :  { %16915 = vrcp.f32 %v14628_v20  ;;  %v14626_v46 = vadd.f32 1.0, %v16914_v15 }
 0x8ab   :  { %16917 = vrcp.f32 %v14625_v2 }
 0x8ac   :  { %16919 = vrcp.f32 %v14626_v46 }
 0x8b4   :  { %v16916_v48 = vpop.eup %16915 }
 0x8b5   :  { %v16918_v59 = vpop.eup %16917  ;;  %14676 = vst [vmem:[%s22510_s3 + $0x78] sm:$0xff] %v16916_v48 }
 0x8b6   :  { %v16920_v53 = vpop.eup %16919  ;;  %14673 = vst [vmem:[%s22510_s3 + $0x60] sm:$0xff] %v16918_v59 }
 0x8b7   :  { %14674 = vst [vmem:[%s22510_s3 + $0x68] sm:$0xff] %v16920_v53 }

</bundles_post_ra>
